<compile_context>
chip_gen: v6e
topology: v6e:2x2x1
jax: 0.10.0
libtpu: 0.0.40
codegen_flags: <defaults>
</compile_context>

<pallas_src>
import functools

import jax
import jax.numpy as jnp
from jax.experimental import pallas as pl
from jax.experimental.pallas import tpu as pltpu


def _attention_kernel(x_ref, wqkv_ref, bqkv_ref, wproj_ref, bproj_ref, o_ref,
                      attn_out_ref, *, num_heads: int, scale: float,
                      tokens: int, matmul_dtype):
    # x_ref:        (Gb, N*C)   lane-dense block of Gb windows
    # wqkv_ref:     (C, 3C)     qkv weight (bf16, resident across grid)
    # bqkv_ref:     (1, 3C)     qkv bias (f32)
    # wproj_ref:    (C, C)      output projection weight (bf16, resident)
    # bproj_ref:    (1, C)      output projection bias (f32)
    # o_ref:        (Gb, N*C)   lane-dense output block
    # attn_out_ref: (Gb*N, C)   f32 VMEM scratch for per-head attention output
    Gb, NC = x_ref.shape
    N = tokens
    C = NC // N
    H = num_heads
    D = C // H
    R = Gb * N
    mdt = matmul_dtype

    # ---- lane-dense load -> token rows (row r = token r // Gb of window r % Gb)
    x_slab = x_ref[...]                                            # (Gb, N*C)
    x_tok = jnp.concatenate(
        [x_slab[:, n * C:(n + 1) * C] for n in range(N)], axis=0)  # (R, C)

    # ---- QKV projection: one MXU matmul over the whole step ----------------
    qkv = jnp.dot(x_tok.astype(mdt), wqkv_ref[...],
                  preferred_element_type=jnp.float32)              # (R, 3C) f32
    qkv = qkv + bqkv_ref[...]                                      # f32 bias

    # ---- block-diagonal "same window" mask, shared by all heads ------------
    rows = jax.lax.broadcasted_iota(jnp.int32, (R, R), 0)
    cols = jax.lax.broadcasted_iota(jnp.int32, (R, R), 1)
    mask = jnp.where((rows % Gb) == (cols % Gb), 0.0,
                     -1e30).astype(jnp.float32)                    # (R, R)

    # ---- per-head attention: 2 large masked matmuls per head ---------------
    for h in range(H):                                             # static unroll
        q_h = (qkv[:, h * D:(h + 1) * D] * scale).astype(mdt)          # (R, D)
        k_h = qkv[:, C + h * D:C + (h + 1) * D].astype(mdt)            # (R, D)
        v_h = qkv[:, 2 * C + h * D:2 * C + (h + 1) * D].astype(mdt)    # (R, D)

        s = jax.lax.dot_general(q_h, k_h, (((1,), (1,)), ((), ())),
                                preferred_element_type=jnp.float32)    # (R, R)
        s = s + mask
        m = jnp.max(s, axis=-1, keepdims=True)
        p = jnp.exp(s - m)                              # f32; masked entries -> 0
        inv = pl.reciprocal(jnp.sum(p, axis=-1, keepdims=True), approx=True)
        attn = (p * inv).astype(mdt)

        o_h = jnp.dot(attn, v_h, preferred_element_type=jnp.float32)   # (R, D)
        attn_out_ref[:, h * D:(h + 1) * D] = o_h        # static lane-slice write

    # ---- output projection ---------------------------------------------------
    out = attn_out_ref[...].astype(mdt)                               # (R, C)
    y = jnp.dot(out, wproj_ref[...],
                preferred_element_type=jnp.float32)                   # (R, C)
    y = y + bproj_ref[...]

    # ---- token rows -> lane-dense (Gb, N*C) block store ----------------------
    y_win = jnp.concatenate(
        [y[n * Gb:(n + 1) * Gb, :] for n in range(N)], axis=1)        # (Gb, N*C)
    o_ref[...] = y_win.astype(o_ref.dtype)


def _pick_block_windows(B_: int, N: int, C: int, max_rows: int = 256) -> int:
    """Windows per grid step.

    Prefer a single grid step (v5e/v6e have one TensorCore; extra steps only
    add per-step pipeline overhead).  Only split when the per-step row count
    exceeds `max_rows` (bounds the O(R^2) masked-score work), and only into
    blocks satisfying the (8, 128) BlockSpec rule for (Gb, N*C) blocks; fall
    back to a single full block otherwise.
    """
    if B_ * N <= max_rows:
        return B_
    if (N * C) % 128 == 0:
        cands = [g for g in range(8, B_, 8) if B_ % g == 0 and g * N <= max_rows]
        if cands:
            return max(cands)
    return B_


def attention_local(x, w_qkv, b_qkv, w_proj, b_proj, *, num_heads: int,
                    qk_scale=None, max_rows: int = 256,
                    matmul_dtype=jnp.bfloat16):
    """Local window attention forward: x (B_, N, C) -> (B_, N, C)."""
    B_, N, C = x.shape
    assert C % num_heads == 0, "C must be divisible by num_heads"
    head_dim = C // num_heads
    scale = float(qk_scale) if qk_scale is not None else head_dim ** (-0.5)

    Gb = _pick_block_windows(B_, N, C, max_rows)
    grid = (B_ // Gb,)
    R = Gb * N

    # Lane-dense I/O: (B_, N*C) rows instead of (B_, N, 32)-tiled blocks.
    x2 = x.reshape(B_, N * C)
    # bf16 MXU operands (f32 accumulation inside the kernel); f32 biases.
    w_qkv_c = w_qkv.astype(matmul_dtype)
    w_proj_c = w_proj.astype(matmul_dtype)
    b_qkv2 = b_qkv.reshape(1, 3 * C).astype(jnp.float32)
    b_proj2 = b_proj.reshape(1, C).astype(jnp.float32)

    kernel = functools.partial(_attention_kernel, num_heads=num_heads,
                               scale=scale, tokens=N, matmul_dtype=matmul_dtype)

    wbytes = jnp.dtype(matmul_dtype).itemsize
    xbytes = x.dtype.itemsize
    cost = pl.CostEstimate(
        flops=(2 * B_ * N * C * 3 * C                      # qkv projection
               + 4 * B_ * num_heads * N * N * head_dim     # scores + PV
               + 2 * B_ * N * C * C),                      # output projection
        transcendentals=B_ * num_heads * N * N,
        bytes_accessed=(2 * B_ * N * C * xbytes
                        + (3 * C * C + C * C) * wbytes
                        + 4 * (3 * C + C)),
    )

    out2 = pl.pallas_call(
        kernel,
        out_shape=jax.ShapeDtypeStruct((B_, N * C), x.dtype),
        grid_spec=pltpu.PrefetchScalarGridSpec(
            num_scalar_prefetch=0,
            grid=grid,
            in_specs=[
                pl.BlockSpec((Gb, N * C), lambda b: (b, 0)),   # x (lane-dense)
                pl.BlockSpec((C, 3 * C), lambda b: (0, 0)),    # w_qkv (resident)
                pl.BlockSpec((1, 3 * C), lambda b: (0, 0)),    # b_qkv
                pl.BlockSpec((C, C), lambda b: (0, 0)),        # w_proj (resident)
                pl.BlockSpec((1, C), lambda b: (0, 0)),        # b_proj
            ],
            out_specs=pl.BlockSpec((Gb, N * C), lambda b: (b, 0)),
            scratch_shapes=[pltpu.VMEM((R, C), jnp.float32)],
        ),
        compiler_params=pltpu.CompilerParams(
            dimension_semantics=("parallel",),
            # Per-step footprint (double-buffered lane-dense in/out blocks,
            # resident weights, (R,R) f32 score intermediates) is ~1-2 MiB:
            # safe within v5e/v6e (128 MiB) and v7x (64 MiB physical / 32 MiB
            # scoped default).
            vmem_limit_bytes=32 * 1024 * 1024,
        ),
        cost_estimate=cost,
    )(x2, w_qkv_c, b_qkv2, w_proj_c, b_proj2)

    return out2.reshape(B_, N, C)


def attention_local_ref(x, w_qkv, b_qkv, w_proj, b_proj, *, num_heads: int,
                        qk_scale=None, matmul_dtype=jnp.float32):
    """Pure-JAX reference mirroring the PyTorch forward (local path).

    matmul_dtype=float32 reproduces the module's f32 semantics;
    matmul_dtype=bfloat16 mirrors the kernel's MXU-operand rounding.
    """
    B_, N, C = x.shape
    H = num_heads
    D = C // H
    scale = qk_scale if qk_scale is not None else D ** (-0.5)
    mdt = matmul_dtype
    f32 = jnp.float32

    qkv = jnp.dot(x.astype(mdt), w_qkv.astype(mdt),
                  preferred_element_type=f32) + b_qkv.astype(f32)
    qkv = qkv.reshape(B_, N, 3, H, D).transpose(2, 0, 3, 1, 4)
    q, k, v = qkv[0], qkv[1], qkv[2]                      # (B_, H, N, D) f32
    q = q * scale
    s = jnp.einsum('bhqd,bhkd->bhqk', q.astype(mdt), k.astype(mdt),
                   preferred_element_type=f32)
    attn = jax.nn.softmax(s, axis=-1)
    out = jnp.einsum('bhqk,bhkd->bhqd', attn.astype(mdt), v.astype(mdt),
                     preferred_element_type=f32)          # (B_, H, N, D)
    out = out.transpose(0, 2, 1, 3).reshape(B_, N, C)
    return jnp.dot(out.astype(mdt), w_proj.astype(mdt),
                   preferred_element_type=f32) + b_proj.astype(f32)


if __name__ == "__main__":
    # Shapes consistent with a small hvit local-attention stage:
    # B_=32 windows, N=8 tokens per window, C=32 channels, 4 heads (head_dim=8).
    B_, N, C = 32, 8, 32
    num_heads = 4

    key = jax.random.PRNGKey(0)
    kx, kw1, kb1, kw2, kb2 = jax.random.split(key, 5)

    x = jax.random.normal(kx, (B_, N, C), dtype=jnp.float32)

    # Deterministic parameter init (uniform, roughly nn.Linear scale).
    lim = 1.0 / (C ** 0.5)
    w_qkv = jax.random.uniform(kw1, (C, 3 * C), minval=-lim, maxval=lim,
                               dtype=jnp.float32)
    b_qkv = jax.random.uniform(kb1, (3 * C,), minval=-lim, maxval=lim,
                               dtype=jnp.float32)
    w_proj = jax.random.uniform(kw2, (C, C), minval=-lim, maxval=lim,
                                dtype=jnp.float32)
    b_proj = jax.random.uniform(kb2, (C,), minval=-lim, maxval=lim,
                                dtype=jnp.float32)

    out = attention_local(x, w_qkv, b_qkv, w_proj, b_proj, num_heads=num_heads)
    out = jax.block_until_ready(out)
    assert out.shape == (B_, N, C)

    # (1) Tight check vs a reference with matching bf16-operand numerics
    #     (residual differences: approx reciprocal, reduction order).
    ref_bf16 = attention_local_ref(x, w_qkv, b_qkv, w_proj, b_proj,
                                   num_heads=num_heads,
                                   matmul_dtype=jnp.bfloat16)
    err_bf16 = float(jnp.max(jnp.abs(out - ref_bf16)))
    assert jnp.allclose(out, ref_bf16, atol=1e-2, rtol=1e-2), (
        f"mismatch vs bf16-matched reference (max abs err {err_bf16})")

    # (2) Semantic check vs the exact f32 module reference; tolerance covers
    #     the bf16 MXU-operand rounding budget.
    ref_f32 = attention_local_ref(x, w_qkv, b_qkv, w_proj, b_proj,
                                  num_heads=num_heads,
                                  matmul_dtype=jnp.float32)
    err_f32 = float(jnp.max(jnp.abs(out - ref_f32)))
    assert jnp.allclose(out, ref_f32, atol=4e-2, rtol=4e-2), (
        f"mismatch vs f32 reference (max abs err {err_f32})")

    # TODO(synk): 'global' attention_type branch (_process_global_query with
    # q_ms repeat/remainder fill) is not implemented; attn_drop / proj_drop are
    # rate 0.0 here (identity) and are omitted.
    print("KERNEL_OK")
</pallas_src>

<mosaic_0001>
module attributes {stable_mosaic.version = 11 : i64} {
  func.func @_attention_kernel(%arg0: i32, %arg1: memref<32x256xf32, #tpu.memory_space<vmem>>, %arg2: memref<32x96xbf16, #tpu.memory_space<vmem>>, %arg3: memref<1x96xf32, #tpu.memory_space<vmem>>, %arg4: memref<32x32xbf16, #tpu.memory_space<vmem>>, %arg5: memref<1x32xf32, #tpu.memory_space<vmem>>, %arg6: memref<32x256xf32, #tpu.memory_space<vmem>>, %arg7: memref<256x32xf32, #tpu.memory_space<vmem>>) attributes {dimension_semantics = [#tpu.dimension_semantics<parallel>], iteration_bounds = array<i64: 1>, scalar_prefetch = 0 : i64, scratch_operands = 1 : i64, tpu.core_type = #tpu.core_type<tc>, window_params = [{transform_indices = @transform_0, window_bounds = array<i64: 32, 256>}, {pipeline_mode = #tpu.pipeline_mode<synchronous>, transform_indices = @transform_1, window_bounds = array<i64: 32, 96>}, {pipeline_mode = #tpu.pipeline_mode<synchronous>, transform_indices = @transform_2, window_bounds = array<i64: 1, 96>}, {pipeline_mode = #tpu.pipeline_mode<synchronous>, transform_indices = @transform_3, window_bounds = array<i64: 32, 32>}, {pipeline_mode = #tpu.pipeline_mode<synchronous>, transform_indices = @transform_4, window_bounds = array<i64: 1, 32>}, {transform_indices = @transform_5, window_bounds = array<i64: 32, 256>}]} {
    %c0 = arith.constant 0 : index
    %c0_0 = arith.constant 0 : index
    %0 = vector.load %arg1[%c0, %c0_0] : memref<32x256xf32, #tpu.memory_space<vmem>>, vector<32x256xf32>
    %1 = vector.extract_strided_slice %0 {offsets = [0, 0], sizes = [32, 32], strides = [1, 1]} : vector<32x256xf32> to vector<32x32xf32>
    %2 = vector.extract_strided_slice %0 {offsets = [0, 32], sizes = [32, 32], strides = [1, 1]} : vector<32x256xf32> to vector<32x32xf32>
    %3 = vector.extract_strided_slice %0 {offsets = [0, 64], sizes = [32, 32], strides = [1, 1]} : vector<32x256xf32> to vector<32x32xf32>
    %4 = vector.extract_strided_slice %0 {offsets = [0, 96], sizes = [32, 32], strides = [1, 1]} : vector<32x256xf32> to vector<32x32xf32>
    %5 = vector.extract_strided_slice %0 {offsets = [0, 128], sizes = [32, 32], strides = [1, 1]} : vector<32x256xf32> to vector<32x32xf32>
    %6 = vector.extract_strided_slice %0 {offsets = [0, 160], sizes = [32, 32], strides = [1, 1]} : vector<32x256xf32> to vector<32x32xf32>
    %7 = vector.extract_strided_slice %0 {offsets = [0, 192], sizes = [32, 32], strides = [1, 1]} : vector<32x256xf32> to vector<32x32xf32>
    %8 = vector.extract_strided_slice %0 {offsets = [0, 224], sizes = [32, 32], strides = [1, 1]} : vector<32x256xf32> to vector<32x32xf32>
    %9 = tpu.concatenate %1, %2, %3, %4, %5, %6, %7, %8 in 0 : vector<32x32xf32>, vector<32x32xf32>, vector<32x32xf32>, vector<32x32xf32>, vector<32x32xf32>, vector<32x32xf32>, vector<32x32xf32>, vector<32x32xf32> -> vector<256x32xf32>
    %10 = arith.truncf %9 : vector<256x32xf32> to vector<256x32xbf16>
    %c0_1 = arith.constant 0 : index
    %c0_2 = arith.constant 0 : index
    %11 = vector.load %arg2[%c0_1, %c0_2] : memref<32x96xbf16, #tpu.memory_space<vmem>>, vector<32x96xbf16>
    %cst = arith.constant dense<0.000000e+00> : vector<256x96xf32>
    %12 = tpu.matmul %10, %11, %cst {dimension_numbers = #tpu.dot_dimension_numbers<[1], [0], [0], [1], [0, 0, 1, 1], [], []>} : vector<256x32xbf16>, vector<32x96xbf16>, vector<256x96xf32> -> vector<256x96xf32>
    %c0_3 = arith.constant 0 : index
    %c0_4 = arith.constant 0 : index
    %13 = vector.load %arg3[%c0_3, %c0_4] : memref<1x96xf32, #tpu.memory_space<vmem>>, vector<1x96xf32>
    %14 = vector.broadcast %13 : vector<1x96xf32> to vector<256x96xf32>
    %15 = arith.addf %12, %14 : vector<256x96xf32>
    %16 = tpu.iota {dimensions = array<i32: 0>} : vector<256x256xi32>
    %17 = tpu.iota {dimensions = array<i32: 1>} : vector<256x256xi32>
    %c32_i32 = arith.constant 32 : i32
    %c0_i32 = arith.constant 0 : i32
    %18 = arith.cmpi eq, %c32_i32, %c0_i32 : i32
    %c1_i32 = arith.constant 1 : i32
    %19 = arith.select %18, %c1_i32, %c32_i32 : i32
    %20 = vector.broadcast %19 : i32 to vector<256x256xi32>
    %21 = arith.remsi %16, %20 : vector<256x256xi32>
    %c0_i32_5 = arith.constant 0 : i32
    %22 = vector.broadcast %c0_i32_5 : i32 to vector<256x256xi32>
    %23 = arith.cmpi ne, %21, %22 : vector<256x256xi32>
    %c0_i32_6 = arith.constant 0 : i32
    %24 = vector.broadcast %c0_i32_6 : i32 to vector<256x256xi32>
    %25 = arith.cmpi slt, %21, %24 : vector<256x256xi32>
    %c0_i32_7 = arith.constant 0 : i32
    %26 = arith.cmpi slt, %19, %c0_i32_7 : i32
    %27 = vector.broadcast %26 : i1 to vector<256x256xi1>
    %28 = vector.broadcast %27 : vector<256x256xi1> to vector<256x256xi1>
    %29 = arith.xori %25, %28 : vector<256x256xi1>
    %30 = arith.andi %29, %23 : vector<256x256xi1>
    %31 = vector.broadcast %19 : i32 to vector<256x256xi32>
    %32 = arith.addi %21, %31 : vector<256x256xi32>
    %33 = arith.select %30, %32, %21 : vector<256x256xi1>, vector<256x256xi32>
    %c32_i32_8 = arith.constant 32 : i32
    %c0_i32_9 = arith.constant 0 : i32
    %34 = arith.cmpi eq, %c32_i32_8, %c0_i32_9 : i32
    %c1_i32_10 = arith.constant 1 : i32
    %35 = arith.select %34, %c1_i32_10, %c32_i32_8 : i32
    %36 = vector.broadcast %35 : i32 to vector<256x256xi32>
    %37 = arith.remsi %17, %36 : vector<256x256xi32>
    %c0_i32_11 = arith.constant 0 : i32
    %38 = vector.broadcast %c0_i32_11 : i32 to vector<256x256xi32>
    %39 = arith.cmpi ne, %37, %38 : vector<256x256xi32>
    %c0_i32_12 = arith.constant 0 : i32
    %40 = vector.broadcast %c0_i32_12 : i32 to vector<256x256xi32>
    %41 = arith.cmpi slt, %37, %40 : vector<256x256xi32>
    %c0_i32_13 = arith.constant 0 : i32
    %42 = arith.cmpi slt, %35, %c0_i32_13 : i32
    %43 = vector.broadcast %42 : i1 to vector<256x256xi1>
    %44 = vector.broadcast %43 : vector<256x256xi1> to vector<256x256xi1>
    %45 = arith.xori %41, %44 : vector<256x256xi1>
    %46 = arith.andi %45, %39 : vector<256x256xi1>
    %47 = vector.broadcast %35 : i32 to vector<256x256xi32>
    %48 = arith.addi %37, %47 : vector<256x256xi32>
    %49 = arith.select %46, %48, %37 : vector<256x256xi1>, vector<256x256xi32>
    %50 = arith.cmpi eq, %33, %49 : vector<256x256xi32>
    %cst_14 = arith.constant 0.000000e+00 : f32
    %cst_15 = arith.constant -1.000000e+30 : f32
    %51 = vector.broadcast %cst_14 : f32 to vector<256x256xf32>
    %52 = vector.broadcast %cst_15 : f32 to vector<256x256xf32>
    %53 = arith.select %50, %51, %52 : vector<256x256xi1>, vector<256x256xf32>
    %54 = vector.extract_strided_slice %15 {offsets = [0, 0], sizes = [256, 8], strides = [1, 1]} : vector<256x96xf32> to vector<256x8xf32>
    %cst_16 = arith.constant 0.353553385 : f32
    %55 = vector.broadcast %cst_16 : f32 to vector<256x8xf32>
    %56 = arith.mulf %54, %55 : vector<256x8xf32>
    %57 = arith.truncf %56 : vector<256x8xf32> to vector<256x8xbf16>
    %58 = vector.extract_strided_slice %15 {offsets = [0, 32], sizes = [256, 8], strides = [1, 1]} : vector<256x96xf32> to vector<256x8xf32>
    %59 = arith.truncf %58 : vector<256x8xf32> to vector<256x8xbf16>
    %60 = vector.extract_strided_slice %15 {offsets = [0, 64], sizes = [256, 8], strides = [1, 1]} : vector<256x96xf32> to vector<256x8xf32>
    %61 = arith.truncf %60 : vector<256x8xf32> to vector<256x8xbf16>
    %cst_17 = arith.constant dense<0.000000e+00> : vector<256x256xf32>
    %62 = tpu.matmul %57, %59, %cst_17 {dimension_numbers = #tpu.dot_dimension_numbers<[1], [1], [0], [0], [0, 0, 1, 0], [], []>} : vector<256x8xbf16>, vector<256x8xbf16>, vector<256x256xf32> -> vector<256x256xf32>
    %63 = arith.addf %62, %53 : vector<256x256xf32>
    %cst_18 = arith.constant dense<0xFF800000> : vector<256xf32>
    %64 = vector.multi_reduction <maximumf>, %63, %cst_18 [1] : vector<256x256xf32> to vector<256xf32>
    %65 = vector.shape_cast %64 : vector<256xf32> to vector<256x1xf32>
    %66 = vector.broadcast %65 : vector<256x1xf32> to vector<256x256xf32>
    %67 = arith.subf %63, %66 : vector<256x256xf32>
    %68 = math.exp %67 : vector<256x256xf32>
    %cst_19 = arith.constant dense<0.000000e+00> : vector<256xf32>
    %69 = vector.multi_reduction <add>, %68, %cst_19 [1] : vector<256x256xf32> to vector<256xf32>
    %70 = vector.shape_cast %69 : vector<256xf32> to vector<256x1xf32>
    %71 = tpu.reciprocal %70 {approx = true} : vector<256x1xf32> -> vector<256x1xf32>
    %72 = vector.broadcast %71 : vector<256x1xf32> to vector<256x256xf32>
    %73 = arith.mulf %68, %72 : vector<256x256xf32>
    %74 = arith.truncf %73 : vector<256x256xf32> to vector<256x256xbf16>
    %cst_20 = arith.constant dense<0.000000e+00> : vector<256x8xf32>
    %75 = tpu.matmul %74, %61, %cst_20 {dimension_numbers = #tpu.dot_dimension_numbers<[1], [0], [0], [1], [0, 0, 1, 1], [], []>} : vector<256x256xbf16>, vector<256x8xbf16>, vector<256x8xf32> -> vector<256x8xf32>
    %c0_21 = arith.constant 0 : index
    %c0_22 = arith.constant 0 : index
    %76 = vector.load %arg7[%c0_21, %c0_22] : memref<256x32xf32, #tpu.memory_space<vmem>>, vector<256x8xf32>
    tpu.vector_store %arg7[%c0_21, %c0_22], %75 {strides = array<i32>} : memref<256x32xf32, #tpu.memory_space<vmem>>, vector<256x8xf32>,
    %77 = vector.extract_strided_slice %15 {offsets = [0, 8], sizes = [256, 8], strides = [1, 1]} : vector<256x96xf32> to vector<256x8xf32>
    %cst_23 = arith.constant 0.353553385 : f32
    %78 = vector.broadcast %cst_23 : f32 to vector<256x8xf32>
    %79 = arith.mulf %77, %78 : vector<256x8xf32>
    %80 = arith.truncf %79 : vector<256x8xf32> to vector<256x8xbf16>
    %81 = vector.extract_strided_slice %15 {offsets = [0, 40], sizes = [256, 8], strides = [1, 1]} : vector<256x96xf32> to vector<256x8xf32>
    %82 = arith.truncf %81 : vector<256x8xf32> to vector<256x8xbf16>
    %83 = vector.extract_strided_slice %15 {offsets = [0, 72], sizes = [256, 8], strides = [1, 1]} : vector<256x96xf32> to vector<256x8xf32>
    %84 = arith.truncf %83 : vector<256x8xf32> to vector<256x8xbf16>
    %cst_24 = arith.constant dense<0.000000e+00> : vector<256x256xf32>
    %85 = tpu.matmul %80, %82, %cst_24 {dimension_numbers = #tpu.dot_dimension_numbers<[1], [1], [0], [0], [0, 0, 1, 0], [], []>} : vector<256x8xbf16>, vector<256x8xbf16>, vector<256x256xf32> -> vector<256x256xf32>
    %86 = arith.addf %85, %53 : vector<256x256xf32>
    %cst_25 = arith.constant dense<0xFF800000> : vector<256xf32>
    %87 = vector.multi_reduction <maximumf>, %86, %cst_25 [1] : vector<256x256xf32> to vector<256xf32>
    %88 = vector.shape_cast %87 : vector<256xf32> to vector<256x1xf32>
    %89 = vector.broadcast %88 : vector<256x1xf32> to vector<256x256xf32>
    %90 = arith.subf %86, %89 : vector<256x256xf32>
    %91 = math.exp %90 : vector<256x256xf32>
    %cst_26 = arith.constant dense<0.000000e+00> : vector<256xf32>
    %92 = vector.multi_reduction <add>, %91, %cst_26 [1] : vector<256x256xf32> to vector<256xf32>
    %93 = vector.shape_cast %92 : vector<256xf32> to vector<256x1xf32>
    %94 = tpu.reciprocal %93 {approx = true} : vector<256x1xf32> -> vector<256x1xf32>
    %95 = vector.broadcast %94 : vector<256x1xf32> to vector<256x256xf32>
    %96 = arith.mulf %91, %95 : vector<256x256xf32>
    %97 = arith.truncf %96 : vector<256x256xf32> to vector<256x256xbf16>
    %cst_27 = arith.constant dense<0.000000e+00> : vector<256x8xf32>
    %98 = tpu.matmul %97, %84, %cst_27 {dimension_numbers = #tpu.dot_dimension_numbers<[1], [0], [0], [1], [0, 0, 1, 1], [], []>} : vector<256x256xbf16>, vector<256x8xbf16>, vector<256x8xf32> -> vector<256x8xf32>
    %c0_28 = arith.constant 0 : index
    %c8 = arith.constant 8 : index
    %99 = vector.load %arg7[%c0_28, %c8] : memref<256x32xf32, #tpu.memory_space<vmem>>, vector<256x8xf32>
    tpu.vector_store %arg7[%c0_28, %c8], %98 {strides = array<i32>} : memref<256x32xf32, #tpu.memory_space<vmem>>, vector<256x8xf32>,
    %100 = vector.extract_strided_slice %15 {offsets = [0, 16], sizes = [256, 8], strides = [1, 1]} : vector<256x96xf32> to vector<256x8xf32>
    %cst_29 = arith.constant 0.353553385 : f32
    %101 = vector.broadcast %cst_29 : f32 to vector<256x8xf32>
    %102 = arith.mulf %100, %101 : vector<256x8xf32>
    %103 = arith.truncf %102 : vector<256x8xf32> to vector<256x8xbf16>
    %104 = vector.extract_strided_slice %15 {offsets = [0, 48], sizes = [256, 8], strides = [1, 1]} : vector<256x96xf32> to vector<256x8xf32>
    %105 = arith.truncf %104 : vector<256x8xf32> to vector<256x8xbf16>
    %106 = vector.extract_strided_slice %15 {offsets = [0, 80], sizes = [256, 8], strides = [1, 1]} : vector<256x96xf32> to vector<256x8xf32>
    %107 = arith.truncf %106 : vector<256x8xf32> to vector<256x8xbf16>
    %cst_30 = arith.constant dense<0.000000e+00> : vector<256x256xf32>
    %108 = tpu.matmul %103, %105, %cst_30 {dimension_numbers = #tpu.dot_dimension_numbers<[1], [1], [0], [0], [0, 0, 1, 0], [], []>} : vector<256x8xbf16>, vector<256x8xbf16>, vector<256x256xf32> -> vector<256x256xf32>
    %109 = arith.addf %108, %53 : vector<256x256xf32>
    %cst_31 = arith.constant dense<0xFF800000> : vector<256xf32>
    %110 = vector.multi_reduction <maximumf>, %109, %cst_31 [1] : vector<256x256xf32> to vector<256xf32>
    %111 = vector.shape_cast %110 : vector<256xf32> to vector<256x1xf32>
    %112 = vector.broadcast %111 : vector<256x1xf32> to vector<256x256xf32>
    %113 = arith.subf %109, %112 : vector<256x256xf32>
    %114 = math.exp %113 : vector<256x256xf32>
    %cst_32 = arith.constant dense<0.000000e+00> : vector<256xf32>
    %115 = vector.multi_reduction <add>, %114, %cst_32 [1] : vector<256x256xf32> to vector<256xf32>
    %116 = vector.shape_cast %115 : vector<256xf32> to vector<256x1xf32>
    %117 = tpu.reciprocal %116 {approx = true} : vector<256x1xf32> -> vector<256x1xf32>
    %118 = vector.broadcast %117 : vector<256x1xf32> to vector<256x256xf32>
    %119 = arith.mulf %114, %118 : vector<256x256xf32>
    %120 = arith.truncf %119 : vector<256x256xf32> to vector<256x256xbf16>
    %cst_33 = arith.constant dense<0.000000e+00> : vector<256x8xf32>
    %121 = tpu.matmul %120, %107, %cst_33 {dimension_numbers = #tpu.dot_dimension_numbers<[1], [0], [0], [1], [0, 0, 1, 1], [], []>} : vector<256x256xbf16>, vector<256x8xbf16>, vector<256x8xf32> -> vector<256x8xf32>
    %c0_34 = arith.constant 0 : index
    %c16 = arith.constant 16 : index
    %122 = vector.load %arg7[%c0_34, %c16] : memref<256x32xf32, #tpu.memory_space<vmem>>, vector<256x8xf32>
    tpu.vector_store %arg7[%c0_34, %c16], %121 {strides = array<i32>} : memref<256x32xf32, #tpu.memory_space<vmem>>, vector<256x8xf32>,
    %123 = vector.extract_strided_slice %15 {offsets = [0, 24], sizes = [256, 8], strides = [1, 1]} : vector<256x96xf32> to vector<256x8xf32>
    %cst_35 = arith.constant 0.353553385 : f32
    %124 = vector.broadcast %cst_35 : f32 to vector<256x8xf32>
    %125 = arith.mulf %123, %124 : vector<256x8xf32>
    %126 = arith.truncf %125 : vector<256x8xf32> to vector<256x8xbf16>
    %127 = vector.extract_strided_slice %15 {offsets = [0, 56], sizes = [256, 8], strides = [1, 1]} : vector<256x96xf32> to vector<256x8xf32>
    %128 = arith.truncf %127 : vector<256x8xf32> to vector<256x8xbf16>
    %129 = vector.extract_strided_slice %15 {offsets = [0, 88], sizes = [256, 8], strides = [1, 1]} : vector<256x96xf32> to vector<256x8xf32>
    %130 = arith.truncf %129 : vector<256x8xf32> to vector<256x8xbf16>
    %cst_36 = arith.constant dense<0.000000e+00> : vector<256x256xf32>
    %131 = tpu.matmul %126, %128, %cst_36 {dimension_numbers = #tpu.dot_dimension_numbers<[1], [1], [0], [0], [0, 0, 1, 0], [], []>} : vector<256x8xbf16>, vector<256x8xbf16>, vector<256x256xf32> -> vector<256x256xf32>
    %132 = arith.addf %131, %53 : vector<256x256xf32>
    %cst_37 = arith.constant dense<0xFF800000> : vector<256xf32>
    %133 = vector.multi_reduction <maximumf>, %132, %cst_37 [1] : vector<256x256xf32> to vector<256xf32>
    %134 = vector.shape_cast %133 : vector<256xf32> to vector<256x1xf32>
    %135 = vector.broadcast %134 : vector<256x1xf32> to vector<256x256xf32>
    %136 = arith.subf %132, %135 : vector<256x256xf32>
    %137 = math.exp %136 : vector<256x256xf32>
    %cst_38 = arith.constant dense<0.000000e+00> : vector<256xf32>
    %138 = vector.multi_reduction <add>, %137, %cst_38 [1] : vector<256x256xf32> to vector<256xf32>
    %139 = vector.shape_cast %138 : vector<256xf32> to vector<256x1xf32>
    %140 = tpu.reciprocal %139 {approx = true} : vector<256x1xf32> -> vector<256x1xf32>
    %141 = vector.broadcast %140 : vector<256x1xf32> to vector<256x256xf32>
    %142 = arith.mulf %137, %141 : vector<256x256xf32>
    %143 = arith.truncf %142 : vector<256x256xf32> to vector<256x256xbf16>
    %cst_39 = arith.constant dense<0.000000e+00> : vector<256x8xf32>
    %144 = tpu.matmul %143, %130, %cst_39 {dimension_numbers = #tpu.dot_dimension_numbers<[1], [0], [0], [1], [0, 0, 1, 1], [], []>} : vector<256x256xbf16>, vector<256x8xbf16>, vector<256x8xf32> -> vector<256x8xf32>
    %c0_40 = arith.constant 0 : index
    %c24 = arith.constant 24 : index
    %145 = vector.load %arg7[%c0_40, %c24] : memref<256x32xf32, #tpu.memory_space<vmem>>, vector<256x8xf32>
    tpu.vector_store %arg7[%c0_40, %c24], %144 {strides = array<i32>} : memref<256x32xf32, #tpu.memory_space<vmem>>, vector<256x8xf32>,
    %c0_41 = arith.constant 0 : index
    %c0_42 = arith.constant 0 : index
    %146 = vector.load %arg7[%c0_41, %c0_42] : memref<256x32xf32, #tpu.memory_space<vmem>>, vector<256x32xf32>
    %147 = arith.truncf %146 : vector<256x32xf32> to vector<256x32xbf16>
    %c0_43 = arith.constant 0 : index
    %c0_44 = arith.constant 0 : index
    %148 = vector.load %arg4[%c0_43, %c0_44] : memref<32x32xbf16, #tpu.memory_space<vmem>>, vector<32x32xbf16>
    %cst_45 = arith.constant dense<0.000000e+00> : vector<256x32xf32>
    %149 = tpu.matmul %147, %148, %cst_45 {dimension_numbers = #tpu.dot_dimension_numbers<[1], [0], [0], [1], [0, 0, 1, 1], [], []>} : vector<256x32xbf16>, vector<32x32xbf16>, vector<256x32xf32> -> vector<256x32xf32>
    %c0_46 = arith.constant 0 : index
    %c0_47 = arith.constant 0 : index
    %150 = vector.load %arg5[%c0_46, %c0_47] : memref<1x32xf32, #tpu.memory_space<vmem>>, vector<1x32xf32>
    %151 = vector.broadcast %150 : vector<1x32xf32> to vector<256x32xf32>
    %152 = arith.addf %149, %151 : vector<256x32xf32>
    %153 = vector.extract_strided_slice %152 {offsets = [0, 0], sizes = [32, 32], strides = [1, 1]} : vector<256x32xf32> to vector<32x32xf32>
    %154 = vector.extract_strided_slice %152 {offsets = [32, 0], sizes = [32, 32], strides = [1, 1]} : vector<256x32xf32> to vector<32x32xf32>
    %155 = vector.extract_strided_slice %152 {offsets = [64, 0], sizes = [32, 32], strides = [1, 1]} : vector<256x32xf32> to vector<32x32xf32>
    %156 = vector.extract_strided_slice %152 {offsets = [96, 0], sizes = [32, 32], strides = [1, 1]} : vector<256x32xf32> to vector<32x32xf32>
    %157 = vector.extract_strided_slice %152 {offsets = [128, 0], sizes = [32, 32], strides = [1, 1]} : vector<256x32xf32> to vector<32x32xf32>
    %158 = vector.extract_strided_slice %152 {offsets = [160, 0], sizes = [32, 32], strides = [1, 1]} : vector<256x32xf32> to vector<32x32xf32>
    %159 = vector.extract_strided_slice %152 {offsets = [192, 0], sizes = [32, 32], strides = [1, 1]} : vector<256x32xf32> to vector<32x32xf32>
    %160 = vector.extract_strided_slice %152 {offsets = [224, 0], sizes = [32, 32], strides = [1, 1]} : vector<256x32xf32> to vector<32x32xf32>
    %161 = tpu.concatenate %153, %154, %155, %156, %157, %158, %159, %160 in 1 : vector<32x32xf32>, vector<32x32xf32>, vector<32x32xf32>, vector<32x32xf32>, vector<32x32xf32>, vector<32x32xf32>, vector<32x32xf32>, vector<32x32xf32> -> vector<32x256xf32>
    %c0_48 = arith.constant 0 : index
    %c0_49 = arith.constant 0 : index
    %162 = vector.load %arg6[%c0_48, %c0_49] : memref<32x256xf32, #tpu.memory_space<vmem>>, vector<32x256xf32>
    tpu.vector_store %arg6[%c0_48, %c0_49], %161 {strides = array<i32>} : memref<32x256xf32, #tpu.memory_space<vmem>>, vector<32x256xf32>,
    return
  }
  func.func @transform_0(%arg0: i32) -> (i32, i32) {
    %c0_i32 = arith.constant 0 : i32
    %c0_i32_0 = arith.constant 0 : i32
    return %arg0, %c0_i32 : i32, i32
  }
  func.func @transform_1(%arg0: i32) -> (i32, i32) {
    %c0_i32 = arith.constant 0 : i32
    %c0_i32_0 = arith.constant 0 : i32
    %c0_i32_1 = arith.constant 0 : i32
    return %c0_i32, %c0_i32_0 : i32, i32
  }
  func.func @transform_2(%arg0: i32) -> (i32, i32) {
    %c0_i32 = arith.constant 0 : i32
    %c0_i32_0 = arith.constant 0 : i32
    %c0_i32_1 = arith.constant 0 : i32
    return %c0_i32, %c0_i32_0 : i32, i32
  }
  func.func @transform_3(%arg0: i32) -> (i32, i32) {
    %c0_i32 = arith.constant 0 : i32
    %c0_i32_0 = arith.constant 0 : i32
    %c0_i32_1 = arith.constant 0 : i32
    return %c0_i32, %c0_i32_0 : i32, i32
  }
  func.func @transform_4(%arg0: i32) -> (i32, i32) {
    %c0_i32 = arith.constant 0 : i32
    %c0_i32_0 = arith.constant 0 : i32
    %c0_i32_1 = arith.constant 0 : i32
    return %c0_i32, %c0_i32_0 : i32, i32
  }
  func.func @transform_5(%arg0: i32) -> (i32, i32) {
    %c0_i32 = arith.constant 0 : i32
    %c0_i32_0 = arith.constant 0 : i32
    return %arg0, %c0_i32 : i32, i32
  }
}

</mosaic_0001>

<bundles_post_ra>
// kernel: tpu_custom_call.1
= control target key start
LH: loop header
LB: loop body
LE: loop exit
PB: predicated region body
PF: predicated region fallthrough
CT: control target
= control target key end

     0   :  { %10 = vsyncpa [#allocation4], 0  ;;  %s13229_s0 = inlined_call_operand.hbm [shape: f32[32,256], index: 0, kind: input, shape index: {}]   ;;  %s13230_s1 = inlined_call_operand.hbm [shape: bf16[32,96], index: 1, kind: input, shape index: {}]   ;;  %s13231_s2 = inlined_call_operand.vmem [shape: f32[1,96], index: 2, kind: input, shape index: {}]   ;;  %s13232_s3 = inlined_call_operand.hbm [shape: bf16[32,32], index: 3, kind: input, shape index: {}]   ;;  %s13233_s4 = inlined_call_operand.vmem [shape: f32[1,32], index: 4, kind: input, shape index: {}]   ;;  %s13234_s5 = inlined_call_operand.hbm [shape: f32[32,256], index: 5, kind: output, shape index: {}]  }
   0x1   :  { %11 = vsyncpa [#allocation7], 0 }
   0x2   :  { %12 = vsyncpa [#allocation5], 0  ;;  %s8102_s18 = smov [#allocation6]  }
   0x3   :  { %s30_s19 = sshll.u32 %s8102_s18, 4  ;;  %s31_s19 = int_to_ptr.vmem [resolvable:$true] %s30_s19 }
   0x4   :  { %s8024_s20 = scalar_lea.vmem %s31_s19, 256  ;;  %p8029_p1 = scmp.lt.s32.totalorder %s31_s19, %s31_s19 }
   0x5   :  { %p8025_p0 = scmp.ne.s32.totalorder %s31_s19, %s8024_s20  ;;  %p8030_p2 = scmp.lt.s32.totalorder %s8024_s20, %s8024_s20 }
   0x7   :  { %p8031_p3 = por %p8030_p2, %p8029_p1 }
   0x9   :  { %p8032_p4 = pnand %p8031_p3, %p8025_p0 }
   0xb   :  { %8035 = shalt.err (!%p8032_p4)
}
   0xc   :  { %s8103_s21 = smov 64   ;;  %s8104_s22 = smov 4  }
   0xd   :  { %36 = dma.hbm_to_vmem [thread:$0]  %s13230_s1, 256, %s31_s19, [#allocation7], %s8103_s21, %s8103_s21, %s8104_s22  }
   0xe   :  { %s8105_s25 = smov [#allocation3]  }
   0xf   :  { %s18_s26 = sshll.u32 %s8105_s25, 4  ;;  %s19_s26 = int_to_ptr.vmem [resolvable:$true] %s18_s26 }
  0x10   :  { %s8044_s27 = scalar_lea.vmem %s19_s26, 1024  ;;  %p8049_p6 = scmp.lt.s32.totalorder %s19_s26, %s19_s26 }
  0x11   :  { %p8045_p5 = scmp.ne.s32.totalorder %s19_s26, %s8044_s27  ;;  %p8050_p7 = scmp.lt.s32.totalorder %s8044_s27, %s8044_s27 }
  0x13   :  { %p8051_p8 = por %p8050_p7, %p8049_p6 }
  0x15   :  { %p8052_p9 = pnand %p8051_p8, %p8045_p5 }
  0x17   :  { %8055 = shalt.err (!%p8052_p9)
}
  0x18   :  { %s8106_s28 = smov 256   ;;  %s8107_s29 = smov 16  }
  0x19   :  { %24 = dma.hbm_to_vmem [thread:$0]  %s13229_s0, 1024, %s19_s26, [#allocation4], %s8106_s28, %s8106_s28, %s8107_s29  }
  0x1a   :  { %s8108_s1 = smov [#allocation8]  }
  0x1b   :  { %s44_s7 = sshll.u32 %s8108_s1, 4  ;;  %s45_s7 = int_to_ptr.vmem [resolvable:$true] %s44_s7 }
  0x1c   :  { %s8064_s8 = scalar_lea.vmem %s45_s7, 256  ;;  %p8069_p11 = scmp.lt.s32.totalorder %s45_s7, %s45_s7 }
  0x1d   :  { %p8065_p10 = scmp.ne.s32.totalorder %s45_s7, %s8064_s8  ;;  %p8070_p12 = scmp.lt.s32.totalorder %s8064_s8, %s8064_s8 }
  0x1f   :  { %p8071_p13 = por %p8070_p12, %p8069_p11 }
  0x21   :  { %p8072_p0 = pnand %p8071_p13, %p8065_p10 }
  0x23   :  { %8075 = shalt.err (!%p8072_p0)
}
  0x24   :  { %50 = dma.hbm_to_vmem [thread:$0]  %s13232_s3, 256, %s45_s7, [#allocation7], %s8103_s21, %s8103_s21, %s8104_s22  }
  0x25   :  { %8096 = dma.done.wait [#allocation4], 1024  }
  0x26   :  { %8097 = vsyncadd [#allocation4], 4294966272 }
  0x27   :  { %8098 = dma.done.wait [#allocation7], 512  }
  0x28   :  { %8099 = vsyncadd [#allocation7], 4294966784  ;;  %v63_v0 = vld [vmem:[#allocation3] sm:$0xff]  ;;  %v65_v1 = vld [vmem:[#allocation3 + $0x10] sm:$0xff]  ;;  %vm190_vm0 = vcmask 261120   ;;  %s8109_s0 = smov 96  }
  0x29   :  { %v67_v2 = vld [vmem:[#allocation3 + $0x20] sm:$0xff]  ;;  %v7184_v3 = vpack.i.bf16 %v65_v1, %v63_v0  ;;  %v69_v4 = vld [vmem:[#allocation3 + $0x30] sm:$0xff]  ;;  %v151_v5 = vpack.c.bf16 %v65_v1, %v63_v0  ;;  %v7244_v6 = vld [vmem:[#allocation6 + $0x8] sm:$0xff]   ;;  %s8110_s3 = smov 32   ;;  %vm1084_vm1 = vcmask 64512   ;;  %s8112_s13 = smov 88  }
  0x2a   :  { %v7189_v7 = vpack.i.bf16 %v69_v4, %v67_v2  ;;  %7054 = vmatprep.subr.bf16.mxu0 %v7244_v6  ;;  %v7245_v8 = vld [vmem:[#allocation6] sm:$0xff]   ;;  %v64_v9 = vld [vmem:[#allocation3 + $0x8] sm:$0xff]  ;;  %v66_v10 = vld [vmem:[#allocation3 + $0x18] sm:$0xff]  ;;  %v152_v13 = vpack.c.bf16 %v69_v4, %v67_v2  ;;  %s8113_s14 = smov 120   ;;  %s8114_s15 = smov 112  }
  0x2b   :  { %7185 = vrot.lane.b32.xlu0 %v7184_v3, %s8109_s0  ;;  %7195 = vrot.lane.b32.xlu1 %v7184_v3, %s8103_s21  ;;  %v68_v11 = vld [vmem:[#allocation3 + $0x28] sm:$0xff]  ;;  %v70_v12 = vld [vmem:[#allocation3 + $0x38] sm:$0xff]  ;;  %v7214_v14 = vpack.i.bf16 %v66_v10, %v64_v9  ;;  %v159_v16 = vpack.c.bf16 %v66_v10, %v64_v9  ;;  %s8115_s16 = smov 72   ;;  %s8116_s17 = smov 104  }
  0x2c   :  { %7058 = vmatprep.mubr.msk.bf16.mxu0 %vm190_vm0, %v151_v5  ;;  %7055 = vmatpush3.bf16.msra.mxu0 %v7244_v6  ;;  %v7219_v15 = vpack.i.bf16 %v70_v12, %v68_v11  ;;  %v160_v17 = vpack.c.bf16 %v70_v12, %v68_v11  ;;  %s8118_s18 = smov 56   ;;  %s8119_s19 = smov 48  }
  0x2d   :  { %7056 = vmatprep.subr.bf16.mxu0 %v7245_v8  ;;  %s8120_s20 = smov 40   ;;  %s8121_s22 = smov 8  }
  0x2e   :  { %s8122_s23 = smov 24  }
  0x2f   :  { %7190 = vrot.lane.b32.xlu0 %v7189_v7, %s8109_s0  ;;  %7200 = vrot.lane.b32.xlu1 %v7189_v7, %s8103_s21 }
  0x30   :  { %7057 = vmatpush3.bf16.msra.mxu0 %v7245_v8 }
  0x33   :  { %7205 = vrot.lane.b32.xlu0 %v7184_v3, %s8110_s3  ;;  %7210 = vrot.lane.b32.xlu1 %v7189_v7, %s8110_s3  ;;  %v8201_v3 = vld [vmem:[%s13231_s2] ss:$0 sm:$0xff]  ;;  %s8111_s2 = smov 80  }
  0x34   :  { %7059 = vmatmul.mubr.msk.bf16.vlgmr.msra.gmra.mxu0 %vm190_vm0, %v152_v13 }
  0x37   :  { %7215 = vrot.lane.b32.xlu0 %v7214_v14, %s8109_s0  ;;  %7220 = vrot.lane.b32.xlu1 %v7219_v15, %s8109_s0 }
  0x3b   :  { %7225 = vrot.lane.b32.xlu0 %v7214_v14, %s8103_s21  ;;  %7230 = vrot.lane.b32.xlu1 %v7219_v15, %s8103_s21 }
  0x3f   :  { %7235 = vrot.lane.b32.xlu0 %v7214_v14, %s8110_s3  ;;  %7240 = vrot.lane.b32.xlu1 %v7219_v15, %s8110_s3 }
  0x9d   :  { %v7186_v18 = vpop.permute.xlu0 %7185  ;;  %v7196_v19 = vpop.permute.xlu1 %7195 }
  0x9e   :  { %v7188_v20 = vunpack.i.h.bf16 %v7186_v18  ;;  %v7187_v21 = vunpack.i.l.bf16 %v7186_v18  ;;  %v7198_v22 = vunpack.i.h.bf16 %v7196_v19  ;;  %v7197_v23 = vunpack.i.l.bf16 %v7196_v19 }
  0xa0   :  { %v153_v24 = vpack.c.bf16 %v7188_v20, %v7187_v21  ;;  %v155_v28 = vpack.c.bf16 %v7198_v22, %v7197_v23 }
  0xa1   :  { %v7191_v25 = vpop.permute.xlu0 %7190  ;;  %v7201_v29 = vpop.permute.xlu1 %7200 }
  0xa2   :  { %v7193_v26 = vunpack.i.h.bf16 %v7191_v25  ;;  %v7192_v27 = vunpack.i.l.bf16 %v7191_v25  ;;  %7062 = vmatprep.mubr.msk.bf16.mxu0 %vm190_vm0, %v153_v24  ;;  %v7203_v32 = vunpack.i.h.bf16 %v7201_v29  ;;  %v7202_v33 = vunpack.i.l.bf16 %v7201_v29 }
  0xa4   :  { %v154_v30 = vpack.c.bf16 %v7193_v26, %v7192_v27  ;;  %v156_v36 = vpack.c.bf16 %v7203_v32, %v7202_v33 }
  0xa5   :  { %v7206_v31 = vpop.permute.xlu0 %7205  ;;  %v7211_v38 = vpop.permute.xlu1 %7210 }
  0xa6   :  { %7063 = vmatmul.mubr.msk.bf16.gmra.mxu0 %vm190_vm0, %v154_v30  ;;  %v7208_v34 = vunpack.i.h.bf16 %v7206_v31  ;;  %v7207_v35 = vunpack.i.l.bf16 %v7206_v31  ;;  %v7213_v39 = vunpack.i.h.bf16 %v7211_v38  ;;  %v7212_v40 = vunpack.i.l.bf16 %v7211_v38 }
  0xa7   :  { %7066 = vmatprep.mubr.msk.bf16.mxu0 %vm190_vm0, %v155_v28 }
  0xa8   :  { %v157_v37 = vpack.c.bf16 %v7208_v34, %v7207_v35  ;;  %v158_v41 = vpack.c.bf16 %v7213_v39, %v7212_v40 }
  0xa9   :  { %v7216_v42 = vpop.permute.xlu0 %7215  ;;  %v7221_v46 = vpop.permute.xlu1 %7220 }
  0xaa   :  { %v7218_v43 = vunpack.i.h.bf16 %v7216_v42  ;;  %v7217_v44 = vunpack.i.l.bf16 %v7216_v42  ;;  %v7223_v48 = vunpack.i.h.bf16 %v7221_v46  ;;  %v7222_v49 = vunpack.i.l.bf16 %v7221_v46 }
  0xac   :  { %v161_v45 = vpack.c.bf16 %v7218_v43, %v7217_v44  ;;  %v162_v52 = vpack.c.bf16 %v7223_v48, %v7222_v49 }
  0xad   :  { %v7226_v47 = vpop.permute.xlu0 %7225  ;;  %v7231_v54 = vpop.permute.xlu1 %7230 }
  0xae   :  { %7067 = vmatmul.mubr.msk.bf16.gmra.mxu0 %vm190_vm0, %v156_v36  ;;  %v7228_v50 = vunpack.i.h.bf16 %v7226_v47  ;;  %v7227_v51 = vunpack.i.l.bf16 %v7226_v47  ;;  %v7233_v56 = vunpack.i.h.bf16 %v7231_v54  ;;  %v7232_v57 = vunpack.i.l.bf16 %v7231_v54 }
  0xaf   :  { %7070 = vmatprep.mubr.msk.bf16.mxu0 %vm190_vm0, %v157_v37 }
  0xb0   :  { %v163_v53 = vpack.c.bf16 %v7228_v50, %v7227_v51  ;;  %v164_v60 = vpack.c.bf16 %v7233_v56, %v7232_v57 }
  0xb1   :  { %v7236_v55 = vpop.permute.xlu0 %7235  ;;  %v7241_v62 = vpop.permute.xlu1 %7240 }
  0xb2   :  { %v7238_v58 = vunpack.i.h.bf16 %v7236_v55  ;;  %v7237_v59 = vunpack.i.l.bf16 %v7236_v55  ;;  %v7243_v63 = vunpack.i.h.bf16 %v7241_v62  ;;  %v7242_v0 = vunpack.i.l.bf16 %v7241_v62 }
  0xb4   :  { %v165_v61 = vpack.c.bf16 %v7238_v58, %v7237_v59  ;;  %v166_v1 = vpack.c.bf16 %v7243_v63, %v7242_v0 }
  0xb6   :  { %7071 = vmatmul.mubr.msk.bf16.gmra.mxu0 %vm190_vm0, %v158_v41 }
  0xb7   :  { %7074 = vmatprep.mubr.msk.bf16.mxu0 %vm190_vm0, %v159_v16 }
  0xbe   :  { %7075 = vmatmul.mubr.msk.bf16.gmra.mxu0 %vm190_vm0, %v160_v17 }
  0xbf   :  { %7078 = vmatprep.mubr.msk.bf16.mxu0 %vm190_vm0, %v161_v45 }
  0xc6   :  { %7079 = vmatmul.mubr.msk.bf16.gmra.mxu0 %vm190_vm0, %v162_v52 }
  0xc7   :  { %7082 = vmatprep.mubr.msk.bf16.mxu0 %vm190_vm0, %v163_v53 }
  0xce   :  { %7083 = vmatmul.mubr.msk.bf16.gmra.mxu0 %vm190_vm0, %v164_v60 }
  0xcf   :  { %7086 = vmatprep.mubr.msk.bf16.mxu0 %vm190_vm0, %v165_v61 }
  0xd6   :  { %7087 = vmatmul.mubr.msk.bf16.gmra.mxu0 %vm190_vm0, %v166_v1 }
  0xf4   :  { %v7060_v2 = vpop.f32.mrf.mxu0 }
  0xf5   :  { %v282_v5 = vadd.f32 %v7060_v2, %v8201_v3 }
  0xf6   :  { %v273_v4 = vpop.f32.mrf.mxu0 }
  0xf7   :  { %v274_v8 = vadd.f32 %v8201_v3, %v273_v4  ;;  %v974_v10 = vmul.f32 0.35355338, %v282_v5 }
  0xf8   :  { %v7061_v6 = vpop.f32.mrf.mxu0 }
  0xf9   :  { %v285_v7 = vadd.f32 %v7061_v6, %v8201_v3  ;;  %v972_v14 = vmul.f32 0.35355338, %v274_v8 }
  0xfa   :  { %v276_v9 = vpop.f32.mrf.mxu0 }
  0xfb   :  { %v975_v11 = vmul.f32 0.35355338, %v285_v7  ;;  %v8206_v12 = vpack.c.bf16 %v285_v7, %v282_v5  ;;  %v277_v13 = vadd.f32 %v8201_v3, %v276_v9 }
  0xfd   :  { %13704 = vst [vmem:[#allocation13_spill] sm:$0xff] %v8206_v12  ;;  %1054 = vrot.lane.b32.xlu0 %v8206_v12, %s8109_s0  ;;  %v973_v15 = vmul.f32 0.35355338, %v277_v13  ;;  %3412 = vrot.lane.b32.xlu1 %v8206_v12, %s8111_s2  ;;  %v8213_v16 = vpack.c.bf16 %v975_v11, %v974_v10  ;;  %v8217_v18 = vpack.c.bf16 %v277_v13, %v274_v8 }
  0xff   :  { %v8215_v17 = vpack.c.bf16 %v973_v15, %v972_v14  ;;  %13705 = vst [vmem:[#allocation14_spill] sm:$0xff] %v8217_v18 }
 0x101   :  { %2177 = vrot.lane.b32.xlu0 %v8206_v12, %s8112_s13  ;;  %2145 = vrot.lane.b32.xlu1 %v8213_v16, %s8113_s14 }
 0x102   :  { %6412 = vmatprep.mubr.msk.bf16.mxu1 %vm1084_vm1, %v8215_v17 }
 0x105   :  { %1052 = vrot.lane.b32.xlu0 %v8217_v18, %s8109_s0 }
 0x109   :  { %2175 = vrot.lane.b32.xlu0 %v8217_v18, %s8112_s13 }
 0x10d   :  { %3410 = vrot.lane.b32.xlu0 %v8217_v18, %s8111_s2 }
 0x111   :  { %3380 = vrot.lane.b32.xlu0 %v8213_v16, %s8114_s15 }
 0x115   :  { %2143 = vrot.lane.b32.xlu0 %v8215_v17, %s8113_s14 }
 0x119   :  { %3378 = vrot.lane.b32.xlu0 %v8215_v17, %s8114_s15 }
 0x166   :  { %v7064_v19 = vpop.f32.mrf.mxu0 }
 0x167   :  { %v298_v22 = vadd.f32 %v7064_v19, %v8201_v3 }
 0x168   :  { %v289_v20 = vpop.f32.mrf.mxu0 }
 0x169   :  { %v978_v29 = vmul.f32 0.35355338, %v298_v22  ;;  %v290_v30 = vadd.f32 %v8201_v3, %v289_v20 }
 0x16a   :  { %v7065_v21 = vpop.f32.mrf.mxu0 }
 0x16b   :  { %v301_v23 = vadd.f32 %v7065_v21, %v8201_v3  ;;  %v976_v35 = vmul.f32 0.35355338, %v290_v30 }
 0x16c   :  { %v292_v24 = vpop.f32.mrf.mxu0 }
 0x16d   :  { %v979_v25 = vmul.f32 0.35355338, %v301_v23  ;;  %v8239_v26 = vpack.c.bf16 %v301_v23, %v298_v22  ;;  %v293_v27 = vadd.f32 %v8201_v3, %v292_v24 }
 0x16e   :  { %v7068_v28 = vpop.f32.mrf.mxu0 }
 0x16f   :  { %13706 = vst [vmem:[#allocation15_spill] sm:$0xff] %v8239_v26  ;;  %3416 = vrot.lane.b32.xlu1 %v8239_v26, %s8111_s2  ;;  %1058 = vrot.lane.b32.xlu0 %v8239_v26, %s8109_s0  ;;  %v8247_v32 = vpack.c.bf16 %v979_v25, %v978_v29  ;;  %v977_v33 = vmul.f32 0.35355338, %v293_v27  ;;  %v314_v37 = vadd.f32 %v7068_v28, %v8201_v3  ;;  %v8351_v15 = vpop.permute.xlu0 %1054 }
 0x170   :  { %v305_v31 = vpop.f32.mrf.mxu0  ;;  %v8261_v39 = vpack.c.bf16 %v293_v27, %v290_v30 }
 0x171   :  { %v8253_v36 = vpack.c.bf16 %v977_v33, %v976_v35  ;;  %v982_v41 = vmul.f32 0.35355338, %v314_v37  ;;  %v306_v47 = vadd.f32 %v8201_v3, %v305_v31 }
 0x172   :  { %v7069_v34 = vpop.f32.mrf.mxu0  ;;  %13707 = vst [vmem:[#allocation16_spill] sm:$0xff] %v8261_v39 }
 0x173   :  { %2149 = vrot.lane.b32.xlu1 %v8247_v32, %s8113_s14  ;;  %2181 = vrot.lane.b32.xlu0 %v8239_v26, %s8112_s13  ;;  %v317_v38 = vadd.f32 %v7069_v34, %v8201_v3  ;;  %v980_v51 = vmul.f32 0.35355338, %v306_v47  ;;  %v8361_v24 = vpop.permute.xlu0 %2177 }
 0x174   :  { %v308_v43 = vpop.f32.mrf.mxu0 }
 0x175   :  { %v8263_v40 = vpack.c.bf16 %v317_v38, %v314_v37  ;;  %v983_v42 = vmul.f32 0.35355338, %v317_v38  ;;  %v309_v46 = vadd.f32 %v8201_v3, %v308_v43 }
 0x176   :  { %v7072_v44 = vpop.f32.mrf.mxu0 }
 0x177   :  { %3382 = vrot.lane.b32.xlu1 %v8253_v36, %s8114_s15  ;;  %4651 = vrot.lane.b32.xlu0 %v8239_v26, %s8115_s16  ;;  %13708 = vst [vmem:[#allocation17_spill] sm:$0xff] %v8263_v40  ;;  %v8273_v45 = vpack.c.bf16 %v983_v42, %v982_v41  ;;  %v981_v49 = vmul.f32 0.35355338, %v309_v46  ;;  %v8281_v50 = vpack.c.bf16 %v309_v46, %v306_v47  ;;  %v8373_v30 = vpop.permute.xlu0 %1052 }
 0x178   :  { %v321_v48 = vpop.f32.mrf.mxu0  ;;  %v330_v54 = vadd.f32 %v7072_v44, %v8201_v3 }
 0x179   :  { %13709 = vst [vmem:[#allocation18_spill] sm:$0xff] %v8273_v45  ;;  %13710 = vst [vmem:[#allocation19_spill] sm:$0xff] %v8281_v50  ;;  %v8287_v53 = vpack.c.bf16 %v981_v49, %v980_v51  ;;  %v322_v63 = vadd.f32 %v8201_v3, %v321_v48 }
 0x17a   :  { %v7073_v52 = vpop.f32.mrf.mxu0  ;;  %v986_v57 = vmul.f32 0.35355338, %v330_v54 }
 0x17b   :  { %3420 = vrot.lane.b32.xlu1 %v8263_v40, %s8111_s2  ;;  %1056 = vrot.lane.b32.xlu0 %v8261_v39, %s8109_s0  ;;  %13711 = vst [vmem:[#allocation20_spill] sm:$0xff] %v8287_v53  ;;  %v333_v55 = vadd.f32 %v7073_v52, %v8201_v3  ;;  %v984_v25 = vmul.f32 0.35355338, %v322_v63  ;;  %v8385_v37 = vpop.permute.xlu0 %2175 }
 0x17c   :  { %v324_v59 = vpop.f32.mrf.mxu0 }
 0x17d   :  { %v8295_v56 = vpack.c.bf16 %v333_v55, %v330_v54  ;;  %v987_v58 = vmul.f32 0.35355338, %v333_v55  ;;  %v325_v0 = vadd.f32 %v8201_v3, %v324_v59  ;;  %v8415_v59 = vpop.permute.xlu1 %3412 }
 0x17e   :  { %v7076_v60 = vpop.f32.mrf.mxu0  ;;  %13726 = vst [vmem:[#allocation35_spill] sm:$0xff] %v8415_v59 }
 0x17f   :  { %4655 = vrot.lane.b32.xlu1 %v8263_v40, %s8115_s16  ;;  %2179 = vrot.lane.b32.xlu0 %v8261_v39, %s8112_s13  ;;  %13712 = vst [vmem:[#allocation21_spill] sm:$0xff] %v8295_v56  ;;  %v8309_v61 = vpack.c.bf16 %v987_v58, %v986_v57  ;;  %v8321_v2 = vpack.c.bf16 %v325_v0, %v322_v63  ;;  %v985_v27 = vmul.f32 0.35355338, %v325_v0  ;;  %v8393_v43 = vpop.permute.xlu0 %3410 }
 0x180   :  { %v337_v62 = vpop.f32.mrf.mxu0  ;;  %v346_v4 = vadd.f32 %v7076_v60, %v8201_v3  ;;  %13721 = vst [vmem:[#allocation30_spill] sm:$0xff] %v8393_v43 }
 0x181   :  { %13713 = vst [vmem:[#allocation22_spill] sm:$0xff] %v8309_v61  ;;  %13714 = vst [vmem:[#allocation23_spill] sm:$0xff] %v8321_v2  ;;  %v338_v8 = vadd.f32 %v8201_v3, %v337_v62  ;;  %v8375_v31 = vpack.c.bf16 %v985_v27, %v984_v25 }
 0x182   :  { %v7077_v1 = vpop.f32.mrf.mxu0  ;;  %v990_v13 = vmul.f32 0.35355338, %v346_v4 }
 0x183   :  { %2153 = vrot.lane.b32.xlu1 %v8273_v45, %s8113_s14  ;;  %3414 = vrot.lane.b32.xlu0 %v8261_v39, %s8111_s2  ;;  %v349_v5 = vadd.f32 %v7077_v1, %v8201_v3  ;;  %13719 = vst [vmem:[#allocation28_spill] sm:$0xff] %v8375_v31  ;;  %v988_v46 = vmul.f32 0.35355338, %v338_v8  ;;  %v8407_v55 = vpop.permute.xlu0 %3380  ;;  %v8431_v1 = vpop.permute.xlu1 %2145 }
 0x184   :  { %v340_v7 = vpop.f32.mrf.mxu0  ;;  %13724 = vst [vmem:[#allocation33_spill] sm:$0xff] %v8407_v55 }
 0x185   :  { %v8329_v6 = vpack.c.bf16 %v349_v5, %v346_v4  ;;  %v341_v9 = vadd.f32 %v8201_v3, %v340_v7  ;;  %v991_v14 = vmul.f32 0.35355338, %v349_v5 }
 0x186   :  { %v7080_v11 = vpop.f32.mrf.mxu0 }
 0x187   :  { %4653 = vrot.lane.b32.xlu1 %v8281_v50, %s8115_s16  ;;  %3384 = vrot.lane.b32.xlu0 %v8247_v32, %s8114_s15  ;;  %13715 = vst [vmem:[#allocation24_spill] sm:$0xff] %v8329_v6  ;;  %v8341_v10 = vpack.c.bf16 %v341_v9, %v338_v8  ;;  %v8353_v20 = vpack.c.bf16 %v991_v14, %v990_v13  ;;  %v989_v47 = vmul.f32 0.35355338, %v341_v9  ;;  %v8417_v60 = vpop.permute.xlu0 %2143 }
 0x188   :  { %v353_v19 = vpop.f32.mrf.mxu0  ;;  %v362_v22 = vadd.f32 %v7080_v11, %v8201_v3 }
 0x189   :  { %13716 = vst [vmem:[#allocation25_spill] sm:$0xff] %v8341_v10  ;;  %13717 = vst [vmem:[#allocation26_spill] sm:$0xff] %v8353_v20  ;;  %v354_v33 = vadd.f32 %v8201_v3, %v353_v19  ;;  %v8403_v51 = vpack.c.bf16 %v989_v47, %v988_v46 }
 0x18a   :  { %v7081_v21 = vpop.f32.mrf.mxu0  ;;  %v994_v41 = vmul.f32 0.35355338, %v362_v22 }
 0x18b   :  { %3386 = vrot.lane.b32.xlu1 %v8287_v53, %s8114_s15  ;;  %2147 = vrot.lane.b32.xlu0 %v8253_v36, %s8113_s14  ;;  %v365_v23 = vadd.f32 %v7081_v21, %v8201_v3  ;;  %13723 = vst [vmem:[#allocation32_spill] sm:$0xff] %v8403_v51  ;;  %v8433_v4 = vpop.permute.xlu0 %3378  ;;  %v992_v7 = vmul.f32 0.35355338, %v354_v33 }
 0x18c   :  { %v356_v29 = vpop.f32.mrf.mxu0  ;;  %13728 = vst [vmem:[#allocation37_spill] sm:$0xff] %v8433_v4 }
 0x18d   :  { %v8367_v28 = vpack.c.bf16 %v365_v23, %v362_v22  ;;  %v357_v34 = vadd.f32 %v8201_v3, %v356_v29  ;;  %v995_v42 = vmul.f32 0.35355338, %v365_v23 }
 0x18e   :  { %v7084_v38 = vpop.f32.mrf.mxu0 }
 0x18f   :  { %3424 = vrot.lane.b32.xlu1 %v8295_v56, %s8111_s2  ;;  %1062 = vrot.lane.b32.xlu0 %v8263_v40, %s8109_s0  ;;  %13718 = vst [vmem:[#allocation27_spill] sm:$0xff] %v8367_v28  ;;  %v8383_v35 = vpack.c.bf16 %v357_v34, %v354_v33  ;;  %v8397_v48 = vpack.c.bf16 %v995_v42, %v994_v41  ;;  %v993_v8 = vmul.f32 0.35355338, %v357_v34 }
 0x190   :  { %v369_v44 = vpop.f32.mrf.mxu0  ;;  %v378_v52 = vadd.f32 %v7084_v38, %v8201_v3 }
 0x191   :  { %13720 = vst [vmem:[#allocation29_spill] sm:$0xff] %v8383_v35  ;;  %13722 = vst [vmem:[#allocation31_spill] sm:$0xff] %v8397_v48  ;;  %v370_v62 = vadd.f32 %v8201_v3, %v369_v44  ;;  %v8447_v14 = vpack.c.bf16 %v993_v8, %v992_v7 }
 0x192   :  { %v7085_v49 = vpop.f32.mrf.mxu0  ;;  %v998_v19 = vmul.f32 0.35355338, %v378_v52 }
 0x193   :  { %4659 = vrot.lane.b32.xlu1 %v8295_v56, %s8115_s16  ;;  %2185 = vrot.lane.b32.xlu0 %v8263_v40, %s8112_s13  ;;  %v381_v54 = vadd.f32 %v7085_v49, %v8201_v3  ;;  %13730 = vst [vmem:[#allocation39_spill] sm:$0xff] %v8447_v14 }
 0x194   :  { %v372_v58 = vpop.f32.mrf.mxu0 }
 0x195   :  { %v8413_v57 = vpack.c.bf16 %v381_v54, %v378_v52  ;;  %v373_v63 = vadd.f32 %v8201_v3, %v372_v58  ;;  %v999_v21 = vmul.f32 0.35355338, %v381_v54  ;;  %v996_v58 = vmul.f32 0.35355338, %v370_v62 }
 0x196   :  { %v7088_v5 = vpop.f32.mrf.mxu0 }
 0x197   :  { %1900 = vrot.lane.b32.xlu1 %v8295_v56, %s8103_s21  ;;  %1060 = vrot.lane.b32.xlu0 %v8281_v50, %s8109_s0  ;;  %13725 = vst [vmem:[#allocation34_spill] sm:$0xff] %v8413_v57  ;;  %v8429_v0 = vpack.c.bf16 %v373_v63, %v370_v62  ;;  %v8457_v27 = vpack.c.bf16 %v999_v21, %v998_v19 }
 0x198   :  { %v385_v13 = vpop.f32.mrf.mxu0  ;;  %v394_v29 = vadd.f32 %v7088_v5, %v8201_v3  ;;  %v997_v5 = vmul.f32 0.35355338, %v373_v63 }
 0x199   :  { %13727 = vst [vmem:[#allocation36_spill] sm:$0xff] %v8429_v0  ;;  %13731 = vst [vmem:[#allocation40_spill] sm:$0xff] %v8457_v27  ;;  %v386_v47 = vadd.f32 %v8201_v3, %v385_v13 }
 0x19a   :  { %v7089_v25 = vpop.f32.mrf.mxu0  ;;  %v1002_v62 = vmul.f32 0.35355338, %v394_v29 }
 0x19b   :  { %2157 = vrot.lane.b32.xlu1 %v8309_v61, %s8113_s14  ;;  %2183 = vrot.lane.b32.xlu0 %v8281_v50, %s8112_s13  ;;  %v397_v33 = vadd.f32 %v7089_v25, %v8201_v3 }
 0x19c   :  { %v388_v46 = vpop.f32.mrf.mxu0 }
 0x19d   :  { %v8469_v41 = vpack.c.bf16 %v397_v33, %v394_v29  ;;  %v389_v49 = vadd.f32 %v8201_v3, %v388_v46  ;;  %v8499_v3 = vpack.c.bf16 %v997_v5, %v996_v58  ;;  %v1003_v63 = vmul.f32 0.35355338, %v397_v33 }
 0x19f   :  { %3392 = vrot.lane.b32.xlu1 %v8309_v61, %s8114_s15  ;;  %3418 = vrot.lane.b32.xlu0 %v8281_v50, %s8111_s2  ;;  %13734 = vst [vmem:[#allocation43_spill] sm:$0xff] %v8469_v41  ;;  %v8489_v7 = vpack.c.bf16 %v389_v49, %v386_v47  ;;  %13739 = vst [vmem:[#allocation48_spill] sm:$0xff] %v8499_v3  ;;  %v8517_v58 = vpack.c.bf16 %v1003_v63, %v1002_v62 }
 0x1a1   :  { %13736 = vst [vmem:[#allocation45_spill] sm:$0xff] %v8489_v7  ;;  %13743 = vst [vmem:[#allocation52_spill] sm:$0xff] %v8517_v58 }
 0x1a3   :  { %4657 = vrot.lane.b32.xlu1 %v8321_v2, %s8115_s16  ;;  %3388 = vrot.lane.b32.xlu0 %v8273_v45, %s8114_s15 }
 0x1a7   :  { %1070 = vrot.lane.b32.xlu1 %v8329_v6, %s8109_s0  ;;  %2151 = vrot.lane.b32.xlu0 %v8287_v53, %s8113_s14 }
 0x1ab   :  { %2193 = vrot.lane.b32.xlu1 %v8329_v6, %s8112_s13  ;;  %1066 = vrot.lane.b32.xlu0 %v8295_v56, %s8109_s0 }
 0x1af   :  { %1068 = vrot.lane.b32.xlu1 %v8341_v10, %s8109_s0  ;;  %2189 = vrot.lane.b32.xlu0 %v8295_v56, %s8112_s13  ;;  %v1000_v56 = vmul.f32 0.35355338, %v386_v47 }
 0x1b3   :  { %2191 = vrot.lane.b32.xlu1 %v8341_v10, %s8112_s13  ;;  %1064 = vrot.lane.b32.xlu0 %v8321_v2, %s8109_s0 }
 0x1b7   :  { %2161 = vrot.lane.b32.xlu1 %v8353_v20, %s8113_s14  ;;  %2187 = vrot.lane.b32.xlu0 %v8321_v2, %s8112_s13 }
 0x1bb   :  { %3426 = vrot.lane.b32.xlu1 %v8341_v10, %s8111_s2  ;;  %3422 = vrot.lane.b32.xlu0 %v8321_v2, %s8111_s2 }
 0x1bf   :  { %1074 = vrot.lane.b32.xlu1 %v8367_v28, %s8109_s0  ;;  %1898 = vrot.lane.b32.xlu0 %v8321_v2, %s8103_s21 }
 0x1c3   :  { %2197 = vrot.lane.b32.xlu1 %v8367_v28, %s8112_s13  ;;  %2155 = vrot.lane.b32.xlu0 %v8375_v31, %s8113_s14 }
 0x1c7   :  { %1072 = vrot.lane.b32.xlu1 %v8383_v35, %s8109_s0  ;;  %3390 = vrot.lane.b32.xlu0 %v8375_v31, %s8114_s15 }
 0x1cb   :  { %2195 = vrot.lane.b32.xlu1 %v8383_v35, %s8112_s13  ;;  %3428 = vrot.lane.b32.xlu0 %v8329_v6, %s8111_s2 }
 0x1cf   :  { %2165 = vrot.lane.b32.xlu1 %v8397_v48, %s8113_s14  ;;  %3396 = vrot.lane.b32.xlu0 %v8353_v20, %s8114_s15 }
 0x1d3   :  { %3430 = vrot.lane.b32.xlu1 %v8383_v35, %s8111_s2  ;;  %2159 = vrot.lane.b32.xlu0 %v8403_v51, %s8113_s14 }
 0x1d7   :  { %1078 = vrot.lane.b32.xlu1 %v8413_v57, %s8109_s0  ;;  %3394 = vrot.lane.b32.xlu0 %v8403_v51, %s8114_s15 }
 0x1db   :  { %2201 = vrot.lane.b32.xlu1 %v8413_v57, %s8112_s13  ;;  %3432 = vrot.lane.b32.xlu0 %v8367_v28, %s8111_s2 }
 0x1df   :  { %1076 = vrot.lane.b32.xlu1 %v8429_v0, %s8109_s0  ;;  %4667 = vrot.lane.b32.xlu0 %v8367_v28, %s8115_s16 }
 0x1e1   :  { %v8439_v9 = vpop.permute.xlu1 %3416  ;;  %v8441_v11 = vpop.permute.xlu0 %1058 }
 0x1e2   :  { %13729 = vst [vmem:[#allocation38_spill] sm:$0xff] %v8439_v9 }
 0x1e3   :  { %2199 = vrot.lane.b32.xlu1 %v8429_v0, %s8112_s13  ;;  %3400 = vrot.lane.b32.xlu0 %v8397_v48, %s8114_s15 }
 0x1e5   :  { %v8449_v22 = vpop.permute.xlu1 %2149  ;;  %v8451_v23 = vpop.permute.xlu0 %2181 }
 0x1e7   :  { %3434 = vrot.lane.b32.xlu1 %v8429_v0, %s8111_s2  ;;  %2163 = vrot.lane.b32.xlu0 %v8447_v14, %s8113_s14 }
 0x1e9   :  { %v8461_v34 = vpop.permute.xlu1 %3382  ;;  %v8463_v38 = vpop.permute.xlu0 %4651 }
 0x1ea   :  { %13732 = vst [vmem:[#allocation41_spill] sm:$0xff] %v8461_v34  ;;  %13733 = vst [vmem:[#allocation42_spill] sm:$0xff] %v8463_v38  ;;  %v1001_v38 = vmul.f32 0.35355338, %v389_v49 }
 0x1eb   :  { %2169 = vrot.lane.b32.xlu1 %v8457_v27, %s8113_s14  ;;  %3398 = vrot.lane.b32.xlu0 %v8447_v14, %s8114_s15 }
 0x1ed   :  { %v8471_v42 = vpop.permute.xlu1 %3420  ;;  %v8473_v44 = vpop.permute.xlu0 %1056 }
 0x1ef   :  { %1082 = vrot.lane.b32.xlu1 %v8469_v41, %s8109_s0  ;;  %3436 = vrot.lane.b32.xlu0 %v8413_v57, %s8111_s2 }
 0x1f1   :  { %v8481_v52 = vpop.permute.xlu1 %4655  ;;  %v8483_v54 = vpop.permute.xlu0 %2179 }
 0x1f2   :  { %13735 = vst [vmem:[#allocation44_spill] sm:$0xff] %v8481_v52 }
 0x1f3   :  { %2205 = vrot.lane.b32.xlu1 %v8469_v41, %s8112_s13  ;;  %4671 = vrot.lane.b32.xlu0 %v8413_v57, %s8115_s16 }
 0x1f5   :  { %v8491_v8 = vpop.permute.xlu1 %2153  ;;  %v8493_v19 = vpop.permute.xlu0 %3414 }
 0x1f6   :  { %13737 = vst [vmem:[#allocation46_spill] sm:$0xff] %v8491_v8  ;;  %13738 = vst [vmem:[#allocation47_spill] sm:$0xff] %v8493_v19 }
 0x1f7   :  { %1080 = vrot.lane.b32.xlu1 %v8489_v7, %s8109_s0  ;;  %4669 = vrot.lane.b32.xlu0 %v8429_v0, %s8115_s16 }
 0x1f9   :  { %v8501_v13 = vpop.permute.xlu1 %4653  ;;  %v8503_v21 = vpop.permute.xlu0 %3384 }
 0x1fa   :  { %13740 = vst [vmem:[#allocation49_spill] sm:$0xff] %v8501_v13  ;;  %13741 = vst [vmem:[#allocation50_spill] sm:$0xff] %v8503_v21  ;;  %v8551_v21 = vpack.c.bf16 %v1001_v38, %v1000_v56 }
 0x1fb   :  { %2203 = vrot.lane.b32.xlu1 %v8489_v7, %s8112_s13  ;;  %2167 = vrot.lane.b32.xlu0 %v8499_v3, %s8113_s14 }
 0x1fc   :  { %13746 = vst [vmem:[#allocation55_spill] sm:$0xff] %v8551_v21 }
 0x1fd   :  { %v8509_v25 = vpop.permute.xlu1 %3386  ;;  %v8511_v46 = vpop.permute.xlu0 %2147 }
 0x1fe   :  { %13742 = vst [vmem:[#allocation51_spill] sm:$0xff] %v8509_v25 }
 0x1ff   :  { %3438 = vrot.lane.b32.xlu1 %v8489_v7, %s8111_s2  ;;  %3402 = vrot.lane.b32.xlu0 %v8499_v3, %s8114_s15 }
 0x201   :  { %v8519_v5 = vpop.permute.xlu1 %3424  ;;  %v8521_v2 = vpop.permute.xlu0 %1062 }
 0x203   :  { %2173 = vrot.lane.b32.xlu1 %v8517_v58, %s8113_s14  ;;  %3440 = vrot.lane.b32.xlu0 %v8469_v41, %s8111_s2 }
 0x205   :  { %v8527_v29 = vpop.permute.xlu1 %4659  ;;  %v8529_v33 = vpop.permute.xlu0 %2185 }
 0x206   :  { %13744 = vst [vmem:[#allocation53_spill] sm:$0xff] %v8527_v29 }
 0x207   :  { %1914 = vrot.lane.b32.xlu1 %v8489_v7, %s8103_s21  ;;  %4675 = vrot.lane.b32.xlu0 %v8469_v41, %s8115_s16 }
 0x209   :  { %v8535_v62 = vpop.permute.xlu1 %1900  ;;  %v8537_v63 = vpop.permute.xlu0 %1060 }
 0x20b   :  { %1896 = vrot.lane.b32.xlu1 %v8263_v40, %s8103_s21  ;;  %1916 = vrot.lane.b32.xlu0 %v8469_v41, %s8103_s21 }
 0x20d   :  { %v8543_v25 = vpop.permute.xlu1 %2157  ;;  %v8545_v13 = vpop.permute.xlu0 %2183 }
 0x20e   :  { %13745 = vst [vmem:[#allocation54_spill] sm:$0xff] %v8543_v25 }
 0x20f   :  { %4665 = vrot.lane.b32.xlu1 %v8383_v35, %s8115_s16  ;;  %4673 = vrot.lane.b32.xlu0 %v8489_v7, %s8115_s16 }
 0x211   :  { %v8553_v52 = vpop.permute.xlu1 %3392  ;;  %v8555_v40 = vpop.permute.xlu0 %3418 }
 0x212   :  { %13747 = vst [vmem:[#allocation56_spill] sm:$0xff] %v8553_v52  ;;  %13748 = vst [vmem:[#allocation57_spill] sm:$0xff] %v8555_v40 }
 0x213   :  { %1894 = vrot.lane.b32.xlu1 %v8281_v50, %s8103_s21  ;;  %2171 = vrot.lane.b32.xlu0 %v8551_v21, %s8113_s14 }
 0x215   :  { %v8561_v47 = vpop.permute.xlu1 %4657  ;;  %v8563_v49 = vpop.permute.xlu0 %3388 }
 0x216   :  { %13749 = vst [vmem:[#allocation58_spill] sm:$0xff] %v8561_v47  ;;  %13750 = vst [vmem:[#allocation59_spill] sm:$0xff] %v8563_v49 }
 0x217   :  { %1892 = vrot.lane.b32.xlu1 %v8239_v26, %s8103_s21  ;;  %1912 = vrot.lane.b32.xlu0 %v8413_v57, %s8103_s21 }
 0x219   :  { %v8569_v56 = vpop.permute.xlu1 %1070  ;;  %v8571_v38 = vpop.permute.xlu0 %2151 }
 0x21a   :  { %13751 = vst [vmem:[#allocation60_spill] sm:$0xff] %v8571_v38 }
 0x21b   :  { %1906 = vrot.lane.b32.xlu1 %v8383_v35, %s8103_s21  ;;  %3404 = vrot.lane.b32.xlu0 %v8457_v27, %s8114_s15 }
 0x21d   :  { %v8577_v50 = vpop.permute.xlu1 %2193  ;;  %v1067_v7 = vpop.permute.xlu0 %1066 }
 0x21f   :  { %1888 = vrot.lane.b32.xlu1 %v8206_v12, %s8103_s21  ;;  %4649 = vrot.lane.b32.xlu0 %v8261_v39, %s8115_s16 }
 0x221   :  { %v8583_v26 = vpop.permute.xlu1 %1068  ;;  %v8585_v57 = vpop.permute.xlu0 %2189 }
 0x223   :  { %4661 = vrot.lane.b32.xlu1 %v8341_v10, %s8115_s16  ;;  %1910 = vrot.lane.b32.xlu0 %v8429_v0, %s8103_s21 }
 0x225   :  { %v8591_v35 = vpop.permute.xlu1 %2191  ;;  %v1065_v41 = vpop.permute.xlu0 %1064 }
 0x227   :  { %1886 = vrot.lane.b32.xlu1 %v8217_v18, %s8103_s21  ;;  %1908 = vrot.lane.b32.xlu0 %v8367_v28, %s8103_s21 }
 0x229   :  { %v8597_v52 = vpop.permute.xlu1 %2161  ;;  %v8599_v49 = vpop.permute.xlu0 %2187 }
 0x22a   :  { %13752 = vst [vmem:[#allocation61_spill] sm:$0xff] %v8597_v52 }
 0x22b   :  { %4613 = vrot.lane.b32.xlu1 %v8215_v17, %s8116_s17  ;;  %3406 = vrot.lane.b32.xlu0 %v8551_v21, %s8114_s15 }
 0x22d   :  { %v8605_v0 = vpop.permute.xlu1 %3426  ;;  %v8607_v34 = vpop.permute.xlu0 %3422 }
 0x22e   :  { %13753 = vst [vmem:[#allocation62_spill] sm:$0xff] %v8605_v0 }
 0x22f   :  { %4615 = vrot.lane.b32.xlu1 %v8213_v16, %s8116_s17  ;;  %4647 = vrot.lane.b32.xlu0 %v8206_v12, %s8115_s16 }
 0x231   :  { %v1075_v28 = vpop.permute.xlu1 %1074  ;;  %v8613_v47 = vpop.permute.xlu0 %1898 }
 0x233   :  { %4663 = vrot.lane.b32.xlu0 %v8329_v6, %s8115_s16 }
 0x235   :  { %v8617_v55 = vpop.permute.xlu1 %2197  ;;  %v8619_v29 = vpop.permute.xlu0 %2155 }
 0x236   :  { %13754 = vst [vmem:[#allocation63_spill] sm:$0xff] %v8619_v29 }
 0x237   :  { %1890 = vrot.lane.b32.xlu0 %v8261_v39, %s8103_s21 }
 0x239   :  { %v1073_v4 = vpop.permute.xlu1 %1072  ;;  %v8623_v52 = vpop.permute.xlu0 %3390 }
 0x23a   :  { %13755 = vst [vmem:[#allocation64_spill] sm:$0xff] %v8623_v52 }
 0x23b   :  { %1904 = vrot.lane.b32.xlu0 %v8329_v6, %s8103_s21 }
 0x23d   :  { %v8627_v12 = vpop.permute.xlu1 %2195  ;;  %v8629_v43 = vpop.permute.xlu0 %3428 }
 0x23e   :  { %13756 = vst [vmem:[#allocation65_spill] sm:$0xff] %v8629_v43 }
 0x23f   :  { %3408 = vrot.lane.b32.xlu0 %v8517_v58, %s8114_s15 }
 0x241   :  { %v8633_v0 = vpop.permute.xlu1 %2165  ;;  %v8635_v25 = vpop.permute.xlu0 %3396 }
 0x242   :  { %13757 = vst [vmem:[#allocation66_spill] sm:$0xff] %v8633_v0  ;;  %13758 = vst [vmem:[#allocation67_spill] sm:$0xff] %v8635_v25 }
 0x243   :  { %4645 = vrot.lane.b32.xlu0 %v8217_v18, %s8115_s16 }
 0x245   :  { %v8639_v39 = vpop.permute.xlu1 %3430  ;;  %v8641_v52 = vpop.permute.xlu0 %2159 }
 0x246   :  { %13759 = vst [vmem:[#allocation68_spill] sm:$0xff] %v8639_v39  ;;  %13760 = vst [vmem:[#allocation69_spill] sm:$0xff] %v8641_v52 }
 0x247   :  { %1902 = vrot.lane.b32.xlu0 %v8341_v10, %s8103_s21 }
 0x249   :  { %v1079_v6 = vpop.permute.xlu1 %1078  ;;  %v8645_v59 = vpop.permute.xlu0 %3394 }
 0x24a   :  { %13761 = vst [vmem:[#allocation70_spill] sm:$0xff] %v8645_v59 }
 0x24b   :  { %4617 = vrot.lane.b32.xlu0 %v8253_v36, %s8116_s17 }
 0x24d   :  { %v8649_v43 = vpop.permute.xlu1 %2201  ;;  %v8651_v0 = vpop.permute.xlu0 %3432 }
 0x24e   :  { %13762 = vst [vmem:[#allocation71_spill] sm:$0xff] %v8651_v0  ;;  %v1155_v0 = vsel %vm1084_vm1, %v1067_v7, 0 }
 0x251   :  { %v1077_v25 = vpop.permute.xlu1 %1076  ;;  %v8653_v29 = vpop.permute.xlu0 %4667 }
 0x252   :  { %13763 = vst [vmem:[#allocation72_spill] sm:$0xff] %v8653_v29 }
 0x255   :  { %v8655_v18 = vpop.permute.xlu1 %2199  ;;  %v8657_v19 = vpop.permute.xlu0 %3400 }
 0x256   :  { %13764 = vst [vmem:[#allocation73_spill] sm:$0xff] %v8657_v19 }
 0x259   :  { %v8659_v52 = vpop.permute.xlu1 %3434  ;;  %v8661_v10 = vpop.permute.xlu0 %2163 }
 0x25a   :  { %13765 = vst [vmem:[#allocation74_spill] sm:$0xff] %v8661_v10 }
 0x25d   :  { %v8663_v39 = vpop.permute.xlu1 %2169  ;;  %v8665_v59 = vpop.permute.xlu0 %3398 }
 0x25e   :  { %13766 = vst [vmem:[#allocation75_spill] sm:$0xff] %v8663_v39  ;;  %13767 = vst [vmem:[#allocation76_spill] sm:$0xff] %v8665_v59  ;;  %v1152_v39 = vsel %vm1084_vm1, %v1065_v41, 0 }
 0x261   :  { %v1083_v8 = vpop.permute.xlu1 %1082  ;;  %v8667_v9 = vpop.permute.xlu0 %3436 }
 0x262   :  { %7130 = vmatprep.subr.msk.bf16.mxu1 %vm1084_vm1, %v1083_v8 }
 0x263   :  { %6397 = vmatpush3.bf16.xpose.msra.mxu1 %v1155_v0  ;;  %v1149_v0 = vsel %vm1084_vm1, %v8521_v2, 0 }
 0x265   :  { %v2206_v29 = vpop.permute.xlu1 %2205  ;;  %v8671_v38 = vpop.permute.xlu0 %4671 }
 0x269   :  { %v1081_v19 = vpop.permute.xlu1 %1080  ;;  %v8673_v40 = vpop.permute.xlu0 %4669 }
 0x26a   :  { %13768 = vst [vmem:[#allocation77_spill] sm:$0xff] %v8673_v40  ;;  %7131 = vmatprep.subr.msk.bf16.mxu1 %vm1084_vm1, %v1081_v19 }
 0x26b   :  { %6399 = vmatpush3.bf16.xpose.msra.mxu1 %v1152_v39 }
 0x26c   :  { %7132 = vmatprep.subr.msk.bf16.mxu1 %vm1084_vm1, %v1079_v6  ;;  %v1146_v6 = vsel %vm1084_vm1, %v8537_v63, 0 }
 0x26d   :  { %v2204_v59 = vpop.permute.xlu1 %2203  ;;  %v8678_v10 = vpop.permute.xlu0 %2167 }
 0x271   :  { %v8680_v8 = vpop.permute.xlu1 %3438  ;;  %v8682_v7 = vpop.permute.xlu0 %3402 }
 0x272   :  { %13769 = vst [vmem:[#allocation78_spill] sm:$0xff] %v8682_v7 }
 0x273   :  { %6401 = vmatpush3.bf16.xpose.msra.mxu1 %v1149_v0 }
 0x274   :  { %7133 = vmatprep.subr.msk.bf16.mxu1 %vm1084_vm1, %v1077_v25  ;;  %v1143_v25 = vsel %vm1084_vm1, %v8441_v11, 0 }
 0x275   :  { %v8687_v40 = vpop.permute.xlu0 %3440  ;;  %v8689_v19 = vpop.permute.xlu1 %2173 }
 0x279   :  { %v8691_v39 = vpop.permute.xlu0 %4675  ;;  %v1915_v41 = vpop.permute.xlu1 %1914 }
 0x27b   :  { %6403 = vmatpush3.bf16.xpose.msra.mxu1 %v1146_v6 }
 0x27c   :  { %7134 = vmatprep.subr.msk.bf16.mxu1 %vm1084_vm1, %v1075_v28 }
 0x27d   :  { %v1917_v7 = vpop.permute.xlu0 %1916  ;;  %v1897_v0 = vpop.permute.xlu1 %1896 }
 0x27e   :  { %6444 = vmatprep.subr.bf16.mxu0 %v1917_v7 }
 0x27f   :  { %6445 = vmatpush3.bf16.msra.mxu0 %v8535_v62  ;;  %v1140_v62 = vsel %vm1084_vm1, %v8473_v44, 0 }
 0x280   :  { %6446 = vmatprep.subr.bf16.mxu0 %v1915_v41 }
 0x281   :  { %v8697_v2 = vpop.permute.xlu0 %4673  ;;  %v8705_v28 = vpop.permute.xlu1 %4665 }
 0x283   :  { %6405 = vmatpush3.bf16.xpose.msra.mxu1 %v1143_v25  ;;  %6447 = vmatpush3.bf16.msra.mxu0 %v8613_v47 }
 0x284   :  { %7135 = vmatprep.subr.msk.bf16.mxu1 %vm1084_vm1, %v1073_v4  ;;  %v1137_v4 = vsel %vm1084_vm1, %v8351_v15, 0 }
 0x285   :  { %v8703_v63 = vpop.permute.xlu0 %2171  ;;  %v1895_v7 = vpop.permute.xlu1 %1894 }
 0x289   :  { %v1913_v6 = vpop.permute.xlu0 %1912  ;;  %v1893_v41 = vpop.permute.xlu1 %1892 }
 0x28a   :  { %6448 = vmatprep.subr.bf16.mxu0 %v1913_v6 }
 0x28b   :  { %6407 = vmatpush3.bf16.xpose.msra.mxu1 %v1140_v62  ;;  %6449 = vmatpush3.bf16.msra.mxu0 %v1897_v0 }
 0x28c   :  { %7136 = vmatprep.subr.msk.bf16.mxu1 %vm1084_vm1, %v8569_v56  ;;  %v1134_v56 = vsel %vm1084_vm1, %v8373_v30, 0 }
 0x28d   :  { %v8711_v11 = vpop.permute.xlu0 %3404  ;;  %v1907_v0 = vpop.permute.xlu1 %1906 }
 0x291   :  { %v8713_v47 = vpop.permute.xlu0 %4649 }
 0x293   :  { %6409 = vmatpush3.bf16.xpose.msra.mxu1 %v1137_v4 }
 0x294   :  { %7137 = vmatprep.subr.msk.bf16.mxu1 %vm1084_vm1, %v8583_v26  ;;  %v2277_v26 = vsel %vm1084_vm1, %v8585_v57, 0  ;;  %v1889_v57 = vpop.permute.xlu1 %1888 }
 0x295   :  { %v1911_v25 = vpop.permute.xlu0 %1910 }
 0x296   :  { %6450 = vmatprep.subr.bf16.mxu0 %v1911_v25 }
 0x297   :  { %6451 = vmatpush3.bf16.msra.mxu0 %v1895_v7 }
 0x299   :  { %v1909_v44 = vpop.permute.xlu0 %1908 }
 0x29a   :  { %6452 = vmatprep.subr.bf16.mxu0 %v1909_v44  ;;  %v13781_v44 = vld [vmem:[#allocation62_spill] sm:$0xff] }
 0x29b   :  { %6411 = vmatpush3.bf16.xpose.msra.mxu1 %v1134_v56  ;;  %6453 = vmatpush3.bf16.msra.mxu0 %v1893_v41  ;;  %v13780_v41 = vld [vmem:[#allocation54_spill] sm:$0xff] }
 0x29c   :  { %6454 = vmatprep.subr.bf16.mxu0 %v1907_v0  ;;  %7138 = vmatprep.subr.msk.bf16.mxu1 %vm1084_vm1, %v2206_v29  ;;  %v2274_v29 = vsel %vm1084_vm1, %v8599_v49, 0  ;;  %v2271_v49 = vsel %vm1084_vm1, %v8529_v33, 0  ;;  %v13779_v33 = vld [vmem:[#allocation35_spill] sm:$0xff] }
 0x29d   :  { %v8722_v15 = vpop.permute.xlu0 %3406 }
 0x2a1   :  { %v8724_v6 = vpop.permute.xlu0 %4647 }
 0x2a2   :  { %6413 = vmatmul.mubr.msk.bf16.vlgmr.msra.gmra.mxu1 %vm1084_vm1, %v8215_v17 }
 0x2a3   :  { %6414 = vmatprep.mubr.msk.bf16.mxu1 %vm1084_vm1, %v8213_v16  ;;  %6557 = vmatpush3.bf16.xpose.msra.mxu1 %v2277_v26  ;;  %v13782_v26 = vld [vmem:[#allocation30_spill] sm:$0xff] }
 0x2a4   :  { %7139 = vmatprep.subr.msk.bf16.mxu1 %vm1084_vm1, %v2204_v59 }
 0x2a5   :  { %v8733_v30 = vpop.permute.xlu0 %4663 }
 0x2a9   :  { %v1891_v62 = vpop.permute.xlu0 %1890 }
 0x2aa   :  { %6415 = vmatmul.mubr.msk.bf16.gmra.mxu1 %vm1084_vm1, %v8213_v16  ;;  %6455 = vmatpush3.bf16.msra.mxu0 %v1891_v62  ;;  %v8751_v16 = vpop.permute.xlu1 %4661  ;;  %v3491_v62 = vsel %vm1084_vm1, %v13782_v26, 0 }
 0x2ab   :  { %6416 = vmatprep.mubr.msk.bf16.mxu1 %vm1084_vm1, %v8253_v36  ;;  %6559 = vmatpush3.bf16.xpose.msra.mxu1 %v2274_v29  ;;  %v13783_v29 = vld [vmem:[#allocation69_spill] sm:$0xff] }
 0x2ac   :  { %7140 = vmatprep.subr.msk.bf16.mxu1 %vm1084_vm1, %v8649_v43 }
 0x2ad   :  { %v1905_v17 = vpop.permute.xlu0 %1904 }
 0x2ae   :  { %6456 = vmatprep.subr.bf16.mxu0 %v1905_v17  ;;  %v1887_v4 = vpop.permute.xlu1 %1886 }
 0x2af   :  { %6457 = vmatpush3.bf16.msra.mxu0 %v1889_v57 }
 0x2b1   :  { %v8743_v59 = vpop.permute.xlu0 %3408 }
 0x2b2   :  { %6417 = vmatmul.mubr.msk.bf16.gmra.mxu1 %vm1084_vm1, %v8253_v36  ;;  %v2268_v36 = vsel %vm1084_vm1, %v8545_v13, 0  ;;  %v2262_v13 = vsel %vm1084_vm1, %v8483_v54, 0  ;;  %v13777_v54 = vld [vmem:[#allocation63_spill] sm:$0xff] }
 0x2b3   :  { %6418 = vmatprep.mubr.msk.bf16.mxu1 %vm1084_vm1, %v8247_v32  ;;  %6561 = vmatpush3.bf16.xpose.msra.mxu1 %v2271_v49 }
 0x2b4   :  { %7141 = vmatprep.subr.msk.bf16.mxu1 %vm1084_vm1, %v8655_v18  ;;  %v2265_v18 = vsel %vm1084_vm1, %v8451_v23, 0 }
 0x2b5   :  { %v8755_v43 = vpop.permute.xlu0 %4645 }
 0x2b9   :  { %v1903_v7 = vpop.permute.xlu0 %1902 }
 0x2ba   :  { %6419 = vmatmul.mubr.msk.bf16.gmra.mxu1 %vm1084_vm1, %v8247_v32  ;;  %6458 = vmatprep.subr.bf16.mxu0 %v1903_v7 }
 0x2bb   :  { %6420 = vmatprep.mubr.msk.bf16.mxu1 %vm1084_vm1, %v8287_v53  ;;  %6459 = vmatpush3.bf16.msra.mxu0 %v1887_v4 }
 0x2bc   :  { %6563 = vmatpush3.bf16.xpose.msra.mxu1 %v2268_v36 }
 0x2bd   :  { %7142 = vmatprep.subr.msk.bf16.mxu1 %vm1084_vm1, %v8617_v55  ;;  %v2259_v55 = vsel %vm1084_vm1, %v8361_v24, 0  ;;  %v3506_v24 = vsel %vm1084_vm1, %v8471_v42, 0  ;;  %v13775_v42 = vld [vmem:[#allocation68_spill] sm:$0xff] }
 0x2c2   :  { %6421 = vmatmul.mubr.msk.bf16.gmra.mxu1 %vm1084_vm1, %v8287_v53 }
 0x2c3   :  { %6422 = vmatprep.mubr.msk.bf16.mxu1 %vm1084_vm1, %v8273_v45 }
 0x2c4   :  { %6565 = vmatpush3.bf16.xpose.msra.mxu1 %v2265_v18  ;;  %v13340_v18 = vmov -1e+30  }
 0x2c5   :  { %7143 = vmatprep.subr.msk.bf16.mxu1 %vm1084_vm1, %v8627_v12  ;;  %v2256_v12 = vsel %vm1084_vm1, %v8385_v37, 0 }
 0x2ca   :  { %6423 = vmatmul.mubr.msk.bf16.gmra.mxu1 %vm1084_vm1, %v8273_v45 }
 0x2cb   :  { %6424 = vmatprep.mubr.msk.bf16.mxu1 %vm1084_vm1, %v8375_v31 }
 0x2cc   :  { %6567 = vmatpush3.bf16.xpose.msra.mxu1 %v2262_v13 }
 0x2cd   :  { %7144 = vmatprep.subr.msk.bf16.mxu1 %vm1084_vm1, %v8577_v50  ;;  %v3509_v50 = vsel %vm1084_vm1, %v8607_v34, 0  ;;  %v13774_v34 = vld [vmem:[#allocation46_spill] sm:$0xff] }
 0x2d2   :  { %6425 = vmatmul.mubr.msk.bf16.gmra.mxu1 %vm1084_vm1, %v8375_v31 }
 0x2d3   :  { %6426 = vmatprep.mubr.msk.bf16.mxu1 %vm1084_vm1, %v8309_v61 }
 0x2d4   :  { %6569 = vmatpush3.bf16.xpose.msra.mxu1 %v2259_v55 }
 0x2d5   :  { %7145 = vmatprep.subr.msk.bf16.mxu1 %vm1084_vm1, %v8591_v35  ;;  %v13770_v35 = vld [vmem:[#allocation57_spill] sm:$0xff] }
 0x2d6   :  { %v3503_v37 = vsel %vm1084_vm1, %v13770_v35, 0 }
 0x2da   :  { %6427 = vmatmul.mubr.msk.bf16.gmra.mxu1 %vm1084_vm1, %v8309_v61  ;;  %v13811_v61 = vld [vmem:[#allocation75_spill] sm:$0xff] }
 0x2db   :  { %6428 = vmatprep.mubr.msk.bf16.mxu1 %vm1084_vm1, %v8403_v51 }
 0x2dc   :  { %6571 = vmatpush3.bf16.xpose.msra.mxu1 %v2256_v12 }
 0x2dd   :  { %7146 = vmatprep.subr.msk.bf16.mxu1 %vm1084_vm1, %v8687_v40  ;;  %v3512_v40 = vsel %vm1084_vm1, %v8519_v5, 0  ;;  %v400_v5 = vlaneseq }
 0x2df   :  { %v434_v25 = vand.u32 127, %v400_v5  ;;  %v8885_v56 = vshrl.u32 %v400_v5, 7 }
 0x2e1   :  { %v435_v0 = vadd.s32 128, %v434_v25  ;;  %v440_v17 = vand.u32 31, %v8885_v56  ;;  %v8894_v57 = vand.u32 31, %v434_v25  ;;  %v402_v7 = vadd.s32 8, %v8885_v56  ;;  %v13791_v25 = vld [vmem:[#allocation74_spill] sm:$0xff] }
 0x2e2   :  { %6429 = vmatmul.mubr.msk.bf16.gmra.mxu1 %vm1084_vm1, %v8403_v51  ;;  %v403_v4 = vadd.s32 16, %v8885_v56 }
 0x2e3   :  { %6430 = vmatprep.mubr.msk.bf16.mxu1 %vm1084_vm1, %v8353_v20  ;;  %v8896_v49 = vand.u32 31, %v435_v0  ;;  %vm844_vm2 = vcmp.eq.s32.totalorder %v440_v17, %v8894_v57  ;;  %v447_v36 = vand.u32 31, %v402_v7 }
 0x2e4   :  { %v8905_v13 = vsel %vm844_vm2, 0.0, %v13340_v18 }
 0x2e5   :  { %vm845_vm3 = vcmp.eq.s32.totalorder %v440_v17, %v8896_v49  ;;  %13784 = vst [vmem:[#allocation57_spill] sm:$0xff] %v8905_v13  ;;  %vm846_vm4 = vcmp.eq.s32.totalorder %v447_v36, %v8894_v57  ;;  %vm847_vm5 = vcmp.eq.s32.totalorder %v447_v36, %v8896_v49 }
 0x2e6   :  { %v8910_v12 = vsel %vm845_vm3, 0.0, %v13340_v18 }
 0x2ea   :  { %6431 = vmatmul.mubr.msk.bf16.gmra.mxu1 %vm1084_vm1, %v8353_v20 }
 0x2eb   :  { %6432 = vmatprep.mubr.msk.bf16.mxu1 %vm1084_vm1, %v8447_v14 }
 0x2f2   :  { %6433 = vmatmul.mubr.msk.bf16.gmra.mxu1 %vm1084_vm1, %v8447_v14 }
 0x2f3   :  { %6434 = vmatprep.mubr.msk.bf16.mxu1 %vm1084_vm1, %v8397_v48 }
 0x2fa   :  { %6435 = vmatmul.mubr.msk.bf16.gmra.mxu1 %vm1084_vm1, %v8397_v48  ;;  %v411_v48 = vadd.s32 80, %v8885_v56 }
 0x2fb   :  { %6436 = vmatprep.mubr.msk.bf16.mxu1 %vm1084_vm1, %v8499_v3 }
 0x302   :  { %6437 = vmatmul.mubr.msk.bf16.gmra.mxu1 %vm1084_vm1, %v8499_v3 }
 0x303   :  { %6438 = vmatprep.mubr.msk.bf16.mxu1 %vm1084_vm1, %v8457_v27 }
 0x30a   :  { %6439 = vmatmul.mubr.msk.bf16.gmra.mxu1 %vm1084_vm1, %v8457_v27 }
 0x30b   :  { %6440 = vmatprep.mubr.msk.bf16.mxu1 %vm1084_vm1, %v8551_v21 }
 0x312   :  { %6441 = vmatmul.mubr.msk.bf16.gmra.mxu1 %vm1084_vm1, %v8551_v21 }
 0x313   :  { %6442 = vmatprep.mubr.msk.bf16.mxu1 %vm1084_vm1, %v8517_v58 }
 0x31a   :  { %6443 = vmatmul.mubr.msk.bf16.gmra.mxu1 %vm1084_vm1, %v8517_v58 }
 0x31b   :  { %6572 = vmatprep.mubr.msk.bf16.mxu1 %vm1084_vm1, %v8417_v60 }
 0x322   :  { %6573 = vmatmul.mubr.msk.bf16.vlgmr.msra.gmra.mxu1 %vm1084_vm1, %v8417_v60  ;;  %v13771_v60 = vld [vmem:[#allocation60_spill] sm:$0xff] }
 0x323   :  { %6717 = vmatpush3.bf16.xpose.msra.mxu1 %v3512_v40  ;;  %6574 = vmatprep.mubr.msk.bf16.mxu1 %vm1084_vm1, %v8431_v1  ;;  %13785 = vst [vmem:[#allocation60_spill] sm:$0xff] %v8910_v12  ;;  %v454_v40 = vand.u32 31, %v403_v4 }
 0x324   :  { %7147 = vmatprep.subr.msk.bf16.mxu1 %vm1084_vm1, %v8680_v8  ;;  %v3494_v8 = vsel %vm1084_vm1, %v13779_v33, 0 }
 0x325   :  { %vm848_vm6 = vcmp.eq.s32.totalorder %v454_v40, %v8894_v57  ;;  %vm849_vm7 = vcmp.eq.s32.totalorder %v454_v40, %v8896_v49 }
 0x326   :  { %v8946_v33 = vsel %vm849_vm7, 0.0, %v13340_v18 }
 0x327   :  { %13790 = vst [vmem:[#allocation68_spill] sm:$0xff] %v8946_v33 }
 0x32a   :  { %6575 = vmatmul.mubr.msk.bf16.gmra.mxu1 %vm1084_vm1, %v8431_v1  ;;  %v13772_v1 = vld [vmem:[#allocation71_spill] sm:$0xff] }
 0x32b   :  { %6719 = vmatpush3.bf16.xpose.msra.mxu1 %v3509_v50  ;;  %6576 = vmatprep.mubr.msk.bf16.mxu1 %vm1084_vm1, %v8511_v46  ;;  %v404_v50 = vadd.s32 24, %v8885_v56 }
 0x32c   :  { %7148 = vmatprep.subr.msk.bf16.mxu1 %vm1084_vm1, %v8667_v9  ;;  %v13773_v9 = vld [vmem:[#allocation38_spill] sm:$0xff] }
 0x32d   :  { %v3500_v23 = vsel %vm1084_vm1, %v13773_v9, 0  ;;  %v8927_v9 = vsel %vm847_vm5, 0.0, %v13340_v18 }
 0x32e   :  { %13788 = vst [vmem:[#allocation38_spill] sm:$0xff] %v8927_v9 }
 0x332   :  { %6577 = vmatmul.mubr.msk.bf16.gmra.mxu1 %vm1084_vm1, %v8511_v46  ;;  %v13778_v46 = vld [vmem:[#allocation65_spill] sm:$0xff] }
 0x333   :  { %6721 = vmatpush3.bf16.xpose.msra.mxu1 %v3506_v24  ;;  %6578 = vmatprep.mubr.msk.bf16.mxu1 %vm1084_vm1, %v8449_v22 }
 0x334   :  { %7149 = vmatprep.subr.msk.bf16.mxu1 %vm1084_vm1, %v8659_v52 }
 0x33a   :  { %6579 = vmatmul.mubr.msk.bf16.gmra.mxu1 %vm1084_vm1, %v8449_v22  ;;  %v13776_v22 = vld [vmem:[#allocation47_spill] sm:$0xff] }
 0x33b   :  { %6723 = vmatpush3.bf16.xpose.msra.mxu1 %v3503_v37  ;;  %6580 = vmatprep.mubr.msk.bf16.mxu1 %vm1084_vm1, %v13771_v60  ;;  %v3497_v52 = vsel %vm1084_vm1, %v13776_v22, 0 }
 0x33c   :  { %7150 = vmatprep.subr.msk.bf16.mxu1 %vm1084_vm1, %v13772_v1 }
 0x342   :  { %6581 = vmatmul.mubr.msk.bf16.gmra.mxu1 %vm1084_vm1, %v13771_v60  ;;  %v8924_v60 = vsel %vm846_vm4, 0.0, %v13340_v18 }
 0x343   :  { %6725 = vmatpush3.bf16.xpose.msra.mxu1 %v3500_v23  ;;  %6582 = vmatprep.mubr.msk.bf16.mxu1 %vm1084_vm1, %v13774_v34  ;;  %13787 = vst [vmem:[#allocation71_spill] sm:$0xff] %v8924_v60 }
 0x344   :  { %7151 = vmatprep.subr.msk.bf16.mxu1 %vm1084_vm1, %v13775_v42  ;;  %v405_v42 = vadd.s32 32, %v8885_v56 }
 0x34a   :  { %6583 = vmatmul.mubr.msk.bf16.gmra.mxu1 %vm1084_vm1, %v13774_v34  ;;  %v461_v34 = vand.u32 31, %v404_v50 }
 0x34b   :  { %6727 = vmatpush3.bf16.xpose.msra.mxu1 %v3497_v52  ;;  %6584 = vmatprep.mubr.msk.bf16.mxu1 %vm1084_vm1, %v13777_v54 }
 0x34c   :  { %7152 = vmatprep.subr.msk.bf16.mxu1 %vm1084_vm1, %v13778_v46  ;;  %v8941_v46 = vsel %vm848_vm6, 0.0, %v13340_v18  ;;  %vm850_vm8 = vcmp.eq.s32.totalorder %v461_v34, %v8894_v57  ;;  %vm851_vm9 = vcmp.eq.s32.totalorder %v461_v34, %v8896_v49 }
 0x34d   :  { %13789 = vst [vmem:[#allocation46_spill] sm:$0xff] %v8941_v46  ;;  %v8965_v7 = vsel %vm851_vm9, 0.0, %v13340_v18 }
 0x34e   :  { %13793 = vst [vmem:[#allocation63_spill] sm:$0xff] %v8965_v7 }
 0x352   :  { %6585 = vmatmul.mubr.msk.bf16.gmra.mxu1 %vm1084_vm1, %v13777_v54 }
 0x353   :  { %6729 = vmatpush3.bf16.xpose.msra.mxu1 %v3494_v8  ;;  %6586 = vmatprep.mubr.msk.bf16.mxu1 %vm1084_vm1, %v13780_v41  ;;  %v406_v8 = vadd.s32 40, %v8885_v56 }
 0x354   :  { %7153 = vmatprep.subr.msk.bf16.mxu1 %vm1084_vm1, %v13781_v44  ;;  %v468_v44 = vand.u32 31, %v405_v42  ;;  %v13796_v42 = vld [vmem:[#allocation66_spill] sm:$0xff] }
 0x355   :  { %v475_v4 = vand.u32 31, %v406_v8 }
 0x356   :  { %vm852_vm10 = vcmp.eq.s32.totalorder %v468_v44, %v8894_v57  ;;  %vm853_vm11 = vcmp.eq.s32.totalorder %v468_v44, %v8896_v49 }
 0x357   :  { %vm854_vm12 = vcmp.eq.s32.totalorder %v475_v4, %v8894_v57  ;;  %vm855_vm13 = vcmp.eq.s32.totalorder %v475_v4, %v8896_v49  ;;  %v409_v4 = vadd.s32 64, %v8885_v56 }
 0x358   :  { %v9000_v44 = vsel %vm854_vm12, 0.0, %v13340_v18 }
 0x359   :  { %13797 = vst [vmem:[#allocation54_spill] sm:$0xff] %v9000_v44 }
 0x35a   :  { %6587 = vmatmul.mubr.msk.bf16.gmra.mxu1 %vm1084_vm1, %v13780_v41 }
 0x35b   :  { %6731 = vmatpush3.bf16.xpose.msra.mxu1 %v3491_v62  ;;  %6588 = vmatprep.mubr.msk.bf16.mxu1 %vm1084_vm1, %v13783_v29 }
 0x35c   :  { %7154 = vmatprep.subr.msk.bf16.mxu1 %vm1084_vm1, %v8691_v39  ;;  %v13786_v39 = vld [vmem:[#allocation61_spill] sm:$0xff] }
 0x362   :  { %v1215_v55 = vpop.f32.mrf.mxu1  ;;  %6589 = vmatmul.mubr.msk.bf16.gmra.mxu1 %vm1084_vm1, %v13783_v29  ;;  %v8962_v29 = vsel %vm850_vm8, 0.0, %v13340_v18 }
 0x363   :  { %6590 = vmatprep.mubr.msk.bf16.mxu1 %vm1084_vm1, %v13786_v39  ;;  %v8918_v35 = vadd.f32 %v1215_v55, %v8905_v13  ;;  %13792 = vst [vmem:[#allocation47_spill] sm:$0xff] %v8962_v29  ;;  %v407_v55 = vadd.s32 48, %v8885_v56 }
 0x364   :  { %v1217_v24 = vpop.f32.mrf.mxu1 }
 0x365   :  { %v8921_v37 = vadd.f32 %v1217_v24, %v8910_v12  ;;  %v8979_v24 = vsel %vm852_vm10, 0.0, %v13340_v18 }
 0x366   :  { %v1219_v1 = vpop.f32.mrf.mxu1  ;;  %13794 = vst [vmem:[#allocation65_spill] sm:$0xff] %v8979_v24 }
 0x367   :  { %v1374_v23 = vmax.f32 %v8918_v35, %v8921_v37  ;;  %v8935_v52 = vadd.f32 %v1219_v1, %v8924_v60 }
 0x368   :  { %v1221_v22 = vpop.f32.mrf.mxu1 }
 0x369   :  { %v8938_v54 = vadd.f32 %v1221_v22, %v8927_v9  ;;  %1375 = vmax.xlane.f32.xlu1 %v1374_v23  ;;  %v8984_v23 = vsel %vm853_vm11, 0.0, %v13340_v18  ;;  %v482_v22 = vand.u32 31, %v407_v55 }
 0x36a   :  { %v1225_v5 = vpop.f32.mrf.mxu1  ;;  %6591 = vmatmul.mubr.msk.bf16.gmra.mxu1 %vm1084_vm1, %v13786_v39  ;;  %13795 = vst [vmem:[#allocation35_spill] sm:$0xff] %v8984_v23 }
 0x36b   :  { %v1377_v41 = vmax.f32 %v8935_v52, %v8938_v54  ;;  %6592 = vmatprep.mubr.msk.bf16.mxu1 %vm1084_vm1, %v13791_v25  ;;  %v8956_v26 = vadd.f32 %v1225_v5, %v8941_v46  ;;  %v408_v5 = vadd.s32 56, %v8885_v56  ;;  %vm856_vm14 = vcmp.eq.s32.totalorder %v482_v22, %v8894_v57 }
 0x36c   :  { %v1227_v0 = vpop.f32.mrf.mxu1  ;;  %vm857_vm15 = vcmp.eq.s32.totalorder %v482_v22, %v8896_v49  ;;  %v496_v22 = vand.u32 31, %v409_v4 }
 0x36d   :  { %v8959_v62 = vadd.f32 %v1227_v0, %v8946_v33  ;;  %1378 = vmax.xlane.f32.xlu0 %v1377_v41  ;;  %v489_v55 = vand.u32 31, %v408_v5  ;;  %v9022_v21 = vsel %vm857_vm15, 0.0, %v13340_v18 }
 0x36e   :  { %v1229_v17 = vpop.f32.mrf.mxu1  ;;  %13802 = vst [vmem:[#allocation74_spill] sm:$0xff] %v9022_v21  ;;  %vm860_vm4 = vcmp.eq.s32.totalorder %v496_v22, %v8894_v57  ;;  %vm861_vm5 = vcmp.eq.s32.totalorder %v496_v22, %v8896_v49 }
 0x36f   :  { %v1380_v36 = vmax.f32 %v8956_v26, %v8959_v62  ;;  %v8973_v39 = vadd.f32 %v1229_v17, %v8962_v29  ;;  %v9003_v17 = vsel %vm855_vm13, 0.0, %v13340_v18  ;;  %vm858_vm2 = vcmp.eq.s32.totalorder %v489_v55, %v8894_v57 }
 0x370   :  { %v1231_v40 = vpop.f32.mrf.mxu1  ;;  %13798 = vst [vmem:[#allocation62_spill] sm:$0xff] %v9003_v17  ;;  %vm859_vm3 = vcmp.eq.s32.totalorder %v489_v55, %v8896_v49  ;;  %v9038_v4 = vsel %vm858_vm2, 0.0, %v13340_v18  ;;  %v9055_v20 = vsel %vm860_vm4, 0.0, %v13340_v18  ;;  %v9060_v22 = vsel %vm861_vm5, 0.0, %v13340_v18 }
 0x371   :  { %v8976_v50 = vadd.f32 %v1231_v40, %v8965_v7  ;;  %1381 = vmax.xlane.f32.xlu1 %v1380_v36  ;;  %13805 = vst [vmem:[#allocation80_spill] sm:$0xff] %v9038_v4  ;;  %v9041_v3 = vsel %vm859_vm3, 0.0, %v13340_v18  ;;  %13809 = vst [vmem:[#allocation84_spill] sm:$0xff] %v9055_v20 }
 0x372   :  { %v1235_v1 = vpop.f32.mrf.mxu1  ;;  %6593 = vmatmul.mubr.msk.bf16.gmra.mxu1 %vm1084_vm1, %v13791_v25  ;;  %13806 = vst [vmem:[#allocation81_spill] sm:$0xff] %v9041_v3  ;;  %13810 = vst [vmem:[#allocation85_spill] sm:$0xff] %v9060_v22 }
 0x373   :  { %v1383_v34 = vmax.f32 %v8973_v39, %v8976_v50  ;;  %6594 = vmatprep.mubr.msk.bf16.mxu1 %vm1084_vm1, %v13796_v42  ;;  %v8994_v41 = vadd.f32 %v1235_v1, %v8979_v24 }
 0x374   :  { %v1237_v8 = vpop.f32.mrf.mxu1 }
 0x375   :  { %v8997_v25 = vadd.f32 %v1237_v8, %v8984_v23  ;;  %1384 = vmax.xlane.f32.xlu1 %v1383_v34  ;;  %v9017_v8 = vsel %vm856_vm14, 0.0, %v13340_v18 }
 0x376   :  { %v1239_v0 = vpop.f32.mrf.mxu1  ;;  %13801 = vst [vmem:[#allocation61_spill] sm:$0xff] %v9017_v8 }
 0x377   :  { %v1386_v36 = vmax.f32 %v8994_v41, %v8997_v25  ;;  %v9011_v1 = vadd.f32 %v1239_v0, %v9000_v44  ;;  %v410_v0 = vadd.s32 72, %v8885_v56 }
 0x378   :  { %v1241_v40 = vpop.f32.mrf.mxu1 }
 0x379   :  { %13799 = vst [vmem:[#allocation30_spill] sm:$0xff] %v9011_v1  ;;  %v9014_v34 = vadd.f32 %v1241_v40, %v9003_v17  ;;  %1387 = vmax.xlane.f32.xlu0 %v1386_v36 }
 0x37a   :  { %v1245_v58 = vpop.f32.mrf.mxu1  ;;  %6595 = vmatmul.mubr.msk.bf16.gmra.mxu1 %vm1084_vm1, %v13796_v42 }
 0x37b   :  { %13800 = vst [vmem:[#allocation69_spill] sm:$0xff] %v9014_v34  ;;  %v1389_v5 = vmax.f32 %v9011_v1, %v9014_v34  ;;  %6596 = vmatprep.mubr.msk.bf16.mxu1 %vm1084_vm1, %v8678_v10  ;;  %v9032_v40 = vadd.f32 %v1245_v58, %v9017_v8  ;;  %v503_v58 = vand.u32 31, %v410_v0  ;;  %v412_v0 = vadd.s32 88, %v8885_v56 }
 0x37c   :  { %v1247_v36 = vpop.f32.mrf.mxu1 }
 0x37d   :  { %13803 = vst [vmem:[#allocation66_spill] sm:$0xff] %v9032_v40  ;;  %v9035_v42 = vadd.f32 %v1247_v36, %v9022_v21  ;;  %1390 = vmax.xlane.f32.xlu1 %v1389_v5  ;;  %vm862_vm6 = vcmp.eq.s32.totalorder %v503_v58, %v8894_v57  ;;  %vm863_vm7 = vcmp.eq.s32.totalorder %v503_v58, %v8896_v49 }
 0x37e   :  { %v1249_v27 = vpop.f32.mrf.mxu1  ;;  %v9076_v45 = vsel %vm862_vm6, 0.0, %v13340_v18 }
 0x37f   :  { %13804 = vst [vmem:[#allocation79_spill] sm:$0xff] %v9035_v42  ;;  %v1392_v55 = vmax.f32 %v9032_v40, %v9035_v42  ;;  %v9049_v5 = vadd.f32 %v1249_v27, %v9038_v4  ;;  %13812 = vst [vmem:[#allocation75_spill] sm:$0xff] %v9076_v45  ;;  %v9079_v4 = vsel %vm863_vm7, 0.0, %v13340_v18 }
 0x380   :  { %v1251_v36 = vpop.f32.mrf.mxu1  ;;  %13813 = vst [vmem:[#allocation86_spill] sm:$0xff] %v9079_v4 }
 0x381   :  { %13807 = vst [vmem:[#allocation82_spill] sm:$0xff] %v9049_v5  ;;  %v9052_v14 = vadd.f32 %v1251_v36, %v9041_v3  ;;  %1393 = vmax.xlane.f32.xlu1 %v1392_v55  ;;  %v510_v55 = vand.u32 31, %v411_v48  ;;  %v517_v3 = vand.u32 31, %v412_v0  ;;  %v413_v48 = vadd.s32 96, %v8885_v56 }
 0x382   :  { %v1255_v51 = vpop.f32.mrf.mxu1  ;;  %6597 = vmatmul.mubr.msk.bf16.gmra.mxu1 %vm1084_vm1, %v8678_v10 }
 0x383   :  { %13808 = vst [vmem:[#allocation83_spill] sm:$0xff] %v9052_v14  ;;  %v1395_v27 = vmax.f32 %v9049_v5, %v9052_v14  ;;  %6598 = vmatprep.mubr.msk.bf16.mxu1 %vm1084_vm1, %v13811_v61  ;;  %v9070_v31 = vadd.f32 %v1255_v51, %v9055_v20  ;;  %vm864_vm8 = vcmp.eq.s32.totalorder %v510_v55, %v8894_v57 }
 0x384   :  { %v1257_v36 = vpop.f32.mrf.mxu1  ;;  %vm865_vm9 = vcmp.eq.s32.totalorder %v510_v55, %v8896_v49  ;;  %v9093_v20 = vsel %vm864_vm8, 0.0, %v13340_v18  ;;  %vm866_vm10 = vcmp.eq.s32.totalorder %v517_v3, %v8894_v57  ;;  %vm867_vm11 = vcmp.eq.s32.totalorder %v517_v3, %v8896_v49 }
 0x385   :  { %v9073_v10 = vadd.f32 %v1257_v36, %v9060_v22  ;;  %1396 = vmax.xlane.f32.xlu1 %v1395_v27  ;;  %13814 = vst [vmem:[#allocation87_spill] sm:$0xff] %v9093_v20  ;;  %v9098_v22 = vsel %vm865_vm9, 0.0, %v13340_v18  ;;  %v524_v55 = vand.u32 31, %v413_v48  ;;  %v9117_v5 = vsel %vm867_vm11, 0.0, %v13340_v18 }
 0x386   :  { %v1259_v53 = vpop.f32.mrf.mxu1  ;;  %13815 = vst [vmem:[#allocation88_spill] sm:$0xff] %v9098_v22  ;;  %13817 = vst [vmem:[#allocation90_spill] sm:$0xff] %v9117_v5  ;;  %v415_v3 = vadd.s32 112, %v8885_v56 }
 0x387   :  { %v1398_v58 = vmax.f32 %v9070_v31, %v9073_v10  ;;  %v9087_v27 = vadd.f32 %v1259_v53, %v9076_v45  ;;  %vm868_vm12 = vcmp.eq.s32.totalorder %v524_v55, %v8894_v57  ;;  %vm869_vm13 = vcmp.eq.s32.totalorder %v524_v55, %v8896_v49 }
 0x388   :  { %v1261_v51 = vpop.f32.mrf.mxu1  ;;  %v9136_v40 = vsel %vm869_vm13, 0.0, %v13340_v18  ;;  %v538_v55 = vand.u32 31, %v415_v3 }
 0x389   :  { %v9090_v36 = vadd.f32 %v1261_v51, %v9079_v4  ;;  %1399 = vmax.xlane.f32.xlu0 %v1398_v58  ;;  %v414_v58 = vadd.s32 104, %v8885_v56  ;;  %v9114_v4 = vsel %vm866_vm10, 0.0, %v13340_v18  ;;  %13819 = vst [vmem:[#allocation92_spill] sm:$0xff] %v9136_v40 }
 0x38a   :  { %v1265_v0 = vpop.f32.mrf.mxu1  ;;  %6599 = vmatmul.mubr.msk.bf16.gmra.mxu1 %vm1084_vm1, %v13811_v61  ;;  %13816 = vst [vmem:[#allocation89_spill] sm:$0xff] %v9114_v4  ;;  %vm872_vm2 = vcmp.eq.s32.totalorder %v538_v55, %v8894_v57  ;;  %vm873_vm3 = vcmp.eq.s32.totalorder %v538_v55, %v8896_v49 }
 0x38b   :  { %v1401_v53 = vmax.f32 %v9087_v27, %v9090_v36  ;;  %6600 = vmatprep.mubr.msk.bf16.mxu1 %vm1084_vm1, %v8703_v63  ;;  %v9108_v45 = vadd.f32 %v1265_v0, %v9093_v20  ;;  %v531_v0 = vand.u32 31, %v414_v58  ;;  %v9169_v34 = vsel %vm872_vm2, 0.0, %v13340_v18 }
 0x38c   :  { %v1267_v51 = vpop.f32.mrf.mxu1  ;;  %13825 = vst [vmem:[#allocation98_spill] sm:$0xff] %v9169_v34  ;;  %v9174_v55 = vsel %vm873_vm3, 0.0, %v13340_v18 }
 0x38d   :  { %v9111_v61 = vadd.f32 %v1267_v51, %v9098_v22  ;;  %1402 = vmax.xlane.f32.xlu1 %v1401_v53  ;;  %v9131_v22 = vsel %vm868_vm12, 0.0, %v13340_v18  ;;  %vm870_vm14 = vcmp.eq.s32.totalorder %v531_v0, %v8894_v57  ;;  %vm871_vm15 = vcmp.eq.s32.totalorder %v531_v0, %v8896_v49  ;;  %13826 = vst [vmem:[#allocation99_spill] sm:$0xff] %v9174_v55 }
 0x38e   :  { %v1269_v14 = vpop.f32.mrf.mxu1  ;;  %13818 = vst [vmem:[#allocation91_spill] sm:$0xff] %v9131_v22  ;;  %v9152_v3 = vsel %vm870_vm14, 0.0, %v13340_v18 }
 0x38f   :  { %v1404_v48 = vmax.f32 %v9108_v45, %v9111_v61  ;;  %v9125_v53 = vadd.f32 %v1269_v14, %v9114_v4  ;;  %v416_v14 = vadd.s32 120, %v8885_v56  ;;  %13821 = vst [vmem:[#allocation94_spill] sm:$0xff] %v9152_v3 }
 0x390   :  { %v1271_v51 = vpop.f32.mrf.mxu1 }
 0x391   :  { %v9128_v20 = vadd.f32 %v1271_v51, %v9117_v5  ;;  %1405 = vmax.xlane.f32.xlu1 %v1404_v48  ;;  %v9155_v5 = vsel %vm871_vm15, 0.0, %v13340_v18 }
 0x392   :  { %v1275_v42 = vpop.f32.mrf.mxu1  ;;  %6601 = vmatmul.mubr.msk.bf16.gmra.mxu1 %vm1084_vm1, %v8703_v63  ;;  %13822 = vst [vmem:[#allocation95_spill] sm:$0xff] %v9155_v5 }
 0x393   :  { %v1407_v58 = vmax.f32 %v9125_v53, %v9128_v20  ;;  %6602 = vmatprep.mubr.msk.bf16.mxu1 %vm1084_vm1, %v8689_v19  ;;  %v9146_v51 = vadd.f32 %v1275_v42, %v9131_v22  ;;  %v545_v42 = vand.u32 31, %v416_v14  ;;  %v417_v22 = vadd.s32 128, %v8885_v56 }
 0x394   :  { %v1277_v48 = vpop.f32.mrf.mxu1  ;;  %v418_v14 = vadd.s32 136, %v8885_v56 }
 0x395   :  { %v9149_v63 = vadd.f32 %v1277_v48, %v9136_v40  ;;  %1408 = vmax.xlane.f32.xlu1 %v1407_v58  ;;  %vm874_vm4 = vcmp.eq.s32.totalorder %v545_v42, %v8894_v57  ;;  %vm875_vm5 = vcmp.eq.s32.totalorder %v545_v42, %v8896_v49 }
 0x396   :  { %v1279_v4 = vpop.f32.mrf.mxu1  ;;  %v9190_v44 = vsel %vm874_vm4, 0.0, %v13340_v18 }
 0x397   :  { %13820 = vst [vmem:[#allocation93_spill] sm:$0xff] %v9149_v63  ;;  %v1410_v0 = vmax.f32 %v9146_v51, %v9149_v63  ;;  %v9163_v58 = vadd.f32 %v1279_v4, %v9152_v3  ;;  %v13827_v3 = vld [vmem:[#allocation37_spill] sm:$0xff]  ;;  %13830 = vst [vmem:[#allocation101_spill] sm:$0xff] %v9190_v44  ;;  %v559_v63 = vand.u32 31, %v418_v14 }
 0x398   :  { %v1281_v48 = vpop.f32.mrf.mxu1 }
 0x399   :  { %13823 = vst [vmem:[#allocation96_spill] sm:$0xff] %v9163_v58  ;;  %v9166_v40 = vadd.f32 %v1281_v48, %v9155_v5  ;;  %1411 = vmax.xlane.f32.xlu1 %v1410_v0  ;;  %v552_v0 = vand.u32 31, %v417_v22  ;;  %vm878_vm8 = vcmp.eq.s32.totalorder %v559_v63, %v8894_v57  ;;  %vm879_vm9 = vcmp.eq.s32.totalorder %v559_v63, %v8896_v49 }
 0x39a   :  { %v1285_v1 = vpop.f32.mrf.mxu1  ;;  %6603 = vmatmul.mubr.msk.bf16.gmra.mxu1 %vm1084_vm1, %v8689_v19 }
 0x39b   :  { %13824 = vst [vmem:[#allocation97_spill] sm:$0xff] %v9166_v40  ;;  %v1413_v4 = vmax.f32 %v9163_v58, %v9166_v40  ;;  %6732 = vmatprep.mubr.msk.bf16.mxu1 %vm1084_vm1, %v13827_v3  ;;  %v9184_v5 = vadd.f32 %v1285_v1, %v9169_v34  ;;  %v9193_v58 = vsel %vm875_vm5, 0.0, %v13340_v18  ;;  %vm876_vm6 = vcmp.eq.s32.totalorder %v552_v0, %v8894_v57  ;;  %v13834_v18 = vld [vmem:[#allocation53_spill] sm:$0xff] }
 0x39c   :  { %v1287_v48 = vpop.f32.mrf.mxu1  ;;  %13831 = vst [vmem:[#allocation102_spill] sm:$0xff] %v9193_v58  ;;  %vm877_vm7 = vcmp.eq.s32.totalorder %v552_v0, %v8896_v49  ;;  %v419_v1 = vadd.s32 144, %v8885_v56  ;;  %v4747_v14 = vsel %vm1084_vm1, %v13834_v18, 0  ;;  %v13835_v34 = vmov -1e+30  }
 0x39d   :  { %13828 = vst [vmem:[#allocation37_spill] sm:$0xff] %v9184_v5  ;;  %v9187_v19 = vadd.f32 %v1287_v48, %v9174_v55  ;;  %1414 = vmax.xlane.f32.xlu0 %v1413_v4  ;;  %v9209_v55 = vsel %vm876_vm6, 0.0, %v13835_v34  ;;  %v9214_v0 = vsel %vm877_vm7, 0.0, %v13835_v34  ;;  %v9235_v63 = vsel %vm879_vm9, 0.0, %v13835_v34 }
 0x39e   :  { %v1289_v40 = vpop.f32.mrf.mxu1  ;;  %13836 = vst [vmem:[#allocation53_spill] sm:$0xff] %v9209_v55  ;;  %13837 = vst [vmem:[#allocation105_spill] sm:$0xff] %v9214_v0  ;;  %v566_v18 = vand.u32 31, %v419_v1  ;;  %v421_v1 = vadd.s32 160, %v8885_v56 }
 0x39f   :  { %13829 = vst [vmem:[#allocation100_spill] sm:$0xff] %v9187_v19  ;;  %v1416_v42 = vmax.f32 %v9184_v5, %v9187_v19  ;;  %v9201_v4 = vadd.f32 %v1289_v40, %v9190_v44  ;;  %13842 = vst [vmem:[#allocation108_spill] sm:$0xff] %v9235_v63 }
 0x3a0   :  { %v1291_v22 = vpop.f32.mrf.mxu1  ;;  %vm880_vm10 = vcmp.eq.s32.totalorder %v566_v18, %v8894_v57  ;;  %vm881_vm11 = vcmp.eq.s32.totalorder %v566_v18, %v8896_v49 }
 0x3a1   :  { %13832 = vst [vmem:[#allocation103_spill] sm:$0xff] %v9201_v4  ;;  %v9204_v48 = vadd.f32 %v1291_v22, %v9193_v58  ;;  %1417 = vmax.xlane.f32.xlu1 %v1416_v42  ;;  %v13838_v42 = vld [vmem:[#allocation33_spill] sm:$0xff]  ;;  %v420_v22 = vadd.s32 152, %v8885_v56  ;;  %v9251_v5 = vsel %vm880_vm10, 0.0, %v13835_v34  ;;  %v9256_v18 = vsel %vm881_vm11, 0.0, %v13835_v34 }
 0x3a2   :  { %v1295_v19 = vpop.f32.mrf.mxu1  ;;  %6733 = vmatmul.mubr.msk.bf16.vlgmr.msra.gmra.mxu1 %vm1084_vm1, %v13827_v3  ;;  %13847 = vst [vmem:[#allocation111_spill] sm:$0xff] %v9256_v18 }
 0x3a3   :  { %13833 = vst [vmem:[#allocation104_spill] sm:$0xff] %v9204_v48  ;;  %v1419_v40 = vmax.f32 %v9201_v4, %v9204_v48  ;;  %6877 = vmatpush3.bf16.xpose.msra.mxu1 %v4747_v14  ;;  %6734 = vmatprep.mubr.msk.bf16.mxu1 %vm1084_vm1, %v13838_v42  ;;  %v9226_v44 = vadd.f32 %v1295_v19, %v9209_v55  ;;  %v9232_v14 = vsel %vm878_vm8, 0.0, %v13835_v34  ;;  %v573_v19 = vand.u32 31, %v420_v22 }
 0x3a4   :  { %7155 = vmatprep.subr.msk.bf16.mxu1 %vm1084_vm1, %v8697_v2  ;;  %v1297_v3 = vpop.f32.mrf.mxu1  ;;  %13841 = vst [vmem:[#allocation107_spill] sm:$0xff] %v9232_v14  ;;  %v580_v22 = vand.u32 31, %v421_v1 }
 0x3a5   :  { %13839 = vst [vmem:[#allocation33_spill] sm:$0xff] %v9226_v44  ;;  %v9229_v58 = vadd.f32 %v1297_v3, %v9214_v0  ;;  %1420 = vmax.xlane.f32.xlu0 %v1419_v40  ;;  %v13845_v0 = vld [vmem:[#allocation58_spill] sm:$0xff]  ;;  %vm882_vm12 = vcmp.eq.s32.totalorder %v573_v19, %v8894_v57  ;;  %vm883_vm13 = vcmp.eq.s32.totalorder %v573_v19, %v8896_v49  ;;  %v423_v19 = vadd.s32 176, %v8885_v56 }
 0x3a6   :  { %v1299_v48 = vpop.f32.mrf.mxu1  ;;  %v4744_v4 = vsel %vm1084_vm1, %v13845_v0, 0  ;;  %13846 = vst [vmem:[#allocation58_spill] sm:$0xff] %v9251_v5  ;;  %v422_v0 = vadd.s32 168, %v8885_v56  ;;  %vm884_vm14 = vcmp.eq.s32.totalorder %v580_v22, %v8894_v57  ;;  %vm885_vm15 = vcmp.eq.s32.totalorder %v580_v22, %v8896_v49 }
 0x3a7   :  { %13840 = vst [vmem:[#allocation106_spill] sm:$0xff] %v9229_v58  ;;  %v1422_v2 = vmax.f32 %v9226_v44, %v9229_v58  ;;  %v9243_v40 = vadd.f32 %v1299_v48, %v9232_v14  ;;  %v9298_v22 = vsel %vm885_vm15, 0.0, %v13835_v34 }
 0x3a8   :  { %v1301_v3 = vpop.f32.mrf.mxu1  ;;  %13856 = vst [vmem:[#allocation116_spill] sm:$0xff] %v9298_v22 }
 0x3a9   :  { %13843 = vst [vmem:[#allocation109_spill] sm:$0xff] %v9243_v40  ;;  %v9246_v55 = vadd.f32 %v1301_v3, %v9235_v63  ;;  %1423 = vmax.xlane.f32.xlu0 %v1422_v2  ;;  %v13848_v3 = vld [vmem:[#allocation41_spill] sm:$0xff]  ;;  %v9277_v63 = vsel %vm883_vm13, 0.0, %v13835_v34 }
 0x3aa   :  { %v1305_v58 = vpop.f32.mrf.mxu1  ;;  %6735 = vmatmul.mubr.msk.bf16.gmra.mxu1 %vm1084_vm1, %v13838_v42  ;;  %13851 = vst [vmem:[#allocation113_spill] sm:$0xff] %v9277_v63 }
 0x3ab   :  { %13844 = vst [vmem:[#allocation110_spill] sm:$0xff] %v9246_v55  ;;  %v1425_v48 = vmax.f32 %v9243_v40, %v9246_v55  ;;  %6879 = vmatpush3.bf16.xpose.msra.mxu1 %v4744_v4  ;;  %6736 = vmatprep.mubr.msk.bf16.mxu1 %vm1084_vm1, %v13848_v3  ;;  %v9268_v2 = vadd.f32 %v1305_v58, %v9251_v5  ;;  %v9274_v4 = vsel %vm882_vm12, 0.0, %v13835_v34  ;;  %v587_v58 = vand.u32 31, %v422_v0 }
 0x3ac   :  { %7156 = vmatprep.subr.msk.bf16.mxu1 %vm1084_vm1, %v8671_v38  ;;  %v1307_v42 = vpop.f32.mrf.mxu1  ;;  %13850 = vst [vmem:[#allocation112_spill] sm:$0xff] %v9274_v4  ;;  %v9293_v40 = vsel %vm884_vm14, 0.0, %v13835_v34 }
 0x3ad   :  { %v9271_v1 = vadd.f32 %v1307_v42, %v9256_v18  ;;  %1426 = vmax.xlane.f32.xlu1 %v1425_v48  ;;  %v13854_v18 = vld [vmem:[#allocation44_spill] sm:$0xff]  ;;  %vm886_vm2 = vcmp.eq.s32.totalorder %v587_v58, %v8894_v57  ;;  %vm887_vm3 = vcmp.eq.s32.totalorder %v587_v58, %v8896_v49 }
 0x3ae   :  { %v1309_v14 = vpop.f32.mrf.mxu1  ;;  %v4741_v55 = vsel %vm1084_vm1, %v13854_v18, 0  ;;  %13855 = vst [vmem:[#allocation44_spill] sm:$0xff] %v9293_v40  ;;  %v594_v18 = vand.u32 31, %v423_v19 }
 0x3af   :  { %13849 = vst [vmem:[#allocation41_spill] sm:$0xff] %v9271_v1  ;;  %v1428_v38 = vmax.f32 %v9268_v2, %v9271_v1  ;;  %v9285_v48 = vadd.f32 %v1309_v14, %v9274_v4  ;;  %v424_v14 = vadd.s32 184, %v8885_v56 }
 0x3b0   :  { %v1311_v42 = vpop.f32.mrf.mxu1  ;;  %vm888_vm4 = vcmp.eq.s32.totalorder %v594_v18, %v8894_v57  ;;  %vm889_vm5 = vcmp.eq.s32.totalorder %v594_v18, %v8896_v49 }
 0x3b1   :  { %13852 = vst [vmem:[#allocation114_spill] sm:$0xff] %v9285_v48  ;;  %v9288_v5 = vadd.f32 %v1311_v42, %v9277_v63  ;;  %1429 = vmax.xlane.f32.xlu0 %v1428_v38  ;;  %v13857_v38 = vld [vmem:[#allocation50_spill] sm:$0xff]  ;;  %v13858_v42 = vld [vmem:[#allocation77_spill] sm:$0xff]  ;;  %v601_v58 = vand.u32 31, %v424_v14  ;;  %v9340_v18 = vsel %vm889_vm5, 0.0, %v13835_v34 }
 0x3b2   :  { %v1315_v44 = vpop.f32.mrf.mxu1  ;;  %6737 = vmatmul.mubr.msk.bf16.gmra.mxu1 %vm1084_vm1, %v13848_v3  ;;  %13867 = vst [vmem:[#allocation121_spill] sm:$0xff] %v9340_v18 }
 0x3b3   :  { %13853 = vst [vmem:[#allocation115_spill] sm:$0xff] %v9288_v5  ;;  %v1431_v0 = vmax.f32 %v9285_v48, %v9288_v5  ;;  %6881 = vmatpush3.bf16.xpose.msra.mxu1 %v4741_v55  ;;  %6738 = vmatprep.mubr.msk.bf16.mxu1 %vm1084_vm1, %v13857_v38  ;;  %v9310_v4 = vadd.f32 %v1315_v44, %v9293_v40  ;;  %v9316_v55 = vsel %vm886_vm2, 0.0, %v13835_v34  ;;  %v9319_v48 = vsel %vm887_vm3, 0.0, %v13835_v34  ;;  %v13865_v40 = vld [vmem:[#allocation49_spill] sm:$0xff] }
 0x3b4   :  { %7157 = vmatprep.subr.msk.bf16.mxu1 %vm1084_vm1, %v13858_v42  ;;  %v1317_v3 = vpop.f32.mrf.mxu1  ;;  %13861 = vst [vmem:[#allocation117_spill] sm:$0xff] %v9316_v55  ;;  %13862 = vst [vmem:[#allocation118_spill] sm:$0xff] %v9319_v48  ;;  %v425_v44 = vadd.s32 192, %v8885_v56  ;;  %v4738_v14 = vsel %vm1084_vm1, %v13865_v40, 0  ;;  %vm890_vm6 = vcmp.eq.s32.totalorder %v601_v58, %v8894_v57  ;;  %vm891_vm7 = vcmp.eq.s32.totalorder %v601_v58, %v8896_v49 }
 0x3b5   :  { %13859 = vst [vmem:[#allocation50_spill] sm:$0xff] %v9310_v4  ;;  %v9313_v63 = vadd.f32 %v1317_v3, %v9298_v22  ;;  %1432 = vmax.xlane.f32.xlu1 %v1431_v0  ;;  %v9335_v22 = vsel %vm888_vm4, 0.0, %v13835_v34  ;;  %v9361_v58 = vsel %vm891_vm7, 0.0, %v13835_v34 }
 0x3b6   :  { %v1319_v5 = vpop.f32.mrf.mxu1  ;;  %13866 = vst [vmem:[#allocation49_spill] sm:$0xff] %v9335_v22  ;;  %v608_v40 = vand.u32 31, %v425_v44  ;;  %13872 = vst [vmem:[#allocation122_spill] sm:$0xff] %v9361_v58  ;;  %v427_v44 = vadd.s32 208, %v8885_v56 }
 0x3b7   :  { %13860 = vst [vmem:[#allocation77_spill] sm:$0xff] %v9313_v63  ;;  %v1434_v19 = vmax.f32 %v9310_v4, %v9313_v63  ;;  %v9327_v0 = vadd.f32 %v1319_v5, %v9316_v55  ;;  %v13869_v55 = vld [vmem:[#allocation72_spill] sm:$0xff] }
 0x3b8   :  { %v1321_v42 = vpop.f32.mrf.mxu1  ;;  %vm892_vm8 = vcmp.eq.s32.totalorder %v608_v40, %v8894_v57  ;;  %vm893_vm9 = vcmp.eq.s32.totalorder %v608_v40, %v8896_v49 }
 0x3b9   :  { %13863 = vst [vmem:[#allocation119_spill] sm:$0xff] %v9327_v0  ;;  %v9330_v3 = vadd.f32 %v1321_v42, %v9319_v48  ;;  %1435 = vmax.xlane.f32.xlu0 %v1434_v19  ;;  %v13868_v19 = vld [vmem:[#allocation51_spill] sm:$0xff]  ;;  %v426_v42 = vadd.s32 200, %v8885_v56  ;;  %v9377_v1 = vsel %vm892_vm8, 0.0, %v13835_v34  ;;  %v9382_v40 = vsel %vm893_vm9, 0.0, %v13835_v34 }
 0x3ba   :  { %v1325_v63 = vpop.f32.mrf.mxu1  ;;  %6739 = vmatmul.mubr.msk.bf16.gmra.mxu1 %vm1084_vm1, %v13857_v38  ;;  %13876 = vst [vmem:[#allocation124_spill] sm:$0xff] %v9382_v40 }
 0x3bb   :  { %13864 = vst [vmem:[#allocation120_spill] sm:$0xff] %v9330_v3  ;;  %v1437_v5 = vmax.f32 %v9327_v0, %v9330_v3  ;;  %6883 = vmatpush3.bf16.xpose.msra.mxu1 %v4738_v14  ;;  %6740 = vmatprep.mubr.msk.bf16.mxu1 %vm1084_vm1, %v13868_v19  ;;  %v9352_v48 = vadd.f32 %v1325_v63, %v9335_v22  ;;  %v9358_v14 = vsel %vm890_vm6, 0.0, %v13835_v34  ;;  %v615_v63 = vand.u32 31, %v426_v42 }
 0x3bc   :  { %7158 = vmatprep.subr.msk.bf16.mxu1 %vm1084_vm1, %v13869_v55  ;;  %v1327_v38 = vpop.f32.mrf.mxu1  ;;  %13871 = vst [vmem:[#allocation72_spill] sm:$0xff] %v9358_v14  ;;  %v622_v42 = vand.u32 31, %v427_v44 }
 0x3bd   :  { %v9355_v4 = vadd.f32 %v1327_v38, %v9340_v18  ;;  %1438 = vmax.xlane.f32.xlu1 %v1437_v5  ;;  %v13874_v18 = vld [vmem:[#allocation42_spill] sm:$0xff]  ;;  %vm894_vm10 = vcmp.eq.s32.totalorder %v615_v63, %v8894_v57  ;;  %vm895_vm11 = vcmp.eq.s32.totalorder %v615_v63, %v8896_v49  ;;  %v429_v63 = vadd.s32 224, %v8885_v56 }
 0x3be   :  { %v1329_v3 = vpop.f32.mrf.mxu1  ;;  %v4735_v0 = vsel %vm1084_vm1, %v13874_v18, 0  ;;  %13875 = vst [vmem:[#allocation42_spill] sm:$0xff] %v9377_v1  ;;  %v428_v18 = vadd.s32 216, %v8885_v56  ;;  %vm896_vm12 = vcmp.eq.s32.totalorder %v622_v42, %v8894_v57  ;;  %vm897_vm13 = vcmp.eq.s32.totalorder %v622_v42, %v8896_v49 }
 0x3bf   :  { %13870 = vst [vmem:[#allocation51_spill] sm:$0xff] %v9355_v4  ;;  %v1440_v55 = vmax.f32 %v9352_v48, %v9355_v4  ;;  %v9369_v5 = vadd.f32 %v1329_v3, %v9358_v14  ;;  %v9424_v42 = vsel %vm897_vm13, 0.0, %v13835_v34  ;;  %vm6233_vm13 = vcmask 785408  }
 0x3c0   :  { %v1331_v38 = vpop.f32.mrf.mxu1  ;;  %13883 = vst [vmem:[#allocation129_spill] sm:$0xff] %v9424_v42 }
 0x3c1   :  { %v9372_v22 = vadd.f32 %v1331_v38, %v9361_v58  ;;  %1441 = vmax.xlane.f32.xlu0 %v1440_v55  ;;  %v13877_v38 = vld [vmem:[#allocation59_spill] sm:$0xff]  ;;  %v9403_v58 = vsel %vm895_vm11, 0.0, %v13835_v34  ;;  %vm5815_vm11 = vcmask 261312  }
 0x3c2   :  { %v1335_v4 = vpop.f32.mrf.mxu1  ;;  %6741 = vmatmul.mubr.msk.bf16.gmra.mxu1 %vm1084_vm1, %v13868_v19  ;;  %13880 = vst [vmem:[#allocation126_spill] sm:$0xff] %v9403_v58 }
 0x3c3   :  { %13873 = vst [vmem:[#allocation123_spill] sm:$0xff] %v9372_v22  ;;  %v1443_v3 = vmax.f32 %v9369_v5, %v9372_v22  ;;  %6885 = vmatpush3.bf16.xpose.msra.mxu1 %v4735_v0  ;;  %6742 = vmatprep.mubr.msk.bf16.mxu1 %vm1084_vm1, %v13877_v38  ;;  %v9394_v55 = vadd.f32 %v1335_v4, %v9377_v1  ;;  %v9400_v0 = vsel %vm894_vm10, 0.0, %v13835_v34  ;;  %v629_v4 = vand.u32 31, %v428_v18 }
 0x3c4   :  { %7159 = vmatprep.subr.msk.bf16.mxu1 %vm1084_vm1, %v8705_v28  ;;  %v1337_v19 = vpop.f32.mrf.mxu1  ;;  %13879 = vst [vmem:[#allocation125_spill] sm:$0xff] %v9400_v0  ;;  %v9419_v22 = vsel %vm896_vm12, 0.0, %v13835_v34  ;;  %vm4580_vm10 = vcmask 195712   ;;  %vm6228_vm12 = vcmask 523264  }
 0x3c5   :  { %v9397_v44 = vadd.f32 %v1337_v19, %v9382_v40  ;;  %1444 = vmax.xlane.f32.xlu1 %v1443_v3  ;;  %v4732_v40 = vsel %vm1084_vm1, %v8713_v47, 0  ;;  %13882 = vst [vmem:[#allocation128_spill] sm:$0xff] %v9419_v22  ;;  %vm898_vm14 = vcmp.eq.s32.totalorder %v629_v4, %v8894_v57  ;;  %vm899_vm15 = vcmp.eq.s32.totalorder %v629_v4, %v8896_v49 }
 0x3c6   :  { %v1339_v14 = vpop.f32.mrf.mxu1  ;;  %v636_v47 = vand.u32 31, %v429_v63 }
 0x3c7   :  { %13878 = vst [vmem:[#allocation59_spill] sm:$0xff] %v9397_v44  ;;  %v1446_v28 = vmax.f32 %v9394_v55, %v9397_v44  ;;  %v9411_v3 = vadd.f32 %v1339_v14, %v9400_v0  ;;  %v430_v14 = vadd.s32 232, %v8885_v56 }
 0x3c8   :  { %v1341_v19 = vpop.f32.mrf.mxu1  ;;  %vm900_vm2 = vcmp.eq.s32.totalorder %v636_v47, %v8894_v57  ;;  %vm901_vm3 = vcmp.eq.s32.totalorder %v636_v47, %v8896_v49 }
 0x3c9   :  { %v9414_v1 = vadd.f32 %v1341_v19, %v9403_v58  ;;  %1447 = vmax.xlane.f32.xlu1 %v1446_v28  ;;  %v13884_v28 = vld [vmem:[#allocation64_spill] sm:$0xff]  ;;  %v643_v4 = vand.u32 31, %v430_v14  ;;  %v4729_v14 = vsel %vm1084_vm1, %v8724_v6, 0  ;;  %v9466_v47 = vsel %vm901_vm3, 0.0, %v13835_v34 }
 0x3ca   :  { %v1345_v44 = vpop.f32.mrf.mxu1  ;;  %6743 = vmatmul.mubr.msk.bf16.gmra.mxu1 %vm1084_vm1, %v13877_v38  ;;  %13889 = vst [vmem:[#allocation133_spill] sm:$0xff] %v9466_v47 }
 0x3cb   :  { %13881 = vst [vmem:[#allocation127_spill] sm:$0xff] %v9414_v1  ;;  %v1449_v18 = vmax.f32 %v9411_v3, %v9414_v1  ;;  %6887 = vmatpush3.bf16.xpose.msra.mxu1 %v4732_v40  ;;  %6744 = vmatprep.mubr.msk.bf16.mxu1 %vm1084_vm1, %v13884_v28  ;;  %v9436_v19 = vadd.f32 %v1345_v44, %v9419_v22  ;;  %v9442_v40 = vsel %vm898_vm14, 0.0, %v13835_v34  ;;  %v9445_v1 = vsel %vm899_vm15, 0.0, %v13835_v34 }
 0x3cc   :  { %7160 = vmatprep.subr.msk.bf16.mxu1 %vm1084_vm1, %v8733_v30  ;;  %v1347_v38 = vpop.f32.mrf.mxu1  ;;  %13885 = vst [vmem:[#allocation64_spill] sm:$0xff] %v9442_v40  ;;  %13886 = vst [vmem:[#allocation130_spill] sm:$0xff] %v9445_v1  ;;  %v431_v30 = vadd.s32 240, %v8885_v56  ;;  %v9461_v22 = vsel %vm900_vm2, 0.0, %v13835_v34  ;;  %vm902_vm4 = vcmp.eq.s32.totalorder %v643_v4, %v8894_v57  ;;  %vm903_vm5 = vcmp.eq.s32.totalorder %v643_v4, %v8896_v49 }
 0x3cd   :  { %v9439_v0 = vadd.f32 %v1347_v38, %v9424_v42  ;;  %1450 = vmax.xlane.f32.xlu0 %v1449_v18  ;;  %13888 = vst [vmem:[#allocation132_spill] sm:$0xff] %v9461_v22  ;;  %v9487_v4 = vsel %vm903_vm5, 0.0, %v13835_v34 }
 0x3ce   :  { %v1349_v58 = vpop.f32.mrf.mxu1  ;;  %v650_v6 = vand.u32 31, %v431_v30  ;;  %13892 = vst [vmem:[#allocation134_spill] sm:$0xff] %v9487_v4 }
 0x3cf   :  { %v1452_v63 = vmax.f32 %v9436_v19, %v9439_v0  ;;  %v9453_v18 = vadd.f32 %v1349_v58, %v9442_v40 }
 0x3d0   :  { %v1351_v44 = vpop.f32.mrf.mxu1  ;;  %vm904_vm6 = vcmp.eq.s32.totalorder %v650_v6, %v8894_v57  ;;  %vm905_vm7 = vcmp.eq.s32.totalorder %v650_v6, %v8896_v49 }
 0x3d1   :  { %v9456_v38 = vadd.f32 %v1351_v44, %v9445_v1  ;;  %1453 = vmax.xlane.f32.xlu0 %v1452_v63  ;;  %v13890_v63 = vld [vmem:[#allocation56_spill] sm:$0xff]  ;;  %v432_v44 = vadd.s32 248, %v8885_v56  ;;  %v9507_v6 = vsel %vm905_vm7, 0.0, %v13835_v34 }
 0x3d2   :  { %v1355_v42 = vpop.f32.mrf.mxu1  ;;  %6745 = vmatmul.mubr.msk.bf16.gmra.mxu1 %vm1084_vm1, %v13884_v28  ;;  %13894 = vst [vmem:[#allocation136_spill] sm:$0xff] %v9507_v6 }
 0x3d3   :  { %13887 = vst [vmem:[#allocation131_spill] sm:$0xff] %v9456_v38  ;;  %v1455_v58 = vmax.f32 %v9453_v18, %v9456_v38  ;;  %6889 = vmatpush3.bf16.xpose.msra.mxu1 %v4729_v14  ;;  %6746 = vmatprep.mubr.msk.bf16.mxu1 %vm1084_vm1, %v13890_v63  ;;  %v9478_v40 = vadd.f32 %v1355_v42, %v9461_v22  ;;  %v9484_v14 = vsel %vm902_vm4, 0.0, %v13835_v34  ;;  %v9502_v22 = vsel %vm904_vm6, 0.0, %v13835_v34 }
 0x3d4   :  { %7161 = vmatprep.subr.msk.bf16.mxu1 %vm1084_vm1, %v8751_v16  ;;  %v1357_v28 = vpop.f32.mrf.mxu1  ;;  %13891 = vst [vmem:[#allocation56_spill] sm:$0xff] %v9484_v14  ;;  %v657_v16 = vand.u32 31, %v432_v44  ;;  %13893 = vst [vmem:[#allocation135_spill] sm:$0xff] %v9502_v22  ;;  %v13895_v44 = vld [vmem:[#allocation70_spill] sm:$0xff] }
 0x3d5   :  { %v9481_v1 = vadd.f32 %v1357_v28, %v9466_v47  ;;  %1456 = vmax.xlane.f32.xlu1 %v1455_v58  ;;  %v4726_v28 = vsel %vm1084_vm1, %v8755_v43, 0 }
 0x3d6   :  { %v1359_v38 = vpop.f32.mrf.mxu1  ;;  %vm906_vm8 = vcmp.eq.s32.totalorder %v657_v16, %v8894_v57  ;;  %vm907_vm9 = vcmp.eq.s32.totalorder %v657_v16, %v8896_v49 }
 0x3d7   :  { %v1458_v56 = vmax.f32 %v9478_v40, %v9481_v1  ;;  %v9494_v30 = vadd.f32 %v1359_v38, %v9484_v14 }
 0x3d8   :  { %v1361_v42 = vpop.f32.mrf.mxu1 }
 0x3d9   :  { %v9497_v58 = vadd.f32 %v1361_v42, %v9487_v4  ;;  %1459 = vmax.xlane.f32.xlu1 %v1458_v56  ;;  %v9522_v42 = vsel %vm906_vm8, 0.0, %v13835_v34 }
 0x3da   :  { %v1365_v47 = vpop.f32.mrf.mxu1  ;;  %6747 = vmatmul.mubr.msk.bf16.gmra.mxu1 %vm1084_vm1, %v13890_v63  ;;  %13898 = vst [vmem:[#allocation138_spill] sm:$0xff] %v9522_v42 }
 0x3db   :  { %v1461_v38 = vmax.f32 %v9494_v30, %v9497_v58  ;;  %6891 = vmatpush3.bf16.xpose.msra.mxu1 %v4726_v28  ;;  %6748 = vmatprep.mubr.msk.bf16.mxu1 %vm1084_vm1, %v13895_v44  ;;  %v9516_v56 = vadd.f32 %v1365_v47, %v9502_v22  ;;  %v9525_v28 = vsel %vm907_vm9, 0.0, %v13835_v34  ;;  %v13902_v34 = vld [vmem:[#allocation67_spill] sm:$0xff] }
 0x3dc   :  { %v1367_v43 = vpop.f32.mrf.mxu1  ;;  %13899 = vst [vmem:[#allocation139_spill] sm:$0xff] %v9525_v28 }
 0x3dd   :  { %13896 = vst [vmem:[#allocation70_spill] sm:$0xff] %v9516_v56  ;;  %v9519_v63 = vadd.f32 %v1367_v43, %v9507_v6  ;;  %1462 = vmax.xlane.f32.xlu0 %v1461_v38 }
 0x3de   :  { %v1369_v14 = vpop.f32.mrf.mxu1 }
 0x3df   :  { %13897 = vst [vmem:[#allocation137_spill] sm:$0xff] %v9519_v63  ;;  %v1464_v57 = vmax.f32 %v9516_v56, %v9519_v63  ;;  %v9530_v49 = vadd.f32 %v1369_v14, %v9522_v42 }
 0x3e0   :  { %v1371_v4 = vpop.f32.mrf.mxu1 }
 0x3e1   :  { %13900 = vst [vmem:[#allocation140_spill] sm:$0xff] %v9530_v49  ;;  %v9533_v47 = vadd.f32 %v1371_v4, %v9525_v28  ;;  %1465 = vmax.xlane.f32.xlu0 %v1464_v57 }
 0x3e2   :  { %v2337_v16 = vpop.f32.mrf.mxu1  ;;  %6749 = vmatmul.mubr.msk.bf16.gmra.mxu1 %vm1084_vm1, %v13895_v44 }
 0x3e3   :  { %13901 = vst [vmem:[#allocation141_spill] sm:$0xff] %v9533_v47  ;;  %v1467_v38 = vmax.f32 %v9530_v49, %v9533_v47  ;;  %6750 = vmatprep.mubr.msk.bf16.mxu1 %vm1084_vm1, %v13902_v34  ;;  %v9542_v22 = vadd.f32 %v2337_v16, %v8905_v13 }
 0x3e4   :  { %v2339_v43 = vpop.f32.mrf.mxu1 }
 0x3e5   :  { %13903 = vst [vmem:[#allocation67_spill] sm:$0xff] %v9542_v22  ;;  %v9545_v14 = vadd.f32 %v2339_v43, %v8910_v12  ;;  %1468 = vmax.xlane.f32.xlu1 %v1467_v38  ;;  %v13907_v38 = vld [vmem:[#allocation76_spill] sm:$0xff] }
 0x3e6   :  { %v2341_v4 = vpop.f32.mrf.mxu1 }
 0x3e7   :  { %13904 = vst [vmem:[#allocation142_spill] sm:$0xff] %v9545_v14  ;;  %v2496_v57 = vmax.f32 %v9542_v22, %v9545_v14  ;;  %v9550_v44 = vadd.f32 %v2341_v4, %v8924_v60 }
 0x3e8   :  { %v2343_v6 = vpop.f32.mrf.mxu1 }
 0x3e9   :  { %13905 = vst [vmem:[#allocation143_spill] sm:$0xff] %v9550_v44  ;;  %v9553_v42 = vadd.f32 %v2343_v6, %v8927_v9  ;;  %2497 = vmax.xlane.f32.xlu0 %v2496_v57  ;;  %v9567_v6 = vpop.permute.xlu1 %4613 }
 0x3ea   :  { %v2347_v28 = vpop.f32.mrf.mxu1  ;;  %6751 = vmatmul.mubr.msk.bf16.gmra.mxu1 %vm1084_vm1, %v13902_v34 }
 0x3eb   :  { %13906 = vst [vmem:[#allocation144_spill] sm:$0xff] %v9553_v42  ;;  %v2499_v16 = vmax.f32 %v9550_v44, %v9553_v42  ;;  %6752 = vmatprep.mubr.msk.bf16.mxu1 %vm1084_vm1, %v13907_v38  ;;  %v9562_v13 = vadd.f32 %v2347_v28, %v8941_v46 }
 0x3ec   :  { %v2349_v43 = vpop.f32.mrf.mxu1 }
 0x3ed   :  { %13908 = vst [vmem:[#allocation76_spill] sm:$0xff] %v9562_v13  ;;  %v9565_v4 = vadd.f32 %v2349_v43, %v8946_v33  ;;  %2500 = vmax.xlane.f32.xlu0 %v2499_v16  ;;  %v13912_v43 = vld [vmem:[#allocation73_spill] sm:$0xff]  ;;  %v9583_v46 = vpop.permute.xlu1 %4615 }
 0x3ee   :  { %v2351_v57 = vpop.f32.mrf.mxu1 }
 0x3ef   :  { %13909 = vst [vmem:[#allocation145_spill] sm:$0xff] %v9565_v4  ;;  %v2502_v34 = vmax.f32 %v9562_v13, %v9565_v4  ;;  %v9572_v9 = vadd.f32 %v2351_v57, %v8962_v29 }
 0x3f0   :  { %v2353_v60 = vpop.f32.mrf.mxu1 }
 0x3f1   :  { %13910 = vst [vmem:[#allocation146_spill] sm:$0xff] %v9572_v9  ;;  %v9575_v12 = vadd.f32 %v2353_v60, %v8965_v7  ;;  %2503 = vmax.xlane.f32.xlu0 %v2502_v34 }
 0x3f2   :  { %v2357_v28 = vpop.f32.mrf.mxu1  ;;  %6753 = vmatmul.mubr.msk.bf16.gmra.mxu1 %vm1084_vm1, %v13907_v38  ;;  %v1376_v29 = vpop.xlane.xlu1 %1375 }
 0x3f3   :  { %13911 = vst [vmem:[#allocation147_spill] sm:$0xff] %v9575_v12  ;;  %v2505_v16 = vmax.f32 %v9572_v9, %v9575_v12  ;;  %6754 = vmatprep.mubr.msk.bf16.mxu1 %vm1084_vm1, %v13912_v43  ;;  %v9586_v57 = vadd.f32 %v2357_v28, %v8979_v24  ;;  %v13915_v9 = vld [vmem:[#allocation78_spill] sm:$0xff]  ;;  %v1471_v4 = vsub.f32 %v8921_v37, %v1376_v29 }
 0x3f4   :  { %v2359_v33 = vpop.f32.mrf.mxu1 }
 0x3f5   :  { %13913 = vst [vmem:[#allocation73_spill] sm:$0xff] %v9586_v57  ;;  %v9589_v60 = vadd.f32 %v2359_v33, %v8984_v23  ;;  %2506 = vmax.xlane.f32.xlu1 %v2505_v16  ;;  %v1536_v47 = vmul.f32 1.442695, %v1471_v4 }
 0x3f6   :  { %v9591_v34 = vpop.f32.mrf.mxu1 }
 0x3f7   :  { %13914 = vst [vmem:[#allocation148_spill] sm:$0xff] %v9589_v60  ;;  %v2508_v38 = vmax.f32 %v9586_v57, %v9589_v60  ;;  %v1470_v57 = vsub.f32 %v8918_v35, %v1376_v29 }
 0x3f8   :  { %v9595_v7 = vpop.f32.mrf.mxu1 }
 0x3f9   :  { %2509 = vmax.xlane.f32.xlu0 %v2508_v38  ;;  %v1534_v42 = vmul.f32 1.442695, %v1470_v57 }
 0x3fa   :  { %v2367_v12 = vpop.f32.mrf.mxu1  ;;  %6755 = vmatmul.mubr.msk.bf16.gmra.mxu1 %vm1084_vm1, %v13912_v43  ;;  %v9601_v28 = vpop.xlane.xlu1 %1381 }
 0x3fb   :  { %6756 = vmatprep.mubr.msk.bf16.mxu1 %vm1084_vm1, %v13915_v9  ;;  %v9604_v16 = vadd.f32 %v2367_v12, %v9017_v8 }
 0x3fc   :  { %v2369_v33 = vpop.f32.mrf.mxu1 }
 0x3fd   :  { %13916 = vst [vmem:[#allocation78_spill] sm:$0xff] %v9604_v16  ;;  %v9607_v24 = vadd.f32 %v2369_v33, %v9022_v21  ;;  %v9623_v33 = vpop.permute.xlu0 %4617 }
 0x3fe   :  { %v9609_v23 = vpop.f32.mrf.mxu1  ;;  %v9615_v43 = vpop.xlane.xlu1 %1384 }
 0x3ff   :  { %13917 = vst [vmem:[#allocation149_spill] sm:$0xff] %v9607_v24  ;;  %v2514_v38 = vmax.f32 %v9604_v16, %v9607_v24 }
 0x400   :  { %v9613_v60 = vpop.f32.mrf.mxu1 }
 0x401   :  { %2515 = vmax.xlane.f32.xlu0 %v2514_v38  ;;  %v1379_v38 = vpop.xlane.xlu0 %1378 }
 0x402   :  { %6757 = vmatmul.mubr.msk.bf16.gmra.mxu1 %vm1084_vm1, %v13915_v9  ;;  %v9621_v12 = vpop.f32.mrf.mxu1  ;;  %v1472_v35 = vsub.f32 %v8935_v52, %v1379_v38  ;;  %v1473_v37 = vsub.f32 %v8938_v54, %v1379_v38  ;;  %v1475_v54 = vsub.f32 %v8959_v62, %v9601_v28  ;;  %v1476_v62 = vsub.f32 %v8973_v39, %v9615_v43 }
 0x403   :  { %6758 = vmatprep.mubr.msk.bf16.mxu1 %vm1084_vm1, %v8711_v11 }
 0x404   :  { %v9629_v21 = vpop.f32.mrf.mxu1  ;;  %v1538_v56 = vmul.f32 1.442695, %v1472_v35  ;;  %v9694_v35 = vadd.f32 %v9595_v7, %v9003_v17 }
 0x405   :  { %v9639_v16 = vpop.xlane.xlu0 %1387 }
 0x406   :  { %4619 = vrot.lane.b32.xlu1 %v8247_v32, %s8116_s17  ;;  %v9627_v8 = vpop.xlane.xlu1 %1390  ;;  %v9637_v24 = vpop.f32.mrf.mxu1  ;;  %v1478_v39 = vsub.f32 %v8994_v41, %v9639_v16  ;;  %13918 = vst [vmem:[#allocation150_spill] sm:$0xff] %v9694_v35 }
 0x408   :  { %v9642_v32 = vpop.f32.mrf.mxu1 }
 0x40a   :  { %6759 = vmatmul.mubr.msk.bf16.gmra.mxu1 %vm1084_vm1, %v8711_v11  ;;  %v9635_v9 = vpop.xlane.xlu1 %1393  ;;  %v9655_v29 = vpop.f32.mrf.mxu1 }
 0x40b   :  { %6760 = vmatprep.mubr.msk.bf16.mxu1 %vm1084_vm1, %v8722_v15 }
 0x40c   :  { %v9663_v4 = vpop.f32.mrf.mxu1 }
 0x40e   :  { %v9645_v13 = vpop.xlane.xlu1 %1396 }
 0x412   :  { %6761 = vmatmul.mubr.msk.bf16.gmra.mxu1 %vm1084_vm1, %v8722_v15  ;;  %v1400_v11 = vpop.xlane.xlu0 %1399 }
 0x413   :  { %v1486_v14 = vsub.f32 %v9070_v31, %v1400_v11  ;;  %6762 = vmatprep.mubr.msk.bf16.mxu1 %vm1084_vm1, %v8743_v59  ;;  %v1487_v22 = vsub.f32 %v9073_v10, %v1400_v11  ;;  %v1474_v10 = vsub.f32 %v8956_v26, %v9601_v28 }
 0x415   :  { %v1566_v44 = vmul.f32 1.442695, %v1486_v14  ;;  %v1568_v49 = vmul.f32 1.442695, %v1487_v22  ;;  %v1540_v14 = vmul.f32 1.442695, %v1473_v37 }
 0x416   :  { %v1403_v63 = vpop.xlane.xlu1 %1402 }
 0x417   :  { %7248 = vpow2.f32 %v1566_v44  ;;  %v1488_v15 = vsub.f32 %v9087_v27, %v1403_v63  ;;  %v1489_v31 = vsub.f32 %v9090_v36, %v1403_v63  ;;  %v1542_v63 = vmul.f32 1.442695, %v1474_v10 }
 0x418   :  { %7250 = vpow2.f32 %v1568_v49  ;;  %v1544_v49 = vmul.f32 1.442695, %v1475_v54 }
 0x419   :  { %7252 = vpow2.f32 %v1534_v42  ;;  %v1570_v52 = vmul.f32 1.442695, %v1488_v15  ;;  %v1572_v22 = vmul.f32 1.442695, %v1489_v31  ;;  %v13920_v15 = vld [vmem:[#allocation54_spill] sm:$0xff] }
 0x41a   :  { %7254 = vpow2.f32 %v1536_v47  ;;  %6763 = vmatmul.mubr.msk.bf16.gmra.mxu1 %vm1084_vm1, %v8743_v59  ;;  %v1406_v27 = vpop.xlane.xlu1 %1405  ;;  %v1477_v59 = vsub.f32 %v8976_v50, %v9615_v43  ;;  %v9675_v47 = vpop.f32.mrf.mxu1  ;;  %v1479_v50 = vsub.f32 %v8997_v25, %v9639_v16  ;;  %v13919_v25 = vld [vmem:[#allocation93_spill] sm:$0xff] }
 0x41b   :  { %7256 = vpow2.f32 %v1570_v52  ;;  %v1490_v36 = vsub.f32 %v9108_v45, %v1406_v27  ;;  %6892 = vmatprep.mubr.msk.bf16.mxu1 %vm1084_vm1, %v9567_v6  ;;  %v1491_v26 = vsub.f32 %v9111_v61, %v1406_v27 }
 0x41c   :  { %7258 = vpow2.f32 %v1572_v22  ;;  %v1548_v38 = vmul.f32 1.442695, %v1477_v59  ;;  %v9683_v43 = vpop.f32.mrf.mxu1  ;;  %v1552_v52 = vmul.f32 1.442695, %v1479_v50 }
 0x41d   :  { %7260 = vpow2.f32 %v1538_v56  ;;  %v1574_v42 = vmul.f32 1.442695, %v1490_v36  ;;  %v1576_v45 = vmul.f32 1.442695, %v1491_v26  ;;  %v1546_v56 = vmul.f32 1.442695, %v1476_v62 }
 0x41e   :  { %7262 = vpow2.f32 %v1540_v14  ;;  %v1409_v44 = vpop.xlane.xlu1 %1408  ;;  %v9705_v14 = vpop.f32.mrf.mxu1  ;;  %v13922_v36 = vld [vmem:[#allocation30_spill] sm:$0xff]  ;;  %v13923_v26 = vld [vmem:[#allocation96_spill] sm:$0xff] }
 0x41f   :  { %7264 = vpow2.f32 %v1574_v42  ;;  %v1492_v57 = vsub.f32 %v9125_v53, %v1409_v44  ;;  %v1493_v61 = vsub.f32 %v9128_v20, %v1409_v44 }
 0x420   :  { %7266 = vpow2.f32 %v1576_v45  ;;  %v13925_v45 = vld [vmem:[#allocation97_spill] sm:$0xff] }
 0x421   :  { %7268 = vpow2.f32 %v1542_v63  ;;  %v1578_v28 = vmul.f32 1.442695, %v1492_v57  ;;  %v1580_v11 = vmul.f32 1.442695, %v1493_v61 }
 0x422   :  { %7270 = vpow2.f32 %v1544_v49  ;;  %6893 = vmatmul.mubr.msk.bf16.vlgmr.msra.gmra.mxu1 %vm1084_vm1, %v9567_v6  ;;  %v1412_v53 = vpop.xlane.xlu1 %1411  ;;  %v9701_v6 = vadd.f32 %v9591_v34, %v13920_v15  ;;  %v1480_v34 = vsub.f32 %v13922_v36, %v9627_v8  ;;  %v13924_v49 = vld [vmem:[#allocation69_spill] sm:$0xff] }
 0x423   :  { %7272 = vpow2.f32 %v1578_v28  ;;  %v1494_v20 = vsub.f32 %v9146_v51, %v1412_v53  ;;  %6894 = vmatprep.mubr.msk.bf16.mxu1 %vm1084_vm1, %v9583_v46  ;;  %v1495_v16 = vsub.f32 %v13919_v25, %v1412_v53  ;;  %v1550_v51 = vmul.f32 1.442695, %v1478_v39  ;;  %v9725_v39 = vpop.f32.mrf.mxu1 }
 0x424   :  { %v9690_v41 = vpop.eup %7248  ;;  %7274 = vpow2.f32 %v1580_v11  ;;  %13921 = vst [vmem:[#allocation93_spill] sm:$0xff] %v9701_v6  ;;  %v2511_v42 = vmax.f32 %v9701_v6, %v9694_v35  ;;  %v1481_v59 = vsub.f32 %v13924_v49, %v9627_v8  ;;  %v1554_v50 = vmul.f32 1.442695, %v1480_v34  ;;  %v13926_v11 = vld [vmem:[#allocation66_spill] sm:$0xff] }
 0x425   :  { %v9697_v37 = vpop.eup %7250  ;;  %7276 = vpow2.f32 %v1546_v56  ;;  %v1582_v31 = vmul.f32 1.442695, %v1494_v20  ;;  %v1584_v7 = vmul.f32 1.442695, %v1495_v16  ;;  %v1482_v53 = vsub.f32 %v13926_v11, %v9635_v9  ;;  %v13928_v16 = vld [vmem:[#allocation79_spill] sm:$0xff]  ;;  %v13932_v11 = vld [vmem:[#allocation37_spill] sm:$0xff] }
 0x426   :  { %v9703_v10 = vpop.eup %7252  ;;  %7278 = vpow2.f32 %v1548_v38  ;;  %v1415_v54 = vpop.xlane.xlu0 %1414  ;;  %v1686_v22 = vadd.f32 %v9697_v37, %v9690_v41  ;;  %v1556_v25 = vmul.f32 1.442695, %v1481_v59 }
 0x427   :  { %v9709_v27 = vpop.eup %7254  ;;  %7280 = vpow2.f32 %v1582_v31  ;;  %v1496_v63 = vsub.f32 %v13923_v26, %v1415_v54  ;;  %v1497_v44 = vsub.f32 %v13925_v45, %v1415_v54  ;;  %v1558_v36 = vmul.f32 1.442695, %v1482_v53 }
 0x428   :  { %v9714_v62 = vpop.eup %7256  ;;  %7282 = vpow2.f32 %v1584_v7  ;;  %1687 = vadd.xlane.f32.xlu0 %v1686_v22  ;;  %v9747_v7 = vpop.f32.mrf.mxu1 }
 0x429   :  { %v9721_v57 = vpop.eup %7258  ;;  %7284 = vpow2.f32 %v1550_v51  ;;  %v1586_v61 = vmul.f32 1.442695, %v1496_v63  ;;  %v1588_v28 = vmul.f32 1.442695, %v1497_v44  ;;  %v1662_v51 = vadd.f32 %v9709_v27, %v9703_v10 }
 0x42a   :  { %v9723_v56 = vpop.eup %7260  ;;  %7286 = vpow2.f32 %v1552_v52  ;;  %6895 = vmatmul.mubr.msk.bf16.gmra.mxu1 %vm1084_vm1, %v9583_v46  ;;  %2512 = vmax.xlane.f32.xlu1 %v2511_v42  ;;  %v1689_v8 = vadd.f32 %v9721_v57, %v9714_v62  ;;  %v1483_v46 = vsub.f32 %v13928_v16, %v9635_v9  ;;  %v13929_v9 = vld [vmem:[#allocation82_spill] sm:$0xff]  ;;  %v13931_v42 = vld [vmem:[#allocation83_spill] sm:$0xff]  ;;  %v1418_v59 = vpop.xlane.xlu1 %1417 }
 0x42b   :  { %v9731_v38 = vpop.eup %7262  ;;  %7288 = vpow2.f32 %v1586_v61  ;;  %6896 = vmatprep.mubr.msk.bf16.mxu1 %vm1084_vm1, %v9623_v33  ;;  %v1484_v34 = vsub.f32 %v13929_v9, %v9645_v13  ;;  %v1485_v49 = vsub.f32 %v13931_v42, %v9645_v13  ;;  %v1498_v53 = vsub.f32 %v13932_v11, %v1418_v59  ;;  %v13938_v11 = vld [vmem:[#allocation104_spill] sm:$0xff] }
 0x42c   :  { %v9737_v20 = vpop.eup %7264  ;;  %7290 = vpow2.f32 %v1588_v28  ;;  %1690 = vadd.xlane.f32.xlu0 %v1689_v8  ;;  %v1560_v63 = vmul.f32 1.442695, %v1483_v46  ;;  %v1665_v45 = vadd.f32 %v9731_v38, %v9723_v56  ;;  %v9765_v28 = vpop.f32.mrf.mxu1  ;;  %v13934_v46 = vld [vmem:[#allocation100_spill] sm:$0xff] }
 0x42d   :  { %13927 = vst [vmem:[#allocation30_spill] sm:$0xff] %v9737_v20  ;;  %v9743_v31 = vpop.eup %7266  ;;  %7292 = vpow2.f32 %v1554_v50  ;;  %v1562_v13 = vmul.f32 1.442695, %v1484_v34  ;;  %v1564_v16 = vmul.f32 1.442695, %v1485_v49  ;;  %v13936_v49 = vld [vmem:[#allocation103_spill] sm:$0xff] }
 0x42e   :  { %v9745_v52 = vpop.eup %7268  ;;  %1663 = vadd.xlane.f32.xlu1 %v1662_v51  ;;  %v1692_v54 = vadd.f32 %v9743_v31, %v9737_v20  ;;  %7294 = vpow2.f32 %v1556_v25  ;;  %v1499_v51 = vsub.f32 %v13934_v46, %v1418_v59 }
 0x42f   :  { %v9751_v22 = vpop.eup %7270  ;;  %7296 = vpow2.f32 %v1558_v36 }
 0x430   :  { %v9755_v26 = vpop.eup %7272  ;;  %1693 = vadd.xlane.f32.xlu0 %v1692_v54  ;;  %7298 = vpow2.f32 %v1560_v63  ;;  %v1421_v54 = vpop.xlane.xlu0 %1420  ;;  %v1590_v63 = vmul.f32 1.442695, %v1498_v53 }
 0x431   :  { %13930 = vst [vmem:[#allocation96_spill] sm:$0xff] %v9755_v26  ;;  %v9761_v44 = vpop.eup %7274  ;;  %7300 = vpow2.f32 %v1562_v13  ;;  %v1501_v46 = vsub.f32 %v13938_v11, %v1421_v54 }
 0x432   :  { %v9763_v61 = vpop.eup %7276  ;;  %6897 = vmatmul.mubr.msk.bf16.gmra.mxu1 %vm1084_vm1, %v9623_v33  ;;  %1666 = vadd.xlane.f32.xlu1 %v1665_v45  ;;  %v1695_v8 = vadd.f32 %v9761_v44, %v9755_v26  ;;  %v1668_v33 = vadd.f32 %v9751_v22, %v9745_v52  ;;  %v1500_v45 = vsub.f32 %v13936_v49, %v1421_v54  ;;  %7302 = vpow2.f32 %v1564_v16 }
 0x433   :  { %v9771_v50 = vpop.eup %7278  ;;  %7304 = vpow2.f32 %v1590_v63  ;;  %v1596_v49 = vmul.f32 1.442695, %v1501_v46  ;;  %v13940_v46 = vld [vmem:[#allocation41_spill] sm:$0xff] }
 0x434   :  { %v9774_v25 = vpop.eup %7280  ;;  %1696 = vadd.xlane.f32.xlu0 %v1695_v8  ;;  %v1592_v8 = vmul.f32 1.442695, %v1499_v51  ;;  %v1671_v15 = vadd.f32 %v9771_v50, %v9763_v61  ;;  %v1594_v13 = vmul.f32 1.442695, %v1500_v45  ;;  %v1424_v16 = vpop.xlane.xlu0 %1423 }
 0x435   :  { %13933 = vst [vmem:[#allocation69_spill] sm:$0xff] %v9774_v25  ;;  %v9779_v9 = vpop.eup %7282 }
 0x436   :  { %13935 = vst [vmem:[#allocation97_spill] sm:$0xff] %v9779_v9  ;;  %v9781_v42 = vpop.eup %7284  ;;  %1669 = vadd.xlane.f32.xlu1 %v1668_v33  ;;  %v1698_v36 = vadd.f32 %v9779_v9, %v9774_v25  ;;  %7306 = vpow2.f32 %v1592_v8  ;;  %v13941_v25 = vld [vmem:[#allocation114_spill] sm:$0xff] }
 0x437   :  { %v9785_v34 = vpop.eup %7286  ;;  %7308 = vpow2.f32 %v1594_v13 }
 0x438   :  { %v9788_v59 = vpop.eup %7288  ;;  %1699 = vadd.xlane.f32.xlu0 %v1698_v36  ;;  %v1674_v51 = vadd.f32 %v9785_v34, %v9781_v42  ;;  %7310 = vpow2.f32 %v1596_v49 }
 0x439   :  { %13937 = vst [vmem:[#allocation66_spill] sm:$0xff] %v9788_v59  ;;  %v9793_v33 = vpop.eup %7290 }
 0x43a   :  { %13939 = vst [vmem:[#allocation79_spill] sm:$0xff] %v9793_v33  ;;  %1672 = vadd.xlane.f32.xlu1 %v1671_v15  ;;  %v1701_v17 = vadd.f32 %v9793_v33, %v9788_v59  ;;  %v9797_v53 = vpop.eup %7292  ;;  %v1427_v15 = vpop.xlane.xlu1 %1426 }
 0x43b   :  { %v9801_v54 = vpop.eup %7294  ;;  %v1430_v11 = vpop.xlane.xlu0 %1429 }
 0x43c   :  { %1702 = vadd.xlane.f32.xlu0 %v1701_v17  ;;  %v9803_v36 = vpop.eup %7296  ;;  %v1677_v63 = vadd.f32 %v9801_v54, %v9797_v53  ;;  %v1506_v17 = vsub.f32 %v9268_v2, %v1430_v11  ;;  %v1507_v35 = vsub.f32 %v13940_v46, %v1430_v11 }
 0x43d   :  { %v9807_v45 = vpop.eup %7298 }
 0x43e   :  { %1675 = vadd.xlane.f32.xlu1 %v1674_v51  ;;  %v9810_v8 = vpop.eup %7300  ;;  %v1433_v6 = vpop.xlane.xlu1 %1432  ;;  %v1680_v13 = vadd.f32 %v9807_v45, %v9803_v36  ;;  %v1606_v49 = vmul.f32 1.442695, %v1506_v17  ;;  %v1608_v20 = vmul.f32 1.442695, %v1507_v35  ;;  %v13946_v35 = vld [vmem:[#allocation81_spill] sm:$0xff] }
 0x43f   :  { %v9815_v51 = vpop.eup %7302  ;;  %v1508_v59 = vsub.f32 %v13941_v25, %v1433_v6 }
 0x440   :  { %v9818_v9 = vpop.eup %7304  ;;  %v1683_v2 = vadd.f32 %v9815_v51, %v9810_v8  ;;  %7312 = vpow2.f32 %v1606_v49 }
 0x441   :  { %13942 = vst [vmem:[#allocation82_spill] sm:$0xff] %v9818_v9  ;;  %v1610_v11 = vmul.f32 1.442695, %v1508_v59  ;;  %7314 = vpow2.f32 %v1608_v20  ;;  %v13948_v59 = vld [vmem:[#allocation80_spill] sm:$0xff] }
 0x442   :  { %1678 = vadd.xlane.f32.xlu1 %v1677_v63  ;;  %v13943_v63 = vld [vmem:[#allocation115_spill] sm:$0xff]  ;;  %v13950_v20 = vld [vmem:[#allocation20_spill] sm:$0xff] }
 0x443   :  { %v1509_v33 = vsub.f32 %v13943_v63, %v1433_v6  ;;  %v9823_v26 = vpop.eup %7306  ;;  %7316 = vpow2.f32 %v1610_v11  ;;  %v9833_v6 = vadd.f32 %v9613_v60, %v13946_v35  ;;  %v9839_v63 = vadd.f32 %v9609_v23, %v13948_v59  ;;  %v13953_v60 = vld [vmem:[#allocation75_spill] sm:$0xff]  ;;  %v13956_v23 = vld [vmem:[#allocation106_spill] sm:$0xff] }
 0x444   :  { %13944 = vst [vmem:[#allocation83_spill] sm:$0xff] %v9823_v26  ;;  %v9825_v46 = vpop.eup %7308  ;;  %v1704_v25 = vadd.f32 %v9823_v26, %v9818_v9  ;;  %v1503_v59 = vsub.f32 %v13956_v23, %v1424_v16 }
 0x445   :  { %13945 = vst [vmem:[#allocation37_spill] sm:$0xff] %v9825_v46  ;;  %v9829_v17 = vpop.eup %7310  ;;  %13947 = vst [vmem:[#allocation100_spill] sm:$0xff] %v9833_v6 }
 0x446   :  { %1681 = vadd.xlane.f32.xlu1 %v1680_v13  ;;  %v1612_v13 = vmul.f32 1.442695, %v1509_v33  ;;  %v1707_v49 = vadd.f32 %v9829_v17, %v9825_v46  ;;  %13949 = vst [vmem:[#allocation103_spill] sm:$0xff] %v9839_v63  ;;  %v2517_v33 = vmax.f32 %v9839_v63, %v9833_v6  ;;  %v13959_v63 = vld [vmem:[#allocation109_spill] sm:$0xff]  ;;  %v13960_v46 = vld [vmem:[#allocation110_spill] sm:$0xff] }
 0x448   :  { %7318 = vpow2.f32 %v1612_v13  ;;  %v9851_v13 = vadd.f32 %v9637_v24, %v13953_v60  ;;  %v1505_v24 = vsub.f32 %v13960_v46, %v1427_v15  ;;  %v13963_v46 = vld [vmem:[#allocation50_spill] sm:$0xff] }
 0x44a   :  { %1684 = vadd.xlane.f32.xlu1 %v1683_v2  ;;  %v13951_v2 = vld [vmem:[#allocation86_spill] sm:$0xff]  ;;  %13954 = vst [vmem:[#allocation41_spill] sm:$0xff] %v9851_v13  ;;  %v1604_v23 = vmul.f32 1.442695, %v1505_v24  ;;  %v13967_v24 = vld [vmem:[#allocation120_spill] sm:$0xff] }
 0x44b   :  { %v9847_v11 = vadd.f32 %v9642_v32, %v13951_v2  ;;  %v1504_v32 = vsub.f32 %v13959_v63, %v1427_v15  ;;  %v1600_v2 = vmul.f32 1.442695, %v1503_v59  ;;  %v1439_v63 = vpop.xlane.xlu1 %1438  ;;  %v1436_v15 = vpop.xlane.xlu0 %1435 }
 0x44c   :  { %v1510_v59 = vsub.f32 %v13963_v46, %v1436_v15 }
 0x44d   :  { %13952 = vst [vmem:[#allocation104_spill] sm:$0xff] %v9847_v11  ;;  %v9855_v9 = vpop.eup %7312 }
 0x44e   :  { %1705 = vadd.xlane.f32.xlu1 %v1704_v25  ;;  %v13955_v25 = vld [vmem:[#allocation33_spill] sm:$0xff]  ;;  %13957 = vst [vmem:[#allocation114_spill] sm:$0xff] %v9855_v9 }
 0x44f   :  { %v1502_v35 = vsub.f32 %v13955_v25, %v1424_v16  ;;  %v1602_v25 = vmul.f32 1.442695, %v1504_v32 }
 0x451   :  { %v1598_v6 = vmul.f32 1.442695, %v1502_v35 }
 0x452   :  { %4621 = vrot.lane.b32.xlu0 %v13950_v20, %s8116_s17  ;;  %1708 = vadd.xlane.f32.xlu1 %v1707_v49  ;;  %v2523_v49 = vmax.f32 %v9851_v13, %v9847_v11  ;;  %v9859_v20 = vpop.eup %7314  ;;  %v13964_v11 = vld [vmem:[#allocation77_spill] sm:$0xff] }
 0x453   :  { %13958 = vst [vmem:[#allocation115_spill] sm:$0xff] %v9859_v20  ;;  %v9863_v60 = vpop.eup %7316  ;;  %7320 = vpow2.f32 %v1598_v6  ;;  %v1511_v13 = vsub.f32 %v13964_v11, %v1436_v15 }
 0x454   :  { %13961 = vst [vmem:[#allocation20_spill] sm:$0xff] %v9863_v60  ;;  %7322 = vpow2.f32 %v1600_v2 }
 0x455   :  { %v9867_v16 = vpop.eup %7318  ;;  %7324 = vpow2.f32 %v1602_v25  ;;  %v1616_v2 = vmul.f32 1.442695, %v1511_v13  ;;  %v13971_v13 = vld [vmem:[#allocation85_spill] sm:$0xff] }
 0x456   :  { %2518 = vmax.xlane.f32.xlu1 %v2517_v33  ;;  %v1716_v33 = vadd.f32 %v9859_v20, %v9855_v9  ;;  %13962 = vst [vmem:[#allocation33_spill] sm:$0xff] %v9867_v16  ;;  %v1719_v35 = vadd.f32 %v9867_v16, %v9863_v60  ;;  %7326 = vpow2.f32 %v1604_v23  ;;  %v1614_v9 = vmul.f32 1.442695, %v1510_v59  ;;  %v13965_v20 = vld [vmem:[#allocation119_spill] sm:$0xff] }
 0x457   :  { %v1512_v6 = vsub.f32 %v13965_v20, %v1439_v63 }
 0x458   :  { %7328 = vpow2.f32 %v1614_v9  ;;  %v13973_v9 = vld [vmem:[#allocation18_spill] sm:$0xff] }
 0x459   :  { %v1618_v23 = vmul.f32 1.442695, %v1512_v6  ;;  %7330 = vpow2.f32 %v1616_v2  ;;  %v13974_v6 = vld [vmem:[#allocation84_spill] sm:$0xff] }
 0x45a   :  { %2524 = vmax.xlane.f32.xlu1 %v2523_v49  ;;  %v1445_v49 = vpop.xlane.xlu1 %1444  ;;  %v9899_v2 = vadd.f32 %v9621_v12, %v13974_v6 }
 0x45b   :  { %7332 = vpow2.f32 %v1618_v23  ;;  %v13976_v23 = vld [vmem:[#allocation88_spill] sm:$0xff] }
 0x45c   :  { %13975 = vst [vmem:[#allocation119_spill] sm:$0xff] %v9899_v2 }
 0x45e   :  { %1717 = vadd.xlane.f32.xlu1 %v1716_v33  ;;  %v1513_v33 = vsub.f32 %v13967_v24, %v1439_v63  ;;  %v9879_v25 = vpop.xlane.xlu1 %1447  ;;  %v9891_v63 = vadd.f32 %v9629_v21, %v13971_v13  ;;  %v9907_v21 = vadd.f32 %v9663_v4, %v13976_v23 }
 0x460   :  { %v9874_v32 = vpop.eup %7320  ;;  %v1620_v46 = vmul.f32 1.442695, %v1513_v33  ;;  %13972 = vst [vmem:[#allocation77_spill] sm:$0xff] %v9891_v63  ;;  %v2520_v33 = vmax.f32 %v9899_v2, %v9891_v63  ;;  %13977 = vst [vmem:[#allocation120_spill] sm:$0xff] %v9907_v21  ;;  %v1442_v2 = vpop.xlane.xlu0 %1441 }
 0x461   :  { %13966 = vst [vmem:[#allocation106_spill] sm:$0xff] %v9874_v32  ;;  %v9877_v26 = vpop.eup %7322 }
 0x462   :  { %1720 = vadd.xlane.f32.xlu1 %v1719_v35  ;;  %13968 = vst [vmem:[#allocation109_spill] sm:$0xff] %v9877_v26  ;;  %v9881_v35 = vpop.eup %7324  ;;  %v1710_v11 = vadd.f32 %v9877_v26, %v9874_v32  ;;  %v9887_v20 = vpop.xlane.xlu1 %1456  ;;  %7334 = vpow2.f32 %v1620_v46  ;;  %v13978_v46 = vld [vmem:[#allocation87_spill] sm:$0xff] }
 0x463   :  { %13969 = vst [vmem:[#allocation110_spill] sm:$0xff] %v9881_v35  ;;  %v9885_v15 = vpop.eup %7326 }
 0x464   :  { %13970 = vst [vmem:[#allocation50_spill] sm:$0xff] %v9885_v15  ;;  %v1713_v59 = vadd.f32 %v9885_v15, %v9881_v35  ;;  %v1451_v32 = vpop.xlane.xlu0 %1450  ;;  %v13986_v15 = vld [vmem:[#allocation123_spill] sm:$0xff] }
 0x465   :  { %v9917_v12 = vpop.eup %7328  ;;  %v1517_v16 = vsub.f32 %v13986_v15, %v1445_v49 }
 0x466   :  { %v9901_v24 = vpop.xlane.xlu1 %1459  ;;  %13980 = vst [vmem:[#allocation151_spill] sm:$0xff] %v9917_v12  ;;  %v9921_v6 = vpop.eup %7330 }
 0x467   :  { %13981 = vst [vmem:[#allocation152_spill] sm:$0xff] %v9921_v6 }
 0x468   :  { %v9927_v23 = vpop.eup %7332  ;;  %v9945_v26 = vpop.xlane.xlu0 %1453 }
 0x469   :  { %13983 = vst [vmem:[#allocation154_spill] sm:$0xff] %v9927_v23 }
 0x46e   :  { %v9915_v13 = vpop.xlane.xlu1 %1468 }
 0x471   :  { %1711 = vadd.xlane.f32.xlu0 %v1710_v11  ;;  %v9911_v11 = vadd.f32 %v9655_v29, %v13978_v46  ;;  %v1722_v29 = vadd.f32 %v9921_v6, %v9917_v12  ;;  %v1516_v6 = vsub.f32 %v9369_v5, %v1445_v49 }
 0x473   :  { %4623 = vrot.lane.b32.xlu1 %v13973_v9, %s8116_s17  ;;  %13979 = vst [vmem:[#allocation18_spill] sm:$0xff] %v9911_v11  ;;  %v9913_v9 = vpop.f32.mrf.mxu1 }
 0x475   :  { %1714 = vadd.xlane.f32.xlu0 %v1713_v59  ;;  %v2526_v59 = vmax.f32 %v9911_v11, %v9907_v21  ;;  %v9923_v63 = vpop.f32.mrf.mxu1  ;;  %v1514_v11 = vsub.f32 %v9352_v48, %v1442_v2  ;;  %v1626_v48 = vmul.f32 1.442695, %v1516_v6  ;;  %v13993_v6 = vld [vmem:[#allocation94_spill] sm:$0xff] }
 0x477   :  { %v9933_v46 = vpop.f32.mrf.mxu1  ;;  %v1622_v12 = vmul.f32 1.442695, %v1514_v11  ;;  %v9967_v11 = vadd.f32 %v9747_v7, %v13993_v6 }
 0x479   :  { %2521 = vmax.xlane.f32.xlu0 %v2520_v33  ;;  %v9931_v33 = vpop.eup %7334  ;;  %7336 = vpow2.f32 %v1622_v12  ;;  %13994 = vst [vmem:[#allocation157_spill] sm:$0xff] %v9967_v11 }
 0x47a   :  { %13984 = vst [vmem:[#allocation155_spill] sm:$0xff] %v9931_v33  ;;  %v1725_v21 = vadd.f32 %v9931_v33, %v9927_v23  ;;  %v1628_v23 = vmul.f32 1.442695, %v1517_v16  ;;  %v9947_v33 = vpop.xlane.xlu0 %1462 }
 0x47d   :  { %2527 = vmax.xlane.f32.xlu0 %v2526_v59  ;;  %v9939_v59 = vpop.f32.mrf.mxu1 }
 0x47e   :  { %v9925_v4 = vpop.xlane.xlu1 %2506  ;;  %v9963_v16 = vpop.xlane.xlu0 %1465 }
 0x47f   :  { %13982 = vst [vmem:[#allocation153_spill] sm:$0xff] %v9925_v4  ;;  %v13985_v4 = vld [vmem:[#allocation51_spill] sm:$0xff] }
 0x480   :  { %v1515_v35 = vsub.f32 %v13985_v4, %v1442_v2  ;;  %v13987_v2 = vld [vmem:[#allocation90_spill] sm:$0xff]  ;;  %v13996_v4 = vld [vmem:[#allocation28_spill] sm:$0xff] }
 0x481   :  { %1723 = vadd.xlane.f32.xlu0 %v1722_v29 }
 0x482   :  { %v4620_v60 = vpop.permute.xlu1 %4619  ;;  %v1624_v29 = vmul.f32 1.442695, %v1515_v35  ;;  %v13991_v35 = vld [vmem:[#allocation95_spill] sm:$0xff] }
 0x483   :  { %6898 = vmatprep.mubr.msk.bf16.mxu1 %vm1084_vm1, %v4620_v60  ;;  %v9961_v15 = vadd.f32 %v9765_v28, %v13991_v35 }
 0x484   :  { %6899 = vmatmul.mubr.msk.bf16.gmra.mxu1 %vm1084_vm1, %v4620_v60  ;;  %7338 = vpow2.f32 %v1624_v29  ;;  %v13989_v60 = vld [vmem:[#allocation89_spill] sm:$0xff] }
 0x485   :  { %1726 = vadd.xlane.f32.xlu0 %v1725_v21  ;;  %7340 = vpow2.f32 %v1626_v48  ;;  %v9951_v21 = vadd.f32 %v9683_v43, %v13987_v2  ;;  %v9955_v5 = vadd.f32 %v9675_v47, %v13989_v60  ;;  %13992 = vst [vmem:[#allocation156_spill] sm:$0xff] %v9961_v15  ;;  %v2535_v47 = vmax.f32 %v9967_v11, %v9961_v15 }
 0x486   :  { %7342 = vpow2.f32 %v1628_v23  ;;  %v9969_v43 = vpop.eup %7336  ;;  %v9973_v23 = vpop.xlane.xlu0 %2497  ;;  %v1520_v15 = vsub.f32 %v9411_v3, %v1451_v32  ;;  %v14006_v3 = vld [vmem:[#allocation22_spill] sm:$0xff] }
 0x487   :  { %13988 = vst [vmem:[#allocation51_spill] sm:$0xff] %v9951_v21  ;;  %13990 = vst [vmem:[#allocation123_spill] sm:$0xff] %v9955_v5  ;;  %v2529_v49 = vmax.f32 %v9955_v5, %v9951_v21  ;;  %v14001_v21 = vld [vmem:[#allocation127_spill] sm:$0xff] }
 0x488   :  { %13995 = vst [vmem:[#allocation158_spill] sm:$0xff] %v9973_v23 }
 0x48a   :  { %v9985_v48 = vpop.xlane.xlu0 %2500 }
 0x48b   :  { %13997 = vst [vmem:[#allocation28_spill] sm:$0xff] %v9985_v48 }
 0x48e   :  { %v9989_v6 = vpop.xlane.xlu0 %2503 }
 0x48f   :  { %13998 = vst [vmem:[#allocation159_spill] sm:$0xff] %v9989_v6 }
 0x491   :  { %v9975_v12 = vpop.eup %7338 }
 0x492   :  { %v9979_v28 = vpop.eup %7340  ;;  %v1728_v7 = vadd.f32 %v9975_v12, %v9969_v43  ;;  %v9995_v60 = vpop.xlane.xlu0 %2509 }
 0x493   :  { %v9983_v29 = vpop.eup %7342 }
 0x496   :  { %v9999_v5 = vpop.xlane.xlu0 %2515 }
 0x497   :  { %2530 = vmax.xlane.f32.xlu1 %v2529_v49  ;;  %v1731_v49 = vadd.f32 %v9983_v29, %v9979_v28  ;;  %14002 = vst [vmem:[#allocation127_spill] sm:$0xff] %v9999_v5 }
 0x49b   :  { %4625 = vrot.lane.b32.xlu0 %v13996_v4, %s8116_s17  ;;  %2536 = vmax.xlane.f32.xlu1 %v2535_v47  ;;  %v1518_v4 = vsub.f32 %v9394_v55, %v9879_v25  ;;  %v13999_v47 = vld [vmem:[#allocation59_spill] sm:$0xff] }
 0x49c   :  { %v1519_v35 = vsub.f32 %v13999_v47, %v9879_v25  ;;  %14000 = vst [vmem:[#allocation59_spill] sm:$0xff] %v9995_v60  ;;  %v14004_v25 = vld [vmem:[#allocation92_spill] sm:$0xff] }
 0x49d   :  { %v1630_v2 = vmul.f32 1.442695, %v1518_v4  ;;  %v10007_v47 = vadd.f32 %v9725_v39, %v14004_v25 }
 0x49e   :  { %v1632_v11 = vmul.f32 1.442695, %v1519_v35 }
 0x49f   :  { %1729 = vadd.xlane.f32.xlu1 %v1728_v7  ;;  %v1521_v7 = vsub.f32 %v14001_v21, %v1451_v32  ;;  %7344 = vpow2.f32 %v1630_v2  ;;  %14005 = vst [vmem:[#allocation161_spill] sm:$0xff] %v10007_v47  ;;  %v14007_v21 = vld [vmem:[#allocation91_spill] sm:$0xff] }
 0x4a0   :  { %7346 = vpow2.f32 %v1632_v11  ;;  %v10015_v2 = vadd.f32 %v9705_v14, %v14007_v21  ;;  %v14009_v11 = vld [vmem:[#allocation99_spill] sm:$0xff] }
 0x4a1   :  { %v1636_v6 = vmul.f32 1.442695, %v1521_v7  ;;  %v10021_v4 = vadd.f32 %v9923_v63, %v14009_v11  ;;  %v10037_v63 = vpop.f32.mrf.mxu1 }
 0x4a2   :  { %14008 = vst [vmem:[#allocation22_spill] sm:$0xff] %v10015_v2 }
 0x4a3   :  { %1732 = vadd.xlane.f32.xlu1 %v1731_v49  ;;  %v1634_v49 = vmul.f32 1.442695, %v1520_v15  ;;  %v2532_v15 = vmax.f32 %v10015_v2, %v10007_v47  ;;  %14010 = vst [vmem:[#allocation162_spill] sm:$0xff] %v10021_v4 }
 0x4a5   :  { %7348 = vpow2.f32 %v1634_v49 }
 0x4a6   :  { %7350 = vpow2.f32 %v1636_v6  ;;  %v14011_v6 = vld [vmem:[#allocation98_spill] sm:$0xff] }
 0x4a7   :  { %v10027_v7 = vadd.f32 %v9913_v9, %v14011_v6 }
 0x4a9   :  { %14012 = vst [vmem:[#allocation163_spill] sm:$0xff] %v10027_v7  ;;  %v2538_v14 = vmax.f32 %v10027_v7, %v10021_v4  ;;  %v1522_v4 = vsub.f32 %v9436_v19, %v9945_v26  ;;  %v1523_v7 = vsub.f32 %v9439_v0, %v9945_v26 }
 0x4b1   :  { %v10001_v23 = vpop.xlane.xlu0 %1687 }
 0x4b3   :  { %v10003_v55 = vpop.xlane.xlu1 %2512 }
 0x4b4   :  { %14003 = vst [vmem:[#allocation160_spill] sm:$0xff] %v10003_v55  ;;  %4627 = vrot.lane.b32.xlu1 %v14006_v3, %s8116_s17  ;;  %v10029_v3 = vpop.eup %7344 }
 0x4b5   :  { %v10011_v32 = vpop.xlane.xlu0 %1690  ;;  %14013 = vst [vmem:[#allocation164_spill] sm:$0xff] %v10029_v3  ;;  %v10033_v21 = vpop.eup %7346 }
 0x4b6   :  { %14014 = vst [vmem:[#allocation165_spill] sm:$0xff] %v10033_v21  ;;  %v10039_v47 = vpop.eup %7348  ;;  %v1734_v9 = vadd.f32 %v10033_v21, %v10029_v3 }
 0x4b7   :  { %v1664_v35 = vpop.xlane.xlu1 %1663  ;;  %14015 = vst [vmem:[#allocation166_spill] sm:$0xff] %v10039_v47 }
 0x4b8   :  { %7352 = vrcp.f32 %v1664_v35  ;;  %v10043_v35 = vpop.eup %7350 }
 0x4b9   :  { %v10023_v39 = vpop.xlane.xlu0 %1693  ;;  %14016 = vst [vmem:[#allocation167_spill] sm:$0xff] %v10043_v35 }
 0x4ba   :  { %2533 = vmax.xlane.f32.xlu0 %v2532_v15 }
 0x4bb   :  { %v1667_v49 = vpop.xlane.xlu1 %1666 }
 0x4bc   :  { %7354 = vrcp.f32 %v1667_v49  ;;  %v10047_v49 = vpop.f32.mrf.mxu1 }
 0x4bd   :  { %v10035_v25 = vpop.xlane.xlu0 %1696 }
 0x4be   :  { %2539 = vmax.xlane.f32.xlu0 %v2538_v14  ;;  %v1737_v14 = vadd.f32 %v10043_v35, %v10039_v47  ;;  %v2421_v5 = vpop.f32.mrf.mxu1  ;;  %v1638_v47 = vmul.f32 1.442695, %v1522_v4  ;;  %v1640_v35 = vmul.f32 1.442695, %v1523_v7 }
 0x4bf   :  { %v1670_v11 = vpop.xlane.xlu1 %1669 }
 0x4c0   :  { %7356 = vrcp.f32 %v1670_v11 }
 0x4c1   :  { %v10045_v15 = vpop.xlane.xlu0 %1699 }
 0x4c2   :  { %1735 = vadd.xlane.f32.xlu0 %v1734_v9  ;;  %v1524_v9 = vsub.f32 %v9453_v18, %v9887_v20  ;;  %v2423_v18 = vpop.f32.mrf.mxu1 }
 0x4c3   :  { %v1673_v6 = vpop.xlane.xlu1 %1672 }
 0x4c4   :  { %7358 = vrcp.f32 %v1673_v6  ;;  %v14017_v6 = vld [vmem:[#allocation131_spill] sm:$0xff]  ;;  %v1642_v48 = vmul.f32 1.442695, %v1524_v9 }
 0x4c5   :  { %v10055_v2 = vpop.xlane.xlu0 %1702  ;;  %v7353_v11 = vpop.eup %7352  ;;  %v1525_v60 = vsub.f32 %v14017_v6, %v9887_v20 }
 0x4c6   :  { %1738 = vadd.xlane.f32.xlu0 %v1737_v14  ;;  %v1791_v0 = vmul.f32 %v7353_v11, %v9709_v27  ;;  %v1790_v14 = vmul.f32 %v7353_v11, %v9703_v10 }
 0x4c7   :  { %v1676_v55 = vpop.xlane.xlu1 %1675  ;;  %v1644_v6 = vmul.f32 1.442695, %v1525_v60 }
 0x4c8   :  { %7360 = vrcp.f32 %v1676_v55 }
 0x4c9   :  { %v7355_v3 = vpop.eup %7354  ;;  %v4622_v19 = vpop.permute.xlu0 %4621 }
 0x4ca   :  { %6900 = vmatprep.mubr.msk.bf16.mxu1 %vm1084_vm1, %v4622_v19  ;;  %v1793_v26 = vmul.f32 %v7355_v3, %v9731_v38  ;;  %v1792_v21 = vmul.f32 %v7355_v3, %v9723_v56  ;;  %v14018_v38 = vld [vmem:[#allocation102_spill] sm:$0xff] }
 0x4cb   :  { %6901 = vmatmul.mubr.msk.bf16.gmra.mxu1 %vm1084_vm1, %v4622_v19  ;;  %v1679_v20 = vpop.xlane.xlu1 %1678  ;;  %v10069_v56 = vadd.f32 %v9939_v59, %v14018_v38 }
 0x4cc   :  { %7362 = vrcp.f32 %v1679_v20  ;;  %v1855_v4 = vpack.c.bf16 %v1793_v26, %v1791_v0  ;;  %v1854_v55 = vpack.c.bf16 %v1792_v21, %v1790_v14 }
 0x4cd   :  { %7364 = vpow2.f32 %v1638_v47  ;;  %v7357_v7 = vpop.eup %7356 }
 0x4ce   :  { %7366 = vpow2.f32 %v1640_v35  ;;  %1966 = vmatprep.mubr.bf16.mxu0 %v1855_v4  ;;  %v1795_v60 = vmul.f32 %v7357_v7, %v9751_v22  ;;  %v1794_v47 = vmul.f32 %v7357_v7, %v9745_v52  ;;  %v14019_v35 = vld [vmem:[#allocation101_spill] sm:$0xff]  ;;  %v14021_v52 = vld [vmem:[#allocation107_spill] sm:$0xff]  ;;  %v14022_v7 = vld [vmem:[#allocation32_spill] sm:$0xff] }
 0x4cf   :  { %7368 = vpow2.f32 %v1642_v48  ;;  %1967 = vmatmul.mubr.bf16.vlgmr.msra.gmra.mxu0 %v1854_v55  ;;  %v1682_v27 = vpop.xlane.xlu1 %1681  ;;  %v10079_v11 = vadd.f32 %v9933_v46, %v14019_v35  ;;  %v14083_v35 = vld [vmem:[#allocation166_spill] sm:$0xff] }
 0x4d0   :  { %7370 = vpow2.f32 %v1644_v6 }
 0x4d1   :  { %v7359_v10 = vpop.eup %7358  ;;  %7372 = vrcp.f32 %v10011_v32  ;;  %v14020_v32 = vld [vmem:[#allocation108_spill] sm:$0xff] }
 0x4d2   :  { %7374 = vrcp.f32 %v1682_v27  ;;  %v1797_v21 = vmul.f32 %v7359_v10, %v9771_v50  ;;  %v1796_v3 = vmul.f32 %v7359_v10, %v9763_v61  ;;  %v10082_v19 = vadd.f32 %v2423_v18, %v14020_v32 }
 0x4d3   :  { %7376 = vrcp.f32 %v10001_v23  ;;  %v1685_v48 = vpop.xlane.xlu1 %1684  ;;  %v2541_v50 = vmax.f32 %v10079_v11, %v10069_v56  ;;  %v10087_v61 = vadd.f32 %v2421_v5, %v14021_v52  ;;  %v14081_v52 = vld [vmem:[#allocation167_spill] sm:$0xff] }
 0x4d4   :  { %7378 = vrcp.f32 %v1685_v48  ;;  %v1857_v59 = vpack.c.bf16 %v1797_v21, %v1795_v60  ;;  %v1856_v9 = vpack.c.bf16 %v1796_v3, %v1794_v47 }
 0x4d5   :  { %v7361_v22 = vpop.eup %7360  ;;  %v2547_v46 = vmax.f32 %v10087_v61, %v10082_v19  ;;  %7380 = vrcp.f32 %v10035_v25 }
 0x4d6   :  { %1974 = vmatprep.mubr.bf16.mxu0 %v1857_v59  ;;  %v1799_v14 = vmul.f32 %v7361_v22, %v9785_v34  ;;  %v1798_v20 = vmul.f32 %v7361_v22, %v9781_v42  ;;  %7382 = vrcp.f32 %v10023_v39 }
 0x4d7   :  { %1975 = vmatmul.mubr.bf16.gmra.mxu0 %v1856_v9  ;;  %v1706_v23 = vpop.xlane.xlu1 %1705  ;;  %7384 = vrcp.f32 %v10055_v2 }
 0x4d8   :  { %2542 = vmax.xlane.f32.xlu1 %v2541_v50  ;;  %7386 = vrcp.f32 %v10045_v15 }
 0x4d9   :  { %v7363_v0 = vpop.eup %7362 }
 0x4da   :  { %v10092_v26 = vpop.eup %7364  ;;  %v1801_v18 = vmul.f32 %v7363_v0, %v9801_v54  ;;  %v1800_v5 = vmul.f32 %v7363_v0, %v9797_v53 }
 0x4db   :  { %v10098_v6 = vpop.eup %7366  ;;  %v1709_v4 = vpop.xlane.xlu1 %1708 }
 0x4dc   :  { %v10100_v55 = vpop.eup %7368  ;;  %4629 = vrot.lane.b32.xlu0 %v14022_v7, %s8116_s17  ;;  %2548 = vmax.xlane.f32.xlu1 %v2547_v46  ;;  %v1859_v25 = vpack.c.bf16 %v1801_v18, %v1799_v14  ;;  %v1858_v27 = vpack.c.bf16 %v1800_v5, %v1798_v20  ;;  %v1740_v42 = vadd.f32 %v10098_v6, %v10092_v26  ;;  %v2427_v46 = vpop.f32.mrf.mxu1  ;;  %7388 = vrcp.f32 %v1709_v4 }
 0x4dd   :  { %v10105_v34 = vpop.eup %7370  ;;  %7390 = vrcp.f32 %v1706_v23 }
 0x4de   :  { %v7373_v54 = vpop.eup %7372  ;;  %1982 = vmatprep.mubr.bf16.mxu0 %v1859_v25  ;;  %v1743_v21 = vadd.f32 %v10105_v34, %v10100_v55  ;;  %v2429_v18 = vpop.f32.mrf.mxu1  ;;  %v1528_v25 = vsub.f32 %v9494_v30, %v9947_v33 }
 0x4df   :  { %v7375_v53 = vpop.eup %7374  ;;  %1983 = vmatmul.mubr.bf16.gmra.mxu0 %v1858_v27  ;;  %v10109_v10 = vpop.xlane.xlu1 %2518  ;;  %v1809_v47 = vmul.f32 %v7373_v54, %v9721_v57  ;;  %v1808_v15 = vmul.f32 %v7373_v54, %v9714_v62  ;;  %v14023_v54 = vld [vmem:[#allocation96_spill] sm:$0xff] }
 0x4e0   :  { %v7377_v60 = vpop.eup %7376  ;;  %1741 = vadd.xlane.f32.xlu1 %v1740_v42  ;;  %v1803_v3 = vmul.f32 %v7375_v53, %v9807_v45  ;;  %v1802_v22 = vmul.f32 %v7375_v53, %v9803_v36  ;;  %v1527_v36 = vsub.f32 %v9481_v1, %v9901_v24  ;;  %v10133_v27 = vpop.f32.mrf.mxu1  ;;  %v1529_v1 = vsub.f32 %v9497_v58, %v9947_v33  ;;  %v14024_v58 = vld [vmem:[#allocation79_spill] sm:$0xff] }
 0x4e1   :  { %v7379_v39 = vpop.eup %7378  ;;  %v1807_v0 = vmul.f32 %v7377_v60, %v9697_v37  ;;  %v1806_v5 = vmul.f32 %v7377_v60, %v9690_v41  ;;  %v1650_v41 = vmul.f32 1.442695, %v1528_v25  ;;  %v14025_v60 = vld [vmem:[#allocation30_spill] sm:$0xff] }
 0x4e2   :  { %v1805_v48 = vmul.f32 %v7379_v39, %v9815_v51  ;;  %v1804_v59 = vmul.f32 %v7379_v39, %v9810_v8  ;;  %v7381_v14 = vpop.eup %7380  ;;  %v1526_v8 = vsub.f32 %v9478_v40, %v9901_v24  ;;  %v1648_v42 = vmul.f32 1.442695, %v1527_v36  ;;  %v10138_v23 = vpop.f32.mrf.mxu1  ;;  %v14031_v36 = vld [vmem:[#allocation66_spill] sm:$0xff] }
 0x4e3   :  { %v10118_v9 = vpop.xlane.xlu1 %2524  ;;  %v1863_v2 = vpack.c.bf16 %v1809_v47, %v1807_v0  ;;  %v7383_v51 = vpop.eup %7382  ;;  %v1813_v37 = vmul.f32 %v7381_v14, %v9761_v44  ;;  %v1862_v62 = vpack.c.bf16 %v1808_v15, %v1806_v5  ;;  %v1812_v53 = vmul.f32 %v7381_v14, %v14023_v54 }
 0x4e4   :  { %1744 = vadd.xlane.f32.xlu1 %v1743_v21  ;;  %v1861_v50 = vpack.c.bf16 %v1805_v48, %v1803_v3  ;;  %v1860_v57 = vpack.c.bf16 %v1804_v59, %v1802_v22  ;;  %v1646_v7 = vmul.f32 1.442695, %v1526_v8  ;;  %v1811_v40 = vmul.f32 %v7383_v51, %v9743_v31  ;;  %v7385_v4 = vpop.eup %7384  ;;  %v14026_v21 = vld [vmem:[#allocation97_spill] sm:$0xff]  ;;  %v14028_v59 = vld [vmem:[#allocation26_spill] sm:$0xff] }
 0x4e5   :  { %v7387_v30 = vpop.eup %7386  ;;  %v1652_v31 = vmul.f32 1.442695, %v1529_v1  ;;  %v1817_v33 = vmul.f32 %v7385_v4, %v14024_v58  ;;  %v1810_v39 = vmul.f32 %v7383_v51, %v14025_v60  ;;  %v14027_v3 = vld [vmem:[#allocation105_spill] sm:$0xff]  ;;  %v14030_v51 = vld [vmem:[#allocation111_spill] sm:$0xff]  ;;  %v1816_v15 = vmul.f32 %v7385_v4, %v14031_v36  ;;  %v14037_v58 = vld [vmem:[#allocation70_spill] sm:$0xff] }
 0x4e6   :  { %1990 = vmatprep.mubr.bf16.mxu0 %v1861_v50  ;;  %v1865_v24 = vpack.c.bf16 %v1813_v37, %v1811_v40  ;;  %7392 = vpow2.f32 %v1646_v7  ;;  %v1815_v47 = vmul.f32 %v7387_v30, %v14026_v21  ;;  %v10147_v48 = vadd.f32 %v10047_v49, %v14027_v3  ;;  %v14032_v7 = vld [vmem:[#allocation58_spill] sm:$0xff]  ;;  %v14038_v21 = vld [vmem:[#allocation137_spill] sm:$0xff]  ;;  %v14039_v36 = vld [vmem:[#allocation140_spill] sm:$0xff] }
 0x4e7   :  { %1991 = vmatmul.mubr.bf16.gmra.mxu0 %v1860_v57  ;;  %v1718_v45 = vpop.xlane.xlu1 %1717  ;;  %7394 = vpow2.f32 %v1648_v42  ;;  %v1864_v22 = vpack.c.bf16 %v1812_v53, %v1810_v39  ;;  %v14029_v57 = vld [vmem:[#allocation53_spill] sm:$0xff]  ;;  %v10158_v49 = vadd.f32 %v2429_v18, %v14030_v51  ;;  %v10163_v25 = vadd.f32 %v2427_v46, %v14032_v7  ;;  %v14034_v42 = vld [vmem:[#allocation83_spill] sm:$0xff]  ;;  %v14036_v53 = vld [vmem:[#allocation82_spill] sm:$0xff] }
 0x4e8   :  { %1998 = vmatprep.mubr.bf16.mxu0 %v1863_v2  ;;  %7396 = vpow2.f32 %v1650_v41  ;;  %v1867_v50 = vpack.c.bf16 %v1817_v33, %v1815_v47  ;;  %v10153_v14 = vadd.f32 %v10037_v63, %v14029_v57  ;;  %v14033_v63 = vld [vmem:[#allocation69_spill] sm:$0xff]  ;;  %v1530_v33 = vsub.f32 %v14037_v58, %v9963_v16  ;;  %v14082_v7 = vld [vmem:[#allocation164_spill] sm:$0xff] }
 0x4e9   :  { %7398 = vpow2.f32 %v1652_v31  ;;  %v7389_v0 = vpop.eup %7388  ;;  %v1814_v40 = vmul.f32 %v7387_v30, %v14033_v63  ;;  %v2550_v18 = vmax.f32 %v10163_v25, %v10158_v49  ;;  %v14035_v41 = vld [vmem:[#allocation37_spill] sm:$0xff]  ;;  %v1531_v47 = vsub.f32 %v14038_v21, %v9963_v16  ;;  %v14046_v21 = vld [vmem:[#allocation115_spill] sm:$0xff] }
 0x4ea   :  { %v7391_v2 = vpop.eup %7390  ;;  %v2544_v8 = vmax.f32 %v10153_v14, %v10147_v48  ;;  %v1821_v5 = vmul.f32 %v7389_v0, %v9829_v17  ;;  %v1820_v30 = vmul.f32 %v7389_v0, %v14035_v41  ;;  %v1654_v0 = vmul.f32 1.442695, %v1530_v33  ;;  %v14044_v41 = vld [vmem:[#allocation106_spill] sm:$0xff] }
 0x4eb   :  { %v1721_v20 = vpop.xlane.xlu1 %1720  ;;  %v1819_v1 = vmul.f32 %v7391_v2, %v14034_v42 }
 0x4ec   :  { %7400 = vrcp.f32 %v1721_v20 }
 0x4ef   :  { %1999 = vmatmul.mubr.bf16.gmra.mxu0 %v1862_v62  ;;  %v4624_v44 = vpop.permute.xlu1 %4623 }
 0x4f0   :  { %2006 = vmatprep.mubr.bf16.mxu0 %v1865_v24  ;;  %6902 = vmatprep.mubr.msk.bf16.mxu1 %vm1084_vm1, %v4624_v44  ;;  %v1866_v24 = vpack.c.bf16 %v1816_v15, %v1814_v40  ;;  %v1532_v15 = vsub.f32 %v14039_v36, %v9915_v13 }
 0x4f1   :  { %6903 = vmatmul.mubr.msk.bf16.gmra.mxu1 %vm1084_vm1, %v4624_v44  ;;  %v1869_v44 = vpack.c.bf16 %v1821_v5, %v1819_v1  ;;  %v14041_v1 = vld [vmem:[#allocation109_spill] sm:$0xff] }
 0x4f2   :  { %v1658_v58 = vmul.f32 1.442695, %v1532_v15  ;;  %v14049_v15 = vld [vmem:[#allocation20_spill] sm:$0xff] }
 0x4f3   :  { %v10167_v62 = vpop.eup %7392 }
 0x4f4   :  { %v10171_v4 = vpop.eup %7394 }
 0x4f5   :  { %4631 = vrot.lane.b32.xlu1 %v14028_v59, %s8116_s17  ;;  %v10173_v46 = vpop.eup %7396  ;;  %v1746_v20 = vadd.f32 %v10171_v4, %v10167_v62 }
 0x4f6   :  { %v10178_v31 = vpop.eup %7398 }
 0x4f7   :  { %2007 = vmatmul.mubr.bf16.gmra.mxu0 %v1864_v22  ;;  %v1749_v60 = vadd.f32 %v10178_v31, %v10173_v46 }
 0x4f8   :  { %2014 = vmatprep.mubr.bf16.mxu0 %v1867_v50  ;;  %v10191_v50 = vpop.f32.mrf.mxu1 }
 0x4f9   :  { %v7401_v22 = vpop.eup %7400 }
 0x4fa   :  { %v1712_v37 = vpop.xlane.xlu0 %1711  ;;  %v10197_v16 = vpop.f32.mrf.mxu1 }
 0x4fb   :  { %2545 = vmax.xlane.f32.xlu0 %v2544_v8  ;;  %7402 = vrcp.f32 %v1712_v37  ;;  %v14040_v37 = vld [vmem:[#allocation141_spill] sm:$0xff] }
 0x4fc   :  { %7404 = vrcp.f32 %v1718_v45  ;;  %v1818_v45 = vmul.f32 %v7391_v2, %v14036_v53  ;;  %v1656_v2 = vmul.f32 1.442695, %v1531_v47  ;;  %v1533_v5 = vsub.f32 %v14040_v37, %v9915_v13  ;;  %v14045_v53 = vld [vmem:[#allocation110_spill] sm:$0xff] }
 0x4fe   :  { %v1715_v17 = vpop.xlane.xlu0 %1714  ;;  %v1868_v39 = vpack.c.bf16 %v1820_v30, %v1818_v45  ;;  %v1660_v13 = vmul.f32 1.442695, %v1533_v5  ;;  %v1828_v5 = vmul.f32 %v7401_v22, %v14049_v15 }
 0x4ff   :  { %7406 = vrcp.f32 %v1715_v17  ;;  %2551 = vmax.xlane.f32.xlu0 %v2550_v18  ;;  %2015 = vmatmul.mubr.bf16.gmra.mxu0 %v1866_v24  ;;  %v14042_v24 = vld [vmem:[#allocation33_spill] sm:$0xff] }
 0x500   :  { %2022 = vmatprep.mubr.bf16.mxu0 %v1869_v44  ;;  %7408 = vpow2.f32 %v1654_v0  ;;  %v1829_v17 = vmul.f32 %v7401_v22, %v14042_v24  ;;  %v14043_v44 = vld [vmem:[#allocation50_spill] sm:$0xff]  ;;  %v2441_v0 = vpop.f32.mrf.mxu1 }
 0x502   :  { %v10180_v54 = vpop.xlane.xlu0 %2521 }
 0x503   :  { %1747 = vadd.xlane.f32.xlu0 %v1746_v20 }
 0x506   :  { %v10189_v59 = vpop.xlane.xlu0 %2527 }
 0x507   :  { %1750 = vadd.xlane.f32.xlu0 %v1749_v60  ;;  %2023 = vmatmul.mubr.bf16.gmra.mxu0 %v1868_v39 }
 0x508   :  { %v7403_v8 = vpop.eup %7402 }
 0x509   :  { %v7405_v40 = vpop.eup %7404  ;;  %v1823_v18 = vmul.f32 %v7403_v8, %v14041_v1  ;;  %v1822_v30 = vmul.f32 %v7403_v8, %v14044_v41 }
 0x50a   :  { %v1724_v63 = vpop.xlane.xlu0 %1723  ;;  %v1827_v47 = vmul.f32 %v7405_v40, %v14046_v21  ;;  %v14060_v21 = vld [vmem:[#allocation151_spill] sm:$0xff] }
 0x50b   :  { %7410 = vrcp.f32 %v1724_v63  ;;  %v14047_v63 = vld [vmem:[#allocation113_spill] sm:$0xff] }
 0x50c   :  { %v7407_v42 = vpop.eup %7406  ;;  %7412 = vpow2.f32 %v1656_v2  ;;  %v1873_v36 = vpack.c.bf16 %v1829_v17, %v1827_v47  ;;  %v10207_v8 = vadd.f32 %v10138_v23, %v14047_v63  ;;  %v2443_v2 = vpop.f32.mrf.mxu1  ;;  %v14053_v23 = vld [vmem:[#allocation118_spill] sm:$0xff] }
 0x50d   :  { %v1825_v20 = vmul.f32 %v7407_v42, %v14043_v44  ;;  %v1824_v45 = vmul.f32 %v7407_v42, %v14045_v53  ;;  %v14050_v42 = vld [vmem:[#allocation112_spill] sm:$0xff]  ;;  %v10220_v44 = vadd.f32 %v2443_v2, %v14053_v23  ;;  %v10222_v41 = vpop.eup %7408 }
 0x50e   :  { %v1727_v33 = vpop.xlane.xlu0 %1726  ;;  %14048 = vst [vmem:[#allocation131_spill] sm:$0xff] %v10207_v8  ;;  %v10214_v1 = vadd.f32 %v10133_v27, %v14050_v42  ;;  %v14080_v42 = vld [vmem:[#allocation165_spill] sm:$0xff] }
 0x50f   :  { %7414 = vrcp.f32 %v1727_v33  ;;  %v1871_v60 = vpack.c.bf16 %v1825_v20, %v1823_v18  ;;  %v1870_v39 = vpack.c.bf16 %v1824_v45, %v1822_v30  ;;  %v14052_v18 = vld [vmem:[#allocation114_spill] sm:$0xff]  ;;  %14054 = vst [vmem:[#allocation96_spill] sm:$0xff] %v10220_v44  ;;  %v14055_v30 = vld [vmem:[#allocation117_spill] sm:$0xff]  ;;  %v14058_v33 = vld [vmem:[#allocation39_spill] sm:$0xff] }
 0x510   :  { %7416 = vpow2.f32 %v1658_v58  ;;  %14051 = vst [vmem:[#allocation32_spill] sm:$0xff] %v10214_v1  ;;  %v1826_v24 = vmul.f32 %v7405_v40, %v14052_v18  ;;  %v2553_v17 = vmax.f32 %v10214_v1, %v10207_v8  ;;  %v10225_v53 = vadd.f32 %v2441_v0, %v14055_v30  ;;  %v14057_v58 = vld [vmem:[#allocation152_spill] sm:$0xff]  ;;  %v14061_v0 = vld [vmem:[#allocation154_spill] sm:$0xff]  ;;  %v14067_v30 = vld [vmem:[#allocation49_spill] sm:$0xff] }
 0x511   :  { %2030 = vmatprep.mubr.bf16.mxu0 %v1871_v60  ;;  %7418 = vpow2.f32 %v1660_v13  ;;  %v14059_v60 = vld [vmem:[#allocation155_spill] sm:$0xff] }
 0x512   :  { %v4626_v37 = vpop.permute.xlu0 %4625  ;;  %2031 = vmatmul.mubr.bf16.gmra.mxu0 %v1870_v39  ;;  %v1872_v20 = vpack.c.bf16 %v1828_v5, %v1826_v24  ;;  %14056 = vst [vmem:[#allocation79_spill] sm:$0xff] %v10225_v53  ;;  %v2559_v27 = vmax.f32 %v10225_v53, %v10220_v44 }
 0x513   :  { %2038 = vmatprep.mubr.bf16.mxu0 %v1873_v36  ;;  %6904 = vmatprep.mubr.msk.bf16.mxu1 %vm1084_vm1, %v4626_v37 }
 0x514   :  { %6905 = vmatmul.mubr.msk.bf16.gmra.mxu1 %vm1084_vm1, %v4626_v37 }
 0x518   :  { %v7411_v22 = vpop.eup %7410 }
 0x519   :  { %2554 = vmax.xlane.f32.xlu1 %v2553_v17  ;;  %v10227_v45 = vpop.eup %7412  ;;  %v1831_v13 = vmul.f32 %v7411_v22, %v14057_v58  ;;  %v1830_v47 = vmul.f32 %v7411_v22, %v14060_v21  ;;  %v2447_v22 = vpop.f32.mrf.mxu1 }
 0x51a   :  { %2039 = vmatmul.mubr.bf16.gmra.mxu0 %v1872_v20  ;;  %v1752_v15 = vadd.f32 %v10227_v45, %v10222_v41  ;;  %v10271_v23 = vadd.f32 %v2447_v22, %v14067_v30 }
 0x51c   :  { %v7415_v40 = vpop.eup %7414  ;;  %14068 = vst [vmem:[#allocation97_spill] sm:$0xff] %v10271_v23 }
 0x51d   :  { %4633 = vrot.lane.b32.xlu0 %v14058_v33, %s8116_s17  ;;  %2560 = vmax.xlane.f32.xlu1 %v2559_v27  ;;  %v1833_v39 = vmul.f32 %v7415_v40, %v14059_v60  ;;  %v1832_v36 = vmul.f32 %v7415_v40, %v14061_v0  ;;  %v10237_v37 = vpop.eup %7416  ;;  %v2449_v40 = vpop.f32.mrf.mxu1 }
 0x51e   :  { %v10241_v18 = vpop.eup %7418 }
 0x51f   :  { %v1875_v2 = vpack.c.bf16 %v1833_v39, %v1831_v13  ;;  %v1874_v5 = vpack.c.bf16 %v1832_v36, %v1830_v47  ;;  %v1755_v17 = vadd.f32 %v10241_v18, %v10237_v37  ;;  %v2451_v13 = vpop.f32.mrf.mxu1  ;;  %v14062_v39 = vld [vmem:[#allocation116_spill] sm:$0xff]  ;;  %v14063_v47 = vld [vmem:[#allocation31_spill] sm:$0xff] }
 0x520   :  { %v10243_v24 = vpop.xlane.xlu1 %2530  ;;  %v10253_v21 = vadd.f32 %v10197_v16, %v14062_v39  ;;  %v14064_v36 = vld [vmem:[#allocation44_spill] sm:$0xff] }
 0x521   :  { %2046 = vmatprep.mubr.bf16.mxu0 %v1875_v2  ;;  %1753 = vadd.xlane.f32.xlu1 %v1752_v15  ;;  %v2453_v60 = vpop.f32.mrf.mxu1  ;;  %v10259_v2 = vadd.f32 %v10191_v50, %v14064_v36 }
 0x522   :  { %2047 = vmatmul.mubr.bf16.gmra.mxu0 %v1874_v5 }
 0x523   :  { %v2556_v5 = vmax.f32 %v10259_v2, %v10253_v21 }
 0x524   :  { %v10247_v20 = vpop.xlane.xlu1 %2536 }
 0x525   :  { %1756 = vadd.xlane.f32.xlu1 %v1755_v17  ;;  %v14065_v17 = vld [vmem:[#allocation121_spill] sm:$0xff] }
 0x528   :  { %v1730_v27 = vpop.xlane.xlu1 %1729 }
 0x529   :  { %7420 = vrcp.f32 %v1730_v27  ;;  %v10264_v27 = vadd.f32 %v2449_v40, %v14065_v17  ;;  %v14069_v40 = vld [vmem:[#allocation28_spill] sm:$0xff] }
 0x52b   :  { %14066 = vst [vmem:[#allocation30_spill] sm:$0xff] %v10264_v27  ;;  %v2562_v39 = vmax.f32 %v10271_v23, %v10264_v27  ;;  %v14095_v27 = vld [vmem:[#allocation42_spill] sm:$0xff] }
 0x52c   :  { %v1733_v58 = vpop.xlane.xlu1 %1732 }
 0x52d   :  { %7422 = vrcp.f32 %v1733_v58 }
 0x530   :  { %v4628_v33 = vpop.permute.xlu1 %4627 }
 0x531   :  { %6906 = vmatprep.mubr.msk.bf16.mxu1 %vm1084_vm1, %v4628_v33 }
 0x532   :  { %6907 = vmatmul.mubr.msk.bf16.gmra.mxu1 %vm1084_vm1, %v4628_v33 }
 0x536   :  { %4635 = vrot.lane.b32.xlu1 %v14063_v47, %s8116_s17  ;;  %v7421_v0 = vpop.eup %7420 }
 0x537   :  { %v1835_v58 = vmul.f32 %v7421_v0, %v9975_v12  ;;  %v1834_v33 = vmul.f32 %v7421_v0, %v9969_v43  ;;  %v14070_v12 = vld [vmem:[#allocation143_spill] sm:$0xff]  ;;  %v14071_v43 = vld [vmem:[#allocation144_spill] sm:$0xff] }
 0x538   :  { %v2594_v17 = vsub.f32 %v14070_v12, %v14069_v40 }
 0x53a   :  { %v7423_v15 = vpop.eup %7422  ;;  %v2660_v0 = vmul.f32 1.442695, %v2594_v17 }
 0x53b   :  { %v1837_v16 = vmul.f32 %v7423_v15, %v9983_v29  ;;  %v1836_v47 = vmul.f32 %v7423_v15, %v9979_v28  ;;  %v2595_v28 = vsub.f32 %v14071_v43, %v14069_v40  ;;  %v14074_v40 = vld [vmem:[#allocation72_spill] sm:$0xff]  ;;  %v14076_v43 = vld [vmem:[#allocation43_spill] sm:$0xff] }
 0x53c   :  { %2557 = vmax.xlane.f32.xlu0 %v2556_v5  ;;  %v10283_v5 = vpop.f32.mrf.mxu1  ;;  %7424 = vpow2.f32 %v2660_v0  ;;  %v10297_v12 = vadd.f32 %v2451_v13, %v14074_v40 }
 0x53d   :  { %v1877_v50 = vpack.c.bf16 %v1837_v16, %v1835_v58  ;;  %v1876_v36 = vpack.c.bf16 %v1836_v47, %v1834_v33  ;;  %v2662_v15 = vmul.f32 1.442695, %v2595_v28  ;;  %v14072_v47 = vld [vmem:[#allocation122_spill] sm:$0xff] }
 0x53e   :  { %v10285_v16 = vpop.f32.mrf.mxu1  ;;  %14075 = vst [vmem:[#allocation66_spill] sm:$0xff] %v10297_v12 }
 0x53f   :  { %2054 = vmatprep.mubr.bf16.mxu0 %v1877_v50  ;;  %7426 = vpow2.f32 %v2662_v15  ;;  %v10290_v50 = vadd.f32 %v2453_v60, %v14072_v47  ;;  %v14077_v15 = vld [vmem:[#allocation158_spill] sm:$0xff] }
 0x540   :  { %2563 = vmax.xlane.f32.xlu0 %v2562_v39  ;;  %2055 = vmatmul.mubr.bf16.gmra.mxu0 %v1876_v36  ;;  %v10287_v36 = vpop.f32.mrf.mxu1 }
 0x541   :  { %14073 = vst [vmem:[#allocation26_spill] sm:$0xff] %v10290_v50  ;;  %v2565_v0 = vmax.f32 %v10297_v12, %v10290_v50  ;;  %v14091_v12 = vld [vmem:[#allocation124_spill] sm:$0xff] }
 0x542   :  { %v10293_v17 = vpop.f32.mrf.mxu1 }
 0x543   :  { %v10277_v29 = vpop.xlane.xlu0 %2533 }
 0x547   :  { %v10281_v22 = vpop.xlane.xlu0 %2539 }
 0x549   :  { %v10301_v28 = vpop.eup %7424 }
 0x54b   :  { %v1736_v58 = vpop.xlane.xlu0 %1735 }
 0x54c   :  { %7428 = vrcp.f32 %v1736_v58  ;;  %v10305_v60 = vpop.eup %7426  ;;  %v14078_v58 = vld [vmem:[#allocation67_spill] sm:$0xff] }
 0x54d   :  { %v2787_v40 = vadd.f32 %v10305_v60, %v10301_v28 }
 0x54f   :  { %v1739_v39 = vpop.xlane.xlu0 %1738 }
 0x550   :  { %7430 = vrcp.f32 %v1739_v39  ;;  %v2592_v39 = vsub.f32 %v14078_v58, %v14077_v15 }
 0x553   :  { %v4630_v33 = vpop.permute.xlu0 %4629 }
 0x554   :  { %6908 = vmatprep.mubr.msk.bf16.mxu1 %vm1084_vm1, %v4630_v33 }
 0x555   :  { %6909 = vmatmul.mubr.msk.bf16.gmra.mxu1 %vm1084_vm1, %v4630_v33  ;;  %v14079_v33 = vld [vmem:[#allocation142_spill] sm:$0xff] }
 0x556   :  { %3038 = vrot.lane.b32.xlu0 %v14076_v43, %s8118_s18  ;;  %v2593_v13 = vsub.f32 %v14079_v33, %v14077_v15  ;;  %v2656_v43 = vmul.f32 1.442695, %v2592_v39 }
 0x558   :  { %v2658_v58 = vmul.f32 1.442695, %v2593_v13  ;;  %7432 = vpow2.f32 %v2656_v43 }
 0x559   :  { %v7429_v30 = vpop.eup %7428 }
 0x55a   :  { %2566 = vmax.xlane.f32.xlu1 %v2565_v0  ;;  %v1839_v63 = vmul.f32 %v7429_v30, %v14080_v42  ;;  %v1838_v51 = vmul.f32 %v7429_v30, %v14082_v7  ;;  %7434 = vpow2.f32 %v2658_v58 }
 0x55d   :  { %v7431_v47 = vpop.eup %7430 }
 0x55e   :  { %2788 = vadd.xlane.f32.xlu1 %v2787_v40  ;;  %v1841_v32 = vmul.f32 %v7431_v47, %v14081_v52  ;;  %v1840_v38 = vmul.f32 %v7431_v47, %v14083_v35  ;;  %v10321_v40 = vpop.f32.mrf.mxu1  ;;  %v14086_v47 = vld [vmem:[#allocation23_spill] sm:$0xff] }
 0x560   :  { %v1879_v0 = vpack.c.bf16 %v1841_v32, %v1839_v63  ;;  %v1878_v57 = vpack.c.bf16 %v1840_v38, %v1838_v51  ;;  %v10323_v39 = vpop.f32.mrf.mxu1  ;;  %v14084_v38 = vld [vmem:[#allocation21_spill] sm:$0xff] }
 0x561   :  { %v10317_v3 = vpop.xlane.xlu1 %2542  ;;  %v14085_v63 = vld [vmem:[#allocation45_spill] sm:$0xff] }
 0x562   :  { %2062 = vmatprep.mubr.bf16.mxu0 %v1879_v0  ;;  %v10327_v32 = vpop.f32.mrf.mxu1 }
 0x563   :  { %2063 = vmatmul.mubr.bf16.gmra.mxu0 %v1878_v57 }
 0x564   :  { %v10334_v7 = vpop.f32.mrf.mxu1 }
 0x565   :  { %v10319_v15 = vpop.xlane.xlu1 %2548  ;;  %v10325_v35 = vpop.eup %7432 }
 0x567   :  { %v10331_v51 = vpop.eup %7434 }
 0x568   :  { %v2784_v30 = vadd.f32 %v10331_v51, %v10325_v35 }
 0x569   :  { %v1742_v42 = vpop.xlane.xlu1 %1741 }
 0x56a   :  { %7436 = vrcp.f32 %v1742_v42 }
 0x56d   :  { %v1745_v52 = vpop.xlane.xlu1 %1744 }
 0x56e   :  { %7438 = vrcp.f32 %v1745_v52 }
 0x56f   :  { %3022 = vrot.lane.b32.xlu1 %v14084_v38, %s8118_s18 }
 0x571   :  { %v4632_v57 = vpop.permute.xlu1 %4631 }
 0x572   :  { %6910 = vmatprep.mubr.msk.bf16.mxu1 %vm1084_vm1, %v4632_v57 }
 0x573   :  { %3036 = vrot.lane.b32.xlu1 %v14085_v63, %s8118_s18  ;;  %6911 = vmatmul.mubr.msk.bf16.gmra.mxu1 %vm1084_vm1, %v4632_v57  ;;  %v10351_v63 = vpop.f32.mrf.mxu1 }
 0x575   :  { %2785 = vadd.xlane.f32.xlu0 %v2784_v30  ;;  %v10355_v50 = vpop.f32.mrf.mxu1 }
 0x577   :  { %3020 = vrot.lane.b32.xlu1 %v14086_v47, %s8118_s18  ;;  %v7437_v43 = vpop.eup %7436  ;;  %v14087_v47 = vld [vmem:[#allocation48_spill] sm:$0xff] }
 0x578   :  { %v1843_v13 = vmul.f32 %v7437_v43, %v10098_v6  ;;  %v1842_v0 = vmul.f32 %v7437_v43, %v10092_v26  ;;  %v10357_v43 = vpop.f32.mrf.mxu1 }
 0x57a   :  { %v10369_v44 = vpop.f32.mrf.mxu1 }
 0x57b   :  { %v7439_v33 = vpop.eup %7438 }
 0x57c   :  { %v1845_v58 = vmul.f32 %v7439_v33, %v10105_v34  ;;  %v1844_v42 = vmul.f32 %v7439_v33, %v10100_v55  ;;  %v14088_v33 = vld [vmem:[#allocation159_spill] sm:$0xff] }
 0x57e   :  { %v1881_v52 = vpack.c.bf16 %v1845_v58, %v1843_v13  ;;  %v1880_v38 = vpack.c.bf16 %v1844_v42, %v1842_v0  ;;  %v14089_v13 = vld [vmem:[#allocation76_spill] sm:$0xff]  ;;  %v14090_v42 = vld [vmem:[#allocation145_spill] sm:$0xff] }
 0x57f   :  { %v2596_v58 = vsub.f32 %v14089_v13, %v14088_v33 }
 0x580   :  { %2070 = vmatprep.mubr.bf16.mxu0 %v1881_v52  ;;  %v2597_v52 = vsub.f32 %v14090_v42, %v14088_v33  ;;  %v10376_v33 = vadd.f32 %v10283_v5, %v14095_v27 }
 0x581   :  { %2071 = vmatmul.mubr.bf16.gmra.mxu0 %v1880_v38 }
 0x582   :  { %v2666_v23 = vmul.f32 1.442695, %v2597_v52 }
 0x584   :  { %v10347_v57 = vpop.xlane.xlu0 %2545 }
 0x588   :  { %v10349_v30 = vpop.xlane.xlu0 %2551 }
 0x58b   :  { %4637 = vrot.lane.b32.xlu0 %v14087_v47, %s8116_s17 }
 0x58c   :  { %v1748_v6 = vpop.xlane.xlu0 %1747 }
 0x58d   :  { %7440 = vrcp.f32 %v1748_v6  ;;  %v10366_v6 = vadd.f32 %v10285_v16, %v14091_v12  ;;  %v14096_v16 = vld [vmem:[#allocation147_spill] sm:$0xff] }
 0x58f   :  { %v6460_v26 = vpop.f32.mrf.mxu0  ;;  %14092 = vst [vmem:[#allocation69_spill] sm:$0xff] %v10366_v6  ;;  %v2568_v8 = vmax.f32 %v10376_v33, %v10366_v6 }
 0x590   :  { %v1751_v34 = vpop.xlane.xlu0 %1750 }
 0x591   :  { %7442 = vrcp.f32 %v1751_v34  ;;  %v6461_v55 = vpop.f32.mrf.mxu0 }
 0x592   :  { %v6462_v38 = vadd.f32 %v6461_v55, %v6460_v26  ;;  %v14093_v26 = vld [vmem:[#allocation153_spill] sm:$0xff]  ;;  %v14094_v55 = vld [vmem:[#allocation146_spill] sm:$0xff] }
 0x593   :  { %v6463_v0 = vpop.f32.mrf.mxu0  ;;  %v2598_v53 = vsub.f32 %v14094_v55, %v14093_v26  ;;  %v2599_v12 = vsub.f32 %v14096_v16, %v14093_v26 }
 0x594   :  { %2095 = vst.msk [vmem:[#allocation2] sm:$0xff] %vm1084_vm1, %v6462_v38  ;;  %v4634_v47 = vpop.permute.xlu0 %4633  ;;  %v2664_v38 = vmul.f32 1.442695, %v2596_v58 }
 0x595   :  { %6912 = vmatprep.mubr.msk.bf16.mxu1 %vm1084_vm1, %v4634_v47  ;;  %v6464_v34 = vpop.f32.mrf.mxu0  ;;  %v2668_v55 = vmul.f32 1.442695, %v2598_v53  ;;  %v2670_v5 = vmul.f32 1.442695, %v2599_v12 }
 0x596   :  { %v6465_v13 = vadd.f32 %v6464_v34, %v6463_v0  ;;  %6913 = vmatmul.mubr.msk.bf16.gmra.mxu1 %vm1084_vm1, %v4634_v47  ;;  %7444 = vpow2.f32 %v2664_v38 }
 0x597   :  { %v6466_v42 = vpop.f32.mrf.mxu0  ;;  %7446 = vpow2.f32 %v2666_v23 }
 0x598   :  { %2096 = vst.msk [vmem:[#allocation2 + $0x8] sm:$0xff] %vm1084_vm1, %v6465_v13  ;;  %7448 = vpow2.f32 %v2668_v55 }
 0x599   :  { %v6467_v1 = vpop.f32.mrf.mxu0  ;;  %7450 = vpow2.f32 %v2670_v5 }
 0x59a   :  { %v6468_v0 = vadd.f32 %v6467_v1, %v6466_v42  ;;  %v7441_v34 = vpop.eup %7440 }
 0x59b   :  { %2569 = vmax.xlane.f32.xlu1 %v2568_v8  ;;  %v6469_v47 = vpop.f32.mrf.mxu0  ;;  %v1847_v13 = vmul.f32 %v7441_v34, %v10171_v4  ;;  %v1846_v53 = vmul.f32 %v7441_v34, %v10167_v62 }
 0x59c   :  { %2097 = vst.msk [vmem:[#allocation2 + $0x10] sm:$0xff] %vm1084_vm1, %v6468_v0  ;;  %v14097_v0 = vld [vmem:[#allocation126_spill] sm:$0xff] }
 0x59d   :  { %v6470_v58 = vpop.f32.mrf.mxu0  ;;  %v10393_v4 = vadd.f32 %v10293_v17, %v14097_v0 }
 0x59e   :  { %v7443_v52 = vpop.eup %7442  ;;  %v6471_v26 = vadd.f32 %v6470_v58, %v6469_v47 }
 0x59f   :  { %v6472_v16 = vpop.f32.mrf.mxu0  ;;  %v1849_v27 = vmul.f32 %v7443_v52, %v10178_v31  ;;  %v1848_v1 = vmul.f32 %v7443_v52, %v10173_v46  ;;  %14098 = vst [vmem:[#allocation83_spill] sm:$0xff] %v10393_v4  ;;  %v14099_v46 = vld [vmem:[#allocation125_spill] sm:$0xff]  ;;  %v10406_v52 = vpop.f32.mrf.mxu1 }
 0x5a0   :  { %2098 = vst.msk [vmem:[#allocation2 + $0x18] sm:$0xff] %vm1084_vm1, %v6471_v26  ;;  %v10398_v31 = vadd.f32 %v10287_v36, %v14099_v46 }
 0x5a1   :  { %v6473_v8 = vpop.f32.mrf.mxu0  ;;  %v1883_v23 = vpack.c.bf16 %v1849_v27, %v1847_v13  ;;  %v1882_v12 = vpack.c.bf16 %v1848_v1, %v1846_v53  ;;  %v10413_v1 = vpop.f32.mrf.mxu1 }
 0x5a2   :  { %v6474_v38 = vadd.f32 %v6473_v8, %v6472_v16  ;;  %v10389_v42 = vpop.xlane.xlu1 %2554  ;;  %14100 = vst [vmem:[#allocation37_spill] sm:$0xff] %v10398_v31  ;;  %v2571_v58 = vmax.f32 %v10398_v31, %v10393_v4  ;;  %v14104_v8 = vld [vmem:[#allocation34_spill] sm:$0xff] }
 0x5a3   :  { %2078 = vmatprep.mubr.bf16.mxu0 %v1883_v23  ;;  %v6475_v55 = vpop.f32.mrf.mxu0  ;;  %v10402_v5 = vpop.eup %7444 }
 0x5a4   :  { %2099 = vst.msk [vmem:[#allocation2 + $0x20] sm:$0xff] %vm1084_vm1, %v6474_v38  ;;  %2079 = vmatmul.mubr.bf16.gmra.mxu0 %v1882_v12  ;;  %14101 = vst [vmem:[#allocation82_spill] sm:$0xff] %v10402_v5  ;;  %v10409_v17 = vpop.eup %7446 }
 0x5a5   :  { %v6476_v62 = vpop.f32.mrf.mxu0  ;;  %14102 = vst [vmem:[#allocation70_spill] sm:$0xff] %v10409_v17  ;;  %v10411_v13 = vpop.eup %7448  ;;  %v2790_v23 = vadd.f32 %v10409_v17, %v10402_v5 }
 0x5a6   :  { %v6477_v47 = vadd.f32 %v6476_v62, %v6475_v55  ;;  %v10400_v27 = vpop.xlane.xlu1 %2560  ;;  %14103 = vst [vmem:[#allocation137_spill] sm:$0xff] %v10411_v13  ;;  %v10420_v12 = vpop.eup %7450 }
 0x5a7   :  { %v6478_v34 = vpop.f32.mrf.mxu0  ;;  %14105 = vst [vmem:[#allocation140_spill] sm:$0xff] %v10420_v12 }
 0x5a8   :  { %2100 = vst.msk [vmem:[#allocation2 + $0x28] sm:$0xff] %vm1084_vm1, %v6477_v47 }
 0x5a9   :  { %v6479_v26 = vpop.f32.mrf.mxu0 }
 0x5aa   :  { %2572 = vmax.xlane.f32.xlu0 %v2571_v58  ;;  %v6480_v16 = vadd.f32 %v6479_v26, %v6478_v34  ;;  %v1754_v36 = vpop.xlane.xlu1 %1753  ;;  %v10422_v34 = vpop.f32.mrf.mxu1  ;;  %v14106_v58 = vld [vmem:[#allocation40_spill] sm:$0xff]  ;;  %v2793_v26 = vadd.f32 %v10420_v12, %v10411_v13 }
 0x5ab   :  { %v6481_v53 = vpop.f32.mrf.mxu0  ;;  %7452 = vrcp.f32 %v1754_v36 }
 0x5ac   :  { %2101 = vst.msk [vmem:[#allocation2 + $0x30] sm:$0xff] %vm1084_vm1, %v6480_v16  ;;  %3034 = vrot.lane.b32.xlu1 %v14104_v8, %s8118_s18 }
 0x5ad   :  { %v6482_v38 = vpop.f32.mrf.mxu0 }
 0x5ae   :  { %2791 = vadd.xlane.f32.xlu0 %v2790_v23  ;;  %v6483_v55 = vadd.f32 %v6482_v38, %v6481_v53  ;;  %v1757_v62 = vpop.xlane.xlu1 %1756  ;;  %v10430_v53 = vpop.f32.mrf.mxu1  ;;  %v14107_v23 = vld [vmem:[#allocation36_spill] sm:$0xff] }
 0x5af   :  { %7454 = vrcp.f32 %v1757_v62  ;;  %v6484_v47 = vpop.f32.mrf.mxu0 }
 0x5b0   :  { %2102 = vst.msk [vmem:[#allocation2 + $0x38] sm:$0xff] %vm1084_vm1, %v6483_v55  ;;  %4639 = vrot.lane.b32.xlu1 %v14106_v58, %s8116_s17 }
 0x5b1   :  { %v6485_v16 = vpop.f32.mrf.mxu0 }
 0x5b2   :  { %2794 = vadd.xlane.f32.xlu0 %v2793_v26  ;;  %v6486_v8 = vadd.f32 %v6485_v16, %v6484_v47  ;;  %v4636_v36 = vpop.permute.xlu1 %4635  ;;  %v14108_v47 = vld [vmem:[#allocation19_spill] sm:$0xff] }
 0x5b3   :  { %v6487_v46 = vpop.f32.mrf.mxu0  ;;  %6914 = vmatprep.mubr.msk.bf16.mxu1 %vm1084_vm1, %v4636_v36 }
 0x5b4   :  { %2103 = vst.msk [vmem:[#allocation2 + $0x40] sm:$0xff] %vm1084_vm1, %v6486_v8  ;;  %3032 = vrot.lane.b32.xlu1 %v14107_v23, %s8118_s18  ;;  %6915 = vmatmul.mubr.msk.bf16.gmra.mxu1 %vm1084_vm1, %v4636_v36 }
 0x5b5   :  { %v6488_v38 = vpop.f32.mrf.mxu0 }
 0x5b6   :  { %v6489_v55 = vadd.f32 %v6488_v38, %v6487_v46 }
 0x5b7   :  { %v6490_v62 = vpop.f32.mrf.mxu0 }
 0x5b8   :  { %2104 = vst.msk [vmem:[#allocation2 + $0x48] sm:$0xff] %vm1084_vm1, %v6489_v55  ;;  %3016 = vrot.lane.b32.xlu1 %v14108_v47, %s8118_s18  ;;  %v7453_v26 = vpop.eup %7452 }
 0x5b9   :  { %v6491_v58 = vpop.f32.mrf.mxu0  ;;  %v1851_v23 = vmul.f32 %v7453_v26, %v10227_v45  ;;  %v1850_v46 = vmul.f32 %v7453_v26, %v10222_v41 }
 0x5ba   :  { %v6492_v16 = vadd.f32 %v6491_v58, %v6490_v62 }
 0x5bb   :  { %v6493_v0 = vpop.f32.mrf.mxu0 }
 0x5bc   :  { %v7455_v5 = vpop.eup %7454  ;;  %2105 = vst.msk [vmem:[#allocation2 + $0x50] sm:$0xff] %vm1084_vm1, %v6492_v16 }
 0x5bd   :  { %v6494_v8 = vpop.f32.mrf.mxu0  ;;  %v1853_v36 = vmul.f32 %v7455_v5, %v10241_v18  ;;  %v1852_v38 = vmul.f32 %v7455_v5, %v10237_v37  ;;  %v14109_v37 = vld [vmem:[#allocation17_spill] sm:$0xff] }
 0x5be   :  { %v6495_v55 = vadd.f32 %v6494_v8, %v6493_v0  ;;  %v14110_v8 = vld [vmem:[#allocation59_spill] sm:$0xff] }
 0x5bf   :  { %v6496_v13 = vpop.f32.mrf.mxu0  ;;  %v1885_v17 = vpack.c.bf16 %v1853_v36, %v1851_v23  ;;  %v1884_v47 = vpack.c.bf16 %v1852_v38, %v1850_v46  ;;  %v14111_v36 = vld [vmem:[#allocation73_spill] sm:$0xff] }
 0x5c0   :  { %2106 = vst.msk [vmem:[#allocation2 + $0x58] sm:$0xff] %vm1084_vm1, %v6495_v55  ;;  %v2600_v46 = vsub.f32 %v14111_v36, %v14110_v8 }
 0x5c1   :  { %v6497_v62 = vpop.f32.mrf.mxu0  ;;  %2086 = vmatprep.mubr.bf16.mxu0 %v1885_v17 }
 0x5c2   :  { %v6498_v58 = vadd.f32 %v6497_v62, %v6496_v13  ;;  %2087 = vmatmul.mubr.bf16.gmra.mxu0 %v1884_v47  ;;  %v2672_v62 = vmul.f32 1.442695, %v2600_v46 }
 0x5c3   :  { %v6499_v16 = vpop.f32.mrf.mxu0 }
 0x5c4   :  { %2107 = vst.msk [vmem:[#allocation2 + $0x60] sm:$0xff] %vm1084_vm1, %v6498_v58  ;;  %v14113_v58 = vld [vmem:[#allocation160_spill] sm:$0xff]  ;;  %7456 = vpow2.f32 %v2672_v62  ;;  %v14120_v62 = vld [vmem:[#allocation130_spill] sm:$0xff] }
 0x5c5   :  { %v10446_v45 = vpop.xlane.xlu0 %2557  ;;  %v6500_v18 = vpop.f32.mrf.mxu0 }
 0x5c6   :  { %v6501_v12 = vadd.f32 %v6500_v18, %v6499_v16  ;;  %v14114_v16 = vld [vmem:[#allocation93_spill] sm:$0xff] }
 0x5c7   :  { %v6502_v41 = vpop.f32.mrf.mxu0  ;;  %v2602_v18 = vsub.f32 %v14114_v16, %v14113_v58 }
 0x5c8   :  { %2108 = vst.msk [vmem:[#allocation2 + $0x68] sm:$0xff] %vm1084_vm1, %v6501_v12  ;;  %3018 = vrot.lane.b32.xlu0 %v14109_v37, %s8118_s18  ;;  %v14112_v12 = vld [vmem:[#allocation148_spill] sm:$0xff] }
 0x5c9   :  { %v10451_v0 = vpop.xlane.xlu0 %2563  ;;  %v6503_v5 = vpop.f32.mrf.mxu0  ;;  %v2601_v38 = vsub.f32 %v14112_v12, %v14110_v8  ;;  %v2676_v46 = vmul.f32 1.442695, %v2602_v18  ;;  %v10478_v18 = vadd.f32 %v10334_v7, %v14120_v62 }
 0x5ca   :  { %v6504_v23 = vadd.f32 %v6503_v5, %v6502_v41 }
 0x5cb   :  { %v6505_v17 = vpop.f32.mrf.mxu0  ;;  %v2674_v5 = vmul.f32 1.442695, %v2601_v38  ;;  %14121 = vst [vmem:[#allocation33_spill] sm:$0xff] %v10478_v18 }
 0x5cc   :  { %2109 = vst.msk [vmem:[#allocation2 + $0x70] sm:$0xff] %vm1084_vm1, %v6504_v23  ;;  %v14115_v23 = vld [vmem:[#allocation150_spill] sm:$0xff] }
 0x5cd   :  { %v3039_v13 = vpop.permute.xlu0 %3038  ;;  %v6506_v47 = vpop.f32.mrf.mxu0  ;;  %v2603_v37 = vsub.f32 %v14115_v23, %v14113_v58  ;;  %7458 = vpow2.f32 %v2674_v5 }
 0x5ce   :  { %v6507_v26 = vadd.f32 %v6506_v47, %v6505_v17  ;;  %6604 = vmatprep.subr.bf16.mxu0 %v3039_v13  ;;  %v14116_v13 = vld [vmem:[#allocation129_spill] sm:$0xff]  ;;  %7460 = vpow2.f32 %v2676_v46 }
 0x5cf   :  { %v10465_v47 = vadd.f32 %v10323_v39, %v14116_v13  ;;  %v2678_v38 = vmul.f32 1.442695, %v2603_v37 }
 0x5d0   :  { %2110 = vst.msk [vmem:[#allocation2 + $0x78] sm:$0xff] %vm1084_vm1, %v6507_v26  ;;  %v14118_v26 = vld [vmem:[#allocation128_spill] sm:$0xff] }
 0x5d1   :  { %14117 = vst [vmem:[#allocation141_spill] sm:$0xff] %v10465_v47  ;;  %v10470_v8 = vadd.f32 %v10321_v40, %v14118_v26  ;;  %7462 = vpow2.f32 %v2678_v38  ;;  %v10487_v38 = vpop.eup %7456 }
 0x5d2   :  { %v6508_v55 = vpop.f32.mrf.mxu0  ;;  %14125 = vst [vmem:[#allocation110_spill] sm:$0xff] %v10487_v38 }
 0x5d3   :  { %14119 = vst [vmem:[#allocation109_spill] sm:$0xff] %v10470_v8 }
 0x5d4   :  { %v6509_v41 = vpop.f32.mrf.mxu0 }
 0x5d5   :  { %v6510_v17 = vadd.f32 %v6509_v41, %v6508_v55  ;;  %v2574_v55 = vmax.f32 %v10470_v8, %v10465_v47 }
 0x5d6   :  { %v6511_v36 = vpop.f32.mrf.mxu0 }
 0x5d7   :  { %2111 = vst.msk [vmem:[#allocation2 + $0x80] sm:$0xff] %vm1084_vm1, %v6510_v17  ;;  %v14122_v17 = vld [vmem:[#allocation64_spill] sm:$0xff] }
 0x5d8   :  { %v6512_v12 = vpop.f32.mrf.mxu0 }
 0x5d9   :  { %v6513_v16 = vadd.f32 %v6512_v12, %v6511_v36  ;;  %v10482_v36 = vadd.f32 %v10327_v32, %v14122_v17  ;;  %v14131_v17 = vld [vmem:[#allocation29_spill] sm:$0xff] }
 0x5da   :  { %v6514_v58 = vpop.f32.mrf.mxu0 }
 0x5db   :  { %2112 = vst.msk [vmem:[#allocation2 + $0x88] sm:$0xff] %vm1084_vm1, %v6513_v16  ;;  %14123 = vst [vmem:[#allocation50_spill] sm:$0xff] %v10482_v36  ;;  %v2577_v16 = vmax.f32 %v10482_v36, %v10478_v18 }
 0x5dc   :  { %v6515_v39 = vpop.f32.mrf.mxu0  ;;  %2575 = vmax.xlane.f32.xlu1 %v2574_v55 }
 0x5dd   :  { %v6516_v41 = vadd.f32 %v6515_v39, %v6514_v58  ;;  %v10491_v58 = vpop.eup %7458 }
 0x5de   :  { %v6517_v23 = vpop.f32.mrf.mxu0  ;;  %14126 = vst [vmem:[#allocation115_spill] sm:$0xff] %v10491_v58 }
 0x5df   :  { %2113 = vst.msk [vmem:[#allocation2 + $0x90] sm:$0xff] %vm1084_vm1, %v6516_v41  ;;  %v10494_v41 = vpop.eup %7460 }
 0x5e0   :  { %v6518_v40 = vpop.f32.mrf.mxu0  ;;  %14127 = vst [vmem:[#allocation20_spill] sm:$0xff] %v10494_v41 }
 0x5e1   :  { %v6519_v37 = vadd.f32 %v6518_v40, %v6517_v23  ;;  %v2796_v40 = vadd.f32 %v10491_v58, %v10487_v38 }
 0x5e2   :  { %v6520_v5 = vpop.f32.mrf.mxu0 }
 0x5e3   :  { %2114 = vst.msk [vmem:[#allocation2 + $0x98] sm:$0xff] %vm1084_vm1, %v6519_v37  ;;  %v10485_v46 = vpop.xlane.xlu1 %2566  ;;  %v10498_v37 = vpop.eup %7462 }
 0x5e4   :  { %14124 = vst [vmem:[#allocation106_spill] sm:$0xff] %v10485_v46  ;;  %v6521_v12 = vpop.f32.mrf.mxu0  ;;  %14128 = vst [vmem:[#allocation114_spill] sm:$0xff] %v10498_v37 }
 0x5e5   :  { %v6522_v55 = vadd.f32 %v6521_v12, %v6520_v5  ;;  %v14129_v12 = vld [vmem:[#allocation27_spill] sm:$0xff] }
 0x5e6   :  { %v6523_v7 = vpop.f32.mrf.mxu0 }
 0x5e7   :  { %2115 = vst.msk [vmem:[#allocation2 + $0xa0] sm:$0xff] %vm1084_vm1, %v6522_v55  ;;  %2578 = vmax.xlane.f32.xlu0 %v2577_v16  ;;  %v2789_v39 = vpop.xlane.xlu1 %2788  ;;  %v2799_v16 = vadd.f32 %v10498_v37, %v10494_v41  ;;  %v14136_v41 = vld [vmem:[#allocation149_spill] sm:$0xff] }
 0x5e8   :  { %v6524_v32 = vpop.f32.mrf.mxu0  ;;  %7464 = vrcp.f32 %v2789_v39  ;;  %v14134_v39 = vld [vmem:[#allocation127_spill] sm:$0xff] }
 0x5e9   :  { %v6525_v23 = vadd.f32 %v6524_v32, %v6523_v7  ;;  %v14130_v7 = vld [vmem:[#allocation55_spill] sm:$0xff]  ;;  %v2605_v58 = vsub.f32 %v14136_v41, %v14134_v39 }
 0x5eb   :  { %2116 = vst.msk [vmem:[#allocation2 + $0xa8] sm:$0xff] %vm1084_vm1, %v6525_v23  ;;  %2797 = vadd.xlane.f32.xlu0 %v2796_v40  ;;  %v3023_v5 = vpop.permute.xlu1 %3022  ;;  %v10509_v23 = vpop.f32.mrf.mxu1  ;;  %v14132_v40 = vld [vmem:[#allocation16_spill] sm:$0xff]  ;;  %v2682_v36 = vmul.f32 1.442695, %v2605_v58 }
 0x5ec   :  { %6605 = vmatpush3.bf16.msra.mxu0 %v3023_v5 }
 0x5ed   :  { %3030 = vrot.lane.b32.xlu1 %v14129_v12, %s8118_s18  ;;  %v10513_v5 = vpop.f32.mrf.mxu1 }
 0x5ef   :  { %2800 = vadd.xlane.f32.xlu0 %v2799_v16  ;;  %v3037_v55 = vpop.permute.xlu1 %3036  ;;  %v10515_v16 = vpop.f32.mrf.mxu1 }
 0x5f0   :  { %6606 = vmatprep.subr.bf16.mxu0 %v3037_v55 }
 0x5f1   :  { %4641 = vrot.lane.b32.xlu1 %v14130_v7, %s8116_s17 }
 0x5f3   :  { %v3021_v32 = vpop.permute.xlu1 %3020 }
 0x5f4   :  { %6607 = vmatpush3.bf16.msra.mxu0 %v3021_v32  ;;  %v10518_v32 = vpop.f32.mrf.mxu1 }
 0x5f5   :  { %3028 = vrot.lane.b32.xlu1 %v14131_v17, %s8118_s18 }
 0x5f9   :  { %3012 = vrot.lane.b32.xlu1 %v14132_v40, %s8118_s18  ;;  %v14133_v40 = vld [vmem:[#allocation15_spill] sm:$0xff] }
 0x5fe   :  { %v2786_v12 = vpop.xlane.xlu0 %2785 }
 0x5ff   :  { %7466 = vrcp.f32 %v2786_v12  ;;  %v14135_v12 = vld [vmem:[#allocation78_spill] sm:$0xff] }
 0x600   :  { %v6526_v55 = vpop.f32.mrf.mxu0  ;;  %v2604_v13 = vsub.f32 %v14135_v12, %v14134_v39  ;;  %v14151_v39 = vld [vmem:[#allocation56_spill] sm:$0xff] }
 0x602   :  { %v4638_v26 = vpop.permute.xlu0 %4637  ;;  %v6527_v7 = vpop.f32.mrf.mxu0  ;;  %v2680_v37 = vmul.f32 1.442695, %v2604_v13 }
 0x603   :  { %v6528_v62 = vadd.f32 %v6527_v7, %v6526_v55  ;;  %6916 = vmatprep.mubr.msk.bf16.mxu1 %vm1084_vm1, %v4638_v26  ;;  %v7465_v7 = vpop.eup %7464 }
 0x604   :  { %6917 = vmatmul.mubr.msk.bf16.gmra.mxu1 %vm1084_vm1, %v4638_v26  ;;  %v6529_v17 = vpop.f32.mrf.mxu0  ;;  %v14137_v26 = vld [vmem:[#allocation103_spill] sm:$0xff]  ;;  %v2915_v12 = vmul.f32 %v7465_v7, %v10305_v60  ;;  %7468 = vpow2.f32 %v2680_v37 }
 0x605   :  { %2117 = vst.msk [vmem:[#allocation2 + $0xb0] sm:$0xff] %vm1084_vm1, %v6528_v62  ;;  %3014 = vrot.lane.b32.xlu0 %v14133_v40, %s8118_s18  ;;  %v2606_v18 = vsub.f32 %v14137_v26, %v10109_v10  ;;  %v14138_v62 = vld [vmem:[#allocation100_spill] sm:$0xff]  ;;  %7470 = vpow2.f32 %v2682_v36  ;;  %v14147_v36 = vld [vmem:[#allocation134_spill] sm:$0xff] }
 0x606   :  { %v6530_v38 = vpop.f32.mrf.mxu0  ;;  %v2607_v4 = vsub.f32 %v14138_v62, %v10109_v10  ;;  %v14141_v10 = vld [vmem:[#allocation133_spill] sm:$0xff]  ;;  %v10561_v37 = vadd.f32 %v10369_v44, %v14147_v36 }
 0x607   :  { %v6531_v55 = vadd.f32 %v6530_v38, %v6529_v17  ;;  %v10539_v17 = vmul.f32 %v7465_v7, %v10301_v28  ;;  %v2684_v13 = vmul.f32 1.442695, %v2606_v18  ;;  %v10545_v60 = vadd.f32 %v10355_v50, %v14141_v10  ;;  %v10557_v18 = vpop.f32.mrf.mxu1 }
 0x608   :  { %v2686_v38 = vmul.f32 1.442695, %v2607_v4  ;;  %14148 = vst [vmem:[#allocation28_spill] sm:$0xff] %v10561_v37 }
 0x609   :  { %2118 = vst.msk [vmem:[#allocation2 + $0xb8] sm:$0xff] %vm1084_vm1, %v6531_v55  ;;  %14140 = vst [vmem:[#allocation39_spill] sm:$0xff] %v10539_v17  ;;  %7472 = vpow2.f32 %v2684_v13  ;;  %v10571_v55 = vadd.f32 %v10357_v43, %v14151_v39  ;;  %v10573_v7 = vpop.f32.mrf.mxu1 }
 0x60a   :  { %7474 = vpow2.f32 %v2686_v38  ;;  %14142 = vst [vmem:[#allocation155_spill] sm:$0xff] %v10545_v60 }
 0x60b   :  { %14152 = vst [vmem:[#allocation158_spill] sm:$0xff] %v10571_v55  ;;  %v2583_v26 = vmax.f32 %v10571_v55, %v10561_v37  ;;  %v10581_v13 = vpop.f32.mrf.mxu1 }
 0x60c   :  { %v7467_v40 = vpop.eup %7466 }
 0x60d   :  { %v2913_v31 = vmul.f32 %v7467_v40, %v10331_v51  ;;  %v10536_v47 = vmul.f32 %v7467_v40, %v10325_v35  ;;  %v14143_v35 = vld [vmem:[#allocation132_spill] sm:$0xff] }
 0x60e   :  { %v10549_v51 = vadd.f32 %v10351_v63, %v14143_v35 }
 0x60f   :  { %14139 = vst [vmem:[#allocation152_spill] sm:$0xff] %v10536_v47  ;;  %v2977_v41 = vpack.c.bf16 %v2915_v12, %v2913_v31 }
 0x610   :  { %14144 = vst [vmem:[#allocation151_spill] sm:$0xff] %v10549_v51  ;;  %v2580_v4 = vmax.f32 %v10549_v51, %v10545_v60 }
 0x611   :  { %3088 = vmatprep.mubr.bf16.mxu0 %v2977_v41  ;;  %v10551_v28 = vpop.eup %7468 }
 0x612   :  { %14145 = vst [vmem:[#allocation154_spill] sm:$0xff] %v10551_v28  ;;  %v10555_v31 = vpop.eup %7470 }
 0x613   :  { %14146 = vst [vmem:[#allocation31_spill] sm:$0xff] %v10555_v31  ;;  %v2802_v63 = vadd.f32 %v10555_v31, %v10551_v28  ;;  %v14159_v28 = vld [vmem:[#allocation52_spill] sm:$0xff] }
 0x616   :  { %v10563_v50 = vpop.eup %7472 }
 0x617   :  { %14149 = vst [vmem:[#allocation143_spill] sm:$0xff] %v10563_v50  ;;  %v10567_v40 = vpop.eup %7474 }
 0x618   :  { %14150 = vst [vmem:[#allocation144_spill] sm:$0xff] %v10567_v40  ;;  %v2805_v44 = vadd.f32 %v10567_v40, %v10563_v50  ;;  %v14160_v40 = vld [vmem:[#allocation25_spill] sm:$0xff] }
 0x61d   :  { %2581 = vmax.xlane.f32.xlu1 %v2580_v4 }
 0x621   :  { %2803 = vadd.xlane.f32.xlu1 %v2802_v63  ;;  %v10584_v63 = vpop.f32.mrf.mxu1 }
 0x623   :  { %v6532_v62 = vpop.f32.mrf.mxu0 }
 0x624   :  { %2584 = vmax.xlane.f32.xlu0 %v2583_v26  ;;  %v10579_v12 = vpop.xlane.xlu1 %2569  ;;  %v10587_v26 = vpop.f32.mrf.mxu1 }
 0x625   :  { %v6533_v38 = vpop.f32.mrf.mxu0  ;;  %2806 = vadd.xlane.f32.xlu1 %v2805_v44 }
 0x626   :  { %v6534_v41 = vadd.f32 %v6533_v38, %v6532_v62  ;;  %v10591_v44 = vpop.f32.mrf.mxu1 }
 0x627   :  { %v6535_v43 = vpop.f32.mrf.mxu0 }
 0x628   :  { %2119 = vst.msk [vmem:[#allocation2 + $0xc0] sm:$0xff] %vm1084_vm1, %v6534_v41  ;;  %v3035_v4 = vpop.permute.xlu1 %3034  ;;  %v10595_v38 = vpop.f32.mrf.mxu1  ;;  %v14154_v41 = vld [vmem:[#allocation13_spill] sm:$0xff] }
 0x629   :  { %v6536_v58 = vpop.f32.mrf.mxu0  ;;  %6608 = vmatprep.subr.bf16.mxu0 %v3035_v4 }
 0x62a   :  { %v6537_v39 = vadd.f32 %v6536_v58, %v6535_v43  ;;  %v10601_v58 = vpop.f32.mrf.mxu1  ;;  %v14157_v43 = vld [vmem:[#allocation14_spill] sm:$0xff] }
 0x62c   :  { %2120 = vst.msk [vmem:[#allocation2 + $0xc8] sm:$0xff] %vm1084_vm1, %v6537_v39  ;;  %v4640_v35 = vpop.permute.xlu1 %4639  ;;  %v14156_v39 = vld [vmem:[#allocation24_spill] sm:$0xff]  ;;  %v10609_v36 = vpop.f32.mrf.mxu1 }
 0x62d   :  { %6918 = vmatprep.mubr.msk.bf16.mxu1 %vm1084_vm1, %v4640_v35 }
 0x62e   :  { %6919 = vmatmul.mubr.msk.bf16.gmra.mxu1 %vm1084_vm1, %v4640_v35 }
 0x630   :  { %v3033_v10 = vpop.permute.xlu1 %3032 }
 0x633   :  { %v10593_v62 = vpop.xlane.xlu0 %2572 }
 0x634   :  { %14153 = vst [vmem:[#allocation67_spill] sm:$0xff] %v10593_v62  ;;  %v14166_v62 = vld [vmem:[#allocation104_spill] sm:$0xff] }
 0x636   :  { %3010 = vrot.lane.b32.xlu1 %v14154_v41, %s8118_s18  ;;  %v10613_v41 = vpop.f32.mrf.mxu1 }
 0x637   :  { %v10599_v4 = vpop.xlane.xlu0 %2791 }
 0x638   :  { %14155 = vst [vmem:[#allocation142_spill] sm:$0xff] %v10599_v4  ;;  %v10617_v17 = vpop.f32.mrf.mxu1 }
 0x63a   :  { %3026 = vrot.lane.b32.xlu0 %v14156_v39, %s8118_s18  ;;  %3008 = vrot.lane.b32.xlu1 %v14157_v43, %s8118_s18  ;;  %v3017_v39 = vpop.permute.xlu1 %3016  ;;  %v10620_v4 = vpop.f32.mrf.mxu1 }
 0x63b   :  { %v10607_v35 = vpop.xlane.xlu0 %2794 }
 0x63c   :  { %14158 = vst [vmem:[#allocation165_spill] sm:$0xff] %v10607_v35  ;;  %v14162_v35 = vld [vmem:[#allocation77_spill] sm:$0xff]  ;;  %v10631_v51 = vpop.f32.mrf.mxu1 }
 0x63d   :  { %v2609_v60 = vsub.f32 %v14162_v35, %v10180_v54 }
 0x63e   :  { %4643 = vrot.lane.b32.xlu0 %v14159_v28, %s8116_s17  ;;  %v10637_v35 = vpop.f32.mrf.mxu1 }
 0x63f   :  { %v3019_v50 = vpop.permute.xlu0 %3018  ;;  %v2690_v8 = vmul.f32 1.442695, %v2609_v60 }
 0x640   :  { %6609 = vmatpush3.bf16.msra.mxu0 %v3019_v50  ;;  %v14161_v50 = vld [vmem:[#allocation119_spill] sm:$0xff]  ;;  %v10643_v6 = vpop.f32.mrf.mxu1 }
 0x641   :  { %6610 = vmatprep.subr.bf16.mxu0 %v3033_v10  ;;  %v6538_v31 = vpop.f32.mrf.mxu0  ;;  %v2608_v10 = vsub.f32 %v14161_v50, %v10180_v54  ;;  %v2611_v50 = vsub.f32 %v14166_v62, %v10118_v9 }
 0x642   :  { %3024 = vrot.lane.b32.xlu0 %v14160_v40, %s8118_s18 }
 0x643   :  { %v6539_v47 = vpop.f32.mrf.mxu0 }
 0x644   :  { %v6540_v43 = vadd.f32 %v6539_v47, %v6538_v31  ;;  %6611 = vmatpush3.bf16.msra.mxu0 %v3017_v39  ;;  %v14163_v47 = vld [vmem:[#allocation18_spill] sm:$0xff]  ;;  %v14164_v39 = vld [vmem:[#allocation120_spill] sm:$0xff] }
 0x645   :  { %v6541_v37 = vpop.f32.mrf.mxu0  ;;  %v2612_v31 = vsub.f32 %v14163_v47, %v10189_v59  ;;  %v2613_v40 = vsub.f32 %v14164_v39, %v10189_v59  ;;  %v2694_v47 = vmul.f32 1.442695, %v2611_v50  ;;  %v14167_v59 = vld [vmem:[#allocation22_spill] sm:$0xff] }
 0x646   :  { %2121 = vst.msk [vmem:[#allocation2 + $0xd0] sm:$0xff] %vm1084_vm1, %v6540_v43  ;;  %v2688_v43 = vmul.f32 1.442695, %v2608_v10  ;;  %v2616_v39 = vsub.f32 %v14167_v59, %v10277_v29  ;;  %v14172_v50 = vld [vmem:[#allocation138_spill] sm:$0xff] }
 0x647   :  { %v6542_v55 = vpop.f32.mrf.mxu0  ;;  %v2696_v46 = vmul.f32 1.442695, %v2612_v31  ;;  %v2698_v54 = vmul.f32 1.442695, %v2613_v40  ;;  %v14170_v40 = vld [vmem:[#allocation51_spill] sm:$0xff] }
 0x648   :  { %v6543_v28 = vadd.f32 %v6542_v55, %v6541_v37  ;;  %v14165_v37 = vld [vmem:[#allocation41_spill] sm:$0xff]  ;;  %7476 = vpow2.f32 %v2688_v43  ;;  %v2615_v62 = vsub.f32 %v14170_v40, %v10243_v24  ;;  %v2704_v31 = vmul.f32 1.442695, %v2616_v39  ;;  %v10653_v43 = vpop.f32.mrf.mxu1 }
 0x649   :  { %v2610_v55 = vsub.f32 %v14165_v37, %v10118_v9  ;;  %7478 = vpow2.f32 %v2690_v8  ;;  %v14168_v37 = vld [vmem:[#allocation161_spill] sm:$0xff]  ;;  %v14169_v9 = vld [vmem:[#allocation123_spill] sm:$0xff] }
 0x64a   :  { %2122 = vst.msk [vmem:[#allocation2 + $0xd8] sm:$0xff] %vm1084_vm1, %v6543_v28  ;;  %7480 = vpow2.f32 %v2696_v46  ;;  %v2617_v10 = vsub.f32 %v14168_v37, %v10277_v29  ;;  %v2614_v60 = vsub.f32 %v14169_v9, %v10243_v24  ;;  %v14171_v8 = vld [vmem:[#allocation139_spill] sm:$0xff]  ;;  %v10657_v29 = vadd.f32 %v10422_v34, %v14172_v50  ;;  %v14175_v37 = vld [vmem:[#allocation60_spill] sm:$0xff]  ;;  %v14176_v34 = vld [vmem:[#allocation162_spill] sm:$0xff]  ;;  %v10677_v40 = vpop.f32.mrf.mxu1 }
 0x64b   :  { %v2692_v28 = vmul.f32 1.442695, %v2610_v55  ;;  %7482 = vpow2.f32 %v2698_v54  ;;  %v10651_v46 = vadd.f32 %v10430_v53, %v14171_v8  ;;  %v2702_v59 = vmul.f32 1.442695, %v2615_v62  ;;  %v14174_v24 = vld [vmem:[#allocation163_spill] sm:$0xff] }
 0x64c   :  { %v2706_v55 = vmul.f32 1.442695, %v2617_v10  ;;  %v2700_v54 = vmul.f32 1.442695, %v2614_v60  ;;  %v2620_v39 = vsub.f32 %v14174_v24, %v10281_v22  ;;  %v10669_v10 = vadd.f32 %v10513_v5, %v14175_v37  ;;  %v14177_v60 = vld [vmem:[#allocation135_spill] sm:$0xff]  ;;  %v14180_v5 = vld [vmem:[#allocation157_spill] sm:$0xff] }
 0x64d   :  { %7484 = vpow2.f32 %v2692_v28  ;;  %v14173_v28 = vld [vmem:[#allocation136_spill] sm:$0xff]  ;;  %v2589_v53 = vmax.f32 %v10657_v29, %v10651_v46  ;;  %v2621_v9 = vsub.f32 %v14176_v34, %v10281_v22  ;;  %v2618_v37 = vsub.f32 %v14180_v5, %v10247_v20  ;;  %v10699_v5 = vpop.f32.mrf.mxu1 }
 0x64e   :  { %7486 = vpow2.f32 %v2694_v47  ;;  %v10661_v47 = vadd.f32 %v10413_v1, %v14173_v28  ;;  %v10675_v1 = vadd.f32 %v10406_v52, %v14177_v60  ;;  %v14182_v52 = vld [vmem:[#allocation156_spill] sm:$0xff]  ;;  %v2712_v50 = vmul.f32 1.442695, %v2620_v39 }
 0x64f   :  { %7488 = vpow2.f32 %v2704_v31  ;;  %v14179_v31 = vld [vmem:[#allocation57_spill] sm:$0xff]  ;;  %v2619_v34 = vsub.f32 %v14182_v52, %v10247_v20  ;;  %v2708_v8 = vmul.f32 1.442695, %v2618_v37  ;;  %v2624_v20 = vsub.f32 %v10153_v14, %v10347_v57  ;;  %v10721_v14 = vpop.f32.mrf.mxu1 }
 0x650   :  { %7490 = vpow2.f32 %v2706_v55  ;;  %v10683_v24 = vadd.f32 %v10509_v23, %v14179_v31  ;;  %v2586_v22 = vmax.f32 %v10675_v1, %v10661_v47 }
 0x651   :  { %7492 = vpow2.f32 %v2700_v54  ;;  %v2714_v54 = vmul.f32 1.442695, %v2621_v9  ;;  %v2710_v28 = vmul.f32 1.442695, %v2619_v34  ;;  %v14185_v9 = vld [vmem:[#allocation68_spill] sm:$0xff]  ;;  %v14186_v34 = vld [vmem:[#allocation38_spill] sm:$0xff] }
 0x652   :  { %7494 = vpow2.f32 %v2702_v59  ;;  %v3731_v23 = vmax.f32 %v10683_v24, %v10669_v10  ;;  %v10711_v52 = vadd.f32 %v10573_v7, %v14185_v9 }
 0x653   :  { %7496 = vpow2.f32 %v2712_v50  ;;  %v10719_v50 = vadd.f32 %v10518_v32, %v14186_v34  ;;  %v2623_v32 = vsub.f32 %v10069_v56, %v10317_v3 }
 0x654   :  { %7498 = vpow2.f32 %v2714_v54 }
 0x655   :  { %v10679_v62 = vpop.eup %7476  ;;  %7500 = vpow2.f32 %v2708_v8 }
 0x656   :  { %14178 = vst [vmem:[#allocation167_spill] sm:$0xff] %v10679_v62  ;;  %v10687_v55 = vpop.eup %7478  ;;  %7502 = vpow2.f32 %v2710_v28 }
 0x657   :  { %14181 = vst [vmem:[#allocation164_spill] sm:$0xff] %v10687_v55  ;;  %v10693_v60 = vpop.eup %7480  ;;  %v2808_v39 = vadd.f32 %v10687_v55, %v10679_v62  ;;  %v14187_v55 = vld [vmem:[#allocation46_spill] sm:$0xff] }
 0x658   :  { %14183 = vst [vmem:[#allocation166_spill] sm:$0xff] %v10693_v60  ;;  %v10697_v31 = vpop.eup %7482  ;;  %v10727_v7 = vadd.f32 %v10557_v18, %v14187_v55 }
 0x659   :  { %14184 = vst [vmem:[#allocation48_spill] sm:$0xff] %v10697_v31 }
 0x65e   :  { %2590 = vmax.xlane.f32.xlu1 %v2589_v53  ;;  %v10701_v53 = vpop.eup %7484 }
 0x65f   :  { %v10703_v59 = vpop.eup %7486 }
 0x660   :  { %v2811_v54 = vadd.f32 %v10703_v59, %v10701_v53  ;;  %v10735_v34 = vpop.eup %7488 }
 0x661   :  { %2587 = vmax.xlane.f32.xlu0 %v2586_v22  ;;  %v2625_v22 = vsub.f32 %v10147_v48, %v10347_v57  ;;  %v2622_v48 = vsub.f32 %v10079_v11, %v10317_v3  ;;  %v3737_v11 = vmax.f32 %v10727_v7, %v10711_v52  ;;  %v10743_v55 = vpop.eup %7490 }
 0x662   :  { %3732 = vmax.xlane.f32.xlu1 %v3731_v23  ;;  %v2814_v23 = vadd.f32 %v10697_v31, %v10693_v60  ;;  %v14188_v60 = vld [vmem:[#allocation71_spill] sm:$0xff]  ;;  %v10745_v31 = vpop.f32.mrf.mxu1 }
 0x663   :  { %v10739_v18 = vadd.f32 %v10515_v16, %v14188_v60  ;;  %v2722_v8 = vmul.f32 1.442695, %v2625_v22  ;;  %v2716_v28 = vmul.f32 1.442695, %v2622_v48  ;;  %v10750_v16 = vpop.eup %7492  ;;  %v2628_v22 = vsub.f32 %v10163_v25, %v10349_v30 }
 0x664   :  { %v6544_v37 = vpop.f32.mrf.mxu0  ;;  %v10754_v60 = vpop.eup %7494  ;;  %v2629_v48 = vsub.f32 %v10158_v49, %v10349_v30  ;;  %v2626_v49 = vsub.f32 %v10087_v61, %v10319_v15  ;;  %v2627_v30 = vsub.f32 %v10082_v19, %v10319_v15 }
 0x665   :  { %2809 = vadd.xlane.f32.xlu0 %v2808_v39  ;;  %v10723_v62 = vpop.xlane.xlu1 %2575  ;;  %v2720_v39 = vmul.f32 1.442695, %v2624_v20  ;;  %v3734_v3 = vmax.f32 %v10739_v18, %v10719_v50 }
 0x666   :  { %v6545_v57 = vpop.f32.mrf.mxu0  ;;  %2815 = vadd.xlane.f32.xlu1 %v2814_v23  ;;  %v2724_v15 = vmul.f32 1.442695, %v2626_v49  ;;  %v2633_v49 = vsub.f32 %v10253_v21, %v10446_v45 }
 0x667   :  { %v6546_v9 = vadd.f32 %v6545_v57, %v6544_v37  ;;  %v2718_v37 = vmul.f32 1.442695, %v2623_v32  ;;  %7504 = vpow2.f32 %v2720_v39  ;;  %v14191_v32 = vld [vmem:[#allocation63_spill] sm:$0xff] }
 0x668   :  { %v6547_v23 = vpop.f32.mrf.mxu0  ;;  %7506 = vpow2.f32 %v2722_v8  ;;  %v10769_v39 = vadd.f32 %v10584_v63, %v14191_v32  ;;  %v2728_v8 = vmul.f32 1.442695, %v2628_v22  ;;  %v2817_v63 = vadd.f32 %v10754_v60, %v10750_v16 }
 0x669   :  { %2123 = vst.msk [vmem:[#allocation2 + $0xe0] sm:$0xff] %vm1084_vm1, %v6546_v9  ;;  %2812 = vadd.xlane.f32.xlu0 %v2811_v54  ;;  %v3031_v56 = vpop.permute.xlu1 %3030  ;;  %v14189_v9 = vld [vmem:[#allocation35_spill] sm:$0xff]  ;;  %7508 = vpow2.f32 %v2716_v28  ;;  %v2730_v28 = vmul.f32 1.442695, %v2629_v48  ;;  %v2632_v48 = vsub.f32 %v10259_v2, %v10446_v45 }
 0x66a   :  { %v6548_v20 = vpop.f32.mrf.mxu0  ;;  %3738 = vmax.xlane.f32.xlu1 %v3737_v11  ;;  %6612 = vmatprep.subr.bf16.mxu0 %v3031_v56  ;;  %v10758_v54 = vadd.f32 %v10591_v44, %v14189_v9  ;;  %v2820_v11 = vadd.f32 %v10743_v55, %v10735_v34  ;;  %v10764_v56 = vpop.f32.mrf.mxu1  ;;  %14192 = vst [vmem:[#allocation76_spill] sm:$0xff] %v10769_v39  ;;  %7510 = vpow2.f32 %v2718_v37  ;;  %v14195_v37 = vld [vmem:[#allocation47_spill] sm:$0xff]  ;;  %v14197_v9 = vld [vmem:[#allocation74_spill] sm:$0xff] }
 0x66b   :  { %v6549_v57 = vadd.f32 %v6548_v20, %v6547_v23  ;;  %v14193_v23 = vld [vmem:[#allocation65_spill] sm:$0xff]  ;;  %7512 = vpow2.f32 %v2728_v8  ;;  %v14199_v8 = vld [vmem:[#allocation62_spill] sm:$0xff]  ;;  %v14204_v45 = vld [vmem:[#allocation131_spill] sm:$0xff]  ;;  %v2736_v32 = vmul.f32 1.442695, %v2632_v48 }
 0x66c   :  { %14190 = vst [vmem:[#allocation159_spill] sm:$0xff] %v10758_v54  ;;  %v10773_v44 = vadd.f32 %v10587_v26, %v14193_v23  ;;  %v10795_v19 = vpop.f32.mrf.mxu1  ;;  %7514 = vpow2.f32 %v2730_v28  ;;  %v10819_v2 = vadd.f32 %v10601_v58, %v14199_v8  ;;  %v14203_v28 = vld [vmem:[#allocation32_spill] sm:$0xff] }
 0x66d   :  { %2124 = vst.msk [vmem:[#allocation2 + $0xe8] sm:$0xff] %vm1084_vm1, %v6549_v57  ;;  %3735 = vmax.xlane.f32.xlu0 %v3734_v3  ;;  %v4642_v25 = vpop.permute.xlu1 %4641  ;;  %v10783_v3 = vpop.eup %7496  ;;  %v10793_v57 = vadd.f32 %v10581_v13, %v14195_v37  ;;  %v10807_v13 = vadd.f32 %v10613_v41, %v14197_v9  ;;  %v14201_v37 = vld [vmem:[#allocation61_spill] sm:$0xff]  ;;  %7516 = vpow2.f32 %v2724_v15  ;;  %v2630_v21 = vsub.f32 %v14203_v28, %v10389_v42  ;;  %v14205_v28 = vld [vmem:[#allocation54_spill] sm:$0xff] }
 0x66e   :  { %14194 = vst [vmem:[#allocation145_spill] sm:$0xff] %v10773_v44  ;;  %2821 = vadd.xlane.f32.xlu1 %v2820_v11  ;;  %6920 = vmatprep.mubr.msk.bf16.mxu1 %vm1084_vm1, %v4642_v25  ;;  %v3743_v26 = vmax.f32 %v10773_v44, %v10758_v54  ;;  %v10789_v20 = vpop.eup %7498  ;;  %14200 = vst [vmem:[#allocation147_spill] sm:$0xff] %v10819_v2  ;;  %v10823_v41 = vadd.f32 %v10609_v36, %v14201_v37  ;;  %v2738_v36 = vmul.f32 1.442695, %v2633_v49 }
 0x66f   :  { %6921 = vmatmul.mubr.msk.bf16.gmra.mxu1 %vm1084_vm1, %v4642_v25  ;;  %14196 = vst [vmem:[#allocation153_spill] sm:$0xff] %v10793_v57  ;;  %v10797_v22 = vpop.eup %7500  ;;  %v3740_v11 = vmax.f32 %v10793_v57, %v10769_v39  ;;  %v2726_v25 = vmul.f32 1.442695, %v2627_v30  ;;  %14198 = vst [vmem:[#allocation146_spill] sm:$0xff] %v10807_v13  ;;  %v10815_v30 = vpop.f32.mrf.mxu1  ;;  %v2631_v9 = vsub.f32 %v14204_v45, %v10389_v42  ;;  %v2732_v42 = vmul.f32 1.442695, %v2630_v21 }
 0x670   :  { %v10787_v61 = vpop.xlane.xlu0 %2578  ;;  %v10803_v23 = vpop.eup %7502  ;;  %14202 = vst [vmem:[#allocation40_spill] sm:$0xff] %v10823_v41  ;;  %v3749_v58 = vmax.f32 %v10823_v41, %v10807_v13  ;;  %v14207_v13 = vld [vmem:[#allocation97_spill] sm:$0xff]  ;;  %v14210_v21 = vld [vmem:[#allocation30_spill] sm:$0xff] }
 0x671   :  { %2818 = vadd.xlane.f32.xlu0 %v2817_v63  ;;  %7518 = vpow2.f32 %v2726_v25  ;;  %v10841_v25 = vadd.f32 %v10595_v38, %v14205_v28  ;;  %v3029_v48 = vpop.permute.xlu1 %3028  ;;  %v2734_v49 = vmul.f32 1.442695, %v2631_v9  ;;  %v2636_v41 = vsub.f32 %v14207_v13, %v10451_v0  ;;  %v14208_v38 = vld [vmem:[#allocation85_spill] sm:$0xff]  ;;  %v14213_v13 = vld [vmem:[#allocation84_spill] sm:$0xff] }
 0x672   :  { %3744 = vmax.xlane.f32.xlu1 %v3743_v26  ;;  %v2826_v26 = vadd.f32 %v10789_v20, %v10783_v3  ;;  %7520 = vpow2.f32 %v2736_v32  ;;  %v10855_v28 = vadd.f32 %v10637_v35, %v14208_v38  ;;  %v14211_v9 = vld [vmem:[#allocation81_spill] sm:$0xff]  ;;  %v10869_v35 = vadd.f32 %v10631_v51, %v14213_v13 }
 0x673   :  { %14206 = vst [vmem:[#allocation59_spill] sm:$0xff] %v10841_v25  ;;  %v3746_v8 = vmax.f32 %v10841_v25, %v10819_v2  ;;  %7522 = vpow2.f32 %v2738_v36  ;;  %v10865_v32 = vadd.f32 %v10620_v4, %v14211_v9  ;;  %v14215_v36 = vld [vmem:[#allocation79_spill] sm:$0xff]  ;;  %v14228_v25 = vld [vmem:[#allocation26_spill] sm:$0xff] }
 0x674   :  { %v10811_v63 = vpop.xlane.xlu0 %2797  ;;  %v10831_v54 = vpop.eup %7504  ;;  %14209 = vst [vmem:[#allocation73_spill] sm:$0xff] %v10855_v28  ;;  %14214 = vst [vmem:[#allocation160_spill] sm:$0xff] %v10869_v35  ;;  %7524 = vpow2.f32 %v2732_v42  ;;  %v3755_v51 = vmax.f32 %v10869_v35, %v10855_v28  ;;  %v2640_v28 = vsub.f32 %v10376_v33, %v10579_v12 }
 0x675   :  { %3741 = vmax.xlane.f32.xlu0 %v3740_v11  ;;  %v2823_v11 = vadd.f32 %v10803_v23, %v10797_v22  ;;  %v10837_v15 = vpop.eup %7506  ;;  %14212 = vst [vmem:[#allocation148_spill] sm:$0xff] %v10865_v32  ;;  %7526 = vpow2.f32 %v2734_v49  ;;  %v3013_v42 = vpop.permute.xlu1 %3012 }
 0x676   :  { %2827 = vadd.xlane.f32.xlu1 %v2826_v26  ;;  %v10843_v26 = vpop.f32.mrf.mxu1  ;;  %v10845_v45 = vpop.eup %7508  ;;  %v2832_v39 = vadd.f32 %v10837_v15, %v10831_v54 }
 0x677   :  { %v10851_v44 = vpop.eup %7510 }
 0x678   :  { %v10835_v37 = vpop.xlane.xlu0 %2800  ;;  %v10861_v2 = vpop.f32.mrf.mxu1 }
 0x679   :  { %2824 = vadd.xlane.f32.xlu0 %v2823_v11  ;;  %v2637_v11 = vsub.f32 %v14210_v21, %v10451_v0  ;;  %v2634_v0 = vsub.f32 %v14215_v36, %v10400_v27  ;;  %v14216_v21 = vld [vmem:[#allocation96_spill] sm:$0xff]  ;;  %v10877_v4 = vpop.eup %7512 }
 0x67a   :  { %3750 = vmax.xlane.f32.xlu1 %v3749_v58  ;;  %v2635_v38 = vsub.f32 %v14216_v21, %v10400_v27  ;;  %v10881_v9 = vpop.eup %7514  ;;  %v14217_v36 = vld [vmem:[#allocation80_spill] sm:$0xff] }
 0x67b   :  { %v2746_v13 = vmul.f32 1.442695, %v2637_v11  ;;  %v2740_v27 = vmul.f32 1.442695, %v2634_v0  ;;  %v10889_v49 = vpop.eup %7516  ;;  %v14221_v0 = vld [vmem:[#allocation69_spill] sm:$0xff] }
 0x67c   :  { %v3015_v58 = vpop.permute.xlu0 %3014  ;;  %v2742_v11 = vmul.f32 1.442695, %v2635_v38 }
 0x67d   :  { %3747 = vmax.xlane.f32.xlu0 %v3746_v8  ;;  %6613 = vmatpush3.bf16.msra.mxu0 %v3015_v58  ;;  %v2744_v8 = vmul.f32 1.442695, %v2636_v41  ;;  %v2829_v58 = vadd.f32 %v10851_v44, %v10845_v45 }
 0x67e   :  { %6614 = vmatprep.subr.bf16.mxu0 %v3029_v48  ;;  %2833 = vadd.xlane.f32.xlu1 %v2832_v39  ;;  %v10885_v39 = vadd.f32 %v10617_v17, %v14217_v36  ;;  %v10887_v48 = vpop.f32.mrf.mxu1  ;;  %v10895_v35 = vpop.eup %7518  ;;  %v14219_v17 = vld [vmem:[#allocation88_spill] sm:$0xff] }
 0x67f   :  { %7528 = vpow2.f32 %v2744_v8  ;;  %v10899_v36 = vadd.f32 %v10699_v5, %v14219_v17  ;;  %v14222_v8 = vld [vmem:[#allocation86_spill] sm:$0xff] }
 0x680   :  { %14218 = vst [vmem:[#allocation93_spill] sm:$0xff] %v10885_v39  ;;  %v3752_v21 = vmax.f32 %v10885_v39, %v10865_v32  ;;  %7530 = vpow2.f32 %v2746_v13  ;;  %v10905_v32 = vpop.f32.mrf.mxu1  ;;  %v10909_v33 = vadd.f32 %v10653_v43, %v14222_v8  ;;  %v14224_v39 = vld [vmem:[#allocation87_spill] sm:$0xff]  ;;  %v14226_v13 = vld [vmem:[#allocation106_spill] sm:$0xff]  ;;  %v2835_v43 = vadd.f32 %v10895_v35, %v10889_v49 }
 0x681   :  { %2830 = vadd.xlane.f32.xlu0 %v2829_v58  ;;  %6615 = vmatpush3.bf16.msra.mxu0 %v3013_v42  ;;  %14220 = vst [vmem:[#allocation150_spill] sm:$0xff] %v10899_v36  ;;  %v2641_v58 = vsub.f32 %v14221_v0, %v10579_v12  ;;  %v2838_v42 = vadd.f32 %v10881_v9, %v10877_v4  ;;  %7532 = vpow2.f32 %v2740_v27  ;;  %v14227_v17 = vld [vmem:[#allocation66_spill] sm:$0xff] }
 0x682   :  { %3756 = vmax.xlane.f32.xlu1 %v3755_v51  ;;  %v6550_v41 = vpop.f32.mrf.mxu0  ;;  %14223 = vst [vmem:[#allocation55_spill] sm:$0xff] %v10909_v33  ;;  %v10913_v5 = vadd.f32 %v10677_v40, %v14224_v39  ;;  %v2638_v12 = vsub.f32 %v14227_v17, %v14226_v13  ;;  %7534 = vpow2.f32 %v2742_v11  ;;  %v2639_v57 = vsub.f32 %v14228_v25, %v14226_v13  ;;  %v10932_v25 = vpop.f32.mrf.mxu1 }
 0x683   :  { %v2754_v27 = vmul.f32 1.442695, %v2641_v58  ;;  %v14231_v58 = vld [vmem:[#allocation109_spill] sm:$0xff] }
 0x684   :  { %v6551_v51 = vpop.f32.mrf.mxu0  ;;  %14225 = vst [vmem:[#allocation127_spill] sm:$0xff] %v10913_v5  ;;  %v3761_v40 = vmax.f32 %v10913_v5, %v10899_v36  ;;  %v2750_v8 = vmul.f32 1.442695, %v2639_v57  ;;  %v2644_v36 = vsub.f32 %v14231_v58, %v10723_v62  ;;  %v3652_v57 = vpop.f32.mrf.mxu1 }
 0x685   :  { %3753 = vmax.xlane.f32.xlu0 %v3752_v21  ;;  %v6552_v38 = vadd.f32 %v6551_v51, %v6550_v41  ;;  %v2752_v21 = vmul.f32 1.442695, %v2640_v28  ;;  %v10922_v41 = vpop.eup %7520 }
 0x686   :  { %2839 = vadd.xlane.f32.xlu1 %v2838_v42  ;;  %v6553_v0 = vpop.f32.mrf.mxu0  ;;  %v10926_v17 = vpop.eup %7522  ;;  %v14229_v42 = vld [vmem:[#allocation75_spill] sm:$0xff]  ;;  %v2760_v5 = vmul.f32 1.442695, %v2644_v36 }
 0x687   :  { %2125 = vst.msk [vmem:[#allocation2 + $0xf0] sm:$0xff] %vm1084_vm1, %v6552_v38  ;;  %v10930_v11 = vadd.f32 %v10643_v6, %v14229_v42  ;;  %v2748_v38 = vmul.f32 1.442695, %v2638_v12  ;;  %v10934_v13 = vpop.eup %7524  ;;  %7536 = vpow2.f32 %v2752_v21  ;;  %v14232_v42 = vld [vmem:[#allocation92_spill] sm:$0xff]  ;;  %v14234_v12 = vld [vmem:[#allocation141_spill] sm:$0xff]  ;;  %v14235_v21 = vld [vmem:[#allocation90_spill] sm:$0xff] }
 0x688   :  { %v6554_v51 = vpop.f32.mrf.mxu0  ;;  %v10941_v6 = vpop.eup %7526  ;;  %7538 = vpow2.f32 %v2754_v27 }
 0x689   :  { %14230 = vst [vmem:[#allocation78_spill] sm:$0xff] %v10930_v11  ;;  %2836 = vadd.xlane.f32.xlu0 %v2835_v43  ;;  %v6555_v28 = vadd.f32 %v6554_v51, %v6553_v0  ;;  %v3758_v39 = vmax.f32 %v10930_v11, %v10909_v33  ;;  %v10945_v43 = vadd.f32 %v10795_v19, %v14232_v42  ;;  %7540 = vpow2.f32 %v2748_v38  ;;  %v14239_v19 = vld [vmem:[#allocation67_spill] sm:$0xff]  ;;  %v14240_v42 = vld [vmem:[#allocation37_spill] sm:$0xff] }
 0x68a   :  { %3762 = vmax.xlane.f32.xlu1 %v3761_v40  ;;  %v2645_v0 = vsub.f32 %v14234_v12, %v10723_v62  ;;  %v2844_v40 = vadd.f32 %v10926_v17, %v10922_v41  ;;  %v10953_v51 = vadd.f32 %v10745_v31, %v14235_v21  ;;  %v2642_v27 = vsub.f32 %v14240_v42, %v14239_v19  ;;  %v14241_v62 = vld [vmem:[#allocation83_spill] sm:$0xff]  ;;  %v14242_v38 = vld [vmem:[#allocation89_spill] sm:$0xff] }
 0x68b   :  { %2126 = vst.msk [vmem:[#allocation2 + $0xf8] sm:$0xff] %vm1084_vm1, %v6555_v28  ;;  %14233 = vst [vmem:[#allocation149_spill] sm:$0xff] %v10945_v43  ;;  %v14237_v28 = vld [vmem:[#allocation91_spill] sm:$0xff]  ;;  %7542 = vpow2.f32 %v2750_v8  ;;  %v2643_v12 = vsub.f32 %v14241_v62, %v14239_v19  ;;  %v10973_v42 = vadd.f32 %v10721_v14, %v14242_v38  ;;  %v3654_v8 = vpop.f32.mrf.mxu1 }
 0x68c   :  { %14236 = vst [vmem:[#allocation103_spill] sm:$0xff] %v10953_v51  ;;  %v10957_v58 = vadd.f32 %v10764_v56, %v14237_v28  ;;  %v10965_v33 = vpop.eup %7528  ;;  %v2762_v56 = vmul.f32 1.442695, %v2645_v0  ;;  %7544 = vpow2.f32 %v2760_v5  ;;  %v14244_v0 = vld [vmem:[#allocation99_spill] sm:$0xff] }
 0x68d   :  { %3759 = vmax.xlane.f32.xlu0 %v3758_v39  ;;  %v2841_v39 = vadd.f32 %v10941_v6, %v10934_v13  ;;  %v10969_v28 = vpop.eup %7530  ;;  %14243 = vst [vmem:[#allocation52_spill] sm:$0xff] %v10973_v42  ;;  %v3764_v19 = vmax.f32 %v10973_v42, %v10953_v51  ;;  %v2758_v62 = vmul.f32 1.442695, %v2643_v12  ;;  %v14248_v12 = vld [vmem:[#allocation50_spill] sm:$0xff]  ;;  %v14249_v38 = vld [vmem:[#allocation95_spill] sm:$0xff]  ;;  %v14254_v51 = vld [vmem:[#allocation105_spill] sm:$0xff] }
 0x68e   :  { %14238 = vst [vmem:[#allocation100_spill] sm:$0xff] %v10957_v58  ;;  %2845 = vadd.xlane.f32.xlu1 %v2844_v40  ;;  %v3767_v31 = vmax.f32 %v10957_v58, %v10945_v43  ;;  %v2756_v40 = vmul.f32 1.442695, %v2642_v27  ;;  %v10975_v36 = vpop.eup %7532  ;;  %v10983_v43 = vadd.f32 %v10887_v48, %v14244_v0  ;;  %7546 = vpow2.f32 %v2762_v56  ;;  %v14246_v27 = vld [vmem:[#allocation98_spill] sm:$0xff]  ;;  %v14251_v48 = vld [vmem:[#allocation33_spill] sm:$0xff] }
 0x68f   :  { %v10979_v21 = vpop.eup %7534  ;;  %v2850_v14 = vadd.f32 %v10969_v28, %v10965_v33  ;;  %v2646_v5 = vsub.f32 %v14248_v12, %v10787_v61  ;;  %v10995_v58 = vadd.f32 %v10843_v26, %v14249_v38  ;;  %v2647_v56 = vsub.f32 %v14251_v48, %v10787_v61  ;;  %v14252_v12 = vld [vmem:[#allocation94_spill] sm:$0xff] }
 0x690   :  { %14245 = vst [vmem:[#allocation119_spill] sm:$0xff] %v10983_v43  ;;  %7548 = vpow2.f32 %v2756_v40 }
 0x691   :  { %2842 = vadd.xlane.f32.xlu0 %v2841_v39  ;;  %v3656_v39 = vpop.f32.mrf.mxu1  ;;  %14250 = vst [vmem:[#allocation18_spill] sm:$0xff] %v10995_v58  ;;  %7550 = vpow2.f32 %v2758_v62  ;;  %v2764_v62 = vmul.f32 1.442695, %v2646_v5  ;;  %v2766_v48 = vmul.f32 1.442695, %v2647_v56  ;;  %v14258_v5 = vld [vmem:[#allocation102_spill] sm:$0xff] }
 0x692   :  { %3768 = vmax.xlane.f32.xlu1 %v3767_v31  ;;  %v10989_v31 = vadd.f32 %v10861_v2, %v14246_v27 }
 0x693   :  { %v3658_v26 = vpop.f32.mrf.mxu1  ;;  %7552 = vpow2.f32 %v2764_v62 }
 0x694   :  { %14247 = vst [vmem:[#allocation77_spill] sm:$0xff] %v10989_v31  ;;  %v11001_v0 = vpop.eup %7536  ;;  %v3773_v2 = vmax.f32 %v10989_v31, %v10983_v43  ;;  %v11018_v43 = vadd.f32 %v3654_v8, %v14254_v51  ;;  %7554 = vpow2.f32 %v2766_v48 }
 0x695   :  { %3765 = vmax.xlane.f32.xlu0 %v3764_v19  ;;  %v2847_v19 = vadd.f32 %v10979_v21, %v10975_v36  ;;  %v11005_v40 = vpop.eup %7538 }
 0x696   :  { %2851 = vadd.xlane.f32.xlu1 %v2850_v14  ;;  %v11009_v14 = vadd.f32 %v10815_v30, %v14252_v12  ;;  %v11011_v27 = vpop.eup %7540  ;;  %14255 = vst [vmem:[#allocation41_spill] sm:$0xff] %v11018_v43  ;;  %v2856_v31 = vadd.f32 %v11005_v40, %v11001_v0  ;;  %v3662_v30 = vpop.f32.mrf.mxu1  ;;  %v14256_v12 = vld [vmem:[#allocation53_spill] sm:$0xff] }
 0x698   :  { %14253 = vst [vmem:[#allocation120_spill] sm:$0xff] %v11009_v14  ;;  %v3770_v61 = vmax.f32 %v11009_v14, %v10995_v58  ;;  %v11015_v38 = vpop.eup %7542  ;;  %v14271_v14 = vld [vmem:[#allocation151_spill] sm:$0xff] }
 0x699   :  { %2848 = vadd.xlane.f32.xlu0 %v2847_v19  ;;  %v11023_v19 = vadd.f32 %v3652_v57, %v14256_v12  ;;  %v2853_v56 = vadd.f32 %v11015_v38, %v11011_v27  ;;  %v11031_v8 = vpop.eup %7544  ;;  %v14265_v12 = vld [vmem:[#allocation111_spill] sm:$0xff] }
 0x69a   :  { %3774 = vmax.xlane.f32.xlu1 %v3773_v2  ;;  %v11027_v2 = vadd.f32 %v10932_v25, %v14258_v5  ;;  %14260 = vst [vmem:[#allocation161_spill] sm:$0xff] %v11031_v8 }
 0x69b   :  { %14257 = vst [vmem:[#allocation104_spill] sm:$0xff] %v11023_v19  ;;  %v3779_v51 = vmax.f32 %v11023_v19, %v11018_v43  ;;  %v11035_v58 = vpop.eup %7546  ;;  %v14267_v19 = vld [vmem:[#allocation58_spill] sm:$0xff] }
 0x69c   :  { %14259 = vst [vmem:[#allocation22_spill] sm:$0xff] %v11027_v2  ;;  %14261 = vst [vmem:[#allocation123_spill] sm:$0xff] %v11035_v58  ;;  %v2862_v43 = vadd.f32 %v11035_v58, %v11031_v8 }
 0x69d   :  { %3771 = vmax.xlane.f32.xlu0 %v3770_v61  ;;  %v14262_v61 = vld [vmem:[#allocation101_spill] sm:$0xff]  ;;  %v11041_v25 = vpop.eup %7548 }
 0x69e   :  { %2857 = vadd.xlane.f32.xlu1 %v2856_v31  ;;  %v11039_v57 = vadd.f32 %v10905_v32, %v14262_v61  ;;  %v3664_v31 = vpop.f32.mrf.mxu1  ;;  %14264 = vst [vmem:[#allocation163_spill] sm:$0xff] %v11041_v25  ;;  %v11045_v48 = vpop.eup %7550  ;;  %v11053_v32 = vadd.f32 %v3662_v30, %v14267_v19  ;;  %v14275_v30 = vld [vmem:[#allocation165_spill] sm:$0xff] }
 0x69f   :  { %v11048_v5 = vadd.f32 %v3664_v31, %v14265_v12  ;;  %v2859_v31 = vadd.f32 %v11045_v48, %v11041_v25  ;;  %7556 = vrcp.f32 %v14275_v30  ;;  %v14279_v30 = vld [vmem:[#allocation158_spill] sm:$0xff] }
 0x6a0   :  { %14263 = vst [vmem:[#allocation51_spill] sm:$0xff] %v11039_v57  ;;  %v3776_v62 = vmax.f32 %v11039_v57, %v11027_v2  ;;  %14268 = vst [vmem:[#allocation157_spill] sm:$0xff] %v11053_v32  ;;  %v14272_v2 = vld [vmem:[#allocation155_spill] sm:$0xff]  ;;  %v3666_v11 = vpop.f32.mrf.mxu1 }
 0x6a1   :  { %2854 = vadd.xlane.f32.xlu0 %v2853_v56  ;;  %14266 = vst [vmem:[#allocation162_spill] sm:$0xff] %v11048_v5  ;;  %v3785_v12 = vmax.f32 %v11053_v32, %v11048_v5 }
 0x6a2   :  { %3780 = vmax.xlane.f32.xlu1 %v3779_v51  ;;  %v14269_v51 = vld [vmem:[#allocation108_spill] sm:$0xff]  ;;  %v3668_v5 = vpop.f32.mrf.mxu1 }
 0x6a3   :  { %v11056_v61 = vadd.f32 %v3658_v26, %v14269_v51  ;;  %v14276_v26 = vld [vmem:[#allocation142_spill] sm:$0xff] }
 0x6a4   :  { %7558 = vrcp.f32 %v14276_v26  ;;  %v14281_v26 = vld [vmem:[#allocation113_spill] sm:$0xff] }
 0x6a5   :  { %3777 = vmax.xlane.f32.xlu0 %v3776_v62  ;;  %14270 = vst [vmem:[#allocation156_spill] sm:$0xff] %v11056_v61  ;;  %v14273_v62 = vld [vmem:[#allocation107_spill] sm:$0xff] }
 0x6a6   :  { %2863 = vadd.xlane.f32.xlu1 %v2862_v43  ;;  %v2582_v56 = vpop.xlane.xlu1 %2581  ;;  %v11065_v8 = vadd.f32 %v3656_v39, %v14273_v62 }
 0x6a7   :  { %v2648_v42 = vsub.f32 %v14271_v14, %v2582_v56  ;;  %v2649_v57 = vsub.f32 %v14272_v2, %v2582_v56  ;;  %v11069_v2 = vpop.eup %7552 }
 0x6a8   :  { %14274 = vst [vmem:[#allocation32_spill] sm:$0xff] %v11065_v8  ;;  %14277 = vst [vmem:[#allocation131_spill] sm:$0xff] %v11069_v2  ;;  %v3782_v56 = vmax.f32 %v11065_v8, %v11056_v61  ;;  %v11073_v51 = vpop.eup %7554  ;;  %v14283_v8 = vld [vmem:[#allocation112_spill] sm:$0xff] }
 0x6a9   :  { %v2768_v43 = vmul.f32 1.442695, %v2648_v42  ;;  %v2770_v19 = vmul.f32 1.442695, %v2649_v57  ;;  %2860 = vadd.xlane.f32.xlu0 %v2859_v31  ;;  %14278 = vst [vmem:[#allocation97_spill] sm:$0xff] %v11073_v51  ;;  %v14280_v57 = vld [vmem:[#allocation28_spill] sm:$0xff]  ;;  %v2865_v32 = vadd.f32 %v11073_v51, %v11069_v2  ;;  %v11084_v58 = vadd.f32 %v3666_v11, %v14283_v8 }
 0x6aa   :  { %3786 = vmax.xlane.f32.xlu1 %v3785_v12  ;;  %v2804_v14 = vpop.xlane.xlu1 %2803  ;;  %v11078_v12 = vadd.f32 %v3668_v5, %v14281_v26  ;;  %v14293_v51 = vld [vmem:[#allocation39_spill] sm:$0xff] }
 0x6ab   :  { %7560 = vpow2.f32 %v2768_v43  ;;  %14284 = vst [vmem:[#allocation79_spill] sm:$0xff] %v11084_v58 }
 0x6ac   :  { %7562 = vpow2.f32 %v2770_v19  ;;  %14282 = vst [vmem:[#allocation30_spill] sm:$0xff] %v11078_v12  ;;  %v3788_v5 = vmax.f32 %v11084_v58, %v11078_v12  ;;  %v14291_v12 = vld [vmem:[#allocation44_spill] sm:$0xff] }
 0x6ad   :  { %v2585_v39 = vpop.xlane.xlu0 %2584  ;;  %3783 = vmax.xlane.f32.xlu0 %v3782_v56  ;;  %7564 = vrcp.f32 %v10811_v63  ;;  %v3672_v56 = vpop.f32.mrf.mxu1 }
 0x6ae   :  { %v2650_v42 = vsub.f32 %v14279_v30, %v2585_v39  ;;  %v2651_v31 = vsub.f32 %v14280_v57, %v2585_v39  ;;  %v2807_v62 = vpop.xlane.xlu1 %2806  ;;  %7566 = vrcp.f32 %v10835_v37  ;;  %v7557_v63 = vpop.eup %7556  ;;  %v11103_v58 = vadd.f32 %v3672_v56, %v14291_v12  ;;  %v14298_v56 = vld [vmem:[#allocation137_spill] sm:$0xff] }
 0x6b0   :  { %v2772_v43 = vmul.f32 1.442695, %v2650_v42  ;;  %v2774_v61 = vmul.f32 1.442695, %v2651_v31  ;;  %v3674_v42 = vpop.f32.mrf.mxu1  ;;  %v14287_v31 = vld [vmem:[#allocation140_spill] sm:$0xff]  ;;  %14292 = vst [vmem:[#allocation66_spill] sm:$0xff] %v11103_v58 }
 0x6b1   :  { %v3027_v19 = vpop.permute.xlu0 %3026  ;;  %2866 = vadd.xlane.f32.xlu0 %v2865_v32  ;;  %v7559_v11 = vpop.eup %7558 }
 0x6b2   :  { %7568 = vpow2.f32 %v2772_v43  ;;  %6616 = vmatprep.subr.bf16.mxu0 %v3027_v19  ;;  %v3011_v39 = vpop.permute.xlu1 %3010  ;;  %v2919_v43 = vmul.f32 %v7557_v63, %v14287_v31  ;;  %v14288_v19 = vld [vmem:[#allocation116_spill] sm:$0xff] }
 0x6b3   :  { %7570 = vpow2.f32 %v2774_v61  ;;  %6617 = vmatpush3.bf16.msra.mxu0 %v3011_v39  ;;  %v11097_v61 = vadd.f32 %v3674_v42, %v14288_v19  ;;  %v3676_v39 = vpop.f32.mrf.mxu1 }
 0x6b4   :  { %7572 = vrcp.f32 %v2807_v62 }
 0x6b5   :  { %v4644_v30 = vpop.permute.xlu0 %4643  ;;  %3789 = vmax.xlane.f32.xlu0 %v3788_v5  ;;  %14289 = vst [vmem:[#allocation106_spill] sm:$0xff] %v11097_v61  ;;  %7574 = vrcp.f32 %v2804_v14  ;;  %v3791_v42 = vmax.f32 %v11103_v58, %v11097_v61  ;;  %v3678_v19 = vpop.f32.mrf.mxu1  ;;  %v14302_v61 = vld [vmem:[#allocation82_spill] sm:$0xff] }
 0x6b6   :  { %6922 = vmatprep.mubr.msk.bf16.mxu1 %vm1084_vm1, %v4644_v30  ;;  %v3009_v5 = vpop.permute.xlu1 %3008  ;;  %v2916_v58 = vmul.f32 %v7559_v11, %v14302_v61  ;;  %v14307_v61 = vld [vmem:[#allocation110_spill] sm:$0xff] }
 0x6b7   :  { %6923 = vmatmul.mubr.msk.bf16.gmra.mxu1 %vm1084_vm1, %v4644_v30  ;;  %v14290_v30 = vld [vmem:[#allocation70_spill] sm:$0xff]  ;;  %vm3345_vm1 = vcmask 130112  }
 0x6b8   :  { %v11091_v37 = vpop.eup %7560  ;;  %v2917_v26 = vmul.f32 %v7559_v11, %v14290_v30 }
 0x6b9   :  { %14285 = vst [vmem:[#allocation96_spill] sm:$0xff] %v11091_v37  ;;  %v11093_v32 = vpop.eup %7562  ;;  %v3025_v57 = vpop.permute.xlu0 %3024 }
 0x6ba   :  { %14286 = vst [vmem:[#allocation69_spill] sm:$0xff] %v11093_v32  ;;  %6618 = vmatprep.subr.bf16.mxu0 %v3025_v57  ;;  %v2868_v8 = vadd.f32 %v11093_v32, %v11091_v37  ;;  %v7565_v62 = vpop.eup %7564  ;;  %v2979_v2 = vpack.c.bf16 %v2919_v43, %v2917_v26  ;;  %v14294_v57 = vld [vmem:[#allocation152_spill] sm:$0xff]  ;;  %v14301_v43 = vld [vmem:[#allocation114_spill] sm:$0xff] }
 0x6bb   :  { %6619 = vmatpush3.bf16.msra.mxu0 %v3009_v5  ;;  %v7567_v31 = vpop.eup %7566  ;;  %v14295_v25 = vpack.c.bf16 %v14293_v51, %v14294_v57  ;;  %v2918_v5 = vmul.f32 %v7557_v63, %v14298_v56  ;;  %v14303_v51 = vld [vmem:[#allocation117_spill] sm:$0xff] }
 0x6bc   :  { %2869 = vadd.xlane.f32.xlu1 %v2868_v8  ;;  %v14299_v8 = vld [vmem:[#allocation118_spill] sm:$0xff]  ;;  %v2923_v12 = vmul.f32 %v7567_v31, %v14301_v43 }
 0x6bd   :  { %v11116_v30 = vadd.f32 %v3678_v19, %v14299_v8  ;;  %v2978_v32 = vpack.c.bf16 %v2918_v5, %v2916_v58  ;;  %v14305_v8 = vld [vmem:[#allocation20_spill] sm:$0xff]  ;;  %v14309_v58 = vld [vmem:[#allocation143_spill] sm:$0xff] }
 0x6be   :  { %3089 = vmatmul.mubr.bf16.vlgmr.msra.gmra.mxu0 %v14295_v25  ;;  %v11123_v25 = vadd.f32 %v3676_v39, %v14303_v51  ;;  %v2922_v43 = vmul.f32 %v7567_v31, %v14305_v8  ;;  %v2920_v39 = vmul.f32 %v7565_v62, %v14307_v61  ;;  %v14308_v51 = vld [vmem:[#allocation31_spill] sm:$0xff] }
 0x6bf   :  { %v11110_v37 = vpop.eup %7568  ;;  %3096 = vmatprep.mubr.bf16.mxu0 %v2979_v2  ;;  %14300 = vst [vmem:[#allocation141_spill] sm:$0xff] %v11116_v30  ;;  %v14304_v2 = vld [vmem:[#allocation115_spill] sm:$0xff] }
 0x6c0   :  { %14296 = vst [vmem:[#allocation26_spill] sm:$0xff] %v11110_v37  ;;  %v11112_v14 = vpop.eup %7570  ;;  %3792 = vmax.xlane.f32.xlu1 %v3791_v42  ;;  %v2921_v57 = vmul.f32 %v7565_v62, %v14304_v2  ;;  %v3794_v63 = vmax.f32 %v11123_v25, %v11116_v30 }
 0x6c1   :  { %14297 = vst [vmem:[#allocation109_spill] sm:$0xff] %v11112_v14  ;;  %v2871_v26 = vadd.f32 %v11112_v14, %v11110_v37  ;;  %v7573_v19 = vpop.eup %7572  ;;  %v14306_v37 = vld [vmem:[#allocation144_spill] sm:$0xff]  ;;  %v2980_v14 = vpack.c.bf16 %v2922_v43, %v2920_v39 }
 0x6c2   :  { %v2981_v42 = vpack.c.bf16 %v2923_v12, %v2921_v57  ;;  %v7575_v56 = vpop.eup %7574  ;;  %v2927_v11 = vmul.f32 %v7573_v19, %v14306_v37  ;;  %v2926_v5 = vmul.f32 %v7573_v19, %v14309_v58  ;;  %v14310_v12 = vld [vmem:[#allocation154_spill] sm:$0xff] }
 0x6c3   :  { %2872 = vadd.xlane.f32.xlu0 %v2871_v26  ;;  %v2925_v26 = vmul.f32 %v7575_v56, %v14308_v51  ;;  %v2924_v57 = vmul.f32 %v7575_v56, %v14310_v12 }
 0x6c5   :  { %v2983_v2 = vpack.c.bf16 %v2927_v11, %v2925_v26  ;;  %v3682_v11 = vpop.f32.mrf.mxu1 }
 0x6c6   :  { %3097 = vmatmul.mubr.bf16.gmra.mxu0 %v2978_v32  ;;  %v2982_v32 = vpack.c.bf16 %v2926_v5, %v2924_v57 }
 0x6c7   :  { %3795 = vmax.xlane.f32.xlu0 %v3794_v63  ;;  %3104 = vmatprep.mubr.bf16.mxu0 %v2981_v42  ;;  %v3684_v58 = vpop.f32.mrf.mxu1 }
 0x6c9   :  { %v3686_v5 = vpop.f32.mrf.mxu1 }
 0x6ce   :  { %3105 = vmatmul.mubr.bf16.gmra.mxu0 %v2980_v14 }
 0x6cf   :  { %3112 = vmatprep.mubr.bf16.mxu0 %v2983_v2 }
 0x6d6   :  { %3113 = vmatmul.mubr.bf16.gmra.mxu0 %v2982_v32  ;;  %v3688_v32 = vpop.f32.mrf.mxu1 }
 0x6e7   :  { %v2591_v63 = vpop.xlane.xlu1 %2590 }
 0x6e8   :  { %v2654_v42 = vsub.f32 %v10657_v29, %v2591_v63  ;;  %v2655_v31 = vsub.f32 %v10651_v46, %v2591_v63 }
 0x6ea   :  { %v2780_v37 = vmul.f32 1.442695, %v2654_v42  ;;  %v2782_v8 = vmul.f32 1.442695, %v2655_v31  ;;  %v2588_v62 = vpop.xlane.xlu0 %2587 }
 0x6eb   :  { %v2652_v51 = vsub.f32 %v10675_v1, %v2588_v62  ;;  %v2653_v43 = vsub.f32 %v10661_v47, %v2588_v62  ;;  %v3733_v14 = vpop.xlane.xlu1 %3732  ;;  %v14311_v62 = vld [vmem:[#allocation122_spill] sm:$0xff] }
 0x6ec   :  { %7576 = vpow2.f32 %v2780_v37  ;;  %v3827_v19 = vsub.f32 %v10683_v24, %v3733_v14  ;;  %v3828_v56 = vsub.f32 %v10669_v10, %v3733_v14 }
 0x6ed   :  { %7578 = vpow2.f32 %v2782_v8  ;;  %v2776_v61 = vmul.f32 1.442695, %v2652_v51  ;;  %v2778_v39 = vmul.f32 1.442695, %v2653_v43  ;;  %v11149_v51 = vadd.f32 %v3688_v32, %v14311_v62  ;;  %v14320_v62 = vld [vmem:[#allocation167_spill] sm:$0xff] }
 0x6ee   :  { %v3891_v29 = vmul.f32 1.442695, %v3827_v19  ;;  %v3893_v26 = vmul.f32 1.442695, %v3828_v56  ;;  %v2810_v46 = vpop.xlane.xlu0 %2809  ;;  %v14313_v19 = vld [vmem:[#allocation72_spill] sm:$0xff] }
 0x6ef   :  { %7580 = vpow2.f32 %v2776_v61  ;;  %v2816_v2 = vpop.xlane.xlu1 %2815  ;;  %14312 = vst [vmem:[#allocation67_spill] sm:$0xff] %v11149_v51  ;;  %v11160_v56 = vadd.f32 %v3686_v5, %v14313_v19 }
 0x6f0   :  { %7582 = vpow2.f32 %v2778_v39  ;;  %v14315_v39 = vld [vmem:[#allocation121_spill] sm:$0xff] }
 0x6f1   :  { %7584 = vpow2.f32 %v3891_v29  ;;  %14314 = vst [vmem:[#allocation37_spill] sm:$0xff] %v11160_v56  ;;  %v11165_v29 = vadd.f32 %v3684_v58, %v14315_v39 }
 0x6f2   :  { %7586 = vpow2.f32 %v3893_v26  ;;  %v2813_v47 = vpop.xlane.xlu0 %2812 }
 0x6f3   :  { %7588 = vrcp.f32 %v2810_v46  ;;  %v11140_v1 = vpop.xlane.xlu1 %3738  ;;  %14316 = vst [vmem:[#allocation83_spill] sm:$0xff] %v11165_v29 }
 0x6f4   :  { %7590 = vrcp.f32 %v2813_v47  ;;  %v3800_v47 = vmax.f32 %v11160_v56, %v11149_v51 }
 0x6f5   :  { %7592 = vrcp.f32 %v2816_v2 }
 0x6f6   :  { %v3736_v24 = vpop.xlane.xlu0 %3735 }
 0x6f7   :  { %v3829_v10 = vsub.f32 %v10739_v18, %v3736_v24  ;;  %v3830_v12 = vsub.f32 %v10719_v50, %v3736_v24  ;;  %v2822_v57 = vpop.xlane.xlu1 %2821 }
 0x6f9   :  { %v11144_v63 = vpop.eup %7576  ;;  %v3895_v42 = vmul.f32 1.442695, %v3829_v10  ;;  %v3897_v31 = vmul.f32 1.442695, %v3830_v12  ;;  %v14317_v10 = vld [vmem:[#allocation49_spill] sm:$0xff] }
 0x6fa   :  { %v11146_v37 = vpop.eup %7578  ;;  %v2819_v8 = vpop.xlane.xlu0 %2818  ;;  %v11176_v12 = vadd.f32 %v3682_v11, %v14317_v10 }
 0x6fb   :  { %7594 = vpow2.f32 %v3895_v42  ;;  %v11151_v43 = vpop.xlane.xlu1 %3744  ;;  %v2877_v18 = vadd.f32 %v11146_v37, %v11144_v63 }
 0x6fc   :  { %v11155_v50 = vpop.eup %7580  ;;  %7596 = vpow2.f32 %v3897_v31  ;;  %14318 = vst [vmem:[#allocation50_spill] sm:$0xff] %v11176_v12  ;;  %v3797_v58 = vmax.f32 %v11176_v12, %v11165_v29 }
 0x6fd   :  { %v11157_v14 = vpop.eup %7582  ;;  %7598 = vrcp.f32 %v2819_v8  ;;  %2878 = vadd.xlane.f32.xlu0 %v2877_v18  ;;  %v14319_v18 = vld [vmem:[#allocation164_spill] sm:$0xff] }
 0x6fe   :  { %v11162_v61 = vpop.eup %7584  ;;  %v11167_v26 = vpop.xlane.xlu0 %3741  ;;  %v2874_v46 = vadd.f32 %v11157_v14, %v11155_v50  ;;  %7600 = vrcp.f32 %v2822_v57 }
 0x6ff   :  { %v11171_v2 = vpop.eup %7586  ;;  %v2828_v24 = vpop.xlane.xlu1 %2827 }
 0x700   :  { %v7589_v5 = vpop.eup %7588  ;;  %2875 = vadd.xlane.f32.xlu1 %v2874_v46  ;;  %v4019_v31 = vadd.f32 %v11171_v2, %v11162_v61 }
 0x701   :  { %3801 = vmax.xlane.f32.xlu0 %v3800_v47  ;;  %v7591_v32 = vpop.eup %7590  ;;  %v2929_v19 = vmul.f32 %v7589_v5, %v14319_v18  ;;  %v2928_v11 = vmul.f32 %v7589_v5, %v14320_v62 }
 0x702   :  { %v2825_v42 = vpop.xlane.xlu0 %2824  ;;  %v2931_v39 = vmul.f32 %v7591_v32, %v10703_v59  ;;  %v2930_v46 = vmul.f32 %v7591_v32, %v10701_v53  ;;  %v7593_v29 = vpop.eup %7592 }
 0x703   :  { %v11182_v8 = vpop.xlane.xlu1 %3750  ;;  %7602 = vrcp.f32 %v2825_v42 }
 0x704   :  { %3798 = vmax.xlane.f32.xlu1 %v3797_v58  ;;  %v2985_v47 = vpack.c.bf16 %v2931_v39, %v2929_v19  ;;  %v2984_v10 = vpack.c.bf16 %v2930_v46, %v2928_v11  ;;  %7604 = vrcp.f32 %v2828_v24  ;;  %v14321_v19 = vld [vmem:[#allocation48_spill] sm:$0xff]  ;;  %v14322_v58 = vld [vmem:[#allocation166_spill] sm:$0xff] }
 0x705   :  { %4020 = vadd.xlane.f32.xlu0 %v4019_v31  ;;  %v2933_v39 = vmul.f32 %v7593_v29, %v14321_v19  ;;  %v2932_v42 = vmul.f32 %v7593_v29, %v14322_v58 }
 0x706   :  { %v11188_v57 = vpop.xlane.xlu0 %3747  ;;  %3120 = vmatprep.mubr.bf16.mxu0 %v2985_v47 }
 0x707   :  { %v2834_v12 = vpop.xlane.xlu1 %2833  ;;  %3121 = vmatmul.mubr.bf16.gmra.mxu0 %v2984_v10 }
 0x708   :  { %v11190_v51 = vpop.eup %7594 }
 0x709   :  { %v11192_v18 = vpop.eup %7596 }
 0x70a   :  { %v7599_v59 = vpop.eup %7598  ;;  %v2831_v62 = vpop.xlane.xlu0 %2830  ;;  %v4022_v53 = vadd.f32 %v11192_v18, %v11190_v51 }
 0x70b   :  { %v11196_v5 = vpop.xlane.xlu1 %3756  ;;  %v2935_v32 = vmul.f32 %v7599_v59, %v10754_v60  ;;  %v2934_v31 = vmul.f32 %v7599_v59, %v10750_v16  ;;  %7606 = vrcp.f32 %v2831_v62  ;;  %v7601_v24 = vpop.eup %7600  ;;  %v14323_v62 = vld [vmem:[#allocation43_spill] sm:$0xff] }
 0x70c   :  { %4023 = vadd.xlane.f32.xlu0 %v4022_v53  ;;  %v2937_v19 = vmul.f32 %v7601_v24, %v10743_v55  ;;  %7608 = vrcp.f32 %v2834_v12  ;;  %v2936_v16 = vmul.f32 %v7601_v24, %v10735_v34  ;;  %v14324_v12 = vld [vmem:[#allocation45_spill] sm:$0xff] }
 0x70d   :  { %v2987_v10 = vpack.c.bf16 %v2935_v32, %v2933_v39  ;;  %v2986_v11 = vpack.c.bf16 %v2934_v31, %v2932_v42 }
 0x70e   :  { %v11202_v46 = vpop.xlane.xlu0 %3753 }
 0x70f   :  { %3128 = vmatprep.mubr.bf16.mxu0 %v2987_v10  ;;  %v2840_v47 = vpop.xlane.xlu1 %2839  ;;  %v14325_v10 = vld [vmem:[#allocation23_spill] sm:$0xff] }
 0x710   :  { %3129 = vmatmul.mubr.bf16.gmra.mxu0 %v2986_v11  ;;  %v7603_v56 = vpop.eup %7602 }
 0x711   :  { %v2939_v29 = vmul.f32 %v7603_v56, %v10803_v23  ;;  %v2938_v59 = vmul.f32 %v7603_v56, %v10797_v22  ;;  %v7605_v58 = vpop.eup %7604 }
 0x712   :  { %v2837_v30 = vpop.xlane.xlu0 %2836  ;;  %v2940_v42 = vmul.f32 %v7605_v58, %v10783_v3 }
 0x713   :  { %v11205_v60 = vpop.xlane.xlu1 %3762  ;;  %7610 = vrcp.f32 %v2837_v30  ;;  %v2989_v53 = vpack.c.bf16 %v2939_v29, %v2937_v19  ;;  %v2988_v39 = vpack.c.bf16 %v2938_v59, %v2936_v16  ;;  %v2941_v30 = vmul.f32 %v7605_v58, %v10789_v20 }
 0x714   :  { %7612 = vrcp.f32 %v2840_v47 }
 0x715   :  { %4273 = vrot.lane.b32.xlu1 %v14323_v62, %s8119_s19  ;;  %3136 = vmatprep.mubr.bf16.mxu0 %v2989_v53 }
 0x716   :  { %v11212_v32 = vpop.xlane.xlu0 %3759 }
 0x717   :  { %v2846_v55 = vpop.xlane.xlu1 %2845 }
 0x718   :  { %3137 = vmatmul.mubr.bf16.gmra.mxu0 %v2988_v39  ;;  %v7607_v23 = vpop.eup %7606 }
 0x719   :  { %4271 = vrot.lane.b32.xlu1 %v14324_v12, %s8119_s19  ;;  %v2943_v56 = vmul.f32 %v7607_v23, %v10851_v44  ;;  %v2942_v31 = vmul.f32 %v7607_v23, %v10845_v45  ;;  %v7609_v29 = vpop.eup %7608  ;;  %v14326_v44 = vld [vmem:[#allocation21_spill] sm:$0xff] }
 0x71a   :  { %v2843_v34 = vpop.xlane.xlu0 %2842  ;;  %v2945_v20 = vmul.f32 %v7609_v29, %v10837_v15  ;;  %v2944_v59 = vmul.f32 %v7609_v29, %v10831_v54 }
 0x71b   :  { %v11216_v22 = vpop.xlane.xlu1 %3768  ;;  %7614 = vrcp.f32 %v2843_v34  ;;  %v2991_v11 = vpack.c.bf16 %v2943_v56, %v2941_v30  ;;  %v2990_v24 = vpack.c.bf16 %v2942_v31, %v2940_v42  ;;  %v3831_v30 = vsub.f32 %v10727_v7, %v11140_v1  ;;  %v3692_v56 = vpop.f32.mrf.mxu1 }
 0x71c   :  { %7616 = vrcp.f32 %v2846_v55 }
 0x71d   :  { %4255 = vrot.lane.b32.xlu1 %v14325_v10, %s8119_s19  ;;  %3144 = vmatprep.mubr.bf16.mxu0 %v2991_v11  ;;  %v3899_v29 = vmul.f32 1.442695, %v3831_v30  ;;  %v14375_v10 = vld [vmem:[#allocation15_spill] sm:$0xff] }
 0x71e   :  { %v11224_v19 = vpop.xlane.xlu0 %3765 }
 0x71f   :  { %v2852_v47 = vpop.xlane.xlu1 %2851 }
 0x720   :  { %3145 = vmatmul.mubr.bf16.gmra.mxu0 %v2990_v24  ;;  %v7611_v16 = vpop.eup %7610 }
 0x721   :  { %v2947_v45 = vmul.f32 %v7611_v16, %v10895_v35  ;;  %v2946_v53 = vmul.f32 %v7611_v16, %v10889_v49  ;;  %v7613_v55 = vpop.eup %7612  ;;  %v3832_v35 = vsub.f32 %v10711_v52, %v11140_v1  ;;  %v14328_v1 = vld [vmem:[#allocation76_spill] sm:$0xff] }
 0x722   :  { %4257 = vrot.lane.b32.xlu0 %v14326_v44, %s8119_s19  ;;  %v2849_v3 = vpop.xlane.xlu0 %2848  ;;  %v2949_v49 = vmul.f32 %v7613_v55, %v10881_v9  ;;  %v2948_v11 = vmul.f32 %v7613_v55, %v10877_v4  ;;  %v3834_v9 = vsub.f32 %v14328_v1, %v11167_v26 }
 0x723   :  { %7618 = vrcp.f32 %v2849_v3  ;;  %v11232_v39 = vpop.xlane.xlu1 %3774  ;;  %v2993_v58 = vpack.c.bf16 %v2947_v45, %v2945_v20  ;;  %v2992_v23 = vpack.c.bf16 %v2946_v53, %v2944_v59  ;;  %v3901_v3 = vmul.f32 1.442695, %v3832_v35  ;;  %v14327_v20 = vld [vmem:[#allocation153_spill] sm:$0xff]  ;;  %v3694_v59 = vpop.f32.mrf.mxu1 }
 0x724   :  { %7620 = vrcp.f32 %v2852_v47  ;;  %v3833_v52 = vsub.f32 %v14327_v20, %v11167_v26  ;;  %v3905_v53 = vmul.f32 1.442695, %v3834_v9  ;;  %v14332_v9 = vld [vmem:[#allocation125_spill] sm:$0xff] }
 0x725   :  { %3152 = vmatprep.mubr.bf16.mxu0 %v2993_v58  ;;  %v3696_v55 = vpop.f32.mrf.mxu1 }
 0x726   :  { %v11234_v34 = vpop.xlane.xlu0 %3771 }
 0x727   :  { %v2858_v42 = vpop.xlane.xlu1 %2857 }
 0x728   :  { %3153 = vmatmul.mubr.bf16.gmra.mxu0 %v2992_v23  ;;  %v7615_v15 = vpop.eup %7614 }
 0x729   :  { %v2951_v31 = vmul.f32 %v7615_v15, %v10941_v6  ;;  %v2950_v24 = vmul.f32 %v7615_v15, %v10934_v13  ;;  %v7617_v47 = vpop.eup %7616  ;;  %v3903_v6 = vmul.f32 1.442695, %v3833_v52  ;;  %v14331_v52 = vld [vmem:[#allocation42_spill] sm:$0xff] }
 0x72a   :  { %v2855_v54 = vpop.xlane.xlu0 %2854  ;;  %v2953_v23 = vmul.f32 %v7617_v47, %v10926_v17  ;;  %v2952_v30 = vmul.f32 %v7617_v47, %v10922_v41  ;;  %v11269_v1 = vadd.f32 %v3692_v56, %v14331_v52  ;;  %v11272_v47 = vadd.f32 %v3696_v55, %v14332_v9 }
 0x72b   :  { %7622 = vrcp.f32 %v2855_v54  ;;  %v2995_v16 = vpack.c.bf16 %v2951_v31, %v2949_v49  ;;  %v2994_v7 = vpack.c.bf16 %v2950_v24, %v2948_v11  ;;  %v11250_v4 = vpop.xlane.xlu1 %3780  ;;  %v3698_v31 = vpop.f32.mrf.mxu1 }
 0x72c   :  { %7624 = vpow2.f32 %v3899_v29 }
 0x72d   :  { %3160 = vmatprep.mubr.bf16.mxu0 %v2995_v16  ;;  %7626 = vpow2.f32 %v3901_v3 }
 0x72e   :  { %v11248_v45 = vpop.xlane.xlu0 %3777  ;;  %7628 = vrcp.f32 %v2858_v42  ;;  %v14329_v42 = vld [vmem:[#allocation124_spill] sm:$0xff] }
 0x72f   :  { %v2864_v11 = vpop.xlane.xlu1 %2863  ;;  %v11259_v29 = vadd.f32 %v3694_v59, %v14329_v42 }
 0x730   :  { %3161 = vmatmul.mubr.bf16.gmra.mxu0 %v2994_v7  ;;  %v7619_v13 = vpop.eup %7618 }
 0x731   :  { %v2955_v26 = vmul.f32 %v7619_v13, %v10979_v21  ;;  %v2954_v15 = vmul.f32 %v7619_v13, %v10975_v36  ;;  %v7621_v24 = vpop.eup %7620  ;;  %v14330_v21 = vld [vmem:[#allocation126_spill] sm:$0xff] }
 0x732   :  { %v2861_v58 = vpop.xlane.xlu0 %2860  ;;  %v11262_v41 = vadd.f32 %v3698_v31, %v14330_v21  ;;  %v2957_v16 = vmul.f32 %v7621_v24, %v10969_v28  ;;  %v2956_v3 = vmul.f32 %v7621_v24, %v10965_v33  ;;  %v3803_v28 = vmax.f32 %v11269_v1, %v11259_v29 }
 0x733   :  { %7630 = vrcp.f32 %v2861_v58  ;;  %v2997_v35 = vpack.c.bf16 %v2955_v26, %v2953_v23  ;;  %v2996_v54 = vpack.c.bf16 %v2954_v15, %v2952_v30  ;;  %v14336_v30 = vld [vmem:[#allocation163_spill] sm:$0xff] }
 0x734   :  { %7632 = vpow2.f32 %v3903_v6  ;;  %v3806_v33 = vmax.f32 %v11272_v47, %v11262_v41 }
 0x735   :  { %7634 = vpow2.f32 %v3905_v53  ;;  %3168 = vmatprep.mubr.bf16.mxu0 %v2997_v35 }
 0x736   :  { %v11256_v49 = vpop.xlane.xlu0 %3783  ;;  %7636 = vrcp.f32 %v2864_v11 }
 0x738   :  { %3169 = vmatmul.mubr.bf16.gmra.mxu0 %v2996_v54  ;;  %v7623_v17 = vpop.eup %7622  ;;  %v11292_v54 = vpop.xlane.xlu1 %3786 }
 0x739   :  { %v2959_v7 = vmul.f32 %v7623_v17, %v11015_v38  ;;  %v2958_v20 = vmul.f32 %v7623_v17, %v11011_v27  ;;  %v11274_v6 = vpop.eup %7624 }
 0x73a   :  { %v2867_v36 = vpop.xlane.xlu0 %2866  ;;  %14333 = vst [vmem:[#allocation33_spill] sm:$0xff] %v11274_v6  ;;  %v11276_v53 = vpop.eup %7626 }
 0x73b   :  { %7638 = vrcp.f32 %v2867_v36  ;;  %v2999_v59 = vpack.c.bf16 %v2959_v7, %v2957_v16  ;;  %v2998_v13 = vpack.c.bf16 %v2958_v20, %v2956_v3  ;;  %14334 = vst [vmem:[#allocation151_spill] sm:$0xff] %v11276_v53  ;;  %v7629_v38 = vpop.eup %7628  ;;  %v4025_v56 = vadd.f32 %v11276_v53, %v11274_v6  ;;  %v14339_v7 = vld [vmem:[#allocation97_spill] sm:$0xff] }
 0x73c   :  { %v2961_v23 = vmul.f32 %v7629_v38, %v11005_v40  ;;  %v2960_v26 = vmul.f32 %v7629_v38, %v11001_v0  ;;  %v14340_v20 = vld [vmem:[#allocation161_spill] sm:$0xff] }
 0x73d   :  { %3176 = vmatprep.mubr.bf16.mxu0 %v2999_v59  ;;  %v14405_v6 = vld [vmem:[#allocation13_spill] sm:$0xff] }
 0x73e   :  { %v11296_v36 = vpop.xlane.xlu0 %3789 }
 0x740   :  { %3177 = vmatmul.mubr.bf16.gmra.mxu0 %v2998_v13  ;;  %v7631_v27 = vpop.eup %7630  ;;  %v14341_v13 = vld [vmem:[#allocation131_spill] sm:$0xff] }
 0x741   :  { %3804 = vmax.xlane.f32.xlu1 %v3803_v28  ;;  %3807 = vmax.xlane.f32.xlu0 %v3806_v33  ;;  %v11284_v58 = vpop.eup %7632  ;;  %v2963_v55 = vmul.f32 %v7631_v27, %v11045_v48  ;;  %v2962_v15 = vmul.f32 %v7631_v27, %v14336_v30  ;;  %v14338_v48 = vld [vmem:[#allocation123_spill] sm:$0xff] }
 0x742   :  { %14335 = vst [vmem:[#allocation155_spill] sm:$0xff] %v11284_v58  ;;  %v11290_v35 = vpop.eup %7634  ;;  %v14344_v30 = vld [vmem:[#allocation19_spill] sm:$0xff] }
 0x743   :  { %14337 = vst [vmem:[#allocation165_spill] sm:$0xff] %v11290_v35  ;;  %v3001_v31 = vpack.c.bf16 %v2963_v55, %v2961_v23  ;;  %v3000_v11 = vpack.c.bf16 %v2962_v15, %v2960_v26  ;;  %v7637_v24 = vpop.eup %7636  ;;  %v4028_v17 = vadd.f32 %v11290_v35, %v11284_v58  ;;  %v14343_v23 = vld [vmem:[#allocation36_spill] sm:$0xff]  ;;  %v14345_v15 = vld [vmem:[#allocation69_spill] sm:$0xff] }
 0x744   :  { %v2965_v16 = vmul.f32 %v7637_v24, %v14338_v48  ;;  %v2964_v59 = vmul.f32 %v7637_v24, %v14340_v20  ;;  %v14350_v20 = vld [vmem:[#allocation145_spill] sm:$0xff] }
 0x745   :  { %4026 = vadd.xlane.f32.xlu0 %v4025_v56  ;;  %3184 = vmatprep.mubr.bf16.mxu0 %v3001_v31  ;;  %v2870_v40 = vpop.xlane.xlu1 %2869  ;;  %v14342_v56 = vld [vmem:[#allocation34_spill] sm:$0xff] }
 0x746   :  { %7640 = vrcp.f32 %v2870_v40 }
 0x748   :  { %3185 = vmatmul.mubr.bf16.gmra.mxu0 %v3000_v11  ;;  %v7639_v0 = vpop.eup %7638  ;;  %v14346_v11 = vld [vmem:[#allocation109_spill] sm:$0xff] }
 0x749   :  { %4029 = vadd.xlane.f32.xlu0 %v4028_v17  ;;  %v2967_v3 = vmul.f32 %v7639_v0, %v14339_v7  ;;  %v2966_v28 = vmul.f32 %v7639_v0, %v14341_v13  ;;  %v14347_v17 = vld [vmem:[#allocation96_spill] sm:$0xff]  ;;  %v14348_v0 = vld [vmem:[#allocation26_spill] sm:$0xff]  ;;  %v14351_v13 = vld [vmem:[#allocation159_spill] sm:$0xff] }
 0x74b   :  { %v3003_v38 = vpack.c.bf16 %v2967_v3, %v2965_v16  ;;  %v3002_v27 = vpack.c.bf16 %v2966_v28, %v2964_v59  ;;  %v14349_v3 = vld [vmem:[#allocation17_spill] sm:$0xff]  ;;  %v3835_v59 = vsub.f32 %v14350_v20, %v11151_v43  ;;  %v3836_v28 = vsub.f32 %v14351_v13, %v11151_v43  ;;  %v14356_v20 = vld [vmem:[#allocation128_spill] sm:$0xff] }
 0x74c   :  { %v2873_v33 = vpop.xlane.xlu0 %2872  ;;  %v14357_v13 = vld [vmem:[#allocation64_spill] sm:$0xff] }
 0x74d   :  { %7642 = vrcp.f32 %v2873_v33  ;;  %3192 = vmatprep.mubr.bf16.mxu0 %v3003_v38  ;;  %v3702_v33 = vpop.f32.mrf.mxu1  ;;  %v3907_v38 = vmul.f32 1.442695, %v3835_v59 }
 0x74e   :  { %v11329_v59 = vadd.f32 %v3702_v33, %v14356_v20 }
 0x74f   :  { %7644 = vpow2.f32 %v3907_v38 }
 0x750   :  { %3193 = vmatmul.mubr.bf16.gmra.mxu0 %v3002_v27  ;;  %v14352_v27 = vld [vmem:[#allocation59_spill] sm:$0xff] }
 0x752   :  { %4269 = vrot.lane.b32.xlu1 %v14342_v56, %s8119_s19 }
 0x753   :  { %v7641_v55 = vpop.eup %7640 }
 0x754   :  { %v2969_v31 = vmul.f32 %v7641_v55, %v14345_v15  ;;  %v2968_v40 = vmul.f32 %v7641_v55, %v14347_v17  ;;  %v3837_v55 = vsub.f32 %v14352_v27, %v11188_v57  ;;  %v3909_v15 = vmul.f32 1.442695, %v3836_v28 }
 0x756   :  { %4267 = vrot.lane.b32.xlu1 %v14343_v23, %s8119_s19  ;;  %7646 = vpow2.f32 %v3909_v15 }
 0x75a   :  { %v7643_v26 = vpop.eup %7642  ;;  %4251 = vrot.lane.b32.xlu1 %v14344_v30, %s8119_s19 }
 0x75b   :  { %v2971_v24 = vmul.f32 %v7643_v26, %v14346_v11  ;;  %v2970_v48 = vmul.f32 %v7643_v26, %v14348_v0  ;;  %v14353_v26 = vld [vmem:[#allocation147_spill] sm:$0xff]  ;;  %v3704_v11 = vpop.f32.mrf.mxu1 }
 0x75c   :  { %v11334_v28 = vpop.eup %7644 }
 0x75d   :  { %v3005_v16 = vpack.c.bf16 %v2971_v24, %v2969_v31  ;;  %v3004_v7 = vpack.c.bf16 %v2970_v48, %v2968_v40  ;;  %v3838_v31 = vsub.f32 %v14353_v26, %v11188_v57  ;;  %v3911_v24 = vmul.f32 1.442695, %v3837_v55  ;;  %v3706_v40 = vpop.f32.mrf.mxu1  ;;  %v14354_v48 = vld [vmem:[#allocation129_spill] sm:$0xff]  ;;  %14358 = vst [vmem:[#allocation142_spill] sm:$0xff] %v11334_v28 }
 0x75e   :  { %v11323_v43 = vadd.f32 %v3704_v11, %v14354_v48  ;;  %v11332_v57 = vadd.f32 %v3706_v40, %v14357_v13 }
 0x75f   :  { %4253 = vrot.lane.b32.xlu0 %v14349_v3, %s8119_s19  ;;  %3200 = vmatprep.mubr.bf16.mxu0 %v3005_v16  ;;  %v3913_v17 = vmul.f32 1.442695, %v3838_v31  ;;  %7648 = vpow2.f32 %v3911_v24  ;;  %v3708_v0 = vpop.f32.mrf.mxu1  ;;  %v14355_v16 = vld [vmem:[#allocation130_spill] sm:$0xff] }
 0x760   :  { %3201 = vmatmul.mubr.bf16.gmra.mxu0 %v3004_v7  ;;  %v11326_v7 = vadd.f32 %v3708_v0, %v14355_v16  ;;  %v3809_v38 = vmax.f32 %v11329_v59, %v11323_v43 }
 0x761   :  { %7650 = vpow2.f32 %v3913_v17  ;;  %v11350_v17 = vpop.xlane.xlu0 %3795  ;;  %v11370_v3 = vpop.f32.mrf.mxu1 }
 0x762   :  { %v3812_v27 = vmax.f32 %v11332_v57, %v11326_v7 }
 0x763   :  { %v11340_v55 = vpop.eup %7646 }
 0x764   :  { %14359 = vst [vmem:[#allocation158_spill] sm:$0xff] %v11340_v55  ;;  %v4031_v31 = vadd.f32 %v11340_v55, %v11334_v28  ;;  %v14400_v28 = vld [vmem:[#allocation25_spill] sm:$0xff] }
 0x76c   :  { %v11342_v26 = vpop.eup %7648 }
 0x76d   :  { %14360 = vst [vmem:[#allocation28_spill] sm:$0xff] %v11342_v26 }
 0x76e   :  { %v11346_v11 = vpop.eup %7650 }
 0x76f   :  { %14361 = vst [vmem:[#allocation140_spill] sm:$0xff] %v11346_v11 }
 0x77e   :  { %3810 = vmax.xlane.f32.xlu1 %v3809_v38  ;;  %3813 = vmax.xlane.f32.xlu0 %v3812_v27  ;;  %v6620_v15 = vpop.f32.mrf.mxu0  ;;  %v4034_v38 = vadd.f32 %v11346_v11, %v11342_v26  ;;  %v11358_v27 = vpop.xlane.xlu1 %3792 }
 0x780   :  { %v6621_v33 = vpop.f32.mrf.mxu0 }
 0x781   :  { %v11348_v24 = vadd.f32 %v6621_v33, %v6620_v15 }
 0x782   :  { %4032 = vadd.xlane.f32.xlu0 %v4031_v31  ;;  %v11352_v40 = vpop.f32.mrf.mxu0 }
 0x783   :  { %14362 = vst [vmem:[#allocation70_spill] sm:$0xff] %v11348_v24  ;;  %14363 = vst [vmem:[#allocation39_spill] sm:$0xff] %v11352_v40 }
 0x784   :  { %v11354_v0 = vpop.f32.mrf.mxu0 }
 0x785   :  { %14364 = vst [vmem:[#allocation152_spill] sm:$0xff] %v11354_v0 }
 0x786   :  { %4035 = vadd.xlane.f32.xlu0 %v4034_v38  ;;  %v6626_v13 = vpop.f32.mrf.mxu0  ;;  %v2879_v20 = vpop.xlane.xlu0 %2878  ;;  %v14368_v38 = vld [vmem:[#allocation27_spill] sm:$0xff] }
 0x787   :  { %7652 = vrcp.f32 %v2879_v20 }
 0x788   :  { %v6627_v16 = vpop.f32.mrf.mxu0 }
 0x789   :  { %v11360_v48 = vadd.f32 %v6627_v16, %v6626_v13  ;;  %v2876_v15 = vpop.xlane.xlu1 %2875 }
 0x78a   :  { %7654 = vrcp.f32 %v2876_v15  ;;  %v11362_v33 = vpop.f32.mrf.mxu0  ;;  %v11364_v31 = vpop.xlane.xlu0 %3801 }
 0x78b   :  { %14365 = vst [vmem:[#allocation137_spill] sm:$0xff] %v11360_v48  ;;  %14366 = vst [vmem:[#allocation114_spill] sm:$0xff] %v11362_v33  ;;  %v3714_v33 = vpop.f32.mrf.mxu1  ;;  %v14371_v48 = vld [vmem:[#allocation29_spill] sm:$0xff] }
 0x78c   :  { %v11366_v40 = vpop.f32.mrf.mxu0 }
 0x78d   :  { %14367 = vst [vmem:[#allocation82_spill] sm:$0xff] %v11366_v40  ;;  %v11368_v0 = vpop.xlane.xlu1 %3798  ;;  %v3716_v52 = vpop.f32.mrf.mxu1 }
 0x78e   :  { %v6632_v24 = vpop.f32.mrf.mxu0  ;;  %v4021_v30 = vpop.xlane.xlu0 %4020 }
 0x78f   :  { %4265 = vrot.lane.b32.xlu1 %v14368_v38, %s8119_s19  ;;  %7656 = vrcp.f32 %v4021_v30  ;;  %v3718_v44 = vpop.f32.mrf.mxu1 }
 0x790   :  { %v6633_v20 = vpop.f32.mrf.mxu0 }
 0x791   :  { %v11374_v16 = vadd.f32 %v6633_v20, %v6632_v24  ;;  %v4274_v13 = vpop.permute.xlu1 %4273  ;;  %v14373_v24 = vld [vmem:[#allocation16_spill] sm:$0xff] }
 0x792   :  { %6764 = vmatprep.subr.bf16.mxu0 %v4274_v13  ;;  %v11376_v15 = vpop.f32.mrf.mxu0 }
 0x793   :  { %14369 = vst [vmem:[#allocation115_spill] sm:$0xff] %v11374_v16  ;;  %14370 = vst [vmem:[#allocation20_spill] sm:$0xff] %v11376_v15  ;;  %4263 = vrot.lane.b32.xlu1 %v14371_v48, %s8119_s19 }
 0x794   :  { %v11380_v40 = vpop.f32.mrf.mxu0  ;;  %v7653_v23 = vpop.eup %7652 }
 0x795   :  { %14372 = vst [vmem:[#allocation144_spill] sm:$0xff] %v11380_v40  ;;  %v4024_v56 = vpop.xlane.xlu0 %4023  ;;  %v4272_v21 = vpop.permute.xlu1 %4271  ;;  %v2975_v15 = vmul.f32 %v7653_v23, %v11146_v37  ;;  %v2974_v30 = vmul.f32 %v7653_v23, %v11144_v63 }
 0x796   :  { %7658 = vrcp.f32 %v4024_v56  ;;  %v6638_v9 = vpop.f32.mrf.mxu0  ;;  %v11392_v37 = vpop.f32.mrf.mxu1 }
 0x797   :  { %v7655_v38 = vpop.eup %7654  ;;  %4247 = vrot.lane.b32.xlu1 %v14373_v24, %s8119_s19 }
 0x798   :  { %v6639_v20 = vpop.f32.mrf.mxu0  ;;  %v2973_v13 = vmul.f32 %v7655_v38, %v11157_v14  ;;  %v2972_v16 = vmul.f32 %v7655_v38, %v11155_v50  ;;  %v11394_v63 = vpop.f32.mrf.mxu1 }
 0x799   :  { %v11388_v40 = vadd.f32 %v6639_v20, %v6638_v9  ;;  %v4258_v48 = vpop.permute.xlu0 %4257  ;;  %v4256_v24 = vpop.permute.xlu1 %4255  ;;  %v14376_v9 = vld [vmem:[#allocation40_spill] sm:$0xff] }
 0x79a   :  { %6765 = vmatpush3.bf16.msra.mxu0 %v4258_v48  ;;  %v3007_v56 = vpack.c.bf16 %v2975_v15, %v2973_v13  ;;  %v3006_v42 = vpack.c.bf16 %v2974_v30, %v2972_v16  ;;  %v3839_v23 = vsub.f32 %v14376_v9, %v11182_v8  ;;  %v14379_v16 = vld [vmem:[#allocation146_spill] sm:$0xff]  ;;  %v11410_v13 = vpop.f32.mrf.mxu1  ;;  %v14381_v9 = vld [vmem:[#allocation148_spill] sm:$0xff] }
 0x79b   :  { %14374 = vst [vmem:[#allocation110_spill] sm:$0xff] %v11388_v40  ;;  %6766 = vmatprep.subr.bf16.mxu0 %v4272_v21  ;;  %v3840_v15 = vsub.f32 %v14379_v16, %v11182_v8  ;;  %v14384_v16 = vld [vmem:[#allocation134_spill] sm:$0xff]  ;;  %v11457_v40 = vpop.f32.mrf.mxu0 }
 0x79c   :  { %4249 = vrot.lane.b32.xlu0 %v14375_v10, %s8119_s19  ;;  %3208 = vmatprep.mubr.bf16.mxu0 %v3007_v56  ;;  %v7657_v50 = vpop.eup %7656  ;;  %v3915_v30 = vmul.f32 1.442695, %v3839_v23  ;;  %v14382_v23 = vld [vmem:[#allocation133_spill] sm:$0xff]  ;;  %14394 = vst [vmem:[#allocation123_spill] sm:$0xff] %v11457_v40  ;;  %v14398_v40 = vld [vmem:[#allocation24_spill] sm:$0xff] }
 0x79d   :  { %3209 = vmatmul.mubr.bf16.gmra.mxu0 %v3006_v42  ;;  %v11399_v48 = vmul.f32 %v7657_v50, %v11162_v61  ;;  %v4148_v38 = vmul.f32 %v7657_v50, %v11171_v2  ;;  %v14380_v61 = vld [vmem:[#allocation93_spill] sm:$0xff]  ;;  %v3842_v2 = vsub.f32 %v14381_v9, %v11202_v46  ;;  %v11416_v50 = vpop.f32.mrf.mxu1 }
 0x79e   :  { %6767 = vmatpush3.bf16.msra.mxu0 %v4256_v24  ;;  %v3841_v56 = vsub.f32 %v14380_v61, %v11202_v46  ;;  %7660 = vpow2.f32 %v3915_v30  ;;  %v14388_v30 = vld [vmem:[#allocation56_spill] sm:$0xff] }
 0x79f   :  { %14377 = vst [vmem:[#allocation31_spill] sm:$0xff] %v11399_v48  ;;  %v3921_v8 = vmul.f32 1.442695, %v3842_v2  ;;  %v11433_v61 = vadd.f32 %v3716_v52, %v14388_v30 }
 0x7a1   :  { %14389 = vst [vmem:[#allocation48_spill] sm:$0xff] %v11433_v61 }
 0x7a3   :  { %v7659_v14 = vpop.eup %7658 }
 0x7a4   :  { %v11402_v21 = vmul.f32 %v7659_v14, %v11190_v51  ;;  %v4150_v42 = vmul.f32 %v7659_v14, %v11192_v18  ;;  %v3917_v51 = vmul.f32 1.442695, %v3840_v15  ;;  %v3919_v18 = vmul.f32 1.442695, %v3841_v56  ;;  %v11418_v14 = vpop.f32.mrf.mxu1 }
 0x7a5   :  { %v11426_v15 = vadd.f32 %v3718_v44, %v14384_v16 }
 0x7a6   :  { %14378 = vst [vmem:[#allocation143_spill] sm:$0xff] %v11402_v21  ;;  %v4212_v24 = vpack.c.bf16 %v4150_v42, %v4148_v38  ;;  %7662 = vpow2.f32 %v3917_v51  ;;  %v11420_v38 = vpop.f32.mrf.mxu1  ;;  %v11423_v42 = vadd.f32 %v3714_v33, %v14382_v23  ;;  %v14411_v21 = vld [vmem:[#allocation78_spill] sm:$0xff] }
 0x7a7   :  { %7664 = vpow2.f32 %v3919_v18  ;;  %14385 = vst [vmem:[#allocation164_spill] sm:$0xff] %v11426_v15  ;;  %v3818_v33 = vmax.f32 %v11433_v61, %v11426_v15  ;;  %v14442_v61 = vld [vmem:[#allocation60_spill] sm:$0xff] }
 0x7a8   :  { %4323 = vmatprep.mubr.bf16.mxu0 %v4212_v24  ;;  %7666 = vpow2.f32 %v3921_v8  ;;  %14383 = vst [vmem:[#allocation154_spill] sm:$0xff] %v11423_v42  ;;  %v14386_v24 = vld [vmem:[#allocation132_spill] sm:$0xff]  ;;  %v11435_v56 = vpop.f32.mrf.mxu1 }
 0x7a9   :  { %v11430_v46 = vadd.f32 %v11370_v3, %v14386_v24 }
 0x7aa   :  { %v11445_v44 = vpop.f32.mrf.mxu1 }
 0x7ab   :  { %14387 = vst [vmem:[#allocation167_spill] sm:$0xff] %v11430_v46  ;;  %v11437_v51 = vpop.eup %7660  ;;  %v3815_v9 = vmax.f32 %v11430_v46, %v11423_v42 }
 0x7ac   :  { %14390 = vst [vmem:[#allocation166_spill] sm:$0xff] %v11437_v51  ;;  %v11453_v8 = vpop.f32.mrf.mxu1 }
 0x7ae   :  { %v11459_v30 = vpop.f32.mrf.mxu1 }
 0x7b3   :  { %v11443_v2 = vpop.eup %7662 }
 0x7b4   :  { %14391 = vst [vmem:[#allocation153_spill] sm:$0xff] %v11443_v2  ;;  %v11447_v3 = vpop.eup %7664  ;;  %v4037_v52 = vadd.f32 %v11443_v2, %v11437_v51 }
 0x7b5   :  { %14392 = vst [vmem:[#allocation76_spill] sm:$0xff] %v11447_v3  ;;  %v11451_v18 = vpop.eup %7666 }
 0x7b6   :  { %14393 = vst [vmem:[#allocation163_spill] sm:$0xff] %v11451_v18  ;;  %v4040_v20 = vadd.f32 %v11451_v18, %v11447_v3 }
 0x7bb   :  { %3816 = vmax.xlane.f32.xlu1 %v3815_v9  ;;  %3819 = vmax.xlane.f32.xlu0 %v3818_v33  ;;  %v11461_v9 = vpop.f32.mrf.mxu0  ;;  %v11463_v33 = vpop.f32.mrf.mxu1 }
 0x7bc   :  { %14395 = vst [vmem:[#allocation97_spill] sm:$0xff] %v11461_v9 }
 0x7bd   :  { %v11467_v10 = vpop.f32.mrf.mxu1 }
 0x7bf   :  { %4038 = vadd.xlane.f32.xlu0 %v4037_v52  ;;  %v11481_v51 = vpop.f32.mrf.mxu1 }
 0x7c3   :  { %4041 = vadd.xlane.f32.xlu0 %v4040_v20 }
 0x7c7   :  { %v6644_v24 = vpop.f32.mrf.mxu0 }
 0x7c9   :  { %v6645_v16 = vpop.f32.mrf.mxu0 }
 0x7ca   :  { %v11465_v23 = vpop.xlane.xlu0 %3807  ;;  %v11469_v12 = vadd.f32 %v6645_v16, %v6644_v24  ;;  %v11471_v52 = vpop.xlane.xlu1 %3804 }
 0x7cb   :  { %v11473_v62 = vpop.f32.mrf.mxu0 }
 0x7cc   :  { %14396 = vst [vmem:[#allocation161_spill] sm:$0xff] %v11469_v12  ;;  %14397 = vst [vmem:[#allocation131_spill] sm:$0xff] %v11473_v62  ;;  %4261 = vrot.lane.b32.xlu1 %v14398_v40, %s8119_s19  ;;  %v11487_v12 = vpop.f32.mrf.mxu1 }
 0x7cd   :  { %v11477_v20 = vpop.f32.mrf.mxu0 }
 0x7ce   :  { %14399 = vst [vmem:[#allocation69_spill] sm:$0xff] %v11477_v20  ;;  %v11479_v9 = vpop.xlane.xlu0 %4026  ;;  %v4270_v3 = vpop.permute.xlu1 %4269  ;;  %v14403_v20 = vld [vmem:[#allocation14_spill] sm:$0xff] }
 0x7cf   :  { %6768 = vmatprep.subr.bf16.mxu0 %v4270_v3  ;;  %v11497_v3 = vpop.f32.mrf.mxu1 }
 0x7d0   :  { %v6650_v2 = vpop.f32.mrf.mxu0  ;;  %4259 = vrot.lane.b32.xlu1 %v14400_v28, %s8119_s19 }
 0x7d2   :  { %v6651_v16 = vpop.f32.mrf.mxu0  ;;  %v11485_v24 = vpop.xlane.xlu0 %4029 }
 0x7d3   :  { %v11489_v62 = vadd.f32 %v6651_v16, %v6650_v2  ;;  %v4268_v40 = vpop.permute.xlu1 %4267 }
 0x7d4   :  { %v11491_v18 = vpop.f32.mrf.mxu0  ;;  %4243 = vrot.lane.b32.xlu1 %v14403_v20, %s8119_s19 }
 0x7d5   :  { %14401 = vst [vmem:[#allocation109_spill] sm:$0xff] %v11489_v62  ;;  %14402 = vst [vmem:[#allocation96_spill] sm:$0xff] %v11491_v18  ;;  %v11503_v18 = vpop.f32.mrf.mxu1 }
 0x7d6   :  { %v11495_v26 = vpop.f32.mrf.mxu0  ;;  %v4254_v55 = vpop.permute.xlu0 %4253 }
 0x7d7   :  { %14404 = vst [vmem:[#allocation26_spill] sm:$0xff] %v11495_v26  ;;  %6769 = vmatpush3.bf16.msra.mxu0 %v4254_v55  ;;  %v4252_v11 = vpop.permute.xlu1 %4251  ;;  %v11507_v20 = vpop.f32.mrf.mxu1  ;;  %v14409_v55 = vld [vmem:[#allocation160_spill] sm:$0xff] }
 0x7d8   :  { %v6656_v28 = vpop.f32.mrf.mxu0  ;;  %6770 = vmatprep.subr.bf16.mxu0 %v4268_v40  ;;  %v3843_v58 = vsub.f32 %v14409_v55, %v11196_v5  ;;  %v14410_v40 = vld [vmem:[#allocation73_spill] sm:$0xff] }
 0x7d9   :  { %4245 = vrot.lane.b32.xlu0 %v14405_v6, %s8119_s19  ;;  %v3844_v48 = vsub.f32 %v14410_v40, %v11196_v5 }
 0x7da   :  { %v6657_v2 = vpop.f32.mrf.mxu0  ;;  %v3923_v53 = vmul.f32 1.442695, %v3843_v58 }
 0x7db   :  { %v11501_v16 = vadd.f32 %v6657_v2, %v6656_v28  ;;  %6771 = vmatpush3.bf16.msra.mxu0 %v4252_v11  ;;  %v3845_v28 = vsub.f32 %v14411_v21, %v11212_v32  ;;  %v11517_v2 = vpop.f32.mrf.mxu1  ;;  %v14412_v11 = vld [vmem:[#allocation55_spill] sm:$0xff] }
 0x7dc   :  { %v11505_v62 = vpop.f32.mrf.mxu0  ;;  %7668 = vpow2.f32 %v3923_v53  ;;  %v14416_v21 = vld [vmem:[#allocation127_spill] sm:$0xff] }
 0x7dd   :  { %14406 = vst [vmem:[#allocation145_spill] sm:$0xff] %v11501_v16  ;;  %14407 = vst [vmem:[#allocation159_spill] sm:$0xff] %v11505_v62  ;;  %v3846_v16 = vsub.f32 %v14412_v11, %v11212_v32  ;;  %v3927_v55 = vmul.f32 1.442695, %v3845_v28  ;;  %v11525_v46 = vpop.f32.mrf.mxu1  ;;  %v3847_v15 = vsub.f32 %v14416_v21, %v11205_v60  ;;  %v14417_v32 = vld [vmem:[#allocation150_spill] sm:$0xff] }
 0x7de   :  { %v11509_v26 = vpop.f32.mrf.mxu0  ;;  %v3848_v11 = vsub.f32 %v14417_v32, %v11205_v60 }
 0x7df   :  { %14408 = vst [vmem:[#allocation59_spill] sm:$0xff] %v11509_v26  ;;  %v3925_v26 = vmul.f32 1.442695, %v3844_v48  ;;  %v3929_v5 = vmul.f32 1.442695, %v3846_v16  ;;  %v11535_v48 = vpop.f32.mrf.mxu1  ;;  %v14419_v16 = vld [vmem:[#allocation103_spill] sm:$0xff] }
 0x7e0   :  { %v6662_v6 = vpop.f32.mrf.mxu0  ;;  %v3850_v28 = vsub.f32 %v14419_v16, %v11224_v19  ;;  %v3931_v53 = vmul.f32 1.442695, %v3847_v15  ;;  %v14424_v15 = vld [vmem:[#allocation120_spill] sm:$0xff] }
 0x7e1   :  { %7670 = vpow2.f32 %v3925_v26  ;;  %v11541_v21 = vpop.f32.mrf.mxu1  ;;  %v3933_v26 = vmul.f32 1.442695, %v3848_v11 }
 0x7e2   :  { %v6663_v62 = vpop.f32.mrf.mxu0  ;;  %7672 = vpow2.f32 %v3927_v55  ;;  %v3937_v55 = vmul.f32 1.442695, %v3850_v28 }
 0x7e3   :  { %v11521_v35 = vadd.f32 %v6663_v62, %v6662_v6  ;;  %v14418_v62 = vld [vmem:[#allocation52_spill] sm:$0xff]  ;;  %7674 = vpow2.f32 %v3929_v5 }
 0x7e4   :  { %v11523_v42 = vpop.f32.mrf.mxu0  ;;  %v3849_v6 = vsub.f32 %v14418_v62, %v11224_v19  ;;  %7676 = vpow2.f32 %v3931_v53  ;;  %v11547_v62 = vpop.f32.mrf.mxu1  ;;  %v14423_v5 = vld [vmem:[#allocation100_spill] sm:$0xff]  ;;  %v14429_v53 = vld [vmem:[#allocation18_spill] sm:$0xff] }
 0x7e5   :  { %14413 = vst [vmem:[#allocation147_spill] sm:$0xff] %v11521_v35  ;;  %14414 = vst [vmem:[#allocation40_spill] sm:$0xff] %v11523_v42  ;;  %7678 = vpow2.f32 %v3933_v26  ;;  %v3851_v19 = vsub.f32 %v14423_v5, %v11216_v22  ;;  %v3854_v26 = vsub.f32 %v14429_v53, %v11234_v34  ;;  %v14430_v5 = vld [vmem:[#allocation149_spill] sm:$0xff] }
 0x7e6   :  { %v11527_v40 = vpop.f32.mrf.mxu0  ;;  %v3935_v60 = vmul.f32 1.442695, %v3849_v6  ;;  %v14427_v6 = vld [vmem:[#allocation139_spill] sm:$0xff] }
 0x7e7   :  { %14415 = vst [vmem:[#allocation146_spill] sm:$0xff] %v11527_v40  ;;  %v11559_v28 = vadd.f32 %v11416_v50, %v14427_v6  ;;  %v3939_v6 = vmul.f32 1.442695, %v3851_v19 }
 0x7e8   :  { %v6668_v58 = vpop.f32.mrf.mxu0  ;;  %7680 = vpow2.f32 %v3935_v60 }
 0x7e9   :  { %14428 = vst [vmem:[#allocation78_spill] sm:$0xff] %v11559_v28  ;;  %7682 = vpow2.f32 %v3937_v55  ;;  %v11577_v55 = vpop.f32.mrf.mxu1 }
 0x7ea   :  { %v6669_v40 = vpop.f32.mrf.mxu0  ;;  %7684 = vpow2.f32 %v3939_v6  ;;  %v14446_v6 = vld [vmem:[#allocation22_spill] sm:$0xff] }
 0x7eb   :  { %v11539_v42 = vadd.f32 %v6669_v40, %v6668_v58  ;;  %v3853_v40 = vsub.f32 %v14424_v15, %v11234_v34  ;;  %v14425_v58 = vld [vmem:[#allocation136_spill] sm:$0xff]  ;;  %v14433_v15 = vld [vmem:[#allocation135_spill] sm:$0xff]  ;;  %v11593_v19 = vpop.f32.mrf.mxu1 }
 0x7ec   :  { %v11543_v35 = vpop.f32.mrf.mxu0  ;;  %v11555_v11 = vadd.f32 %v11394_v63, %v14425_v58  ;;  %v11571_v63 = vadd.f32 %v11392_v37, %v14433_v15  ;;  %v14435_v58 = vld [vmem:[#allocation138_spill] sm:$0xff] }
 0x7ed   :  { %14420 = vst [vmem:[#allocation93_spill] sm:$0xff] %v11539_v42  ;;  %14421 = vst [vmem:[#allocation148_spill] sm:$0xff] %v11543_v35  ;;  %v3852_v35 = vsub.f32 %v14430_v5, %v11216_v22  ;;  %v11567_v42 = vpop.eup %7668  ;;  %v11575_v50 = vadd.f32 %v11410_v13, %v14435_v58  ;;  %v3943_v22 = vmul.f32 1.442695, %v3853_v40  ;;  %v3945_v5 = vmul.f32 1.442695, %v3854_v26 }
 0x7ee   :  { %v11545_v32 = vpop.f32.mrf.mxu0  ;;  %14426 = vst [vmem:[#allocation73_spill] sm:$0xff] %v11555_v11  ;;  %14432 = vst [vmem:[#allocation127_spill] sm:$0xff] %v11567_v42  ;;  %v11581_v53 = vpop.eup %7670 }
 0x7ef   :  { %14422 = vst [vmem:[#allocation160_spill] sm:$0xff] %v11545_v32  ;;  %14434 = vst [vmem:[#allocation150_spill] sm:$0xff] %v11571_v63  ;;  %v3824_v37 = vmax.f32 %v11575_v50, %v11559_v28  ;;  %v3941_v58 = vmul.f32 1.442695, %v3852_v35  ;;  %7686 = vpow2.f32 %v3943_v22  ;;  %v14445_v35 = vld [vmem:[#allocation51_spill] sm:$0xff]  ;;  %v11607_v28 = vpop.f32.mrf.mxu1 }
 0x7f0   :  { %v6674_v16 = vpop.f32.mrf.mxu0  ;;  %14437 = vst [vmem:[#allocation103_spill] sm:$0xff] %v11581_v53  ;;  %7688 = vpow2.f32 %v3945_v5 }
 0x7f1   :  { %7690 = vpow2.f32 %v3941_v58 }
 0x7f2   :  { %v6675_v32 = vpop.f32.mrf.mxu0 }
 0x7f3   :  { %v11565_v60 = vadd.f32 %v6675_v32, %v6674_v16  ;;  %v11583_v32 = vpop.eup %7672  ;;  %v3821_v16 = vmax.f32 %v11571_v63, %v11555_v11  ;;  %v11599_v11 = vadd.f32 %v11420_v38, %v14442_v61  ;;  %v14444_v63 = vld [vmem:[#allocation38_spill] sm:$0xff]  ;;  %v4043_v38 = vadd.f32 %v11581_v53, %v11567_v42  ;;  %v14447_v61 = vld [vmem:[#allocation119_spill] sm:$0xff]  ;;  %v14458_v42 = vld [vmem:[#allocation32_spill] sm:$0xff] }
 0x7f4   :  { %v11579_v34 = vpop.f32.mrf.mxu0  ;;  %14438 = vst [vmem:[#allocation100_spill] sm:$0xff] %v11583_v32  ;;  %v11591_v13 = vpop.eup %7674  ;;  %v11603_v26 = vadd.f32 %v11445_v44, %v14444_v63  ;;  %v3856_v44 = vsub.f32 %v14447_v61, %v11232_v39 }
 0x7f5   :  { %14431 = vst [vmem:[#allocation55_spill] sm:$0xff] %v11565_v60  ;;  %14436 = vst [vmem:[#allocation52_spill] sm:$0xff] %v11579_v34  ;;  %v14441_v34 = vld [vmem:[#allocation77_spill] sm:$0xff]  ;;  %v11619_v22 = vpop.eup %7676  ;;  %v11639_v61 = vpop.f32.mrf.mxu1 }
 0x7f6   :  { %v11589_v60 = vpop.f32.mrf.mxu0  ;;  %14440 = vst [vmem:[#allocation18_spill] sm:$0xff] %v11591_v13  ;;  %v3855_v40 = vsub.f32 %v14441_v34, %v11232_v39  ;;  %14443 = vst [vmem:[#allocation149_spill] sm:$0xff] %v11599_v11  ;;  %v3858_v34 = vsub.f32 %v14446_v6, %v11248_v45  ;;  %v11631_v58 = vpop.eup %7678 }
 0x7f7   :  { %14439 = vst [vmem:[#allocation120_spill] sm:$0xff] %v11589_v60  ;;  %v3857_v60 = vsub.f32 %v14445_v35, %v11248_v45  ;;  %14449 = vst [vmem:[#allocation60_spill] sm:$0xff] %v11619_v22  ;;  %v14450_v35 = vld [vmem:[#allocation57_spill] sm:$0xff]  ;;  %v14451_v45 = vld [vmem:[#allocation71_spill] sm:$0xff]  ;;  %v11653_v53 = vpop.f32.mrf.mxu1 }
 0x7f8   :  { %v6680_v15 = vpop.f32.mrf.mxu0  ;;  %3822 = vmax.xlane.f32.xlu1 %v3821_v16  ;;  %3825 = vmax.xlane.f32.xlu0 %v3824_v37  ;;  %v4046_v37 = vadd.f32 %v11591_v13, %v11583_v32  ;;  %v11623_v5 = vadd.f32 %v11418_v14, %v14450_v35  ;;  %v11627_v6 = vadd.f32 %v11435_v56, %v14451_v45  ;;  %v3947_v32 = vmul.f32 1.442695, %v3855_v40 }
 0x7f9   :  { %14453 = vst [vmem:[#allocation51_spill] sm:$0xff] %v11631_v58  ;;  %v3951_v39 = vmul.f32 1.442695, %v3857_v60  ;;  %v3953_v56 = vmul.f32 1.442695, %v3858_v34  ;;  %v3861_v34 = vsub.f32 %v14458_v42, %v11256_v49  ;;  %v14462_v42 = vld [vmem:[#allocation41_spill] sm:$0xff] }
 0x7fa   :  { %v6681_v16 = vpop.f32.mrf.mxu0  ;;  %v4969_v14 = vmax.f32 %v11627_v6, %v11603_v26  ;;  %7692 = vpow2.f32 %v3947_v32 }
 0x7fb   :  { %v11617_v63 = vadd.f32 %v6681_v16, %v6680_v15  ;;  %v11633_v15 = vpop.eup %7680  ;;  %v4966_v16 = vmax.f32 %v11623_v5, %v11599_v11  ;;  %7694 = vpow2.f32 %v3951_v39 }
 0x7fc   :  { %v11629_v13 = vpop.f32.mrf.mxu0  ;;  %4047 = vadd.xlane.f32.xlu0 %v4046_v37  ;;  %4044 = vadd.xlane.f32.xlu1 %v4043_v38  ;;  %v11643_v40 = vpop.eup %7682  ;;  %v3949_v37 = vmul.f32 1.442695, %v3856_v44  ;;  %v14455_v38 = vld [vmem:[#allocation104_spill] sm:$0xff]  ;;  %7696 = vpow2.f32 %v3953_v56  ;;  %v14464_v56 = vld [vmem:[#allocation47_spill] sm:$0xff] }
 0x7fd   :  { %14448 = vst [vmem:[#allocation77_spill] sm:$0xff] %v11617_v63  ;;  %14452 = vst [vmem:[#allocation38_spill] sm:$0xff] %v11629_v13  ;;  %v3859_v60 = vsub.f32 %v14455_v38, %v11250_v4  ;;  %v14456_v13 = vld [vmem:[#allocation63_spill] sm:$0xff]  ;;  %v14459_v44 = vld [vmem:[#allocation156_spill] sm:$0xff]  ;;  %v4052_v38 = vadd.f32 %v11643_v40, %v11633_v15 }
 0x7fe   :  { %v11641_v35 = vpop.f32.mrf.mxu0  ;;  %v11649_v63 = vadd.f32 %v11467_v10, %v14456_v13  ;;  %v3862_v32 = vsub.f32 %v14459_v44, %v11256_v49  ;;  %7698 = vpow2.f32 %v3949_v37  ;;  %v3860_v13 = vsub.f32 %v14462_v42, %v11250_v4 }
 0x7ff   :  { %14454 = vst [vmem:[#allocation22_spill] sm:$0xff] %v11641_v35  ;;  %v11671_v49 = vadd.f32 %v11463_v33, %v14464_v56  ;;  %v3955_v44 = vmul.f32 1.442695, %v3859_v60  ;;  %v3959_v37 = vmul.f32 1.442695, %v3861_v34  ;;  %v14472_v34 = vld [vmem:[#allocation157_spill] sm:$0xff] }
 0x800   :  { %v6686_v45 = vpop.f32.mrf.mxu0  ;;  %4970 = vmax.xlane.f32.xlu0 %v4969_v14  ;;  %4967 = vmax.xlane.f32.xlu1 %v4966_v16  ;;  %14457 = vst [vmem:[#allocation119_spill] sm:$0xff] %v11649_v63  ;;  %v4049_v16 = vadd.f32 %v11631_v58, %v11619_v22  ;;  %v14460_v14 = vld [vmem:[#allocation68_spill] sm:$0xff]  ;;  %v11675_v22 = vpop.eup %7684  ;;  %v14468_v58 = vld [vmem:[#allocation46_spill] sm:$0xff]  ;;  %v3961_v33 = vmul.f32 1.442695, %v3862_v32  ;;  %v3863_v56 = vsub.f32 %v14472_v34, %v11292_v54  ;;  %v14473_v32 = vld [vmem:[#allocation35_spill] sm:$0xff] }
 0x801   :  { %v11663_v10 = vadd.f32 %v11459_v30, %v14460_v14  ;;  %14465 = vst [vmem:[#allocation104_spill] sm:$0xff] %v11671_v49  ;;  %14467 = vst [vmem:[#allocation32_spill] sm:$0xff] %v11675_v22  ;;  %v11679_v30 = vadd.f32 %v11453_v8, %v14468_v58  ;;  %v11681_v14 = vpop.eup %7686  ;;  %v4975_v4 = vmax.f32 %v11671_v49, %v11649_v63  ;;  %7700 = vpow2.f32 %v3955_v44  ;;  %v14476_v49 = vld [vmem:[#allocation62_spill] sm:$0xff] }
 0x802   :  { %v6687_v35 = vpop.f32.mrf.mxu0  ;;  %7702 = vpow2.f32 %v3959_v37  ;;  %v14478_v44 = vld [vmem:[#allocation30_spill] sm:$0xff] }
 0x803   :  { %14461 = vst [vmem:[#allocation57_spill] sm:$0xff] %v11663_v10  ;;  %v11667_v39 = vadd.f32 %v6687_v35, %v6686_v45  ;;  %14469 = vst [vmem:[#allocation156_spill] sm:$0xff] %v11679_v30  ;;  %v11685_v35 = vpop.f32.mrf.mxu1  ;;  %v11689_v45 = vpop.eup %7688  ;;  %7704 = vpow2.f32 %v3961_v33  ;;  %v3866_v34 = vsub.f32 %v14478_v44, %v11296_v36 }
 0x804   :  { %v11673_v11 = vpop.f32.mrf.mxu0  ;;  %4053 = vadd.xlane.f32.xlu0 %v4052_v38  ;;  %4050 = vadd.xlane.f32.xlu1 %v4049_v16  ;;  %v4972_v38 = vmax.f32 %v11679_v30, %v11663_v10  ;;  %v3957_v16 = vmul.f32 1.442695, %v3860_v13  ;;  %v11697_v58 = vpop.eup %7690  ;;  %v14475_v13 = vld [vmem:[#allocation79_spill] sm:$0xff]  ;;  %v11711_v10 = vadd.f32 %v11503_v18, %v14476_v49  ;;  %v14481_v49 = vld [vmem:[#allocation54_spill] sm:$0xff] }
 0x805   :  { %14463 = vst [vmem:[#allocation71_spill] sm:$0xff] %v11667_v39  ;;  %14466 = vst [vmem:[#allocation63_spill] sm:$0xff] %v11673_v11  ;;  %v11705_v39 = vpop.f32.mrf.mxu1  ;;  %v3865_v63 = vsub.f32 %v14475_v13, %v11296_v36  ;;  %v4055_v18 = vadd.f32 %v11697_v58, %v11675_v22  ;;  %v11727_v33 = vadd.f32 %v11497_v3, %v14481_v49  ;;  %v3963_v36 = vmul.f32 1.442695, %v3863_v56 }
 0x806   :  { %v11687_v60 = vpop.f32.mrf.mxu0  ;;  %14471 = vst [vmem:[#allocation41_spill] sm:$0xff] %v11697_v58  ;;  %14477 = vst [vmem:[#allocation46_spill] sm:$0xff] %v11711_v10  ;;  %7706 = vpow2.f32 %v3957_v16  ;;  %v3969_v56 = vmul.f32 1.442695, %v3866_v34 }
 0x807   :  { %14470 = vst [vmem:[#allocation68_spill] sm:$0xff] %v11687_v60  ;;  %v11693_v42 = vpop.xlane.xlu0 %3813  ;;  %v11695_v8 = vpop.xlane.xlu1 %3810  ;;  %v11703_v60 = vadd.f32 %v11487_v12, %v14473_v32  ;;  %v4058_v12 = vadd.f32 %v11689_v45, %v11681_v14  ;;  %v14479_v32 = vld [vmem:[#allocation162_spill] sm:$0xff]  ;;  %14482 = vst [vmem:[#allocation35_spill] sm:$0xff] %v11727_v33  ;;  %v4981_v3 = vmax.f32 %v11727_v33, %v11711_v10  ;;  %7708 = vpow2.f32 %v3963_v36 }
 0x808   :  { %v6692_v11 = vpop.f32.mrf.mxu0  ;;  %4976 = vmax.xlane.f32.xlu0 %v4975_v4  ;;  %4973 = vmax.xlane.f32.xlu1 %v4972_v38  ;;  %v3864_v37 = vsub.f32 %v14479_v32, %v11292_v54  ;;  %v11731_v16 = vpop.eup %7692  ;;  %v14484_v54 = vld [vmem:[#allocation65_spill] sm:$0xff]  ;;  %v3967_v32 = vmul.f32 1.442695, %v3865_v63  ;;  %v14487_v63 = vld [vmem:[#allocation66_spill] sm:$0xff] }
 0x809   :  { %14474 = vst [vmem:[#allocation47_spill] sm:$0xff] %v11703_v60  ;;  %v14488_v10 = vld [vmem:[#allocation74_spill] sm:$0xff] }
 0x80a   :  { %v6693_v4 = vpop.f32.mrf.mxu0  ;;  %v11757_v34 = vadd.f32 %v11517_v2, %v14488_v10  ;;  %7710 = vpow2.f32 %v3967_v32  ;;  %v14493_v10 = vld [vmem:[#allocation106_spill] sm:$0xff] }
 0x80b   :  { %v11719_v30 = vadd.f32 %v6693_v4, %v6692_v11  ;;  %v11721_v13 = vpop.xlane.xlu0 %4032  ;;  %v4266_v38 = vpop.permute.xlu1 %4265  ;;  %v11735_v11 = vadd.f32 %v11481_v51, %v14484_v54  ;;  %7712 = vpow2.f32 %v3969_v56  ;;  %v3868_v32 = vsub.f32 %v14493_v10, %v11358_v27 }
 0x80c   :  { %v11729_v44 = vpop.f32.mrf.mxu0  ;;  %4059 = vadd.xlane.f32.xlu0 %v4058_v12  ;;  %6772 = vmatprep.subr.bf16.mxu0 %v4266_v38  ;;  %v11737_v4 = vpop.f32.mrf.mxu1  ;;  %14489 = vst [vmem:[#allocation162_spill] sm:$0xff] %v11757_v34 }
 0x80d   :  { %14480 = vst [vmem:[#allocation157_spill] sm:$0xff] %v11719_v30  ;;  %14483 = vst [vmem:[#allocation79_spill] sm:$0xff] %v11729_v44  ;;  %4056 = vadd.xlane.f32.xlu1 %v4055_v18  ;;  %v11739_v30 = vpop.eup %7694  ;;  %v4978_v38 = vmax.f32 %v11735_v11, %v11703_v60  ;;  %v3965_v44 = vmul.f32 1.442695, %v3864_v37  ;;  %v3867_v18 = vsub.f32 %v14487_v63, %v11358_v27  ;;  %v14490_v60 = vld [vmem:[#allocation81_spill] sm:$0xff] }
 0x80e   :  { %14485 = vst [vmem:[#allocation62_spill] sm:$0xff] %v11735_v11  ;;  %v11743_v49 = vpop.f32.mrf.mxu0  ;;  %v11745_v12 = vpop.eup %7696  ;;  %v3869_v37 = vsub.f32 %v11123_v25, %v11350_v17  ;;  %v11765_v36 = vadd.f32 %v11535_v48, %v14490_v60  ;;  %v14492_v63 = vld [vmem:[#allocation141_spill] sm:$0xff]  ;;  %v14495_v48 = vld [vmem:[#allocation80_spill] sm:$0xff] }
 0x80f   :  { %14486 = vst [vmem:[#allocation30_spill] sm:$0xff] %v11743_v49  ;;  %v11749_v51 = vpop.xlane.xlu0 %4035  ;;  %v11751_v54 = vpop.eup %7698  ;;  %v4064_v2 = vadd.f32 %v11745_v12, %v11739_v30  ;;  %7714 = vpow2.f32 %v3965_v44  ;;  %v11779_v60 = vadd.f32 %v11525_v46, %v14495_v48  ;;  %v3971_v56 = vmul.f32 1.442695, %v3867_v18 }
 0x810   :  { %v6698_v22 = vpop.f32.mrf.mxu0  ;;  %4982 = vmax.xlane.f32.xlu0 %v4981_v3  ;;  %v11759_v49 = vpop.f32.mrf.mxu1  ;;  %14491 = vst [vmem:[#allocation54_spill] sm:$0xff] %v11765_v36  ;;  %v3870_v3 = vsub.f32 %v14492_v63, %v11350_v17  ;;  %v14497_v63 = vld [vmem:[#allocation61_spill] sm:$0xff] }
 0x811   :  { %v4264_v33 = vpop.permute.xlu1 %4263  ;;  %4979 = vmax.xlane.f32.xlu1 %v4978_v38  ;;  %v4061_v38 = vadd.f32 %v11751_v54, %v11731_v16  ;;  %14496 = vst [vmem:[#allocation66_spill] sm:$0xff] %v11779_v60  ;;  %v11781_v17 = vpop.eup %7700  ;;  %v11785_v44 = vadd.f32 %v11507_v20, %v14497_v63  ;;  %v4987_v46 = vmax.f32 %v11779_v60, %v11765_v36  ;;  %v3973_v20 = vmul.f32 1.442695, %v3868_v32  ;;  %v14503_v32 = vld [vmem:[#allocation50_spill] sm:$0xff] }
 0x812   :  { %v6699_v11 = vpop.f32.mrf.mxu0  ;;  %v11787_v27 = vpop.f32.mrf.mxu1  ;;  %v3977_v10 = vmul.f32 1.442695, %v3870_v3  ;;  %7716 = vpow2.f32 %v3971_v56  ;;  %v14500_v3 = vld [vmem:[#allocation67_spill] sm:$0xff]  ;;  %v3871_v60 = vsub.f32 %v14503_v32, %v11368_v0  ;;  %v14510_v32 = vld [vmem:[#allocation84_spill] sm:$0xff] }
 0x813   :  { %v11773_v58 = vadd.f32 %v6699_v11, %v6698_v22  ;;  %v4250_v25 = vpop.permute.xlu0 %4249  ;;  %14498 = vst [vmem:[#allocation74_spill] sm:$0xff] %v11785_v44  ;;  %v3975_v22 = vmul.f32 1.442695, %v3869_v37  ;;  %v11789_v11 = vpop.eup %7702 }
 0x814   :  { %4065 = vadd.xlane.f32.xlu0 %v4064_v2  ;;  %6773 = vmatpush3.bf16.msra.mxu0 %v4250_v25  ;;  %v11793_v18 = vpop.eup %7704  ;;  %v4984_v2 = vmax.f32 %v11785_v44, %v11757_v34  ;;  %v11797_v25 = vpop.f32.mrf.mxu1  ;;  %v14582_v44 = vld [vmem:[#allocation153_spill] sm:$0xff] }
 0x815   :  { %14494 = vst [vmem:[#allocation65_spill] sm:$0xff] %v11773_v58  ;;  %4062 = vadd.xlane.f32.xlu1 %v4061_v38  ;;  %6774 = vmatprep.subr.bf16.mxu0 %v4264_v33  ;;  %v4248_v48 = vpop.permute.xlu1 %4247  ;;  %v11799_v63 = vpop.eup %7706  ;;  %v14499_v33 = vld [vmem:[#allocation37_spill] sm:$0xff]  ;;  %7718 = vpow2.f32 %v3975_v22  ;;  %v3874_v38 = vsub.f32 %v14500_v3, %v11364_v31  ;;  %v14501_v58 = vld [vmem:[#allocation86_spill] sm:$0xff]  ;;  %v4070_v56 = vadd.f32 %v11793_v18, %v11789_v11 }
 0x816   :  { %v3873_v37 = vsub.f32 %v14499_v33, %v11364_v31  ;;  %v11807_v36 = vadd.f32 %v11593_v19, %v14501_v58  ;;  %7720 = vpow2.f32 %v3977_v10  ;;  %v11811_v34 = vpop.f32.mrf.mxu0  ;;  %v14507_v31 = vld [vmem:[#allocation83_spill] sm:$0xff]  ;;  %v4067_v58 = vadd.f32 %v11799_v63, %v11781_v17  ;;  %v11829_v3 = vpop.eup %7708 }
 0x817   :  { %14504 = vst [vmem:[#allocation141_spill] sm:$0xff] %v11811_v34  ;;  %7722 = vpow2.f32 %v3973_v20  ;;  %v3872_v19 = vsub.f32 %v14507_v31, %v11368_v0  ;;  %v14508_v10 = vld [vmem:[#allocation75_spill] sm:$0xff]  ;;  %v11835_v20 = vpop.eup %7710  ;;  %v3979_v31 = vmul.f32 1.442695, %v3871_v60 }
 0x818   :  { %4988 = vmax.xlane.f32.xlu0 %v4987_v46  ;;  %6775 = vmatpush3.bf16.msra.mxu0 %v4248_v48  ;;  %14502 = vst [vmem:[#allocation81_spill] sm:$0xff] %v11807_v36  ;;  %v14505_v46 = vld [vmem:[#allocation85_spill] sm:$0xff]  ;;  %v11819_v48 = vpop.f32.mrf.mxu1  ;;  %v3983_v33 = vmul.f32 1.442695, %v3873_v37  ;;  %v11839_v34 = vpop.f32.mrf.mxu0 }
 0x819   :  { %4985 = vmax.xlane.f32.xlu1 %v4984_v2  ;;  %v11817_v22 = vadd.f32 %v11547_v62, %v14505_v46  ;;  %v11827_v2 = vadd.f32 %v11577_v55, %v14508_v10  ;;  %v11833_v62 = vadd.f32 %v11541_v21, %v14510_v32  ;;  %v3985_v46 = vmul.f32 1.442695, %v3874_v38  ;;  %14512 = vst [vmem:[#allocation37_spill] sm:$0xff] %v11839_v34  ;;  %v11841_v55 = vpop.eup %7712  ;;  %v14513_v32 = vld [vmem:[#allocation88_spill] sm:$0xff] }
 0x81a   :  { %v3981_v10 = vmul.f32 1.442695, %v3872_v19  ;;  %7724 = vpow2.f32 %v3983_v33  ;;  %v3877_v38 = vsub.f32 %v11272_v47, %v11465_v23  ;;  %v11853_v60 = vadd.f32 %v11639_v61, %v14513_v32 }
 0x81b   :  { %14506 = vst [vmem:[#allocation106_spill] sm:$0xff] %v11817_v22  ;;  %14509 = vst [vmem:[#allocation80_spill] sm:$0xff] %v11827_v2  ;;  %v4993_v0 = vmax.f32 %v11827_v2, %v11807_v36  ;;  %v4990_v37 = vmax.f32 %v11833_v62, %v11817_v22  ;;  %7726 = vpow2.f32 %v3985_v46  ;;  %v3878_v34 = vsub.f32 %v11262_v41, %v11465_v23  ;;  %v14515_v22 = vld [vmem:[#allocation90_spill] sm:$0xff]  ;;  %v14518_v23 = vld [vmem:[#allocation89_spill] sm:$0xff] }
 0x81c   :  { %4071 = vadd.xlane.f32.xlu0 %v4070_v56  ;;  %14511 = vst [vmem:[#allocation61_spill] sm:$0xff] %v11833_v62  ;;  %v11845_v56 = vpop.f32.mrf.mxu1  ;;  %v11847_v21 = vpop.eup %7714  ;;  %14514 = vst [vmem:[#allocation67_spill] sm:$0xff] %v11853_v60  ;;  %v11859_v19 = vadd.f32 %v11685_v35, %v14515_v22  ;;  %7728 = vpow2.f32 %v3979_v31  ;;  %v3875_v33 = vsub.f32 %v11269_v1, %v11471_v52  ;;  %v3991_v22 = vmul.f32 1.442695, %v3877_v38  ;;  %v14520_v31 = vld [vmem:[#allocation87_spill] sm:$0xff] }
 0x81d   :  { %4068 = vadd.xlane.f32.xlu1 %v4067_v58  ;;  %7730 = vpow2.f32 %v3981_v10  ;;  %v3876_v61 = vsub.f32 %v11259_v29, %v11471_v52  ;;  %v4073_v41 = vadd.f32 %v11847_v21, %v11829_v3  ;;  %v11873_v35 = vadd.f32 %v11653_v53, %v14518_v23 }
 0x81e   :  { %14516 = vst [vmem:[#allocation86_spill] sm:$0xff] %v11859_v19  ;;  %v4883_v62 = vpop.f32.mrf.mxu1  ;;  %v3993_v29 = vmul.f32 1.442695, %v3878_v34  ;;  %v3987_v32 = vmul.f32 1.442695, %v3875_v33  ;;  %7732 = vpow2.f32 %v3991_v22  ;;  %v14522_v33 = vld [vmem:[#allocation95_spill] sm:$0xff] }
 0x81f   :  { %14519 = vst [vmem:[#allocation85_spill] sm:$0xff] %v11873_v35  ;;  %v11875_v1 = vpop.eup %7716  ;;  %v11899_v23 = vadd.f32 %v11787_v27, %v14522_v33  ;;  %v14526_v27 = vld [vmem:[#allocation94_spill] sm:$0xff] }
 0x820   :  { %4994 = vmax.xlane.f32.xlu0 %v4993_v0  ;;  %v6704_v58 = vpop.f32.mrf.mxu0  ;;  %v4076_v0 = vadd.f32 %v11841_v55, %v11835_v20  ;;  %v11881_v10 = vpop.f32.mrf.mxu1  ;;  %7734 = vpow2.f32 %v3993_v29  ;;  %v11915_v29 = vadd.f32 %v11759_v49, %v14526_v27  ;;  %v14532_v27 = vld [vmem:[#allocation99_spill] sm:$0xff] }
 0x821   :  { %4991 = vmax.xlane.f32.xlu1 %v4990_v37  ;;  %v11879_v37 = vadd.f32 %v11607_v28, %v14520_v31  ;;  %v3881_v28 = vsub.f32 %v11332_v57, %v11693_v42  ;;  %14523 = vst [vmem:[#allocation75_spill] sm:$0xff] %v11899_v23  ;;  %7736 = vpow2.f32 %v3987_v32  ;;  %v14524_v31 = vld [vmem:[#allocation92_spill] sm:$0xff]  ;;  %v14528_v32 = vld [vmem:[#allocation91_spill] sm:$0xff] }
 0x822   :  { %v6705_v47 = vpop.f32.mrf.mxu0  ;;  %v11883_v52 = vpop.eup %7718  ;;  %v11907_v57 = vadd.f32 %v11737_v4, %v14524_v31  ;;  %14527 = vst [vmem:[#allocation88_spill] sm:$0xff] %v11915_v29 }
 0x823   :  { %v11867_v46 = vadd.f32 %v6705_v47, %v6704_v58  ;;  %14521 = vst [vmem:[#allocation83_spill] sm:$0xff] %v11879_v37  ;;  %v4999_v58 = vmax.f32 %v11873_v35, %v11859_v19  ;;  %v11887_v53 = vpop.eup %7720  ;;  %v4996_v38 = vmax.f32 %v11879_v37, %v11853_v60  ;;  %v3989_v47 = vmul.f32 1.442695, %v3876_v61  ;;  %v4889_v34 = vpop.f32.mrf.mxu1  ;;  %v14557_v60 = vld [vmem:[#allocation154_spill] sm:$0xff]  ;;  %v14574_v35 = vld [vmem:[#allocation44_spill] sm:$0xff] }
 0x824   :  { %4077 = vadd.xlane.f32.xlu0 %v4076_v0  ;;  %v11891_v0 = vpop.eup %7722  ;;  %v3879_v61 = vsub.f32 %v11329_v59, %v11695_v8  ;;  %v4082_v22 = vadd.f32 %v11887_v53, %v11883_v52  ;;  %14525 = vst [vmem:[#allocation84_spill] sm:$0xff] %v11907_v57 }
 0x825   :  { %14517 = vst [vmem:[#allocation50_spill] sm:$0xff] %v11867_v46  ;;  %4074 = vadd.xlane.f32.xlu1 %v4073_v41  ;;  %v3882_v41 = vsub.f32 %v11326_v7, %v11693_v42  ;;  %7738 = vpow2.f32 %v3989_v47  ;;  %v3880_v7 = vsub.f32 %v11323_v43, %v11695_v8  ;;  %v4079_v42 = vadd.f32 %v11891_v0, %v11875_v1  ;;  %v4891_v4 = vpop.f32.mrf.mxu1 }
 0x826   :  { %v5005_v43 = vmax.f32 %v11915_v29, %v11899_v23  ;;  %v3995_v8 = vmul.f32 1.442695, %v3879_v61 }
 0x827   :  { %v11917_v59 = vpop.eup %7724  ;;  %v4001_v47 = vmul.f32 1.442695, %v3882_v41  ;;  %v14530_v41 = vld [vmem:[#allocation102_spill] sm:$0xff] }
 0x828   :  { %5000 = vmax.xlane.f32.xlu0 %v4999_v58  ;;  %v3999_v58 = vmul.f32 1.442695, %v3881_v28  ;;  %v11923_v33 = vpop.eup %7726  ;;  %v3997_v28 = vmul.f32 1.442695, %v3880_v7 }
 0x829   :  { %4997 = vmax.xlane.f32.xlu1 %v4996_v38  ;;  %v11921_v38 = vadd.f32 %v11705_v39, %v14528_v32  ;;  %v11927_v31 = vpop.eup %7728  ;;  %v4893_v39 = vpop.f32.mrf.mxu1  ;;  %v4088_v61 = vadd.f32 %v11923_v33, %v11917_v59  ;;  %v11940_v32 = vadd.f32 %v11819_v48, %v14532_v27 }
 0x82a   :  { %7740 = vpow2.f32 %v3999_v58  ;;  %v14534_v58 = vld [vmem:[#allocation101_spill] sm:$0xff] }
 0x82b   :  { %14529 = vst [vmem:[#allocation90_spill] sm:$0xff] %v11921_v38  ;;  %v5002_v49 = vmax.f32 %v11921_v38, %v11907_v57  ;;  %7742 = vpow2.f32 %v4001_v47  ;;  %14533 = vst [vmem:[#allocation87_spill] sm:$0xff] %v11940_v32  ;;  %v4897_v46 = vpop.f32.mrf.mxu1  ;;  %v11946_v47 = vadd.f32 %v11845_v56, %v14534_v58  ;;  %v14542_v57 = vld [vmem:[#allocation107_spill] sm:$0xff] }
 0x82c   :  { %4083 = vadd.xlane.f32.xlu0 %v4082_v22  ;;  %v11931_v22 = vpop.eup %7730  ;;  %7744 = vpow2.f32 %v3995_v8 }
 0x82d   :  { %4080 = vadd.xlane.f32.xlu1 %v4079_v42  ;;  %v11934_v42 = vadd.f32 %v4883_v62, %v14530_v41  ;;  %7746 = vpow2.f32 %v3997_v28  ;;  %v4085_v7 = vadd.f32 %v11931_v22, %v11927_v31  ;;  %14535 = vst [vmem:[#allocation95_spill] sm:$0xff] %v11946_v47  ;;  %v11948_v62 = vpop.eup %7732  ;;  %v4899_v56 = vpop.f32.mrf.mxu1 }
 0x82e   :  { %7748 = vrcp.f32 %v11485_v24  ;;  %v14556_v24 = vld [vmem:[#allocation167_spill] sm:$0xff] }
 0x82f   :  { %14531 = vst [vmem:[#allocation89_spill] sm:$0xff] %v11934_v42  ;;  %v5011_v48 = vmax.f32 %v11946_v47, %v11934_v42  ;;  %v4901_v42 = vpop.f32.mrf.mxu1  ;;  %7750 = vrcp.f32 %v11479_v9 }
 0x830   :  { %5006 = vmax.xlane.f32.xlu0 %v5005_v43  ;;  %v14536_v43 = vld [vmem:[#allocation98_spill] sm:$0xff]  ;;  %7752 = vrcp.f32 %v11749_v51 }
 0x831   :  { %5003 = vmax.xlane.f32.xlu1 %v5002_v49  ;;  %v11952_v8 = vadd.f32 %v11797_v25, %v14536_v43  ;;  %v11954_v49 = vpop.eup %7734 }
 0x832   :  { %v11958_v28 = vpop.eup %7736  ;;  %v4094_v25 = vadd.f32 %v11954_v49, %v11948_v62 }
 0x833   :  { %14537 = vst [vmem:[#allocation92_spill] sm:$0xff] %v11952_v8  ;;  %v5008_v41 = vmax.f32 %v11952_v8, %v11940_v32  ;;  %v11962_v27 = vpop.eup %7738  ;;  %v11975_v32 = vadd.f32 %v4891_v4, %v14542_v57  ;;  %v4903_v57 = vpop.f32.mrf.mxu1 }
 0x834   :  { %4089 = vadd.xlane.f32.xlu0 %v4088_v61  ;;  %v14538_v61 = vld [vmem:[#allocation108_spill] sm:$0xff]  ;;  %v4091_v47 = vadd.f32 %v11962_v27, %v11958_v28 }
 0x835   :  { %4086 = vadd.xlane.f32.xlu1 %v4085_v7  ;;  %v11965_v58 = vadd.f32 %v4893_v39, %v14538_v61  ;;  %v14540_v7 = vld [vmem:[#allocation105_spill] sm:$0xff]  ;;  %14543 = vst [vmem:[#allocation102_spill] sm:$0xff] %v11975_v32 }
 0x836   :  { %v11970_v43 = vadd.f32 %v4889_v34, %v14540_v7 }
 0x837   :  { %14539 = vst [vmem:[#allocation94_spill] sm:$0xff] %v11965_v58  ;;  %v11977_v8 = vpop.eup %7740  ;;  %v5017_v34 = vmax.f32 %v11975_v32, %v11965_v58  ;;  %v14552_v32 = vld [vmem:[#allocation112_spill] sm:$0xff] }
 0x838   :  { %5012 = vmax.xlane.f32.xlu0 %v5011_v48  ;;  %14541 = vst [vmem:[#allocation91_spill] sm:$0xff] %v11970_v43  ;;  %v14544_v48 = vld [vmem:[#allocation53_spill] sm:$0xff] }
 0x839   :  { %5009 = vmax.xlane.f32.xlu1 %v5008_v41  ;;  %v11981_v39 = vadd.f32 %v11881_v10, %v14544_v48  ;;  %v11983_v41 = vpop.eup %7742 }
 0x83a   :  { %v11987_v61 = vpop.eup %7744  ;;  %v4100_v10 = vadd.f32 %v11983_v41, %v11977_v8 }
 0x83b   :  { %14545 = vst [vmem:[#allocation99_spill] sm:$0xff] %v11981_v39  ;;  %v5014_v7 = vmax.f32 %v11981_v39, %v11970_v43  ;;  %v11991_v4 = vpop.eup %7746  ;;  %v14550_v43 = vld [vmem:[#allocation58_spill] sm:$0xff] }
 0x83c   :  { %4095 = vadd.xlane.f32.xlu0 %v4094_v25  ;;  %v14546_v25 = vld [vmem:[#allocation113_spill] sm:$0xff]  ;;  %v4097_v58 = vadd.f32 %v11991_v4, %v11987_v61  ;;  %v12005_v39 = vadd.f32 %v4897_v46, %v14550_v43 }
 0x83d   :  { %4092 = vadd.xlane.f32.xlu1 %v4091_v47  ;;  %v11994_v38 = vadd.f32 %v4903_v57, %v14546_v25  ;;  %v14548_v47 = vld [vmem:[#allocation111_spill] sm:$0xff]  ;;  %v14554_v25 = vld [vmem:[#allocation48_spill] sm:$0xff] }
 0x83e   :  { %v11999_v48 = vadd.f32 %v4899_v56, %v14548_v47  ;;  %14551 = vst [vmem:[#allocation108_spill] sm:$0xff] %v12005_v39  ;;  %v14555_v56 = vld [vmem:[#allocation164_spill] sm:$0xff] }
 0x83f   :  { %14547 = vst [vmem:[#allocation101_spill] sm:$0xff] %v11994_v38 }
 0x840   :  { %5018 = vmax.xlane.f32.xlu0 %v5017_v34  ;;  %14549 = vst [vmem:[#allocation98_spill] sm:$0xff] %v11999_v48  ;;  %v12008_v34 = vadd.f32 %v4901_v42, %v14552_v32  ;;  %v5020_v42 = vmax.f32 %v12005_v39, %v11999_v48 }
 0x841   :  { %5015 = vmax.xlane.f32.xlu1 %v5014_v7 }
 0x842   :  { %14553 = vst [vmem:[#allocation105_spill] sm:$0xff] %v12008_v34  ;;  %v5023_v46 = vmax.f32 %v12008_v34, %v11994_v38  ;;  %v14567_v34 = vld [vmem:[#allocation116_spill] sm:$0xff] }
 0x844   :  { %v3820_v7 = vpop.xlane.xlu0 %3819  ;;  %4101 = vadd.xlane.f32.xlu0 %v4100_v10  ;;  %v3817_v57 = vpop.xlane.xlu1 %3816 }
 0x845   :  { %v3885_v23 = vsub.f32 %v14554_v25, %v3820_v7  ;;  %v3886_v47 = vsub.f32 %v14555_v56, %v3820_v7  ;;  %4098 = vadd.xlane.f32.xlu1 %v4097_v58  ;;  %v3883_v29 = vsub.f32 %v14556_v24, %v3817_v57  ;;  %v3884_v37 = vsub.f32 %v14557_v60, %v3817_v57  ;;  %v4907_v58 = vpop.f32.mrf.mxu1  ;;  %v7749_v56 = vpop.eup %7748 }
 0x846   :  { %v12054_v36 = vadd.f32 %v4907_v58, %v14574_v35 }
 0x847   :  { %v4007_v32 = vmul.f32 1.442695, %v3885_v23  ;;  %v4009_v9 = vmul.f32 1.442695, %v3886_v47  ;;  %v4003_v43 = vmul.f32 1.442695, %v3883_v29  ;;  %v4909_v57 = vpop.f32.mrf.mxu1  ;;  %v7751_v47 = vpop.eup %7750 }
 0x848   :  { %v4005_v10 = vmul.f32 1.442695, %v3884_v37  ;;  %5024 = vmax.xlane.f32.xlu0 %v5023_v46  ;;  %v4039_v25 = vpop.xlane.xlu0 %4038  ;;  %v4262_v7 = vpop.permute.xlu1 %4261  ;;  %v14558_v37 = vld [vmem:[#allocation165_spill] sm:$0xff]  ;;  %v12042_v19 = vadd.f32 %v4909_v57, %v14567_v34  ;;  %14575 = vst [vmem:[#allocation48_spill] sm:$0xff] %v12054_v36 }
 0x849   :  { %7754 = vpow2.f32 %v4007_v32  ;;  %5021 = vmax.xlane.f32.xlu1 %v5020_v42  ;;  %6776 = vmatprep.subr.bf16.mxu0 %v4262_v7  ;;  %v4911_v51 = vpop.f32.mrf.mxu1  ;;  %v4154_v24 = vmul.f32 %v7749_v56, %v14558_v37  ;;  %v7753_v42 = vpop.eup %7752  ;;  %v14565_v37 = vld [vmem:[#allocation31_spill] sm:$0xff]  ;;  %v14576_v34 = vld [vmem:[#allocation33_spill] sm:$0xff] }
 0x84a   :  { %7756 = vpow2.f32 %v4009_v9  ;;  %v14559_v9 = vld [vmem:[#allocation151_spill] sm:$0xff]  ;;  %v12027_v7 = vpop.f32.mrf.mxu0  ;;  %14568 = vst [vmem:[#allocation111_spill] sm:$0xff] %v12042_v19  ;;  %v4151_v57 = vmul.f32 %v7751_v47, %v14576_v34  ;;  %v5026_v2 = vmax.f32 %v12054_v36, %v12042_v19 }
 0x84b   :  { %7758 = vpow2.f32 %v4003_v43  ;;  %v4913_v32 = vpop.f32.mrf.mxu1  ;;  %v4152_v43 = vmul.f32 %v7751_v47, %v14559_v9  ;;  %14560 = vst [vmem:[#allocation107_spill] sm:$0xff] %v12027_v7  ;;  %v14580_v47 = vld [vmem:[#allocation163_spill] sm:$0xff] }
 0x84c   :  { %7760 = vpow2.f32 %v4005_v10  ;;  %v4042_v60 = vpop.xlane.xlu0 %4041  ;;  %v4260_v23 = vpop.permute.xlu1 %4259 }
 0x84d   :  { %7762 = vrcp.f32 %v11721_v13  ;;  %v4214_v48 = vpack.c.bf16 %v4154_v24, %v4152_v43  ;;  %v14569_v24 = vld [vmem:[#allocation117_spill] sm:$0xff] }
 0x84e   :  { %7764 = vrcp.f32 %v4042_v60  ;;  %v12045_v43 = vadd.f32 %v4911_v51, %v14569_v24 }
 0x84f   :  { %7766 = vrcp.f32 %v4039_v25 }
 0x850   :  { %v4246_v29 = vpop.permute.xlu0 %4245  ;;  %v4244_v46 = vpop.permute.xlu1 %4243  ;;  %14570 = vst [vmem:[#allocation58_spill] sm:$0xff] %v12045_v43 }
 0x851   :  { %6777 = vmatpush3.bf16.msra.mxu0 %v4246_v29  ;;  %v14564_v29 = vld [vmem:[#allocation143_spill] sm:$0xff] }
 0x852   :  { %6778 = vmatprep.subr.bf16.mxu0 %v4260_v23  ;;  %v14562_v23 = vld [vmem:[#allocation118_spill] sm:$0xff]  ;;  %v14566_v38 = vpack.c.bf16 %v14564_v29, %v14565_v37  ;;  %v14573_v37 = vld [vmem:[#allocation140_spill] sm:$0xff] }
 0x853   :  { %v12032_v60 = vadd.f32 %v4913_v32, %v14562_v23  ;;  %v14571_v23 = vld [vmem:[#allocation155_spill] sm:$0xff]  ;;  %v4158_v7 = vmul.f32 %v7753_v42, %v14573_v37 }
 0x854   :  { %v4153_v29 = vmul.f32 %v7749_v56, %v14571_v23 }
 0x855   :  { %6779 = vmatpush3.bf16.msra.mxu0 %v4244_v46  ;;  %14563 = vst [vmem:[#allocation113_spill] sm:$0xff] %v12032_v60 }
 0x856   :  { %v12023_v10 = vpop.eup %7754  ;;  %v4213_v56 = vpack.c.bf16 %v4153_v29, %v4151_v57 }
 0x857   :  { %v12025_v13 = vpop.eup %7756 }
 0x858   :  { %v12029_v39 = vpop.eup %7758  ;;  %4324 = vmatmul.mubr.bf16.vlgmr.msra.gmra.mxu0 %v14566_v38  ;;  %v4106_v25 = vadd.f32 %v12025_v13, %v12023_v10  ;;  %v12050_v38 = vpop.f32.mrf.mxu0 }
 0x859   :  { %14561 = vst [vmem:[#allocation53_spill] sm:$0xff] %v12029_v39  ;;  %v12039_v46 = vpop.eup %7760  ;;  %4331 = vmatprep.mubr.bf16.mxu0 %v4214_v48  ;;  %14572 = vst [vmem:[#allocation112_spill] sm:$0xff] %v12050_v38  ;;  %v5029_v48 = vmax.f32 %v12045_v43, %v12032_v60  ;;  %v14581_v43 = vld [vmem:[#allocation142_spill] sm:$0xff] }
 0x85a   :  { %v7763_v9 = vpop.eup %7762  ;;  %4107 = vadd.xlane.f32.xlu0 %v4106_v25  ;;  %v4103_v32 = vadd.f32 %v12039_v46, %v12029_v39  ;;  %v14577_v25 = vld [vmem:[#allocation158_spill] sm:$0xff] }
 0x85b   :  { %v4156_v24 = vmul.f32 %v7763_v9, %v14577_v25  ;;  %v7765_v37 = vpop.eup %7764  ;;  %v4155_v25 = vmul.f32 %v7763_v9, %v14581_v43  ;;  %v14587_v43 = vld [vmem:[#allocation73_spill] sm:$0xff] }
 0x85c   :  { %4104 = vadd.xlane.f32.xlu1 %v4103_v32  ;;  %v7767_v58 = vpop.eup %7766  ;;  %v14579_v32 = vld [vmem:[#allocation28_spill] sm:$0xff]  ;;  %v4162_v34 = vmul.f32 %v7765_v37, %v14580_v47 }
 0x85d   :  { %v6710_v51 = vpop.f32.mrf.mxu0  ;;  %v4216_v38 = vpack.c.bf16 %v4158_v7, %v4156_v24  ;;  %v4157_v60 = vmul.f32 %v7753_v42, %v14579_v32  ;;  %v4160_v39 = vmul.f32 %v7767_v58, %v14582_v44  ;;  %v14583_v7 = vld [vmem:[#allocation76_spill] sm:$0xff]  ;;  %v14586_v32 = vld [vmem:[#allocation150_spill] sm:$0xff] }
 0x85e   :  { %5030 = vmax.xlane.f32.xlu0 %v5029_v48  ;;  %v4161_v29 = vmul.f32 %v7765_v37, %v14583_v7 }
 0x85f   :  { %v6711_v23 = vpop.f32.mrf.mxu0  ;;  %v4215_v19 = vpack.c.bf16 %v4157_v60, %v4155_v25  ;;  %v4218_v48 = vpack.c.bf16 %v4162_v34, %v4160_v39  ;;  %v4917_v25 = vpop.f32.mrf.mxu1 }
 0x860   :  { %5027 = vmax.xlane.f32.xlu1 %v5026_v2  ;;  %v12062_v35 = vadd.f32 %v6711_v23, %v6710_v51  ;;  %4332 = vmatmul.mubr.bf16.gmra.mxu0 %v4213_v56  ;;  %v14584_v2 = vld [vmem:[#allocation166_spill] sm:$0xff] }
 0x861   :  { %4339 = vmatprep.mubr.bf16.mxu0 %v4216_v38  ;;  %v4159_v57 = vmul.f32 %v7767_v58, %v14584_v2  ;;  %v14585_v56 = vld [vmem:[#allocation78_spill] sm:$0xff] }
 0x862   :  { %14578 = vst [vmem:[#allocation164_spill] sm:$0xff] %v12062_v35 }
 0x863   :  { %v4217_v51 = vpack.c.bf16 %v4161_v29, %v4159_v57  ;;  %v14588_v57 = vld [vmem:[#allocation149_spill] sm:$0xff] }
 0x868   :  { %4340 = vmatmul.mubr.bf16.gmra.mxu0 %v4215_v19 }
 0x869   :  { %4347 = vmatprep.mubr.bf16.mxu0 %v4218_v48 }
 0x870   :  { %4348 = vmatmul.mubr.bf16.gmra.mxu0 %v4217_v51 }
 0x881   :  { %v3826_v38 = vpop.xlane.xlu0 %3825  ;;  %v3823_v24 = vpop.xlane.xlu1 %3822 }
 0x882   :  { %v3889_v42 = vsub.f32 %v11575_v50, %v3826_v38  ;;  %v3890_v23 = vsub.f32 %v14585_v56, %v3826_v38  ;;  %v3887_v9 = vsub.f32 %v14586_v32, %v3823_v24  ;;  %v3888_v44 = vsub.f32 %v14587_v43, %v3823_v24  ;;  %v4919_v50 = vpop.f32.mrf.mxu1 }
 0x884   :  { %v4015_v60 = vmul.f32 1.442695, %v3889_v42  ;;  %v4017_v39 = vmul.f32 1.442695, %v3890_v23  ;;  %v4011_v19 = vmul.f32 1.442695, %v3887_v9  ;;  %v4921_v9 = vpop.f32.mrf.mxu1 }
 0x885   :  { %v4013_v47 = vmul.f32 1.442695, %v3888_v44  ;;  %v4048_v34 = vpop.xlane.xlu0 %4047  ;;  %v4045_v37 = vpop.xlane.xlu1 %4044 }
 0x886   :  { %7768 = vpow2.f32 %v4015_v60 }
 0x887   :  { %7770 = vpow2.f32 %v4017_v39  ;;  %v14589_v39 = vld [vmem:[#allocation122_spill] sm:$0xff] }
 0x888   :  { %7772 = vpow2.f32 %v4011_v19 }
 0x889   :  { %7774 = vpow2.f32 %v4013_v47  ;;  %v4971_v58 = vpop.xlane.xlu0 %4970  ;;  %v4968_v48 = vpop.xlane.xlu1 %4967 }
 0x88a   :  { %7776 = vrcp.f32 %v4048_v34  ;;  %v5064_v7 = vsub.f32 %v11627_v6, %v4971_v58  ;;  %v5065_v29 = vsub.f32 %v11603_v26, %v4971_v58  ;;  %v5062_v2 = vsub.f32 %v11623_v5, %v4968_v48  ;;  %v4923_v6 = vpop.f32.mrf.mxu1 }
 0x88b   :  { %7778 = vrcp.f32 %v4045_v37  ;;  %v5063_v51 = vsub.f32 %v14588_v57, %v4968_v48  ;;  %v12089_v19 = vadd.f32 %v4923_v6, %v14589_v39 }
 0x88c   :  { %v5130_v38 = vmul.f32 1.442695, %v5064_v7  ;;  %v5132_v24 = vmul.f32 1.442695, %v5065_v29  ;;  %v5126_v42 = vmul.f32 1.442695, %v5062_v2 }
 0x88d   :  { %v5128_v56 = vmul.f32 1.442695, %v5063_v51  ;;  %v4054_v23 = vpop.xlane.xlu0 %4053  ;;  %v4051_v32 = vpop.xlane.xlu1 %4050  ;;  %14590 = vst [vmem:[#allocation167_spill] sm:$0xff] %v12089_v19  ;;  %v14591_v7 = vld [vmem:[#allocation121_spill] sm:$0xff]  ;;  %v14593_v2 = vld [vmem:[#allocation72_spill] sm:$0xff] }
 0x88e   :  { %7780 = vpow2.f32 %v5130_v38  ;;  %v12096_v29 = vadd.f32 %v4919_v50, %v14591_v7  ;;  %v12099_v57 = vadd.f32 %v4921_v9, %v14593_v2  ;;  %v14599_v50 = vld [vmem:[#allocation103_spill] sm:$0xff] }
 0x88f   :  { %7782 = vpow2.f32 %v5132_v24  ;;  %v14595_v24 = vld [vmem:[#allocation18_spill] sm:$0xff] }
 0x890   :  { %7784 = vpow2.f32 %v5126_v42  ;;  %14592 = vst [vmem:[#allocation154_spill] sm:$0xff] %v12096_v29  ;;  %14594 = vst [vmem:[#allocation165_spill] sm:$0xff] %v12099_v57  ;;  %v5035_v39 = vmax.f32 %v12099_v57, %v12089_v19 }
 0x891   :  { %7786 = vpow2.f32 %v5128_v56  ;;  %v12078_v43 = vpop.xlane.xlu0 %4976  ;;  %v12080_v26 = vpop.xlane.xlu1 %4973  ;;  %v14596_v56 = vld [vmem:[#allocation100_spill] sm:$0xff] }
 0x892   :  { %7788 = vrcp.f32 %v4054_v23 }
 0x893   :  { %v12082_v5 = vpop.eup %7768  ;;  %7790 = vrcp.f32 %v4051_v32  ;;  %v14597_v32 = vld [vmem:[#allocation49_spill] sm:$0xff] }
 0x894   :  { %v12084_v44 = vpop.eup %7770  ;;  %v12106_v6 = vadd.f32 %v4917_v25, %v14597_v32 }
 0x895   :  { %v12086_v60 = vpop.eup %7772  ;;  %v4060_v47 = vpop.xlane.xlu0 %4059  ;;  %v4112_v34 = vadd.f32 %v12084_v44, %v12082_v5 }
 0x896   :  { %v12093_v37 = vpop.eup %7774  ;;  %v4057_v58 = vpop.xlane.xlu1 %4056  ;;  %14598 = vst [vmem:[#allocation151_spill] sm:$0xff] %v12106_v6  ;;  %7792 = vrcp.f32 %v4060_v47 }
 0x897   :  { %v7777_v48 = vpop.eup %7776  ;;  %4113 = vadd.xlane.f32.xlu0 %v4112_v34  ;;  %v4109_v51 = vadd.f32 %v12093_v37, %v12086_v60  ;;  %v14600_v34 = vld [vmem:[#allocation127_spill] sm:$0xff]  ;;  %7794 = vrcp.f32 %v4057_v58 }
 0x898   :  { %v7779_v38 = vpop.eup %7778  ;;  %v4166_v42 = vmul.f32 %v7777_v48, %v14595_v24  ;;  %v4165_v23 = vmul.f32 %v7777_v48, %v14596_v56  ;;  %v5032_v48 = vmax.f32 %v12106_v6, %v12096_v29 }
 0x899   :  { %4110 = vadd.xlane.f32.xlu1 %v4109_v51  ;;  %v4164_v7 = vmul.f32 %v7779_v38, %v14599_v50  ;;  %v12111_v9 = vpop.xlane.xlu0 %4982  ;;  %v4163_v2 = vmul.f32 %v7779_v38, %v14600_v34 }
 0x89a   :  { %v12114_v35 = vpop.xlane.xlu1 %4979 }
 0x89b   :  { %v12116_v36 = vpop.eup %7780  ;;  %v4220_v25 = vpack.c.bf16 %v4166_v42, %v4164_v7  ;;  %v4219_v24 = vpack.c.bf16 %v4165_v23, %v4163_v2  ;;  %5036 = vmax.xlane.f32.xlu0 %v5035_v39  ;;  %v14601_v23 = vld [vmem:[#allocation51_spill] sm:$0xff]  ;;  %v14602_v2 = vld [vmem:[#allocation60_spill] sm:$0xff] }
 0x89c   :  { %v12120_v56 = vpop.eup %7782 }
 0x89d   :  { %v12122_v51 = vpop.eup %7784  ;;  %4355 = vmatprep.mubr.bf16.mxu0 %v4220_v25  ;;  %5033 = vmax.xlane.f32.xlu1 %v5032_v48  ;;  %v4066_v32 = vpop.xlane.xlu0 %4065  ;;  %v5257_v19 = vadd.f32 %v12120_v56, %v12116_v36 }
 0x89e   :  { %v12124_v38 = vpop.eup %7786  ;;  %4356 = vmatmul.mubr.bf16.gmra.mxu0 %v4219_v24  ;;  %v4063_v47 = vpop.xlane.xlu1 %4062  ;;  %7796 = vrcp.f32 %v4066_v32  ;;  %v14603_v32 = vld [vmem:[#allocation41_spill] sm:$0xff] }
 0x89f   :  { %v7789_v50 = vpop.eup %7788  ;;  %v5254_v34 = vadd.f32 %v12124_v38, %v12122_v51  ;;  %7798 = vrcp.f32 %v4063_v47  ;;  %v14604_v47 = vld [vmem:[#allocation32_spill] sm:$0xff] }
 0x8a0   :  { %v7791_v29 = vpop.eup %7790  ;;  %v4170_v58 = vmul.f32 %v7789_v50, %v11643_v40  ;;  %v4169_v42 = vmul.f32 %v7789_v50, %v11633_v15 }
 0x8a1   :  { %5255 = vadd.xlane.f32.xlu0 %v5254_v34  ;;  %v4168_v39 = vmul.f32 %v7791_v29, %v14601_v23  ;;  %v12131_v7 = vpop.xlane.xlu0 %4988  ;;  %v4167_v48 = vmul.f32 %v7791_v29, %v14602_v2 }
 0x8a2   :  { %v12134_v25 = vpop.xlane.xlu1 %4985 }
 0x8a3   :  { %v4222_v24 = vpack.c.bf16 %v4170_v58, %v4168_v39  ;;  %v4221_v6 = vpack.c.bf16 %v4169_v42, %v4167_v48  ;;  %v7793_v50 = vpop.eup %7792 }
 0x8a4   :  { %v7795_v34 = vpop.eup %7794  ;;  %v4174_v23 = vmul.f32 %v7793_v50, %v11689_v45  ;;  %v4173_v29 = vmul.f32 %v7793_v50, %v11681_v14  ;;  %v14605_v45 = vld [vmem:[#allocation43_spill] sm:$0xff] }
 0x8a5   :  { %4363 = vmatprep.mubr.bf16.mxu0 %v4222_v24  ;;  %5258 = vadd.xlane.f32.xlu0 %v5257_v19  ;;  %v4072_v40 = vpop.xlane.xlu0 %4071  ;;  %v4172_v2 = vmul.f32 %v7795_v34, %v14603_v32  ;;  %v4171_v58 = vmul.f32 %v7795_v34, %v14604_v47 }
 0x8a6   :  { %4364 = vmatmul.mubr.bf16.gmra.mxu0 %v4221_v6  ;;  %v4069_v15 = vpop.xlane.xlu1 %4068  ;;  %7800 = vrcp.f32 %v4072_v40 }
 0x8a7   :  { %7802 = vrcp.f32 %v4069_v15  ;;  %v4224_v19 = vpack.c.bf16 %v4174_v23, %v4172_v2  ;;  %v4223_v39 = vpack.c.bf16 %v4173_v29, %v4171_v58  ;;  %v14606_v23 = vld [vmem:[#allocation45_spill] sm:$0xff] }
 0x8a9   :  { %v12141_v57 = vpop.xlane.xlu0 %4994  ;;  %4371 = vmatprep.mubr.bf16.mxu0 %v4224_v19 }
 0x8aa   :  { %v12144_v42 = vpop.xlane.xlu1 %4991 }
 0x8ab   :  { %v7797_v48 = vpop.eup %7796 }
 0x8ac   :  { %v7799_v24 = vpop.eup %7798  ;;  %v4178_v50 = vmul.f32 %v7797_v48, %v11745_v12  ;;  %v4177_v34 = vmul.f32 %v7797_v48, %v11739_v30  ;;  %v14607_v30 = vld [vmem:[#allocation23_spill] sm:$0xff] }
 0x8ad   :  { %v4078_v6 = vpop.xlane.xlu0 %4077  ;;  %v4176_v40 = vmul.f32 %v7799_v24, %v11751_v54  ;;  %v4175_v15 = vmul.f32 %v7799_v24, %v11731_v16  ;;  %v14608_v24 = vld [vmem:[#allocation21_spill] sm:$0xff] }
 0x8ae   :  { %4372 = vmatmul.mubr.bf16.gmra.mxu0 %v4223_v39  ;;  %5508 = vrot.lane.b32.xlu1 %v14605_v45, %s8120_s20  ;;  %v4075_v14 = vpop.xlane.xlu1 %4074  ;;  %7804 = vrcp.f32 %v4078_v6 }
 0x8af   :  { %7806 = vrcp.f32 %v4075_v14  ;;  %v4226_v2 = vpack.c.bf16 %v4178_v50, %v4176_v40  ;;  %v4225_v47 = vpack.c.bf16 %v4177_v34, %v4175_v15 }
 0x8b1   :  { %v12151_v32 = vpop.xlane.xlu0 %5000  ;;  %4379 = vmatprep.mubr.bf16.mxu0 %v4226_v2 }
 0x8b2   :  { %5506 = vrot.lane.b32.xlu1 %v14606_v23, %s8120_s20  ;;  %v12156_v29 = vpop.xlane.xlu1 %4997 }
 0x8b3   :  { %v7801_v54 = vpop.eup %7800 }
 0x8b4   :  { %v7803_v19 = vpop.eup %7802  ;;  %v4182_v16 = vmul.f32 %v7801_v54, %v11793_v18  ;;  %v4181_v39 = vmul.f32 %v7801_v54, %v11789_v11 }
 0x8b5   :  { %v4084_v58 = vpop.xlane.xlu0 %4083  ;;  %v4180_v6 = vmul.f32 %v7803_v19, %v11799_v63  ;;  %v4179_v14 = vmul.f32 %v7803_v19, %v11781_v17  ;;  %v14609_v17 = vld [vmem:[#allocation156_spill] sm:$0xff] }
 0x8b6   :  { %4380 = vmatmul.mubr.bf16.gmra.mxu0 %v4225_v47  ;;  %5490 = vrot.lane.b32.xlu1 %v14607_v30, %s8120_s20  ;;  %v4081_v12 = vpop.xlane.xlu1 %4080  ;;  %7808 = vrcp.f32 %v4084_v58  ;;  %v5066_v2 = vsub.f32 %v14609_v17, %v12080_v26 }
 0x8b7   :  { %7810 = vrcp.f32 %v4081_v12  ;;  %v4228_v50 = vpack.c.bf16 %v4182_v16, %v4180_v6  ;;  %v4227_v34 = vpack.c.bf16 %v4181_v39, %v4179_v14  ;;  %v14610_v16 = vld [vmem:[#allocation57_spill] sm:$0xff]  ;;  %v4927_v39 = vpop.f32.mrf.mxu1 }
 0x8b9   :  { %v12163_v45 = vpop.xlane.xlu0 %5006  ;;  %4387 = vmatprep.mubr.bf16.mxu0 %v4228_v50 }
 0x8ba   :  { %v12166_v48 = vpop.xlane.xlu1 %5003 }
 0x8bb   :  { %5492 = vrot.lane.b32.xlu0 %v14608_v24, %s8120_s20  ;;  %v7805_v11 = vpop.eup %7804  ;;  %v14611_v24 = vld [vmem:[#allocation104_spill] sm:$0xff] }
 0x8bc   :  { %v7807_v15 = vpop.eup %7806  ;;  %v4186_v63 = vmul.f32 %v7805_v11, %v11841_v55  ;;  %v4185_v23 = vmul.f32 %v7805_v11, %v11835_v20  ;;  %v5067_v55 = vsub.f32 %v14610_v16, %v12080_v26  ;;  %v5134_v20 = vmul.f32 1.442695, %v5066_v2  ;;  %v4929_v26 = vpop.f32.mrf.mxu1 }
 0x8bd   :  { %v4090_v40 = vpop.xlane.xlu0 %4089  ;;  %v4184_v47 = vmul.f32 %v7807_v15, %v11847_v21  ;;  %v4183_v30 = vmul.f32 %v7807_v15, %v11829_v3  ;;  %v5068_v50 = vsub.f32 %v14611_v24, %v12078_v43 }
 0x8be   :  { %4388 = vmatmul.mubr.bf16.gmra.mxu0 %v4227_v34  ;;  %v4087_v18 = vpop.xlane.xlu1 %4086  ;;  %7812 = vrcp.f32 %v4090_v40  ;;  %v14612_v34 = vld [vmem:[#allocation119_spill] sm:$0xff] }
 0x8bf   :  { %7814 = vrcp.f32 %v4087_v18  ;;  %v4230_v54 = vpack.c.bf16 %v4186_v63, %v4184_v47  ;;  %v4229_v19 = vpack.c.bf16 %v4185_v23, %v4183_v30  ;;  %v5069_v40 = vsub.f32 %v14612_v34, %v12078_v43  ;;  %v14614_v34 = vld [vmem:[#allocation126_spill] sm:$0xff] }
 0x8c0   :  { %v5136_v18 = vmul.f32 1.442695, %v5067_v55  ;;  %7816 = vpow2.f32 %v5134_v20  ;;  %v5138_v47 = vmul.f32 1.442695, %v5068_v50  ;;  %v14613_v50 = vld [vmem:[#allocation124_spill] sm:$0xff] }
 0x8c1   :  { %v12175_v58 = vpop.xlane.xlu0 %5012  ;;  %4395 = vmatprep.mubr.bf16.mxu0 %v4230_v54  ;;  %v5140_v54 = vmul.f32 1.442695, %v5069_v40 }
 0x8c2   :  { %v12178_v12 = vpop.xlane.xlu1 %5009 }
 0x8c3   :  { %v7809_v21 = vpop.eup %7808 }
 0x8c4   :  { %v7811_v3 = vpop.eup %7810  ;;  %v4190_v11 = vmul.f32 %v7809_v21, %v11887_v53  ;;  %v4189_v15 = vmul.f32 %v7809_v21, %v11883_v52  ;;  %v4931_v53 = vpop.f32.mrf.mxu1 }
 0x8c5   :  { %v4096_v6 = vpop.xlane.xlu0 %4095  ;;  %v4188_v63 = vmul.f32 %v7811_v3, %v11891_v0  ;;  %v4187_v17 = vmul.f32 %v7811_v3, %v11875_v1  ;;  %v12199_v3 = vadd.f32 %v4929_v26, %v14613_v50 }
 0x8c6   :  { %4396 = vmatmul.mubr.bf16.gmra.mxu0 %v4229_v19  ;;  %v4093_v14 = vpop.xlane.xlu1 %4092  ;;  %7818 = vrcp.f32 %v4096_v6  ;;  %v4933_v20 = vpop.f32.mrf.mxu1 }
 0x8c7   :  { %7820 = vrcp.f32 %v4093_v14  ;;  %v4232_v30 = vpack.c.bf16 %v4190_v11, %v4188_v63  ;;  %v4231_v43 = vpack.c.bf16 %v4189_v15, %v4187_v17  ;;  %v12202_v40 = vadd.f32 %v4933_v20, %v14614_v34  ;;  %v14616_v11 = vld [vmem:[#allocation125_spill] sm:$0xff]  ;;  %v14617_v34 = vld [vmem:[#allocation34_spill] sm:$0xff] }
 0x8c8   :  { %7822 = vpow2.f32 %v5136_v18 }
 0x8c9   :  { %v12189_v23 = vpop.xlane.xlu0 %5018  ;;  %4403 = vmatprep.mubr.bf16.mxu0 %v4232_v30  ;;  %7824 = vpow2.f32 %v5138_v47 }
 0x8ca   :  { %v12192_v2 = vpop.xlane.xlu1 %5015  ;;  %7826 = vpow2.f32 %v5140_v54 }
 0x8cb   :  { %v7813_v52 = vpop.eup %7812 }
 0x8cc   :  { %v7815_v0 = vpop.eup %7814  ;;  %v4194_v1 = vmul.f32 %v7813_v52, %v11923_v33  ;;  %v4193_v55 = vmul.f32 %v7813_v52, %v11917_v59  ;;  %v14615_v33 = vld [vmem:[#allocation42_spill] sm:$0xff] }
 0x8cd   :  { %v4102_v19 = vpop.xlane.xlu0 %4101  ;;  %v4192_v6 = vmul.f32 %v7815_v0, %v11931_v22  ;;  %v4191_v14 = vmul.f32 %v7815_v0, %v11927_v31  ;;  %v12204_v18 = vpop.eup %7816  ;;  %v12207_v59 = vadd.f32 %v4927_v39, %v14615_v33  ;;  %v12210_v22 = vadd.f32 %v4931_v53, %v14616_v11  ;;  %v14619_v11 = vld [vmem:[#allocation19_spill] sm:$0xff] }
 0x8ce   :  { %4404 = vmatmul.mubr.bf16.gmra.mxu0 %v4231_v43  ;;  %v4099_v16 = vpop.xlane.xlu1 %4098  ;;  %7828 = vrcp.f32 %v4102_v19 }
 0x8cf   :  { %7830 = vrcp.f32 %v4099_v16  ;;  %v4234_v21 = vpack.c.bf16 %v4194_v1, %v4192_v6  ;;  %v4233_v24 = vpack.c.bf16 %v4193_v55, %v4191_v14  ;;  %v5038_v63 = vmax.f32 %v12207_v59, %v12199_v3 }
 0x8d0   :  { %v5041_v26 = vmax.f32 %v12210_v22, %v12202_v40 }
 0x8d1   :  { %4411 = vmatprep.mubr.bf16.mxu0 %v4234_v21 }
 0x8d2   :  { %v12234_v55 = vpop.xlane.xlu1 %5021 }
 0x8d3   :  { %v7819_v31 = vpop.eup %7818 }
 0x8d4   :  { %v7821_v15 = vpop.eup %7820  ;;  %v4198_v17 = vmul.f32 %v7819_v31, %v11954_v49  ;;  %v4197_v47 = vmul.f32 %v7819_v31, %v11948_v62  ;;  %v12228_v49 = vpop.xlane.xlu0 %5024 }
 0x8d5   :  { %v12218_v30 = vpop.eup %7822  ;;  %v4196_v39 = vmul.f32 %v7821_v15, %v11962_v27  ;;  %v4195_v43 = vmul.f32 %v7821_v15, %v11958_v28  ;;  %v14620_v15 = vld [vmem:[#allocation53_spill] sm:$0xff] }
 0x8d6   :  { %4412 = vmatmul.mubr.bf16.gmra.mxu0 %v4233_v24  ;;  %v12222_v52 = vpop.eup %7824  ;;  %v5260_v19 = vadd.f32 %v12218_v30, %v12204_v18 }
 0x8d7   :  { %v4236_v54 = vpack.c.bf16 %v4198_v17, %v4196_v39  ;;  %v4235_v53 = vpack.c.bf16 %v4197_v47, %v4195_v43  ;;  %v12226_v0 = vpop.eup %7826  ;;  %v14621_v47 = vld [vmem:[#allocation17_spill] sm:$0xff]  ;;  %v14622_v39 = vld [vmem:[#allocation62_spill] sm:$0xff] }
 0x8d8   :  { %v5263_v28 = vadd.f32 %v12226_v0, %v12222_v52 }
 0x8d9   :  { %4419 = vmatprep.mubr.bf16.mxu0 %v4236_v54  ;;  %v4937_v54 = vpop.f32.mrf.mxu1 }
 0x8da   :  { %5039 = vmax.xlane.f32.xlu1 %v5038_v63  ;;  %5042 = vmax.xlane.f32.xlu0 %v5041_v26 }
 0x8db   :  { %v7829_v62 = vpop.eup %7828 }
 0x8dc   :  { %v7831_v27 = vpop.eup %7830  ;;  %v4202_v16 = vmul.f32 %v7829_v62, %v11983_v41  ;;  %v4201_v1 = vmul.f32 %v7829_v62, %v11977_v8  ;;  %v14618_v8 = vld [vmem:[#allocation36_spill] sm:$0xff]  ;;  %v14625_v62 = vld [vmem:[#allocation46_spill] sm:$0xff] }
 0x8dd   :  { %v4200_v20 = vmul.f32 %v7831_v27, %v11991_v4  ;;  %v4199_v6 = vmul.f32 %v7831_v27, %v11987_v61  ;;  %v5073_v27 = vsub.f32 %v14625_v62, %v12111_v9 }
 0x8de   :  { %4420 = vmatmul.mubr.bf16.gmra.mxu0 %v4235_v53  ;;  %5261 = vadd.xlane.f32.xlu0 %v5260_v19  ;;  %v14624_v53 = vld [vmem:[#allocation35_spill] sm:$0xff] }
 0x8df   :  { %v4238_v14 = vpack.c.bf16 %v4202_v16, %v4200_v20  ;;  %v4237_v21 = vpack.c.bf16 %v4201_v1, %v4199_v6  ;;  %v5072_v19 = vsub.f32 %v14624_v53, %v12111_v9  ;;  %v4939_v16 = vpop.f32.mrf.mxu1  ;;  %v5148_v20 = vmul.f32 1.442695, %v5073_v27 }
 0x8e1   :  { %4427 = vmatprep.mubr.bf16.mxu0 %v4238_v14  ;;  %v5146_v1 = vmul.f32 1.442695, %v5072_v19  ;;  %v4941_v6 = vpop.f32.mrf.mxu1 }
 0x8e2   :  { %5264 = vadd.xlane.f32.xlu0 %v5263_v28 }
 0x8e3   :  { %v4108_v24 = vpop.xlane.xlu0 %4107  ;;  %v4943_v14 = vpop.f32.mrf.mxu1 }
 0x8e4   :  { %7832 = vrcp.f32 %v4108_v24  ;;  %v14627_v24 = vld [vmem:[#allocation130_spill] sm:$0xff] }
 0x8e5   :  { %v4105_v50 = vpop.xlane.xlu1 %4104 }
 0x8e6   :  { %4428 = vmatmul.mubr.bf16.gmra.mxu0 %v4237_v21  ;;  %7834 = vrcp.f32 %v4105_v50  ;;  %v14626_v21 = vld [vmem:[#allocation129_spill] sm:$0xff]  ;;  %v12262_v50 = vadd.f32 %v4943_v14, %v14627_v24 }
 0x8e9   :  { %v12296_v53 = vpop.xlane.xlu1 %5027 }
 0x8eb   :  { %5504 = vrot.lane.b32.xlu1 %v14617_v34, %s8120_s20  ;;  %v12264_v34 = vpop.f32.mrf.mxu0 }
 0x8ec   :  { %14628 = vst [vmem:[#allocation118_spill] sm:$0xff] %v12264_v34 }
 0x8ef   :  { %5502 = vrot.lane.b32.xlu1 %v14618_v8, %s8120_s20  ;;  %v14629_v8 = vld [vmem:[#allocation128_spill] sm:$0xff] }
 0x8f0   :  { %v12267_v9 = vadd.f32 %v4937_v54, %v14629_v8 }
 0x8f1   :  { %v7833_v41 = vpop.eup %7832 }
 0x8f2   :  { %v4206_v4 = vmul.f32 %v7833_v41, %v12025_v13  ;;  %v4205_v61 = vmul.f32 %v7833_v41, %v12023_v10  ;;  %v5070_v13 = vsub.f32 %v14622_v39, %v12114_v35  ;;  %v14623_v10 = vld [vmem:[#allocation47_spill] sm:$0xff]  ;;  %v14630_v41 = vld [vmem:[#allocation64_spill] sm:$0xff] }
 0x8f3   :  { %v7835_v33 = vpop.eup %7834  ;;  %5486 = vrot.lane.b32.xlu1 %v14619_v11, %s8120_s20  ;;  %v5071_v43 = vsub.f32 %v14623_v10, %v12114_v35  ;;  %v12259_v35 = vadd.f32 %v4939_v16, %v14626_v21  ;;  %v12290_v10 = vpop.xlane.xlu0 %5030  ;;  %v14638_v21 = vld [vmem:[#allocation27_spill] sm:$0xff] }
 0x8f4   :  { %v4204_v31 = vmul.f32 %v7835_v33, %v12039_v46  ;;  %v4203_v63 = vmul.f32 %v7835_v33, %v14620_v15  ;;  %v5142_v46 = vmul.f32 1.442695, %v5070_v13  ;;  %v12280_v15 = vpop.f32.mrf.mxu0 }
 0x8f5   :  { %v5144_v28 = vmul.f32 1.442695, %v5071_v43  ;;  %v5044_v33 = vmax.f32 %v12267_v9, %v12259_v35  ;;  %14631 = vst [vmem:[#allocation143_spill] sm:$0xff] %v12280_v15 }
 0x8f6   :  { %v4240_v26 = vpack.c.bf16 %v4206_v4, %v4204_v31  ;;  %v4239_v17 = vpack.c.bf16 %v4205_v61, %v4203_v63  ;;  %7836 = vpow2.f32 %v5142_v46  ;;  %v12270_v4 = vadd.f32 %v4941_v6, %v14630_v41 }
 0x8f7   :  { %7838 = vpow2.f32 %v5144_v28 }
 0x8f8   :  { %5488 = vrot.lane.b32.xlu0 %v14621_v47, %s8120_s20  ;;  %4435 = vmatprep.mubr.bf16.mxu0 %v4240_v26  ;;  %7840 = vpow2.f32 %v5146_v1  ;;  %v5047_v11 = vmax.f32 %v12270_v4, %v12262_v50 }
 0x8f9   :  { %4436 = vmatmul.mubr.bf16.gmra.mxu0 %v4239_v17  ;;  %7842 = vpow2.f32 %v5148_v20 }
 0x903   :  { %v12272_v61 = vpop.eup %7836 }
 0x904   :  { %v12278_v31 = vpop.eup %7838 }
 0x905   :  { %v12282_v26 = vpop.eup %7840  ;;  %v5266_v17 = vadd.f32 %v12278_v31, %v12272_v61 }
 0x906   :  { %v12286_v47 = vpop.eup %7842 }
 0x907   :  { %v5269_v54 = vadd.f32 %v12286_v47, %v12282_v26 }
 0x917   :  { %5045 = vmax.xlane.f32.xlu1 %v5044_v33  ;;  %5048 = vmax.xlane.f32.xlu0 %v5047_v11  ;;  %v14639_v11 = vld [vmem:[#allocation29_spill] sm:$0xff] }
 0x918   :  { %v6780_v63 = vpop.f32.mrf.mxu0 }
 0x91a   :  { %v6781_v39 = vpop.f32.mrf.mxu0 }
 0x91b   :  { %5267 = vadd.xlane.f32.xlu0 %v5266_v17  ;;  %v12288_v13 = vadd.f32 %v6781_v39, %v6780_v63 }
 0x91c   :  { %v12292_v43 = vpop.f32.mrf.mxu0 }
 0x91d   :  { %14632 = vst [vmem:[#allocation31_spill] sm:$0xff] %v12288_v13  ;;  %14633 = vst [vmem:[#allocation116_spill] sm:$0xff] %v12292_v43  ;;  %v14680_v13 = vld [vmem:[#allocation85_spill] sm:$0xff] }
 0x91e   :  { %v12298_v19 = vpop.f32.mrf.mxu0 }
 0x91f   :  { %14634 = vst [vmem:[#allocation117_spill] sm:$0xff] %v12298_v19  ;;  %5270 = vadd.xlane.f32.xlu0 %v5269_v54 }
 0x920   :  { %v4114_v46 = vpop.xlane.xlu0 %4113  ;;  %v6786_v62 = vpop.f32.mrf.mxu0 }
 0x921   :  { %7844 = vrcp.f32 %v4114_v46 }
 0x922   :  { %v4111_v27 = vpop.xlane.xlu1 %4110  ;;  %v6787_v28 = vpop.f32.mrf.mxu0 }
 0x923   :  { %7846 = vrcp.f32 %v4111_v27  ;;  %v12300_v16 = vadd.f32 %v6787_v28, %v6786_v62 }
 0x924   :  { %v12302_v1 = vpop.xlane.xlu0 %5036  ;;  %v12304_v20 = vpop.f32.mrf.mxu0 }
 0x925   :  { %14635 = vst [vmem:[#allocation155_spill] sm:$0xff] %v12300_v16  ;;  %14636 = vst [vmem:[#allocation140_spill] sm:$0xff] %v12304_v20 }
 0x926   :  { %v12306_v6 = vpop.xlane.xlu1 %5033  ;;  %v12308_v14 = vpop.f32.mrf.mxu0 }
 0x927   :  { %14637 = vst [vmem:[#allocation44_spill] sm:$0xff] %v12308_v14  ;;  %v14676_v14 = vld [vmem:[#allocation81_spill] sm:$0xff] }
 0x928   :  { %5500 = vrot.lane.b32.xlu1 %v14638_v21, %s8120_s20  ;;  %v6792_v24 = vpop.f32.mrf.mxu0 }
 0x92a   :  { %v5256_v8 = vpop.xlane.xlu0 %5255  ;;  %v5509_v41 = vpop.permute.xlu1 %5508 }
 0x92b   :  { %6924 = vmatprep.subr.bf16.mxu0 %v5509_v41  ;;  %v6793_v33 = vpop.f32.mrf.mxu0  ;;  %7848 = vrcp.f32 %v5256_v8  ;;  %v14643_v41 = vld [vmem:[#allocation16_spill] sm:$0xff] }
 0x92c   :  { %5498 = vrot.lane.b32.xlu1 %v14639_v11, %s8120_s20  ;;  %v12314_v63 = vadd.f32 %v6793_v33, %v6792_v24 }
 0x92d   :  { %v12316_v17 = vpop.f32.mrf.mxu0 }
 0x92e   :  { %14640 = vst [vmem:[#allocation33_spill] sm:$0xff] %v12314_v63  ;;  %14641 = vst [vmem:[#allocation158_spill] sm:$0xff] %v12316_v17  ;;  %v7845_v39 = vpop.eup %7844  ;;  %v5259_v54 = vpop.xlane.xlu0 %5258 }
 0x92f   :  { %7850 = vrcp.f32 %v5259_v54  ;;  %v12318_v46 = vpop.f32.mrf.mxu0  ;;  %v4210_v62 = vmul.f32 %v7845_v39, %v12084_v44  ;;  %v4209_v27 = vmul.f32 %v7845_v39, %v12082_v5  ;;  %v5507_v21 = vpop.permute.xlu1 %5506  ;;  %v14645_v5 = vld [vmem:[#allocation15_spill] sm:$0xff] }
 0x930   :  { %14642 = vst [vmem:[#allocation28_spill] sm:$0xff] %v12318_v46  ;;  %v7847_v28 = vpop.eup %7846  ;;  %5482 = vrot.lane.b32.xlu1 %v14643_v41, %s8120_s20 }
 0x931   :  { %v6798_v11 = vpop.f32.mrf.mxu0  ;;  %v4208_v24 = vmul.f32 %v7847_v28, %v12093_v37  ;;  %v4207_v8 = vmul.f32 %v7847_v28, %v12086_v60  ;;  %v14646_v37 = vld [vmem:[#allocation74_spill] sm:$0xff] }
 0x932   :  { %v5493_v33 = vpop.permute.xlu0 %5492  ;;  %v5074_v60 = vsub.f32 %v14646_v37, %v12134_v25  ;;  %v14650_v37 = vld [vmem:[#allocation133_spill] sm:$0xff] }
 0x933   :  { %6925 = vmatpush3.bf16.msra.mxu0 %v5493_v33  ;;  %v6799_v15 = vpop.f32.mrf.mxu0  ;;  %v4242_v54 = vpack.c.bf16 %v4210_v62, %v4208_v24  ;;  %v4241_v34 = vpack.c.bf16 %v4209_v27, %v4207_v8  ;;  %v5491_v44 = vpop.permute.xlu1 %5490  ;;  %v14648_v33 = vld [vmem:[#allocation66_spill] sm:$0xff] }
 0x934   :  { %6926 = vmatprep.subr.bf16.mxu0 %v5507_v21  ;;  %v12326_v46 = vadd.f32 %v6799_v15, %v6798_v11  ;;  %v14647_v21 = vld [vmem:[#allocation162_spill] sm:$0xff] }
 0x935   :  { %5484 = vrot.lane.b32.xlu0 %v14645_v5, %s8120_s20  ;;  %4443 = vmatprep.mubr.bf16.mxu0 %v4242_v54  ;;  %v5075_v11 = vsub.f32 %v14647_v21, %v12134_v25  ;;  %v5076_v54 = vsub.f32 %v14648_v33, %v12131_v7 }
 0x936   :  { %14644 = vst [vmem:[#allocation163_spill] sm:$0xff] %v12326_v46  ;;  %4444 = vmatmul.mubr.bf16.gmra.mxu0 %v4241_v34  ;;  %v4947_v34 = vpop.f32.mrf.mxu1 }
 0x937   :  { %6927 = vmatpush3.bf16.msra.mxu0 %v5491_v44  ;;  %v5152_v44 = vmul.f32 1.442695, %v5075_v11 }
 0x938   :  { %v7849_v39 = vpop.eup %7848 }
 0x939   :  { %v12333_v28 = vmul.f32 %v7849_v39, %v12122_v51  ;;  %v5383_v15 = vmul.f32 %v7849_v39, %v12124_v38  ;;  %v5150_v51 = vmul.f32 1.442695, %v5074_v60  ;;  %v4949_v38 = vpop.f32.mrf.mxu1  ;;  %v5154_v39 = vmul.f32 1.442695, %v5076_v54  ;;  %v14652_v60 = vld [vmem:[#allocation132_spill] sm:$0xff] }
 0x93b   :  { %7852 = vpow2.f32 %v5150_v51  ;;  %v4951_v25 = vpop.f32.mrf.mxu1 }
 0x93c   :  { %v7851_v41 = vpop.eup %7850  ;;  %7854 = vpow2.f32 %v5152_v44 }
 0x93d   :  { %v12336_v62 = vmul.f32 %v7851_v41, %v12116_v36  ;;  %v5385_v27 = vmul.f32 %v7851_v41, %v12120_v56  ;;  %v14649_v36 = vld [vmem:[#allocation54_spill] sm:$0xff]  ;;  %7856 = vpow2.f32 %v5154_v39  ;;  %v4953_v41 = vpop.f32.mrf.mxu1 }
 0x93e   :  { %v5077_v5 = vsub.f32 %v14649_v36, %v12131_v7  ;;  %v14653_v7 = vld [vmem:[#allocation56_spill] sm:$0xff] }
 0x93f   :  { %v5447_v24 = vpack.c.bf16 %v5385_v27, %v5383_v15  ;;  %v12349_v15 = vadd.f32 %v4949_v38, %v14650_v37  ;;  %v14651_v27 = vld [vmem:[#allocation134_spill] sm:$0xff]  ;;  %v12358_v11 = vadd.f32 %v4951_v25, %v14653_v7  ;;  %v12374_v38 = vpop.f32.mrf.mxu0  ;;  %v4957_v43 = vpop.f32.mrf.mxu1 }
 0x940   :  { %v5156_v56 = vmul.f32 1.442695, %v5077_v5  ;;  %v12352_v21 = vadd.f32 %v4953_v41, %v14651_v27  ;;  %14657 = vst [vmem:[#allocation166_spill] sm:$0xff] %v12374_v38 }
 0x941   :  { %5558 = vmatprep.mubr.bf16.mxu0 %v5447_v24  ;;  %v12355_v24 = vadd.f32 %v4947_v34, %v14652_v60 }
 0x942   :  { %7858 = vpow2.f32 %v5156_v56  ;;  %v5053_v51 = vmax.f32 %v12358_v11, %v12352_v21  ;;  %v12378_v56 = vpop.f32.mrf.mxu0 }
 0x943   :  { %v5050_v54 = vmax.f32 %v12355_v24, %v12349_v15  ;;  %14658 = vst [vmem:[#allocation78_spill] sm:$0xff] %v12378_v56 }
 0x948   :  { %v12360_v33 = vpop.eup %7852 }
 0x949   :  { %14654 = vst [vmem:[#allocation142_spill] sm:$0xff] %v12360_v33  ;;  %v12366_v36 = vpop.eup %7854 }
 0x94a   :  { %14655 = vst [vmem:[#allocation153_spill] sm:$0xff] %v12366_v36  ;;  %v12368_v5 = vpop.eup %7856  ;;  %v5272_v34 = vadd.f32 %v12366_v36, %v12360_v33 }
 0x94b   :  { %14656 = vst [vmem:[#allocation76_spill] sm:$0xff] %v12368_v5 }
 0x94f   :  { %v12372_v44 = vpop.eup %7858 }
 0x950   :  { %v5275_v39 = vadd.f32 %v12372_v44, %v12368_v5 }
 0x954   :  { %5051 = vmax.xlane.f32.xlu1 %v5050_v54  ;;  %5054 = vmax.xlane.f32.xlu0 %v5053_v51  ;;  %v14662_v51 = vld [vmem:[#allocation24_spill] sm:$0xff] }
 0x958   :  { %5273 = vadd.xlane.f32.xlu0 %v5272_v34 }
 0x95c   :  { %5276 = vadd.xlane.f32.xlu0 %v5275_v39 }
 0x95e   :  { %v6804_v25 = vpop.f32.mrf.mxu0 }
 0x960   :  { %v6805_v41 = vpop.f32.mrf.mxu0 }
 0x961   :  { %v12380_v37 = vadd.f32 %v6805_v41, %v6804_v25  ;;  %v14664_v25 = vld [vmem:[#allocation25_spill] sm:$0xff] }
 0x962   :  { %v12382_v27 = vpop.f32.mrf.mxu0 }
 0x963   :  { %14659 = vst [vmem:[#allocation150_spill] sm:$0xff] %v12380_v37  ;;  %14660 = vst [vmem:[#allocation73_spill] sm:$0xff] %v12382_v27  ;;  %v12384_v60 = vpop.xlane.xlu0 %5042  ;;  %v12386_v7 = vpop.xlane.xlu1 %5039 }
 0x964   :  { %v12388_v54 = vpop.f32.mrf.mxu0 }
 0x965   :  { %14661 = vst [vmem:[#allocation149_spill] sm:$0xff] %v12388_v54  ;;  %5496 = vrot.lane.b32.xlu1 %v14662_v51, %s8120_s20  ;;  %v14667_v51 = vld [vmem:[#allocation14_spill] sm:$0xff] }
 0x966   :  { %v6810_v34 = vpop.f32.mrf.mxu0 }
 0x967   :  { %v12392_v8 = vpop.xlane.xlu0 %5261  ;;  %v5505_v56 = vpop.permute.xlu1 %5504 }
 0x968   :  { %v6811_v39 = vpop.f32.mrf.mxu0  ;;  %6928 = vmatprep.subr.bf16.mxu0 %v5505_v56 }
 0x969   :  { %v12394_v38 = vadd.f32 %v6811_v39, %v6810_v34  ;;  %5494 = vrot.lane.b32.xlu1 %v14664_v25, %s8120_s20  ;;  %v14671_v34 = vld [vmem:[#allocation13_spill] sm:$0xff] }
 0x96a   :  { %v12398_v41 = vpop.f32.mrf.mxu0 }
 0x96b   :  { %14663 = vst [vmem:[#allocation122_spill] sm:$0xff] %v12394_v38  ;;  %14665 = vst [vmem:[#allocation121_spill] sm:$0xff] %v12398_v41  ;;  %v12400_v27 = vpop.xlane.xlu0 %5264  ;;  %v5503_v54 = vpop.permute.xlu1 %5502 }
 0x96c   :  { %v12402_v37 = vpop.f32.mrf.mxu0 }
 0x96d   :  { %14666 = vst [vmem:[#allocation72_spill] sm:$0xff] %v12402_v37  ;;  %5478 = vrot.lane.b32.xlu1 %v14667_v51, %s8120_s20  ;;  %v14674_v51 = vld [vmem:[#allocation80_spill] sm:$0xff] }
 0x96e   :  { %v12406_v46 = vpop.f32.mrf.mxu0  ;;  %v5080_v41 = vsub.f32 %v14674_v51, %v12141_v57 }
 0x96f   :  { %14668 = vst [vmem:[#allocation18_spill] sm:$0xff] %v12406_v46  ;;  %v5489_v17 = vpop.permute.xlu0 %5488  ;;  %v5487_v39 = vpop.permute.xlu1 %5486  ;;  %v14684_v46 = vld [vmem:[#allocation67_spill] sm:$0xff] }
 0x970   :  { %v12408_v63 = vpop.f32.mrf.mxu0  ;;  %6929 = vmatpush3.bf16.msra.mxu0 %v5489_v17  ;;  %v5081_v17 = vsub.f32 %v14676_v14, %v12141_v57  ;;  %v14683_v14 = vld [vmem:[#allocation83_spill] sm:$0xff] }
 0x971   :  { %14669 = vst [vmem:[#allocation100_spill] sm:$0xff] %v12408_v63  ;;  %6930 = vmatprep.subr.bf16.mxu0 %v5503_v54  ;;  %v14677_v54 = vld [vmem:[#allocation61_spill] sm:$0xff] }
 0x972   :  { %v12410_v56 = vpop.f32.mrf.mxu0  ;;  %5480 = vrot.lane.b32.xlu0 %v14671_v34, %s8120_s20  ;;  %v5078_v20 = vsub.f32 %v14677_v54, %v12144_v42  ;;  %v14679_v34 = vld [vmem:[#allocation106_spill] sm:$0xff]  ;;  %v5164_v51 = vmul.f32 1.442695, %v5081_v17  ;;  %v5082_v54 = vsub.f32 %v14683_v14, %v12156_v29 }
 0x973   :  { %14670 = vst [vmem:[#allocation49_spill] sm:$0xff] %v12410_v56  ;;  %v5079_v19 = vsub.f32 %v14679_v34, %v12144_v42  ;;  %v5083_v42 = vsub.f32 %v14684_v46, %v12156_v29  ;;  %v4959_v34 = vpop.f32.mrf.mxu1 }
 0x974   :  { %v12414_v25 = vpop.f32.mrf.mxu0  ;;  %6931 = vmatpush3.bf16.msra.mxu0 %v5487_v39  ;;  %v5162_v39 = vmul.f32 1.442695, %v5080_v41  ;;  %v5158_v57 = vmul.f32 1.442695, %v5078_v20  ;;  %v5166_v14 = vmul.f32 1.442695, %v5082_v54 }
 0x975   :  { %14672 = vst [vmem:[#allocation103_spill] sm:$0xff] %v12414_v25  ;;  %v5084_v25 = vsub.f32 %v14680_v13, %v12151_v32  ;;  %v14685_v13 = vld [vmem:[#allocation88_spill] sm:$0xff]  ;;  %v5168_v46 = vmul.f32 1.442695, %v5083_v42 }
 0x976   :  { %v12416_v37 = vpop.f32.mrf.mxu0  ;;  %7860 = vpow2.f32 %v5162_v39  ;;  %v5088_v33 = vsub.f32 %v14685_v13, %v12163_v45  ;;  %v4961_v13 = vpop.f32.mrf.mxu1  ;;  %v14693_v42 = vld [vmem:[#allocation92_spill] sm:$0xff] }
 0x977   :  { %14673 = vst [vmem:[#allocation127_spill] sm:$0xff] %v12416_v37  ;;  %v5170_v41 = vmul.f32 1.442695, %v5084_v25  ;;  %7862 = vpow2.f32 %v5164_v51  ;;  %v14689_v25 = vld [vmem:[#allocation84_spill] sm:$0xff] }
 0x978   :  { %v12420_v38 = vpop.f32.mrf.mxu0  ;;  %7864 = vpow2.f32 %v5158_v57  ;;  %v5087_v39 = vsub.f32 %v14689_v25, %v12166_v48  ;;  %v5178_v51 = vmul.f32 1.442695, %v5088_v33  ;;  %v14694_v33 = vld [vmem:[#allocation87_spill] sm:$0xff] }
 0x979   :  { %14675 = vst [vmem:[#allocation51_spill] sm:$0xff] %v12420_v38  ;;  %v14682_v38 = vld [vmem:[#allocation86_spill] sm:$0xff]  ;;  %v14695_v25 = vld [vmem:[#allocation135_spill] sm:$0xff] }
 0x97a   :  { %v12426_v16 = vpop.f32.mrf.mxu0  ;;  %v5085_v37 = vsub.f32 %v14682_v38, %v12151_v32  ;;  %v14686_v32 = vld [vmem:[#allocation75_spill] sm:$0xff] }
 0x97b   :  { %14678 = vst [vmem:[#allocation60_spill] sm:$0xff] %v12426_v16  ;;  %v5160_v16 = vmul.f32 1.442695, %v5079_v19  ;;  %v5089_v20 = vsub.f32 %v14686_v32, %v12163_v45  ;;  %v14688_v19 = vld [vmem:[#allocation90_spill] sm:$0xff]  ;;  %v5090_v32 = vsub.f32 %v14693_v42, %v12178_v12 }
 0x97c   :  { %v12432_v56 = vpop.f32.mrf.mxu0  ;;  %v5172_v17 = vmul.f32 1.442695, %v5085_v37  ;;  %v5086_v5 = vsub.f32 %v14688_v19, %v12166_v48  ;;  %v14690_v37 = vld [vmem:[#allocation95_spill] sm:$0xff]  ;;  %v5091_v19 = vsub.f32 %v14694_v33, %v12178_v12 }
 0x97d   :  { %14681 = vst [vmem:[#allocation41_spill] sm:$0xff] %v12432_v56  ;;  %7866 = vpow2.f32 %v5160_v16  ;;  %v5092_v36 = vsub.f32 %v14690_v37, %v12175_v58  ;;  %v12461_v37 = vadd.f32 %v4957_v43, %v14695_v25  ;;  %v5182_v12 = vmul.f32 1.442695, %v5090_v32  ;;  %v14700_v43 = vld [vmem:[#allocation99_spill] sm:$0xff] }
 0x97e   :  { %v6828_v63 = vpop.f32.mrf.mxu0  ;;  %7868 = vpow2.f32 %v5170_v41  ;;  %v5174_v16 = vmul.f32 1.442695, %v5086_v5  ;;  %v5176_v41 = vmul.f32 1.442695, %v5087_v39  ;;  %v14699_v39 = vld [vmem:[#allocation136_spill] sm:$0xff]  ;;  %v14701_v33 = vld [vmem:[#allocation139_spill] sm:$0xff] }
 0x97f   :  { %7870 = vpow2.f32 %v5172_v17  ;;  %v4963_v17 = vpop.f32.mrf.mxu1  ;;  %v12470_v42 = vadd.f32 %v4959_v34, %v14699_v39 }
 0x980   :  { %v6829_v56 = vpop.f32.mrf.mxu0  ;;  %7872 = vpow2.f32 %v5166_v14  ;;  %v12475_v25 = vadd.f32 %v4963_v17, %v14701_v33  ;;  %v14705_v17 = vld [vmem:[#allocation101_spill] sm:$0xff] }
 0x981   :  { %v12444_v38 = vadd.f32 %v6829_v56, %v6828_v63  ;;  %v5180_v63 = vmul.f32 1.442695, %v5089_v20  ;;  %v14691_v56 = vld [vmem:[#allocation89_spill] sm:$0xff]  ;;  %7874 = vpow2.f32 %v5168_v46  ;;  %v5186_v20 = vmul.f32 1.442695, %v5092_v36 }
 0x982   :  { %v6831_v29 = vpop.f32.mrf.mxu0  ;;  %v5093_v57 = vsub.f32 %v14691_v56, %v12175_v58  ;;  %7876 = vpow2.f32 %v5178_v51  ;;  %v14696_v58 = vld [vmem:[#allocation102_spill] sm:$0xff]  ;;  %v5094_v51 = vsub.f32 %v14700_v43, %v12192_v2 }
 0x983   :  { %14687 = vst [vmem:[#allocation32_spill] sm:$0xff] %v12444_v38  ;;  %7878 = vpow2.f32 %v5180_v63  ;;  %v5184_v63 = vmul.f32 1.442695, %v5091_v19 }
 0x984   :  { %v6832_v45 = vpop.f32.mrf.mxu0  ;;  %v5188_v5 = vmul.f32 1.442695, %v5093_v57  ;;  %7880 = vpow2.f32 %v5174_v16  ;;  %v14702_v57 = vld [vmem:[#allocation91_spill] sm:$0xff]  ;;  %v14704_v16 = vld [vmem:[#allocation105_spill] sm:$0xff] }
 0x985   :  { %v12454_v54 = vadd.f32 %v6832_v45, %v6831_v29  ;;  %v5096_v29 = vsub.f32 %v14696_v58, %v12189_v23  ;;  %v14697_v45 = vld [vmem:[#allocation94_spill] sm:$0xff]  ;;  %7882 = vpow2.f32 %v5176_v41  ;;  %v5095_v58 = vsub.f32 %v14702_v57, %v12192_v2 }
 0x986   :  { %v6834_v48 = vpop.f32.mrf.mxu0  ;;  %v5097_v56 = vsub.f32 %v14697_v45, %v12189_v23  ;;  %v14703_v23 = vld [vmem:[#allocation138_spill] sm:$0xff]  ;;  %7884 = vpow2.f32 %v5186_v20  ;;  %v5100_v32 = vsub.f32 %v14704_v16, %v12228_v49  ;;  %v12484_v45 = vpop.eup %7860  ;;  %v5101_v41 = vsub.f32 %v14705_v17, %v12228_v49  ;;  %v14707_v20 = vld [vmem:[#allocation108_spill] sm:$0xff] }
 0x987   :  { %14692 = vst [vmem:[#allocation43_spill] sm:$0xff] %v12454_v54  ;;  %v5194_v34 = vmul.f32 1.442695, %v5096_v29  ;;  %7886 = vpow2.f32 %v5188_v5  ;;  %v12490_v43 = vpop.eup %7862  ;;  %v5056_v2 = vmax.f32 %v12461_v37, %v12470_v42  ;;  %v5098_v29 = vsub.f32 %v14707_v20, %v12234_v55 }
 0x988   :  { %v6835_v14 = vpop.f32.mrf.mxu0  ;;  %v5196_v39 = vmul.f32 1.442695, %v5097_v56  ;;  %7888 = vpow2.f32 %v5182_v12  ;;  %v12496_v57 = vpop.eup %7864  ;;  %v5192_v49 = vmul.f32 1.442695, %v5095_v58  ;;  %v14708_v56 = vld [vmem:[#allocation98_spill] sm:$0xff] }
 0x989   :  { %v12467_v46 = vadd.f32 %v6835_v14, %v6834_v48  ;;  %v12480_v48 = vadd.f32 %v4961_v13, %v14703_v23  ;;  %v5190_v13 = vmul.f32 1.442695, %v5094_v51  ;;  %7890 = vpow2.f32 %v5184_v63  ;;  %v14709_v12 = vld [vmem:[#allocation58_spill] sm:$0xff] }
 0x98a   :  { %v6837_v36 = vpop.f32.mrf.mxu0  ;;  %v12502_v23 = vpop.eup %7866  ;;  %7892 = vpow2.f32 %v5194_v34  ;;  %v5202_v16 = vmul.f32 1.442695, %v5100_v32  ;;  %v5104_v51 = vsub.f32 %v14709_v12, %v12290_v10  ;;  %v5204_v20 = vmul.f32 1.442695, %v5101_v41  ;;  %v14712_v34 = vld [vmem:[#allocation48_spill] sm:$0xff] }
 0x98b   :  { %14698 = vst [vmem:[#allocation45_spill] sm:$0xff] %v12467_v46  ;;  %v5059_v5 = vmax.f32 %v12480_v48, %v12475_v25  ;;  %v12506_v17 = vpop.eup %7868  ;;  %7894 = vpow2.f32 %v5196_v39  ;;  %v5198_v58 = vmul.f32 1.442695, %v5098_v29  ;;  %v5102_v32 = vsub.f32 %v14712_v34, %v12296_v53  ;;  %v14714_v29 = vld [vmem:[#allocation165_spill] sm:$0xff] }
 0x98c   :  { %v6838_v14 = vpop.f32.mrf.mxu0  ;;  %7896 = vpow2.f32 %v5190_v13  ;;  %v5281_v12 = vadd.f32 %v12490_v43, %v12484_v45  ;;  %v5210_v13 = vmul.f32 1.442695, %v5104_v51  ;;  %v14717_v51 = vld [vmem:[#allocation151_spill] sm:$0xff] }
 0x98d   :  { %v12488_v19 = vadd.f32 %v6838_v14, %v6837_v36  ;;  %v5099_v36 = vsub.f32 %v14708_v56, %v12234_v55  ;;  %v12512_v55 = vpop.eup %7870  ;;  %7898 = vpow2.f32 %v5192_v49  ;;  %v14715_v49 = vld [vmem:[#allocation167_spill] sm:$0xff] }
 0x98e   :  { %v6840_v33 = vpop.f32.mrf.mxu0  ;;  %v12518_v39 = vpop.eup %7872  ;;  %7900 = vpow2.f32 %v5202_v16  ;;  %v5206_v16 = vmul.f32 1.442695, %v5102_v32  ;;  %v5287_v38 = vadd.f32 %v12512_v55, %v12506_v17  ;;  %v5112_v32 = vsub.f32 %v12210_v22, %v12384_v60 }
 0x98f   :  { %14706 = vst [vmem:[#allocation23_spill] sm:$0xff] %v12488_v19  ;;  %v14710_v19 = vld [vmem:[#allocation113_spill] sm:$0xff]  ;;  %v5200_v41 = vmul.f32 1.442695, %v5099_v36  ;;  %7902 = vpow2.f32 %v5204_v20  ;;  %v5109_v36 = vsub.f32 %v14715_v49, %v12302_v1 }
 0x990   :  { %v6841_v14 = vpop.f32.mrf.mxu0  ;;  %v5105_v46 = vsub.f32 %v14710_v19, %v12290_v10  ;;  %v14713_v10 = vld [vmem:[#allocation111_spill] sm:$0xff]  ;;  %7904 = vpow2.f32 %v5198_v58 }
 0x991   :  { %v12510_v63 = vadd.f32 %v6841_v14, %v6840_v33  ;;  %5057 = vmax.xlane.f32.xlu1 %v5056_v2  ;;  %5060 = vmax.xlane.f32.xlu0 %v5059_v5  ;;  %v5103_v19 = vsub.f32 %v14713_v10, %v12296_v53  ;;  %v5278_v2 = vadd.f32 %v12502_v23, %v12496_v57  ;;  %v12524_v33 = vpop.eup %7874  ;;  %7906 = vpow2.f32 %v5200_v41 }
 0x992   :  { %v6843_v56 = vpop.f32.mrf.mxu0  ;;  %v5108_v5 = vsub.f32 %v14714_v29, %v12302_v1  ;;  %v12528_v34 = vpop.eup %7876  ;;  %v5106_v10 = vsub.f32 %v14717_v51, %v12306_v6  ;;  %v14718_v1 = vld [vmem:[#allocation154_spill] sm:$0xff]  ;;  %7908 = vpow2.f32 %v5210_v13  ;;  %v5220_v51 = vmul.f32 1.442695, %v5109_v36 }
 0x993   :  { %14711 = vst [vmem:[#allocation21_spill] sm:$0xff] %v12510_v63  ;;  %v5212_v63 = vmul.f32 1.442695, %v5105_v46  ;;  %v12534_v53 = vpop.eup %7878  ;;  %v5208_v46 = vmul.f32 1.442695, %v5103_v19  ;;  %v5113_v41 = vsub.f32 %v12202_v40, %v12384_v60  ;;  %v5111_v40 = vsub.f32 %v12199_v3, %v12386_v7 }
 0x994   :  { %v6844_v14 = vpop.f32.mrf.mxu0  ;;  %v12540_v20 = vpop.eup %7880  ;;  %v5218_v58 = vmul.f32 1.442695, %v5108_v5  ;;  %v5214_v13 = vmul.f32 1.442695, %v5106_v10  ;;  %v5110_v5 = vsub.f32 %v12207_v59, %v12386_v7 }
 0x995   :  { %v12532_v54 = vadd.f32 %v6844_v14, %v6843_v56  ;;  %5282 = vadd.xlane.f32.xlu0 %v5281_v12  ;;  %5279 = vadd.xlane.f32.xlu1 %v5278_v2  ;;  %v5107_v56 = vsub.f32 %v14718_v1, %v12306_v6  ;;  %v5284_v12 = vadd.f32 %v12524_v33, %v12518_v39  ;;  %v12546_v2 = vpop.eup %7882  ;;  %7910 = vpow2.f32 %v5212_v63 }
 0x996   :  { %v6846_v29 = vpop.f32.mrf.mxu0  ;;  %v12550_v49 = vpop.eup %7884  ;;  %7912 = vpow2.f32 %v5206_v16  ;;  %v5293_v1 = vadd.f32 %v12534_v53, %v12528_v34  ;;  %v5290_v60 = vadd.f32 %v12546_v2, %v12540_v20  ;;  %v5226_v16 = vmul.f32 1.442695, %v5112_v32 }
 0x997   :  { %14716 = vst [vmem:[#allocation156_spill] sm:$0xff] %v12532_v54  ;;  %v12556_v6 = vpop.eup %7886  ;;  %7914 = vpow2.f32 %v5208_v46  ;;  %v5216_v36 = vmul.f32 1.442695, %v5107_v56  ;;  %v5222_v3 = vmul.f32 1.442695, %v5110_v5 }
 0x998   :  { %v6847_v14 = vpop.f32.mrf.mxu0  ;;  %v12562_v63 = vpop.eup %7888  ;;  %7916 = vpow2.f32 %v5218_v58  ;;  %v5299_v58 = vadd.f32 %v12556_v6, %v12550_v49 }
 0x999   :  { %v12554_v19 = vadd.f32 %v6847_v14, %v6846_v29  ;;  %5288 = vadd.xlane.f32.xlu0 %v5287_v38  ;;  %5285 = vadd.xlane.f32.xlu1 %v5284_v12  ;;  %v12568_v38 = vpop.eup %7890  ;;  %7918 = vpow2.f32 %v5220_v51  ;;  %v5228_v29 = vmul.f32 1.442695, %v5113_v41  ;;  %v5224_v14 = vmul.f32 1.442695, %v5111_v40 }
 0x99a   :  { %v6849_v22 = vpop.f32.mrf.mxu0  ;;  %v12570_v59 = vpop.eup %7892  ;;  %7920 = vpow2.f32 %v5214_v13  ;;  %v5296_v32 = vadd.f32 %v12568_v38, %v12562_v63 }
 0x99b   :  { %14719 = vst [vmem:[#allocation57_spill] sm:$0xff] %v12554_v19  ;;  %v12574_v46 = vpop.eup %7894  ;;  %7922 = vpow2.f32 %v5216_v36 }
 0x99c   :  { %v6850_v10 = vpop.f32.mrf.mxu0  ;;  %v12576_v56 = vpop.eup %7896  ;;  %7924 = vpow2.f32 %v5226_v16 }
 0x99d   :  { %v12572_v12 = vadd.f32 %v6850_v10, %v6849_v22  ;;  %5294 = vadd.xlane.f32.xlu0 %v5293_v1  ;;  %5291 = vadd.xlane.f32.xlu1 %v5290_v60  ;;  %v12582_v51 = vpop.eup %7898  ;;  %7926 = vpow2.f32 %v5228_v29  ;;  %v5305_v29 = vadd.f32 %v12574_v46, %v12570_v59 }
 0x99e   :  { %v6852_v7 = vpop.f32.mrf.mxu0  ;;  %v12584_v1 = vpop.eup %7900  ;;  %7928 = vpow2.f32 %v5222_v3 }
 0x99f   :  { %14720 = vst [vmem:[#allocation104_spill] sm:$0xff] %v12572_v12  ;;  %14721 = vst [vmem:[#allocation119_spill] sm:$0xff] %v12584_v1  ;;  %v12590_v60 = vpop.eup %7902  ;;  %7930 = vpow2.f32 %v5224_v14 }
 0x9a0   :  { %v6853_v41 = vpop.f32.mrf.mxu0  ;;  %v5049_v22 = vpop.xlane.xlu0 %5048 }
 0x9a1   :  { %v12586_v13 = vadd.f32 %v6853_v41, %v6852_v7  ;;  %v5116_v5 = vsub.f32 %v12270_v4, %v5049_v22  ;;  %v5117_v36 = vsub.f32 %v12262_v50, %v5049_v22  ;;  %v5046_v40 = vpop.xlane.xlu1 %5045  ;;  %5300 = vadd.xlane.f32.xlu0 %v5299_v58  ;;  %5297 = vadd.xlane.f32.xlu1 %v5296_v32  ;;  %v12596_v7 = vpop.eup %7904 }
 0x9a2   :  { %v6855_v10 = vpop.f32.mrf.mxu0  ;;  %v5114_v16 = vsub.f32 %v12267_v9, %v5046_v40  ;;  %v5115_v12 = vsub.f32 %v12259_v35, %v5046_v40  ;;  %14723 = vst [vmem:[#allocation126_spill] sm:$0xff] %v12596_v7  ;;  %v5302_v50 = vadd.f32 %v12582_v51, %v12576_v56  ;;  %v12600_v58 = vpop.eup %7906 }
 0x9a3   :  { %14722 = vst [vmem:[#allocation124_spill] sm:$0xff] %v12586_v13  ;;  %v5234_v4 = vmul.f32 1.442695, %v5116_v5  ;;  %v5236_v41 = vmul.f32 1.442695, %v5117_v36  ;;  %v12604_v9 = vpop.eup %7908 }
 0x9a4   :  { %v5230_v32 = vmul.f32 1.442695, %v5114_v16  ;;  %v5232_v3 = vmul.f32 1.442695, %v5115_v12  ;;  %v6856_v22 = vpop.f32.mrf.mxu0  ;;  %v12602_v13 = vpop.xlane.xlu0 %5267  ;;  %14724 = vst [vmem:[#allocation42_spill] sm:$0xff] %v12604_v9  ;;  %v5311_v12 = vadd.f32 %v12590_v60, %v12584_v1  ;;  %v5308_v16 = vadd.f32 %v12600_v58, %v12596_v7 }
 0x9a5   :  { %7932 = vpow2.f32 %v5234_v4  ;;  %v12606_v35 = vadd.f32 %v6856_v22, %v6855_v10  ;;  %v5501_v40 = vpop.permute.xlu1 %5500  ;;  %5306 = vadd.xlane.f32.xlu0 %v5305_v29  ;;  %5303 = vadd.xlane.f32.xlu1 %v5302_v50  ;;  %v12608_v14 = vpop.eup %7910 }
 0x9a6   :  { %14726 = vst [vmem:[#allocation34_spill] sm:$0xff] %v12608_v14  ;;  %7934 = vpow2.f32 %v5236_v41  ;;  %v6858_v5 = vpop.f32.mrf.mxu0  ;;  %6932 = vmatprep.subr.bf16.mxu0 %v5501_v40  ;;  %v12610_v36 = vpop.eup %7912  ;;  %v5317_v19 = vadd.f32 %v12608_v14, %v12604_v9 }
 0x9a7   :  { %14725 = vst [vmem:[#allocation125_spill] sm:$0xff] %v12606_v35  ;;  %14727 = vst [vmem:[#allocation36_spill] sm:$0xff] %v12610_v36  ;;  %7936 = vpow2.f32 %v5230_v32  ;;  %v12616_v4 = vpop.eup %7914 }
 0x9a8   :  { %7938 = vpow2.f32 %v5232_v3  ;;  %v6859_v10 = vpop.f32.mrf.mxu0  ;;  %v5271_v29 = vpop.xlane.xlu0 %5270  ;;  %v5314_v3 = vadd.f32 %v12616_v4, %v12610_v36 }
 0x9a9   :  { %v12618_v50 = vpop.eup %7916  ;;  %v12620_v22 = vadd.f32 %v6859_v10, %v6858_v5  ;;  %5312 = vadd.xlane.f32.xlu0 %v5311_v12  ;;  %5309 = vadd.xlane.f32.xlu1 %v5308_v16  ;;  %v5499_v35 = vpop.permute.xlu1 %5498  ;;  %7940 = vrcp.f32 %v12400_v27 }
 0x9aa   :  { %v12622_v41 = vpop.eup %7918  ;;  %v6861_v32 = vpop.f32.mrf.mxu0  ;;  %7942 = vrcp.f32 %v12392_v8 }
 0x9ab   :  { %14728 = vst [vmem:[#allocation19_spill] sm:$0xff] %v12620_v22  ;;  %v12624_v40 = vpop.eup %7920  ;;  %v5323_v22 = vadd.f32 %v12622_v41, %v12618_v50  ;;  %7944 = vrcp.f32 %v5271_v29 }
 0x9ac   :  { %v12630_v54 = vpop.eup %7922  ;;  %v6862_v1 = vpop.f32.mrf.mxu0 }
 0x9ad   :  { %v5485_v7 = vpop.permute.xlu0 %5484  ;;  %v12632_v5 = vpop.eup %7924  ;;  %v12634_v12 = vadd.f32 %v6862_v1, %v6861_v32  ;;  %5318 = vadd.xlane.f32.xlu0 %v5317_v19  ;;  %5315 = vadd.xlane.f32.xlu1 %v5314_v3  ;;  %v5320_v9 = vadd.f32 %v12630_v54, %v12624_v40 }
 0x9ae   :  { %14729 = vst [vmem:[#allocation53_spill] sm:$0xff] %v12632_v5  ;;  %v12636_v16 = vpop.eup %7926  ;;  %6933 = vmatpush3.bf16.msra.mxu0 %v5485_v7  ;;  %v5483_v14 = vpop.permute.xlu1 %5482 }
 0x9af   :  { %14730 = vst [vmem:[#allocation17_spill] sm:$0xff] %v12634_v12  ;;  %14731 = vst [vmem:[#allocation62_spill] sm:$0xff] %v12636_v16  ;;  %v12638_v10 = vpop.eup %7928  ;;  %6934 = vmatprep.subr.bf16.mxu0 %v5499_v35  ;;  %v5329_v7 = vadd.f32 %v12636_v16, %v12632_v5 }
 0x9b0   :  { %14732 = vst [vmem:[#allocation47_spill] sm:$0xff] %v12638_v10  ;;  %v12644_v36 = vpop.eup %7930 }
 0x9b1   :  { %14733 = vst [vmem:[#allocation35_spill] sm:$0xff] %v12644_v36  ;;  %5324 = vadd.xlane.f32.xlu0 %v5323_v22  ;;  %5321 = vadd.xlane.f32.xlu1 %v5320_v9  ;;  %v5326_v35 = vadd.f32 %v12644_v36, %v12638_v10 }
 0x9b2   :  { %v12646_v1 = vpop.eup %7932  ;;  %6935 = vmatpush3.bf16.msra.mxu0 %v5483_v14 }
 0x9b3   :  { %14734 = vst [vmem:[#allocation46_spill] sm:$0xff] %v12646_v1  ;;  %v12648_v19 = vpop.eup %7934 }
 0x9b4   :  { %v12654_v32 = vpop.eup %7936  ;;  %v5335_v9 = vadd.f32 %v12648_v19, %v12646_v1 }
 0x9b5   :  { %14735 = vst [vmem:[#allocation129_spill] sm:$0xff] %v12654_v32  ;;  %v12656_v3 = vpop.eup %7938  ;;  %5330 = vadd.xlane.f32.xlu0 %v5329_v7  ;;  %5327 = vadd.xlane.f32.xlu1 %v5326_v35 }
 0x9b6   :  { %v5332_v14 = vadd.f32 %v12656_v3, %v12654_v32 }
 0x9b9   :  { %5336 = vadd.xlane.f32.xlu0 %v5335_v9  ;;  %v6864_v22 = vpop.f32.mrf.mxu0  ;;  %5333 = vadd.xlane.f32.xlu1 %v5332_v14 }
 0x9bb   :  { %v6865_v12 = vpop.f32.mrf.mxu0 }
 0x9bc   :  { %v12662_v5 = vadd.f32 %v6865_v12, %v6864_v22 }
 0x9bd   :  { %v6867_v16 = vpop.f32.mrf.mxu0 }
 0x9be   :  { %14736 = vst [vmem:[#allocation130_spill] sm:$0xff] %v12662_v5 }
 0x9bf   :  { %v6868_v10 = vpop.f32.mrf.mxu0 }
 0x9c0   :  { %v12664_v36 = vadd.f32 %v6868_v10, %v6867_v16 }
 0x9c2   :  { %14737 = vst [vmem:[#allocation128_spill] sm:$0xff] %v12664_v36 }
 0x9dd   :  { %v5055_v7 = vpop.xlane.xlu0 %5054  ;;  %v5052_v35 = vpop.xlane.xlu1 %5051 }
 0x9de   :  { %v5120_v1 = vsub.f32 %v12358_v11, %v5055_v7  ;;  %v5121_v32 = vsub.f32 %v12352_v21, %v5055_v7  ;;  %v5118_v9 = vsub.f32 %v12355_v24, %v5052_v35  ;;  %v5119_v14 = vsub.f32 %v12349_v15, %v5052_v35  ;;  %v7941_v11 = vpop.eup %7940 }
 0x9df   :  { %v7943_v27 = vpop.eup %7942  ;;  %v5389_v15 = vmul.f32 %v7941_v11, %v12226_v0  ;;  %v14738_v35 = vpack.c.bf16 %v12336_v62, %v12333_v28 }
 0x9e0   :  { %v5242_v12 = vmul.f32 1.442695, %v5120_v1  ;;  %v5244_v22 = vmul.f32 1.442695, %v5121_v32  ;;  %v5238_v5 = vmul.f32 1.442695, %v5118_v9  ;;  %v7945_v1 = vpop.eup %7944 }
 0x9e1   :  { %v5240_v16 = vmul.f32 1.442695, %v5119_v14  ;;  %v5274_v10 = vpop.xlane.xlu0 %5273  ;;  %v5497_v36 = vpop.permute.xlu1 %5496 }
 0x9e2   :  { %7946 = vpow2.f32 %v5242_v12  ;;  %6936 = vmatprep.subr.bf16.mxu0 %v5497_v36  ;;  %v5387_v36 = vmul.f32 %v7943_v27, %v12218_v30  ;;  %v5388_v12 = vmul.f32 %v7941_v11, %v12222_v52  ;;  %v14739_v11 = vld [vmem:[#allocation153_spill] sm:$0xff] }
 0x9e3   :  { %7948 = vpow2.f32 %v5244_v22  ;;  %v5393_v22 = vmul.f32 %v7945_v1, %v12286_v47 }
 0x9e4   :  { %7950 = vpow2.f32 %v5238_v5 }
 0x9e5   :  { %7952 = vpow2.f32 %v5240_v16  ;;  %v5277_v8 = vpop.xlane.xlu0 %5276  ;;  %v5495_v21 = vpop.permute.xlu1 %5494  ;;  %v5386_v16 = vmul.f32 %v7943_v27, %v12204_v18 }
 0x9e6   :  { %7954 = vrcp.f32 %v12602_v13  ;;  %v5449_v13 = vpack.c.bf16 %v5389_v15, %v5387_v36  ;;  %v5392_v36 = vmul.f32 %v7945_v1, %v12282_v26 }
 0x9e7   :  { %7956 = vrcp.f32 %v5277_v8 }
 0x9e8   :  { %7958 = vrcp.f32 %v5274_v10  ;;  %v5448_v10 = vpack.c.bf16 %v5388_v12, %v5386_v16 }
 0x9e9   :  { %v5481_v24 = vpop.permute.xlu0 %5480  ;;  %v5479_v29 = vpop.permute.xlu1 %5478 }
 0x9ea   :  { %6937 = vmatpush3.bf16.msra.mxu0 %v5481_v24 }
 0x9eb   :  { %6938 = vmatprep.subr.bf16.mxu0 %v5495_v21 }
 0x9ee   :  { %6939 = vmatpush3.bf16.msra.mxu0 %v5479_v29 }
 0x9ef   :  { %v12675_v5 = vpop.eup %7946 }
 0x9f0   :  { %v12677_v32 = vpop.eup %7948 }
 0x9f1   :  { %v12679_v7 = vpop.eup %7950  ;;  %5559 = vmatmul.mubr.bf16.vlgmr.msra.gmra.mxu0 %v14738_v35  ;;  %v5341_v0 = vadd.f32 %v12677_v32, %v12675_v5 }
 0x9f2   :  { %v12686_v9 = vpop.eup %7952  ;;  %5566 = vmatprep.mubr.bf16.mxu0 %v5449_v13 }
 0x9f3   :  { %v7955_v14 = vpop.eup %7954  ;;  %5342 = vadd.xlane.f32.xlu0 %v5341_v0  ;;  %v5338_v30 = vadd.f32 %v12686_v9, %v12679_v7  ;;  %v14741_v0 = vld [vmem:[#allocation142_spill] sm:$0xff] }
 0x9f4   :  { %v5391_v62 = vmul.f32 %v7955_v14, %v12278_v31  ;;  %v7957_v24 = vpop.eup %7956  ;;  %v5390_v47 = vmul.f32 %v7955_v14, %v12272_v61  ;;  %v14740_v31 = vld [vmem:[#allocation76_spill] sm:$0xff] }
 0x9f5   :  { %5339 = vadd.xlane.f32.xlu1 %v5338_v30  ;;  %v7959_v29 = vpop.eup %7958  ;;  %v5397_v52 = vmul.f32 %v7957_v24, %v12372_v44  ;;  %v5396_v35 = vmul.f32 %v7957_v24, %v14740_v31 }
 0x9f6   :  { %v6870_v28 = vpop.f32.mrf.mxu0  ;;  %v5451_v21 = vpack.c.bf16 %v5393_v22, %v5391_v62  ;;  %v5395_v18 = vmul.f32 %v7959_v29, %v14739_v11  ;;  %v5450_v27 = vpack.c.bf16 %v5392_v36, %v5390_v47  ;;  %v5394_v30 = vmul.f32 %v7959_v29, %v14741_v0 }
 0x9f8   :  { %v6871_v8 = vpop.f32.mrf.mxu0  ;;  %v5453_v13 = vpack.c.bf16 %v5397_v52, %v5395_v18  ;;  %v5452_v12 = vpack.c.bf16 %v5396_v35, %v5394_v30 }
 0x9f9   :  { %v12694_v15 = vadd.f32 %v6871_v8, %v6870_v28  ;;  %5567 = vmatmul.mubr.bf16.gmra.mxu0 %v5448_v10 }
 0x9fa   :  { %5574 = vmatprep.mubr.bf16.mxu0 %v5451_v21 }
 0xa01   :  { %5575 = vmatmul.mubr.bf16.gmra.mxu0 %v5450_v27 }
 0xa02   :  { %5582 = vmatprep.mubr.bf16.mxu0 %v5453_v13 }
 0xa09   :  { %5583 = vmatmul.mubr.bf16.gmra.mxu0 %v5452_v12 }
 0xa1a   :  { %v5061_v22 = vpop.xlane.xlu0 %5060  ;;  %v5058_v16 = vpop.xlane.xlu1 %5057 }
 0xa1b   :  { %v5124_v26 = vsub.f32 %v12480_v48, %v5061_v22  ;;  %v5125_v44 = vsub.f32 %v12475_v25, %v5061_v22  ;;  %v5122_v61 = vsub.f32 %v12461_v37, %v5058_v16  ;;  %v5123_v1 = vsub.f32 %v12470_v42, %v5058_v16 }
 0xa1d   :  { %v5250_v14 = vmul.f32 1.442695, %v5124_v26  ;;  %v5252_v28 = vmul.f32 1.442695, %v5125_v44  ;;  %v5246_v62 = vmul.f32 1.442695, %v5122_v61 }
 0xa1e   :  { %v5248_v10 = vmul.f32 1.442695, %v5123_v1  ;;  %v5283_v8 = vpop.xlane.xlu0 %5282  ;;  %v5280_v21 = vpop.xlane.xlu1 %5279 }
 0xa1f   :  { %7960 = vpow2.f32 %v5250_v14 }
 0xa20   :  { %7962 = vpow2.f32 %v5252_v28 }
 0xa21   :  { %7964 = vpow2.f32 %v5246_v62 }
 0xa22   :  { %7966 = vpow2.f32 %v5248_v10  ;;  %v5289_v24 = vpop.xlane.xlu0 %5288  ;;  %v5286_v29 = vpop.xlane.xlu1 %5285 }
 0xa23   :  { %7968 = vrcp.f32 %v5283_v8 }
 0xa24   :  { %7970 = vrcp.f32 %v5280_v21 }
 0xa25   :  { %7972 = vrcp.f32 %v5289_v24 }
 0xa26   :  { %7974 = vrcp.f32 %v5286_v29  ;;  %v5295_v25 = vpop.xlane.xlu0 %5294  ;;  %v5292_v37 = vpop.xlane.xlu1 %5291 }
 0xa27   :  { %7976 = vrcp.f32 %v5295_v25 }
 0xa28   :  { %7978 = vrcp.f32 %v5292_v37 }
 0xa2a   :  { %v5301_v52 = vpop.xlane.xlu0 %5300  ;;  %v5298_v18 = vpop.xlane.xlu1 %5297 }
 0xa2b   :  { %7980 = vrcp.f32 %v5301_v52  ;;  %v14743_v52 = vld [vmem:[#allocation159_spill] sm:$0xff] }
 0xa2c   :  { %v12706_v42 = vpop.eup %7960  ;;  %7982 = vrcp.f32 %v5298_v18 }
 0xa2d   :  { %v12708_v48 = vpop.eup %7962 }
 0xa2e   :  { %v12710_v36 = vpop.eup %7964  ;;  %v5347_v47 = vadd.f32 %v12708_v48, %v12706_v42  ;;  %v5307_v28 = vpop.xlane.xlu0 %5306 }
 0xa2f   :  { %v12714_v11 = vpop.eup %7966  ;;  %7984 = vrcp.f32 %v5307_v28  ;;  %v14751_v28 = vld [vmem:[#allocation51_spill] sm:$0xff] }
 0xa30   :  { %v7969_v27 = vpop.eup %7968  ;;  %5348 = vadd.xlane.f32.xlu0 %v5347_v47  ;;  %v5344_v13 = vadd.f32 %v12714_v11, %v12710_v36  ;;  %v14744_v47 = vld [vmem:[#allocation59_spill] sm:$0xff] }
 0xa31   :  { %v7971_v31 = vpop.eup %7970  ;;  %v5401_v35 = vmul.f32 %v7969_v27, %v12490_v43  ;;  %v5400_v0 = vmul.f32 %v7969_v27, %v12484_v45  ;;  %v5304_v45 = vpop.xlane.xlu1 %5303  ;;  %v6661_v18 = vadd.f32 %v14744_v47, %v14743_v52  ;;  %v14756_v47 = vld [vmem:[#allocation126_spill] sm:$0xff] }
 0xa32   :  { %v7973_v30 = vpop.eup %7972  ;;  %5345 = vadd.xlane.f32.xlu1 %v5344_v13  ;;  %v5399_v12 = vmul.f32 %v7971_v31, %v12502_v23  ;;  %v5398_v22 = vmul.f32 %v7971_v31, %v12496_v57  ;;  %7986 = vrcp.f32 %v5304_v45  ;;  %v5313_v21 = vpop.xlane.xlu0 %5312  ;;  %v14753_v45 = vld [vmem:[#allocation103_spill] sm:$0xff] }
 0xa33   :  { %v7975_v16 = vpop.eup %7974  ;;  %v5405_v26 = vmul.f32 %v7973_v30, %v12512_v55  ;;  %v5404_v57 = vmul.f32 %v7973_v30, %v12506_v17  ;;  %7988 = vrcp.f32 %v5313_v21 }
 0xa34   :  { %v5455_v44 = vpack.c.bf16 %v5401_v35, %v5399_v12  ;;  %v5454_v61 = vpack.c.bf16 %v5400_v0, %v5398_v22  ;;  %v5403_v1 = vmul.f32 %v7975_v16, %v12524_v33  ;;  %v7977_v14 = vpop.eup %7976  ;;  %v5402_v23 = vmul.f32 %v7975_v16, %v12518_v39  ;;  %v14747_v0 = vld [vmem:[#allocation100_spill] sm:$0xff]  ;;  %v14749_v22 = vld [vmem:[#allocation146_spill] sm:$0xff] }
 0xa35   :  { %v7979_v62 = vpop.eup %7978  ;;  %v5409_v10 = vmul.f32 %v7977_v14, %v12534_v53  ;;  %v5310_v25 = vpop.xlane.xlu1 %5309  ;;  %v5408_v39 = vmul.f32 %v7977_v14, %v12528_v34  ;;  %v14742_v53 = vld [vmem:[#allocation145_spill] sm:$0xff]  ;;  %v14748_v12 = vld [vmem:[#allocation40_spill] sm:$0xff]  ;;  %v14750_v14 = vld [vmem:[#allocation127_spill] sm:$0xff] }
 0xa36   :  { %5590 = vmatprep.mubr.bf16.mxu0 %v5455_v44  ;;  %v5457_v43 = vpack.c.bf16 %v5405_v26, %v5403_v1  ;;  %v5407_v55 = vmul.f32 %v7979_v62, %v12546_v2  ;;  %v5456_v8 = vpack.c.bf16 %v5404_v57, %v5402_v23  ;;  %v5406_v37 = vmul.f32 %v7979_v62, %v12540_v20  ;;  %v5319_v31 = vpop.xlane.xlu0 %5318  ;;  %v14752_v62 = vld [vmem:[#allocation49_spill] sm:$0xff] }
 0xa37   :  { %5591 = vmatmul.mubr.bf16.gmra.mxu0 %v5454_v61  ;;  %7990 = vrcp.f32 %v5310_v25  ;;  %v6667_v16 = vadd.f32 %v14749_v22, %v14748_v12  ;;  %v6821_v23 = vadd.f32 %v14753_v45, %v14752_v62  ;;  %v14762_v62 = vld [vmem:[#allocation62_spill] sm:$0xff] }
 0xa38   :  { %5598 = vmatprep.mubr.bf16.mxu0 %v5457_v43  ;;  %v7981_v33 = vpop.eup %7980  ;;  %v5459_v24 = vpack.c.bf16 %v5409_v10, %v5407_v55  ;;  %v5458_v27 = vpack.c.bf16 %v5408_v39, %v5406_v37  ;;  %7992 = vrcp.f32 %v5319_v31  ;;  %v6824_v43 = vadd.f32 %v14751_v28, %v14750_v14  ;;  %v14761_v28 = vld [vmem:[#allocation35_spill] sm:$0xff] }
 0xa39   :  { %v7983_v29 = vpop.eup %7982  ;;  %v5413_v2 = vmul.f32 %v7981_v33, %v12556_v6  ;;  %v5316_v34 = vpop.xlane.xlu1 %5315  ;;  %v14746_v6 = vld [vmem:[#allocation18_spill] sm:$0xff]  ;;  %v5412_v44 = vmul.f32 %v7981_v33, %v12550_v49 }
 0xa3a   :  { %v5411_v17 = vmul.f32 %v7983_v29, %v12568_v38  ;;  %v14745_v38 = vld [vmem:[#allocation147_spill] sm:$0xff]  ;;  %v6818_v30 = vadd.f32 %v14747_v0, %v14746_v6  ;;  %v5410_v26 = vmul.f32 %v7983_v29, %v12562_v63  ;;  %7994 = vrcp.f32 %v5316_v34  ;;  %v5325_v63 = vpop.xlane.xlu0 %5324  ;;  %v14759_v6 = vld [vmem:[#allocation36_spill] sm:$0xff] }
 0xa3b   :  { %7996 = vrcp.f32 %v5325_v63 }
 0xa3c   :  { %v7985_v13 = vpop.eup %7984  ;;  %v5461_v35 = vpack.c.bf16 %v5413_v2, %v5411_v17  ;;  %v5460_v57 = vpack.c.bf16 %v5412_v44, %v5410_v26 }
 0xa3d   :  { %v5417_v1 = vmul.f32 %v7985_v13, %v12574_v46  ;;  %v14754_v46 = vld [vmem:[#allocation60_spill] sm:$0xff] }
 0xa3e   :  { %v5331_v17 = vpop.xlane.xlu0 %5330 }
 0xa3f   :  { %5599 = vmatmul.mubr.bf16.gmra.mxu0 %v5456_v8  ;;  %v7987_v20 = vpop.eup %7986  ;;  %v5322_v8 = vpop.xlane.xlu1 %5321 }
 0xa40   :  { %5606 = vmatprep.mubr.bf16.mxu0 %v5459_v24  ;;  %v5415_v61 = vmul.f32 %v7987_v20, %v12582_v51  ;;  %v7989_v55 = vpop.eup %7988  ;;  %v14755_v51 = vld [vmem:[#allocation41_spill] sm:$0xff]  ;;  %v5414_v21 = vmul.f32 %v7987_v20, %v12576_v56  ;;  %v5416_v24 = vmul.f32 %v7985_v13, %v12570_v59  ;;  %7998 = vrcp.f32 %v5322_v8 }
 0xa41   :  { %v6827_v33 = vadd.f32 %v14755_v51, %v14754_v46  ;;  %v5421_v25 = vmul.f32 %v7989_v55, %v12590_v60  ;;  %8000 = vrcp.f32 %v5331_v17  ;;  %v14765_v51 = vld [vmem:[#allocation129_spill] sm:$0xff] }
 0xa42   :  { %v5463_v10 = vpack.c.bf16 %v5417_v1, %v5415_v61  ;;  %v5462_v37 = vpack.c.bf16 %v5416_v24, %v5414_v21  ;;  %v14766_v21 = vld [vmem:[#allocation46_spill] sm:$0xff] }
 0xa43   :  { %3273 = vrot.lane.b32.xlu1 %v14742_v53, %s8121_s22  ;;  %v5328_v52 = vpop.xlane.xlu1 %5327 }
 0xa44   :  { %v7991_v49 = vpop.eup %7990  ;;  %8002 = vrcp.f32 %v5328_v52 }
 0xa45   :  { %v5419_v29 = vmul.f32 %v7991_v49, %v12600_v58  ;;  %v7993_v39 = vpop.eup %7992  ;;  %v5418_v56 = vmul.f32 %v7991_v49, %v14756_v47 }
 0xa46   :  { %3275 = vrot.lane.b32.xlu0 %v6661_v18, %s8121_s22  ;;  %v14757_v18 = vld [vmem:[#allocation119_spill] sm:$0xff] }
 0xa47   :  { %5607 = vmatmul.mubr.bf16.gmra.mxu0 %v5458_v27  ;;  %3277 = vrot.lane.b32.xlu1 %v14745_v38, %s8121_s22  ;;  %v5465_v2 = vpack.c.bf16 %v5421_v25, %v5419_v29  ;;  %v7995_v53 = vpop.eup %7994  ;;  %v5420_v59 = vmul.f32 %v7989_v55, %v14757_v18  ;;  %v14758_v27 = vld [vmem:[#allocation34_spill] sm:$0xff]  ;;  %v5334_v38 = vpop.xlane.xlu1 %5333 }
 0xa48   :  { %5614 = vmatprep.mubr.bf16.mxu0 %v5461_v35  ;;  %v5423_v58 = vmul.f32 %v7995_v53, %v12616_v4  ;;  %v5425_v60 = vmul.f32 %v7993_v39, %v14758_v27  ;;  %v7997_v31 = vpop.eup %7996  ;;  %v5337_v35 = vpop.xlane.xlu0 %5336  ;;  %v5422_v0 = vmul.f32 %v7995_v53, %v14759_v6 }
 0xa49   :  { %v5464_v13 = vpack.c.bf16 %v5420_v59, %v5418_v56  ;;  %8004 = vrcp.f32 %v5337_v35  ;;  %v5429_v4 = vmul.f32 %v7997_v31, %v12622_v41  ;;  %v5428_v14 = vmul.f32 %v7997_v31, %v12618_v50  ;;  %v14763_v41 = vld [vmem:[#allocation47_spill] sm:$0xff]  ;;  %v12784_v56 = vpop.f32.mrf.mxu0 }
 0xa4a   :  { %4508 = vrot.lane.b32.xlu0 %v6818_v30, %s8107_s29  ;;  %v5467_v20 = vpack.c.bf16 %v5425_v60, %v5423_v58  ;;  %v14760_v30 = vld [vmem:[#allocation42_spill] sm:$0xff]  ;;  %8006 = vrcp.f32 %v5334_v38 }
 0xa4b   :  { %3279 = vrot.lane.b32.xlu1 %v6667_v16, %s8121_s22  ;;  %v5424_v12 = vmul.f32 %v7993_v39, %v14760_v30  ;;  %v12786_v18 = vpop.f32.mrf.mxu0 }
 0xa4d   :  { %v7999_v34 = vpop.eup %7998  ;;  %v5466_v16 = vpack.c.bf16 %v5424_v12, %v5422_v0 }
 0xa4e   :  { %4512 = vrot.lane.b32.xlu0 %v6824_v43, %s8107_s29  ;;  %v5427_v22 = vmul.f32 %v7999_v34, %v12630_v54  ;;  %v8001_v26 = vpop.eup %8000  ;;  %v5426_v1 = vmul.f32 %v7999_v34, %v12624_v40 }
 0xa4f   :  { %5615 = vmatmul.mubr.bf16.gmra.mxu0 %v5460_v57  ;;  %4510 = vrot.lane.b32.xlu1 %v6821_v23, %s8107_s29  ;;  %v5433_v45 = vmul.f32 %v8001_v26, %v14762_v62 }
 0xa50   :  { %5622 = vmatprep.mubr.bf16.mxu0 %v5463_v10  ;;  %v5469_v44 = vpack.c.bf16 %v5429_v4, %v5427_v22  ;;  %v5468_v23 = vpack.c.bf16 %v5428_v14, %v5426_v1  ;;  %v14764_v10 = vld [vmem:[#allocation53_spill] sm:$0xff] }
 0xa51   :  { %v8003_v61 = vpop.eup %8002  ;;  %v5432_v49 = vmul.f32 %v8001_v26, %v14764_v10 }
 0xa52   :  { %v5431_v43 = vmul.f32 %v8003_v61, %v14761_v28  ;;  %v5430_v63 = vmul.f32 %v8003_v61, %v14763_v41 }
 0xa53   :  { %4514 = vrot.lane.b32.xlu1 %v6827_v33, %s8107_s29 }
 0xa54   :  { %v5471_v55 = vpack.c.bf16 %v5433_v45, %v5431_v43  ;;  %v5470_v46 = vpack.c.bf16 %v5432_v49, %v5430_v63 }
 0xa56   :  { %v8005_v57 = vpop.eup %8004 }
 0xa57   :  { %5623 = vmatmul.mubr.bf16.gmra.mxu0 %v5462_v37  ;;  %v8007_v54 = vpop.eup %8006  ;;  %v5437_v40 = vmul.f32 %v8005_v57, %v12648_v19  ;;  %v5436_v24 = vmul.f32 %v8005_v57, %v14766_v21 }
 0xa58   :  { %5630 = vmatprep.mubr.bf16.mxu0 %v5465_v2  ;;  %v5435_v8 = vmul.f32 %v8007_v54, %v12656_v3  ;;  %v5434_v33 = vmul.f32 %v8007_v54, %v14765_v51 }
 0xa5a   :  { %v5473_v50 = vpack.c.bf16 %v5437_v40, %v5435_v8  ;;  %v5472_v25 = vpack.c.bf16 %v5436_v24, %v5434_v33 }
 0xa5f   :  { %5631 = vmatmul.mubr.bf16.gmra.mxu0 %v5464_v13 }
 0xa60   :  { %5638 = vmatprep.mubr.bf16.mxu0 %v5467_v20 }
 0xa67   :  { %5639 = vmatmul.mubr.bf16.gmra.mxu0 %v5466_v16 }
 0xa68   :  { %5646 = vmatprep.mubr.bf16.mxu0 %v5469_v44 }
 0xa6f   :  { %5647 = vmatmul.mubr.bf16.gmra.mxu0 %v5468_v23 }
 0xa70   :  { %5654 = vmatprep.mubr.bf16.mxu0 %v5471_v55 }
 0xa77   :  { %5655 = vmatmul.mubr.bf16.gmra.mxu0 %v5470_v46 }
 0xa78   :  { %5662 = vmatprep.mubr.bf16.mxu0 %v5473_v50 }
 0xa7c   :  { %v5343_v29 = vpop.xlane.xlu0 %5342 }
 0xa7d   :  { %8008 = vrcp.f32 %v5343_v29 }
 0xa7e   :  { %v5340_v37 = vpop.xlane.xlu1 %5339 }
 0xa7f   :  { %5663 = vmatmul.mubr.bf16.gmra.mxu0 %v5472_v25  ;;  %8010 = vrcp.f32 %v5340_v37 }
 0xa8a   :  { %v8009_v39 = vpop.eup %8008 }
 0xa8b   :  { %v5441_v17 = vmul.f32 %v8009_v39, %v12677_v32  ;;  %v5440_v3 = vmul.f32 %v8009_v39, %v12675_v5 }
 0xa8c   :  { %v8011_v19 = vpop.eup %8010 }
 0xa8d   :  { %v5439_v2 = vmul.f32 %v8011_v19, %v12686_v9  ;;  %v5438_v53 = vmul.f32 %v8011_v19, %v12679_v7 }
 0xa8f   :  { %v5475_v52 = vpack.c.bf16 %v5441_v17, %v5439_v2  ;;  %v5474_v47 = vpack.c.bf16 %v5440_v3, %v5438_v53  ;;  %v7246_v53 = vld [vmem:[#allocation8 + $0x8] sm:$0xff]  }
 0xa90   :  { %7126 = vmatprep.subr.bf16.mxu1 %v7246_v53  ;;  %7090 = vmatprep.subr.bf16.mxu0 %v7246_v53 }
 0xa91   :  { %5670 = vmatprep.mubr.bf16.mxu0 %v5475_v52  ;;  %7128 = vmatpush3.bf16.msra.mxu1 %v7246_v53 }
 0xa92   :  { %5671 = vmatmul.mubr.bf16.gmra.mxu0 %v5474_v47 }
 0xa93   :  { %7091 = vmatpush3.bf16.msra.mxu0 %v7246_v53 }
 0xab1   :  { %v6940_v59 = vpop.f32.mrf.mxu0 }
 0xab3   :  { %v6941_v58 = vpop.f32.mrf.mxu0 }
 0xab4   :  { %v12788_v27 = vadd.f32 %v6941_v58, %v6940_v59  ;;  %v7247_v58 = vld [vmem:[#allocation8] sm:$0xff]  }
 0xab5   :  { %v6943_v32 = vpop.f32.mrf.mxu0  ;;  %7127 = vmatprep.subr.bf16.mxu1 %v7247_v58  ;;  %7092 = vmatprep.subr.bf16.mxu0 %v7247_v58 }
 0xab6   :  { %7129 = vmatpush3.bf16.msra.mxu1 %v7247_v58  ;;  %7093 = vmatpush3.bf16.msra.mxu0 %v7247_v58  ;;  %v14791_v58 = vld [vmem:[#allocation68_spill] sm:$0xff] }
 0xab7   :  { %v6944_v60 = vpop.f32.mrf.mxu0 }
 0xab8   :  { %v12790_v5 = vadd.f32 %v6944_v60, %v6943_v32 }
 0xab9   :  { %v5349_v13 = vpop.xlane.xlu0 %5348  ;;  %v6946_v9 = vpop.f32.mrf.mxu0 }
 0xaba   :  { %8012 = vrcp.f32 %v5349_v13 }
 0xabb   :  { %v5346_v7 = vpop.xlane.xlu1 %5345  ;;  %v6947_v31 = vpop.f32.mrf.mxu0 }
 0xabc   :  { %8014 = vrcp.f32 %v5346_v7  ;;  %v12792_v35 = vadd.f32 %v6947_v31, %v6946_v9 }
 0xabd   :  { %v3276_v20 = vpop.permute.xlu0 %3275  ;;  %v6949_v34 = vpop.f32.mrf.mxu0 }
 0xabe   :  { %3359 = vst.msk [vmem:[#allocation2 + $0x68] sm:$0xff] %vm3345_vm1, %v3276_v20  ;;  %v14767_v20 = vld [vmem:[#allocation93_spill] sm:$0xff] }
 0xabf   :  { %v3274_v38 = vpop.permute.xlu1 %3273  ;;  %v6950_v6 = vpop.f32.mrf.mxu0 }
 0xac0   :  { %3358 = vst.msk [vmem:[#allocation2 + $0x60] sm:$0xff] %vm3345_vm1, %v3274_v38  ;;  %v12796_v0 = vadd.f32 %v6950_v6, %v6949_v34  ;;  %v14768_v38 = vld [vmem:[#allocation148_spill] sm:$0xff] }
 0xac1   :  { %v4509_v30 = vpop.permute.xlu0 %4508  ;;  %v6952_v12 = vpop.f32.mrf.mxu0  ;;  %v14769_v6 = vld [vmem:[#allocation160_spill] sm:$0xff] }
 0xac2   :  { %4593 = vst.msk [vmem:[#allocation2 + $0x60] sm:$0xff] %vm4580_vm10, %v4509_v30  ;;  %v6673_v30 = vadd.f32 %v14769_v6, %v14768_v38  ;;  %v14796_v6 = vld [vmem:[#allocation156_spill] sm:$0xff] }
 0xac3   :  { %v3278_v22 = vpop.permute.xlu1 %3277  ;;  %v6953_v4 = vpop.f32.mrf.mxu0 }
 0xac4   :  { %3360 = vst.msk [vmem:[#allocation2 + $0x70] sm:$0xff] %vm3345_vm1, %v3278_v22  ;;  %v12800_v16 = vadd.f32 %v6953_v4, %v6952_v12  ;;  %v14770_v22 = vld [vmem:[#allocation55_spill] sm:$0xff] }
 0xac5   :  { %v4513_v26 = vpop.permute.xlu0 %4512  ;;  %v6955_v44 = vpop.f32.mrf.mxu0 }
 0xac6   :  { %4595 = vst.msk [vmem:[#allocation2 + $0x70] sm:$0xff] %vm4580_vm10, %v4513_v26  ;;  %v14771_v26 = vld [vmem:[#allocation52_spill] sm:$0xff] }
 0xac7   :  { %v8013_v61 = vpop.eup %8012  ;;  %v3280_v1 = vpop.permute.xlu1 %3279 }
 0xac8   :  { %v6956_v14 = vpop.f32.mrf.mxu0  ;;  %3361 = vst.msk [vmem:[#allocation2 + $0x78] sm:$0xff] %vm3345_vm1, %v3280_v1  ;;  %v5445_v43 = vmul.f32 %v8013_v61, %v12708_v48  ;;  %v5444_v62 = vmul.f32 %v8013_v61, %v12706_v42 }
 0xac9   :  { %v12804_v28 = vadd.f32 %v6956_v14, %v6955_v44  ;;  %v8015_v45 = vpop.eup %8014  ;;  %v14772_v44 = vld [vmem:[#allocation120_spill] sm:$0xff] }
 0xaca   :  { %v6958_v23 = vpop.f32.mrf.mxu0  ;;  %v5443_v57 = vmul.f32 %v8015_v45, %v12714_v11  ;;  %v5442_v55 = vmul.f32 %v8015_v45, %v12710_v36  ;;  %v6679_v61 = vadd.f32 %v14772_v44, %v14771_v26  ;;  %v14773_v14 = vld [vmem:[#allocation32_spill] sm:$0xff]  ;;  %v14775_v45 = vld [vmem:[#allocation45_spill] sm:$0xff] }
 0xacb   :  { %v4511_v54 = vpop.permute.xlu1 %4510 }
 0xacc   :  { %v6959_v41 = vpop.f32.mrf.mxu0  ;;  %4594 = vst.msk [vmem:[#allocation2 + $0x68] sm:$0xff] %vm4580_vm10, %v4511_v54  ;;  %v5477_v10 = vpack.c.bf16 %v5445_v43, %v5443_v57  ;;  %v5476_v49 = vpack.c.bf16 %v5444_v62, %v5442_v55  ;;  %v14774_v62 = vld [vmem:[#allocation43_spill] sm:$0xff] }
 0xacd   :  { %v12811_v63 = vadd.f32 %v6959_v41, %v6958_v23  ;;  %v14776_v55 = vld [vmem:[#allocation23_spill] sm:$0xff] }
 0xace   :  { %v6961_v8 = vpop.f32.mrf.mxu0  ;;  %5678 = vmatprep.mubr.bf16.mxu0 %v5477_v10 }
 0xacf   :  { %5679 = vmatmul.mubr.bf16.gmra.mxu0 %v5476_v49  ;;  %v4515_v48 = vpop.permute.xlu1 %4514 }
 0xad0   :  { %v6962_v40 = vpop.f32.mrf.mxu0  ;;  %4596 = vst.msk [vmem:[#allocation2 + $0x78] sm:$0xff] %vm4580_vm10, %v4515_v48  ;;  %v14778_v48 = vld [vmem:[#allocation39_spill] sm:$0xff] }
 0xad1   :  { %v12814_v42 = vadd.f32 %v6962_v40, %v6961_v8  ;;  %v14777_v8 = vld [vmem:[#allocation70_spill] sm:$0xff]  ;;  %v14779_v40 = vld [vmem:[#allocation152_spill] sm:$0xff] }
 0xaf7   :  { %v6964_v11 = vpop.f32.mrf.mxu0 }
 0xaf9   :  { %v6965_v46 = vpop.f32.mrf.mxu0 }
 0xafa   :  { %v12816_v36 = vadd.f32 %v6965_v46, %v6964_v11  ;;  %v6625_v11 = vadd.f32 %v14779_v40, %v14778_v48  ;;  %v14780_v46 = vld [vmem:[#allocation137_spill] sm:$0xff]  ;;  %v14810_v48 = vld [vmem:[#allocation28_spill] sm:$0xff] }
 0xafb   :  { %v6967_v50 = vpop.f32.mrf.mxu0 }
 0xafd   :  { %v6968_v51 = vpop.f32.mrf.mxu0 }
 0xafe   :  { %v12818_v33 = vadd.f32 %v6968_v51, %v6967_v50  ;;  %v14781_v50 = vld [vmem:[#allocation114_spill] sm:$0xff] }
 0xaff   :  { %v6970_v21 = vpop.f32.mrf.mxu0  ;;  %v14782_v51 = vld [vmem:[#allocation82_spill] sm:$0xff] }
 0xb01   :  { %v6971_v24 = vpop.f32.mrf.mxu0 }
 0xb02   :  { %v12820_v29 = vadd.f32 %v6971_v24, %v6970_v21  ;;  %v6631_v21 = vadd.f32 %v14782_v51, %v14781_v50  ;;  %v14783_v24 = vld [vmem:[#allocation77_spill] sm:$0xff] }
 0xb03   :  { %v6973_v25 = vpop.f32.mrf.mxu0  ;;  %v14812_v50 = vld [vmem:[#allocation141_spill] sm:$0xff] }
 0xb04   :  { %v14813_v51 = vld [vmem:[#allocation37_spill] sm:$0xff] }
 0xb05   :  { %v6974_v37 = vpop.f32.mrf.mxu0 }
 0xb06   :  { %v12822_v39 = vadd.f32 %v6974_v37, %v6973_v25  ;;  %v14784_v25 = vld [vmem:[#allocation38_spill] sm:$0xff] }
 0xb07   :  { %v6976_v17 = vpop.f32.mrf.mxu0  ;;  %v14785_v37 = vld [vmem:[#allocation22_spill] sm:$0xff] }
 0xb09   :  { %v6977_v3 = vpop.f32.mrf.mxu0 }
 0xb0a   :  { %v6978_v19 = vadd.f32 %v6977_v3, %v6976_v17  ;;  %v6685_v17 = vadd.f32 %v14785_v37, %v14784_v25  ;;  %v14786_v3 = vld [vmem:[#allocation31_spill] sm:$0xff]  ;;  %v14815_v37 = vld [vmem:[#allocation166_spill] sm:$0xff] }
 0xb0b   :  { %v6979_v2 = vpop.f32.mrf.mxu0  ;;  %v14814_v25 = vld [vmem:[#allocation163_spill] sm:$0xff] }
 0xb0c   :  { %5743 = vrot.lane.b32.xlu0 %v6978_v19, %s8122_s23  ;;  %v14787_v19 = vld [vmem:[#allocation116_spill] sm:$0xff] }
 0xb0d   :  { %v6980_v52 = vpop.f32.mrf.mxu0 }
 0xb0e   :  { %v6981_v47 = vadd.f32 %v6980_v52, %v6979_v2  ;;  %v14788_v2 = vld [vmem:[#allocation117_spill] sm:$0xff] }
 0xb0f   :  { %v6982_v59 = vpop.f32.mrf.mxu0  ;;  %v6785_v53 = vadd.f32 %v14788_v2, %v14787_v19  ;;  %v14817_v2 = vld [vmem:[#allocation124_spill] sm:$0xff] }
 0xb10   :  { %5745 = vrot.lane.b32.xlu1 %v6981_v47, %s8122_s23  ;;  %v14789_v47 = vld [vmem:[#allocation71_spill] sm:$0xff] }
 0xb11   :  { %v6983_v32 = vpop.f32.mrf.mxu0 }
 0xb12   :  { %v6984_v60 = vadd.f32 %v6983_v32, %v6982_v59  ;;  %v14790_v59 = vld [vmem:[#allocation63_spill] sm:$0xff] }
 0xb13   :  { %v6985_v13 = vpop.f32.mrf.mxu0  ;;  %v6691_v32 = vadd.f32 %v14791_v58, %v14790_v59  ;;  %v14819_v58 = vld [vmem:[#allocation19_spill] sm:$0xff] }
 0xb14   :  { %5747 = vrot.lane.b32.xlu0 %v6984_v60, %s8122_s23 }
 0xb15   :  { %v6986_v9 = vpop.f32.mrf.mxu0 }
 0xb16   :  { %v6987_v7 = vadd.f32 %v6986_v9, %v6985_v13  ;;  %v14792_v13 = vld [vmem:[#allocation155_spill] sm:$0xff]  ;;  %v14793_v9 = vld [vmem:[#allocation140_spill] sm:$0xff] }
 0xb17   :  { %v6988_v31 = vpop.f32.mrf.mxu0 }
 0xb18   :  { %5749 = vrot.lane.b32.xlu1 %v6987_v7, %s8122_s23  ;;  %3281 = vrot.lane.b32.xlu0 %v14767_v20, %s8121_s22  ;;  %v14794_v7 = vld [vmem:[#allocation44_spill] sm:$0xff] }
 0xb19   :  { %v6989_v34 = vpop.f32.mrf.mxu0 }
 0xb1a   :  { %v6990_v23 = vadd.f32 %v6989_v34, %v6988_v31  ;;  %v6791_v31 = vadd.f32 %v14794_v7, %v14793_v9  ;;  %v14795_v34 = vld [vmem:[#allocation21_spill] sm:$0xff] }
 0xb1b   :  { %v6991_v12 = vpop.f32.mrf.mxu0 }
 0xb1c   :  { %3283 = vrot.lane.b32.xlu1 %v6673_v30, %s8121_s22  ;;  %3285 = vrot.lane.b32.xlu0 %v14770_v22, %s8121_s22 }
 0xb1d   :  { %v6992_v4 = vpop.f32.mrf.mxu0 }
 0xb1e   :  { %v6993_v54 = vadd.f32 %v6992_v4, %v6991_v12  ;;  %v14797_v12 = vld [vmem:[#allocation57_spill] sm:$0xff]  ;;  %v14798_v4 = vld [vmem:[#allocation104_spill] sm:$0xff] }
 0xb1f   :  { %v6994_v1 = vpop.f32.mrf.mxu0 }
 0xb20   :  { %3287 = vrot.lane.b32.xlu1 %v6679_v61, %s8121_s22  ;;  %4516 = vrot.lane.b32.xlu0 %v14773_v14, %s8107_s29  ;;  %v14799_v14 = vld [vmem:[#allocation115_spill] sm:$0xff] }
 0xb21   :  { %v6995_v43 = vpop.f32.mrf.mxu0 }
 0xb22   :  { %v6996_v41 = vadd.f32 %v6995_v43, %v6994_v1  ;;  %v14801_v43 = vld [vmem:[#allocation144_spill] sm:$0xff] }
 0xb23   :  { %v6997_v57 = vpop.f32.mrf.mxu0 }
 0xb24   :  { %4518 = vrot.lane.b32.xlu1 %v14774_v62, %s8107_s29  ;;  %4520 = vrot.lane.b32.xlu0 %v14775_v45, %s8107_s29  ;;  %v14803_v45 = vld [vmem:[#allocation123_spill] sm:$0xff] }
 0xb25   :  { %v6998_v10 = vpop.f32.mrf.mxu0 }
 0xb26   :  { %v6999_v49 = vadd.f32 %v6998_v10, %v6997_v57 }
 0xb27   :  { %v7000_v52 = vpop.f32.mrf.mxu0 }
 0xb28   :  { %4522 = vrot.lane.b32.xlu1 %v14776_v55, %s8107_s29  ;;  %5751 = vrot.lane.b32.xlu0 %v6990_v23, %s8122_s23  ;;  %v14804_v23 = vld [vmem:[#allocation97_spill] sm:$0xff] }
 0xb29   :  { %v7001_v60 = vpop.f32.mrf.mxu0  ;;  %v6643_v57 = vadd.f32 %v14804_v23, %v14803_v45  ;;  %v14805_v55 = vld [vmem:[#allocation157_spill] sm:$0xff] }
 0xb2a   :  { %v7002_v26 = vadd.f32 %v7001_v60, %v7000_v52  ;;  %v14818_v52 = vld [vmem:[#allocation125_spill] sm:$0xff] }
 0xb2b   :  { %v7003_v20 = vpop.f32.mrf.mxu0 }
 0xb2c   :  { %5753 = vrot.lane.b32.xlu1 %v6993_v54, %s8122_s23  ;;  %5755 = vrot.lane.b32.xlu0 %v6996_v41, %s8122_s23  ;;  %v14806_v54 = vld [vmem:[#allocation79_spill] sm:$0xff]  ;;  %v14807_v41 = vld [vmem:[#allocation30_spill] sm:$0xff] }
 0xb2d   :  { %v7004_v38 = vpop.f32.mrf.mxu0  ;;  %v6697_v10 = vadd.f32 %v14807_v41, %v14806_v54  ;;  %v14828_v54 = vld [vmem:[#allocation107_spill] sm:$0xff]  ;;  %v14829_v41 = vld [vmem:[#allocation112_spill] sm:$0xff] }
 0xb2f   :  { %v7006_v30 = vpop.f32.mrf.mxu0 }
 0xb30   :  { %5757 = vrot.lane.b32.xlu1 %v6999_v49, %s8122_s23  ;;  %3249 = vrot.lane.b32.xlu0 %v14777_v8, %s8121_s22  ;;  %v14808_v49 = vld [vmem:[#allocation33_spill] sm:$0xff]  ;;  %v14809_v8 = vld [vmem:[#allocation158_spill] sm:$0xff] }
 0xb31   :  { %v7007_v22 = vpop.f32.mrf.mxu0  ;;  %v6797_v40 = vadd.f32 %v14810_v48, %v14809_v8  ;;  %v14830_v48 = vld [vmem:[#allocation150_spill] sm:$0xff] }
 0xb32   :  { %v7008_v61 = vadd.f32 %v7007_v22, %v7006_v30 }
 0xb33   :  { %v7009_v44 = vpop.f32.mrf.mxu0 }
 0xb34   :  { %3251 = vrot.lane.b32.xlu1 %v6625_v11, %s8121_s22  ;;  %3253 = vrot.lane.b32.xlu0 %v14780_v46, %s8121_s22  ;;  %v14811_v46 = vld [vmem:[#allocation65_spill] sm:$0xff] }
 0xb38   :  { %3255 = vrot.lane.b32.xlu1 %v6631_v21, %s8121_s22  ;;  %3289 = vrot.lane.b32.xlu0 %v14783_v24, %s8121_s22  ;;  %v6703_v21 = vadd.f32 %v14813_v51, %v14812_v50 }
 0xb3c   :  { %3291 = vrot.lane.b32.xlu1 %v6685_v17, %s8121_s22  ;;  %4484 = vrot.lane.b32.xlu0 %v14786_v3, %s8107_s29  ;;  %v14816_v17 = vld [vmem:[#allocation78_spill] sm:$0xff] }
 0xb3d   :  { %v6803_v3 = vadd.f32 %v14816_v17, %v14815_v37  ;;  %v14835_v37 = vld [vmem:[#allocation143_spill] sm:$0xff] }
 0xb40   :  { %4486 = vrot.lane.b32.xlu1 %v6785_v53, %s8107_s29  ;;  %3293 = vrot.lane.b32.xlu0 %v14789_v47, %s8121_s22 }
 0xb44   :  { %3295 = vrot.lane.b32.xlu1 %v6691_v32, %s8121_s22  ;;  %4488 = vrot.lane.b32.xlu0 %v14792_v13, %s8107_s29  ;;  %v14820_v13 = vld [vmem:[#allocation17_spill] sm:$0xff] }
 0xb48   :  { %4490 = vrot.lane.b32.xlu1 %v6791_v31, %s8107_s29  ;;  %4524 = vrot.lane.b32.xlu0 %v14795_v34, %s8107_s29 }
 0xb4c   :  { %4526 = vrot.lane.b32.xlu1 %v14796_v6, %s8107_s29  ;;  %5719 = vrot.lane.b32.xlu0 %v12788_v27, %s8122_s23  ;;  %v7005_v27 = vadd.f32 %v7004_v38, %v7003_v20 }
 0xb50   :  { %5721 = vrot.lane.b32.xlu1 %v12790_v5, %s8122_s23  ;;  %4528 = vrot.lane.b32.xlu0 %v14797_v12, %s8107_s29  ;;  %v7010_v5 = vpop.f32.mrf.mxu0 }
 0xb51   :  { %v7011_v1 = vadd.f32 %v7010_v5, %v7009_v44  ;;  %v14823_v44 = vld [vmem:[#allocation69_spill] sm:$0xff] }
 0xb52   :  { %v7012_v11 = vpop.f32.mrf.mxu0 }
 0xb54   :  { %4530 = vrot.lane.b32.xlu1 %v14798_v4, %s8107_s29  ;;  %5723 = vrot.lane.b32.xlu0 %v12792_v35, %s8122_s23  ;;  %v14800_v35 = vld [vmem:[#allocation20_spill] sm:$0xff]  ;;  %v7013_v24 = vpop.f32.mrf.mxu0  ;;  %v14821_v4 = vld [vmem:[#allocation161_spill] sm:$0xff] }
 0xb55   :  { %v6637_v62 = vadd.f32 %v14801_v43, %v14800_v35  ;;  %v14824_v43 = vld [vmem:[#allocation109_spill] sm:$0xff] }
 0xb56   :  { %v7015_v19 = vpop.f32.mrf.mxu0 }
 0xb58   :  { %5725 = vrot.lane.b32.xlu1 %v12796_v0, %s8122_s23  ;;  %5759 = vrot.lane.b32.xlu0 %v7002_v26, %s8122_s23  ;;  %v14802_v0 = vld [vmem:[#allocation110_spill] sm:$0xff]  ;;  %v7016_v53 = vpop.f32.mrf.mxu0  ;;  %v14822_v26 = vld [vmem:[#allocation131_spill] sm:$0xff] }
 0xb5a   :  { %v7018_v59 = vpop.f32.mrf.mxu0 }
 0xb5c   :  { %5761 = vrot.lane.b32.xlu1 %v7005_v27, %s8122_s23  ;;  %5763 = vrot.lane.b32.xlu0 %v7008_v61, %s8122_s23  ;;  %v7019_v60 = vpop.f32.mrf.mxu0  ;;  %v6649_v27 = vadd.f32 %v14823_v44, %v14822_v26 }
 0xb5d   :  { %v7020_v31 = vadd.f32 %v7019_v60, %v7018_v59 }
 0xb5e   :  { %v7021_v7 = vpop.f32.mrf.mxu0 }
 0xb60   :  { %5765 = vrot.lane.b32.xlu1 %v7011_v1, %s8122_s23  ;;  %3257 = vrot.lane.b32.xlu0 %v14799_v14, %s8121_s22  ;;  %v7022_v30 = vpop.f32.mrf.mxu0 }
 0xb64   :  { %3259 = vrot.lane.b32.xlu1 %v6637_v62, %s8121_s22  ;;  %3261 = vrot.lane.b32.xlu0 %v14802_v0, %s8121_s22  ;;  %v14825_v62 = vld [vmem:[#allocation96_spill] sm:$0xff]  ;;  %v14826_v0 = vld [vmem:[#allocation26_spill] sm:$0xff] }
 0xb65   :  { %v6655_v45 = vadd.f32 %v14826_v0, %v14825_v62 }
 0xb68   :  { %3263 = vrot.lane.b32.xlu1 %v6643_v57, %s8121_s22  ;;  %3297 = vrot.lane.b32.xlu0 %v14805_v55, %s8121_s22  ;;  %v14827_v55 = vld [vmem:[#allocation50_spill] sm:$0xff] }
 0xb6c   :  { %3299 = vrot.lane.b32.xlu1 %v6697_v10, %s8121_s22  ;;  %4492 = vrot.lane.b32.xlu0 %v14808_v49, %s8107_s29  ;;  %v6709_v10 = vadd.f32 %v14829_v41, %v14828_v54 }
 0xb70   :  { %4494 = vrot.lane.b32.xlu1 %v6797_v40, %s8107_s29  ;;  %3301 = vrot.lane.b32.xlu0 %v14811_v46, %s8121_s22  ;;  %v14831_v40 = vld [vmem:[#allocation73_spill] sm:$0xff] }
 0xb74   :  { %3303 = vrot.lane.b32.xlu1 %v6703_v21, %s8121_s22  ;;  %4496 = vrot.lane.b32.xlu0 %v14814_v25, %s8107_s29  ;;  %v14833_v21 = vld [vmem:[#allocation164_spill] sm:$0xff]  ;;  %v14834_v25 = vld [vmem:[#allocation118_spill] sm:$0xff] }
 0xb75   :  { %v6715_v17 = vadd.f32 %v14835_v37, %v14834_v25 }
 0xb78   :  { %4498 = vrot.lane.b32.xlu1 %v6803_v3, %s8107_s29  ;;  %4532 = vrot.lane.b32.xlu0 %v14817_v2, %s8107_s29  ;;  %v14836_v2 = vld [vmem:[#allocation122_spill] sm:$0xff] }
 0xb7c   :  { %4534 = vrot.lane.b32.xlu1 %v14818_v52, %s8107_s29  ;;  %5727 = vrot.lane.b32.xlu0 %v12800_v16, %s8122_s23  ;;  %v7014_v16 = vadd.f32 %v7013_v24, %v7012_v11  ;;  %v14832_v11 = vld [vmem:[#allocation149_spill] sm:$0xff]  ;;  %v7024_v24 = vpop.f32.mrf.mxu0 }
 0xb7d   :  { %v6809_v46 = vadd.f32 %v14832_v11, %v14831_v40  ;;  %v14837_v52 = vld [vmem:[#allocation121_spill] sm:$0xff] }
 0xb7e   :  { %v5744_v47 = vpop.permute.xlu0 %5743 }
 0xb7f   :  { %5828 = vst.msk [vmem:[#allocation2 + $0x60] sm:$0xff] %vm5815_vm11, %v5744_v47  ;;  %v14838_v47 = vld [vmem:[#allocation72_spill] sm:$0xff] }
 0xb80   :  { %5729 = vrot.lane.b32.xlu1 %v12804_v28, %s8122_s23  ;;  %4536 = vrot.lane.b32.xlu0 %v14819_v58, %s8107_s29  ;;  %v7017_v28 = vadd.f32 %v7016_v53, %v7015_v19  ;;  %v7025_v53 = vpop.f32.mrf.mxu0  ;;  %v6815_v59 = vadd.f32 %v14838_v47, %v14837_v52 }
 0xb81   :  { %v7026_v44 = vadd.f32 %v7025_v53, %v7024_v24 }
 0xb82   :  { %v5746_v32 = vpop.permute.xlu1 %5745 }
 0xb83   :  { %5829 = vst.msk [vmem:[#allocation2 + $0x68] sm:$0xff] %vm5815_vm11, %v5746_v32 }
 0xb84   :  { %4538 = vrot.lane.b32.xlu1 %v14820_v13, %s8107_s29  ;;  %5731 = vrot.lane.b32.xlu0 %v12811_v63, %s8122_s23 }
 0xb86   :  { %v5748_v9 = vpop.permute.xlu0 %5747  ;;  %v5860_v38 = vld [vmem:[#allocation2 + $0x60] sm:$0xff] }
 0xb87   :  { %5830 = vst.msk [vmem:[#allocation2 + $0x70] sm:$0xff] %vm5815_vm11, %v5748_v9  ;;  %v14839_v9 = vld [vmem:[#allocation130_spill] sm:$0xff] }
 0xb88   :  { %5733 = vrot.lane.b32.xlu1 %v12814_v42, %s8122_s23  ;;  %5767 = vrot.lane.b32.xlu0 %v7014_v16, %s8122_s23  ;;  %v7023_v42 = vadd.f32 %v7022_v30, %v7021_v7  ;;  %v7027_v7 = vpop.f32.mrf.mxu0 }
 0xb8a   :  { %v3282_v20 = vpop.permute.xlu0 %3281  ;;  %v5750_v34 = vpop.permute.xlu1 %5749  ;;  %v5861_v6 = vld [vmem:[#allocation2 + $0x68] sm:$0xff] }
 0xb8b   :  { %3362 = vst.msk [vmem:[#allocation2 + $0x80] sm:$0xff] %vm3345_vm1, %v3282_v20  ;;  %v5886_v63 = vpack.c.bf16 %v5861_v6, %v5860_v38  ;;  %v14840_v6 = vld [vmem:[#allocation128_spill] sm:$0xff]  ;;  %v7028_v30 = vpop.f32.mrf.mxu0 }
 0xb8c   :  { %5831 = vst.msk [vmem:[#allocation2 + $0x78] sm:$0xff] %vm5815_vm11, %v5750_v34  ;;  %5769 = vrot.lane.b32.xlu1 %v7017_v28, %s8122_s23  ;;  %5771 = vrot.lane.b32.xlu0 %v7020_v31, %s8122_s23 }
 0xb8d   :  { %7106 = vmatprep.mubr.msk.bf16.mxu1 %vm190_vm0, %v5886_v63 }
 0xb8e   :  { %v3286_v12 = vpop.permute.xlu0 %3285  ;;  %v3284_v22 = vpop.permute.xlu1 %3283  ;;  %v5862_v1 = vld [vmem:[#allocation2 + $0x70] sm:$0xff] }
 0xb8f   :  { %3364 = vst.msk [vmem:[#allocation2 + $0x90] sm:$0xff] %vm3345_vm1, %v3286_v12  ;;  %3363 = vst.msk [vmem:[#allocation2 + $0x88] sm:$0xff] %vm3345_vm1, %v3284_v22  ;;  %v7030_v12 = vpop.f32.mrf.mxu0  ;;  %v6875_v22 = vadd.f32 %v12786_v18, %v12784_v56 }
 0xb90   :  { %5773 = vrot.lane.b32.xlu1 %v7023_v42, %s8122_s23  ;;  %3265 = vrot.lane.b32.xlu0 %v14821_v4, %s8121_s22 }
 0xb91   :  { %v7031_v26 = vpop.f32.mrf.mxu0 }
 0xb92   :  { %v4517_v61 = vpop.permute.xlu0 %4516  ;;  %v3288_v5 = vpop.permute.xlu1 %3287  ;;  %v7032_v56 = vadd.f32 %v7031_v26, %v7030_v12 }
 0xb93   :  { %v5863_v14 = vld [vmem:[#allocation2 + $0x78] sm:$0xff]  ;;  %4597 = vst.msk [vmem:[#allocation2 + $0x80] sm:$0xff] %vm4580_vm10, %v4517_v61  ;;  %v7033_v61 = vpop.f32.mrf.mxu0 }
 0xb94   :  { %3365 = vst.msk [vmem:[#allocation2 + $0x98] sm:$0xff] %vm3345_vm1, %v3288_v5  ;;  %v5887_v35 = vpack.c.bf16 %v5863_v14, %v5862_v1  ;;  %3267 = vrot.lane.b32.xlu1 %v6649_v27, %s8121_s22  ;;  %3269 = vrot.lane.b32.xlu0 %v14824_v43, %s8121_s22 }
 0xb95   :  { %v7034_v1 = vpop.f32.mrf.mxu0 }
 0xb96   :  { %7107 = vmatmul.mubr.msk.bf16.vlgmr.msra.gmra.mxu1 %vm190_vm0, %v5887_v35  ;;  %v4521_v23 = vpop.permute.xlu0 %4520  ;;  %v4519_v57 = vpop.permute.xlu1 %4518 }
 0xb97   :  { %4599 = vst.msk [vmem:[#allocation2 + $0x90] sm:$0xff] %vm4580_vm10, %v4521_v23  ;;  %4598 = vst.msk [vmem:[#allocation2 + $0x88] sm:$0xff] %vm4580_vm10, %v4519_v57 }
 0xb98   :  { %3271 = vrot.lane.b32.xlu1 %v6655_v45, %s8121_s22  ;;  %3305 = vrot.lane.b32.xlu0 %v14827_v55, %s8121_s22 }
 0xb9a   :  { %v5752_v49 = vpop.permute.xlu0 %5751  ;;  %v4523_v8 = vpop.permute.xlu1 %4522 }
 0xb9b   :  { %5832 = vst.msk [vmem:[#allocation2 + $0x80] sm:$0xff] %vm5815_vm11, %v5752_v49 }
 0xb9c   :  { %4600 = vst.msk [vmem:[#allocation2 + $0x98] sm:$0xff] %vm4580_vm10, %v4523_v8  ;;  %3307 = vrot.lane.b32.xlu1 %v6709_v10, %s8121_s22  ;;  %4500 = vrot.lane.b32.xlu0 %v14830_v48, %s8107_s29 }
 0xb9e   :  { %v5756_v50 = vpop.permute.xlu0 %5755  ;;  %v5754_v51 = vpop.permute.xlu1 %5753 }
 0xb9f   :  { %5834 = vst.msk [vmem:[#allocation2 + $0x90] sm:$0xff] %vm5815_vm11, %v5756_v50  ;;  %5833 = vst.msk [vmem:[#allocation2 + $0x88] sm:$0xff] %vm5815_vm11, %v5754_v51 }
 0xba0   :  { %4502 = vrot.lane.b32.xlu1 %v6809_v46, %s8107_s29  ;;  %3309 = vrot.lane.b32.xlu0 %v14833_v21, %s8121_s22 }
 0xba2   :  { %v3250_v3 = vpop.permute.xlu0 %3249  ;;  %v5758_v19 = vpop.permute.xlu1 %5757  ;;  %v5864_v60 = vld [vmem:[#allocation2 + $0x80] sm:$0xff] }
 0xba3   :  { %3346 = vst.msk [vmem:[#allocation2] sm:$0xff] %vm3345_vm1, %v3250_v3 }
 0xba4   :  { %5835 = vst.msk [vmem:[#allocation2 + $0x98] sm:$0xff] %vm5815_vm11, %v5758_v19  ;;  %3311 = vrot.lane.b32.xlu1 %v6715_v17, %s8121_s22  ;;  %4504 = vrot.lane.b32.xlu0 %v14836_v2, %s8107_s29 }
 0xba6   :  { %v3254_v58 = vpop.permute.xlu0 %3253  ;;  %v3252_v32 = vpop.permute.xlu1 %3251  ;;  %v5865_v13 = vld [vmem:[#allocation2 + $0x88] sm:$0xff]  ;;  %v5866_v20 = vld [vmem:[#allocation2 + $0x90] sm:$0xff] }
 0xba7   :  { %3348 = vst.msk [vmem:[#allocation2 + $0x10] sm:$0xff] %vm3345_vm1, %v3254_v58  ;;  %3347 = vst.msk [vmem:[#allocation2 + $0x8] sm:$0xff] %vm3345_vm1, %v3252_v32  ;;  %v5888_v16 = vpack.c.bf16 %v5865_v13, %v5864_v60 }
 0xba8   :  { %4506 = vrot.lane.b32.xlu1 %v6815_v59, %s8107_s29  ;;  %4540 = vrot.lane.b32.xlu0 %v14839_v9, %s8107_s29 }
 0xba9   :  { %7110 = vmatprep.mubr.msk.bf16.mxu1 %vm190_vm0, %v5888_v16 }
 0xbaa   :  { %v3290_v28 = vpop.permute.xlu0 %3289  ;;  %v3256_v31 = vpop.permute.xlu1 %3255 }
 0xbab   :  { %v5867_v34 = vld [vmem:[#allocation2 + $0x98] sm:$0xff]  ;;  %3366 = vst.msk [vmem:[#allocation2 + $0xa0] sm:$0xff] %vm3345_vm1, %v3290_v28  ;;  %3349 = vst.msk [vmem:[#allocation2 + $0x18] sm:$0xff] %vm3345_vm1, %v3256_v31 }
 0xbac   :  { %v5889_v38 = vpack.c.bf16 %v5867_v34, %v5866_v20  ;;  %4542 = vrot.lane.b32.xlu1 %v14840_v6, %s8107_s29  ;;  %5735 = vrot.lane.b32.xlu0 %v12816_v36, %s8122_s23 }
 0xbae   :  { %7111 = vmatmul.mubr.msk.bf16.gmra.mxu1 %vm190_vm0, %v5889_v38  ;;  %v4485_v63 = vpop.permute.xlu0 %4484  ;;  %v3292_v42 = vpop.permute.xlu1 %3291 }
 0xbaf   :  { %4581 = vst.msk [vmem:[#allocation2] sm:$0xff] %vm4580_vm10, %v4485_v63 }
 0xbb0   :  { %3367 = vst.msk [vmem:[#allocation2 + $0xa8] sm:$0xff] %vm3345_vm1, %v3292_v42  ;;  %5737 = vrot.lane.b32.xlu1 %v12818_v33, %s8122_s23  ;;  %4544 = vrot.lane.b32.xlu0 %v12694_v15, %s8107_s29  ;;  %v7029_v15 = vadd.f32 %v7028_v30, %v7027_v7 }
 0xbb2   :  { %v3294_v36 = vpop.permute.xlu0 %3293  ;;  %v4487_v4 = vpop.permute.xlu1 %4486 }
 0xbb3   :  { %3368 = vst.msk [vmem:[#allocation2 + $0xb0] sm:$0xff] %vm3345_vm1, %v3294_v36 }
 0xbb4   :  { %4582 = vst.msk [vmem:[#allocation2 + $0x8] sm:$0xff] %vm4580_vm10, %v4487_v4  ;;  %4546 = vrot.lane.b32.xlu1 %v6875_v22, %s8107_s29  ;;  %5739 = vrot.lane.b32.xlu0 %v12820_v29, %s8122_s23  ;;  %v7035_v29 = vadd.f32 %v7034_v1, %v7033_v61 }
 0xbb6   :  { %v4489_v33 = vpop.permute.xlu0 %4488  ;;  %v3296_v27 = vpop.permute.xlu1 %3295 }
 0xbb7   :  { %4583 = vst.msk [vmem:[#allocation2 + $0x10] sm:$0xff] %vm4580_vm10, %v4489_v33 }
 0xbb8   :  { %3369 = vst.msk [vmem:[#allocation2 + $0xb8] sm:$0xff] %vm3345_vm1, %v3296_v27  ;;  %5741 = vrot.lane.b32.xlu1 %v12822_v39, %s8122_s23  ;;  %5775 = vrot.lane.b32.xlu0 %v7026_v44, %s8122_s23 }
 0xbba   :  { %v4525_v18 = vpop.permute.xlu0 %4524  ;;  %v4491_v5 = vpop.permute.xlu1 %4490 }
 0xbbb   :  { %4601 = vst.msk [vmem:[#allocation2 + $0xa0] sm:$0xff] %vm4580_vm10, %v4525_v18  ;;  %4584 = vst.msk [vmem:[#allocation2 + $0x18] sm:$0xff] %vm4580_vm10, %v4491_v5 }
 0xbbc   :  { %5777 = vrot.lane.b32.xlu1 %v7029_v15, %s8122_s23  ;;  %5779 = vrot.lane.b32.xlu0 %v7032_v56, %s8122_s23 }
 0xbbe   :  { %v5720_v14 = vpop.permute.xlu0 %5719  ;;  %v4527_v35 = vpop.permute.xlu1 %4526 }
 0xbbf   :  { %5816 = vst.msk [vmem:[#allocation2] sm:$0xff] %vm5815_vm11, %v5720_v14 }
 0xbc0   :  { %4602 = vst.msk [vmem:[#allocation2 + $0xa8] sm:$0xff] %vm4580_vm10, %v4527_v35  ;;  %5781 = vrot.lane.b32.xlu1 %v7035_v29, %s8122_s23 }
 0xbc2   :  { %v4529_v39 = vpop.permute.xlu0 %4528  ;;  %v5722_v43 = vpop.permute.xlu1 %5721 }
 0xbc3   :  { %4603 = vst.msk [vmem:[#allocation2 + $0xb0] sm:$0xff] %vm4580_vm10, %v4529_v39 }
 0xbc4   :  { %5817 = vst.msk [vmem:[#allocation2 + $0x8] sm:$0xff] %vm5815_vm11, %v5722_v43 }
 0xbc6   :  { %v5724_v62 = vpop.permute.xlu0 %5723  ;;  %v4531_v0 = vpop.permute.xlu1 %4530  ;;  %v5848_v57 = vld [vmem:[#allocation2] sm:$0xff] }
 0xbc7   :  { %5818 = vst.msk [vmem:[#allocation2 + $0x10] sm:$0xff] %vm5815_vm11, %v5724_v62 }
 0xbc8   :  { %4604 = vst.msk [vmem:[#allocation2 + $0xb8] sm:$0xff] %vm4580_vm10, %v4531_v0 }
 0xbca   :  { %v5760_v45 = vpop.permute.xlu0 %5759  ;;  %v5726_v23 = vpop.permute.xlu1 %5725 }
 0xbcb   :  { %v5849_v55 = vld [vmem:[#allocation2 + $0x8] sm:$0xff]  ;;  %5836 = vst.msk [vmem:[#allocation2 + $0xa0] sm:$0xff] %vm5815_vm11, %v5760_v45  ;;  %5819 = vst.msk [vmem:[#allocation2 + $0x18] sm:$0xff] %vm5815_vm11, %v5726_v23 }
 0xbcc   :  { %v5880_v54 = vpack.c.bf16 %v5849_v55, %v5848_v57 }
 0xbce   :  { %7094 = vmatprep.mubr.msk.bf16.mxu0 %vm190_vm0, %v5880_v54  ;;  %v5764_v41 = vpop.permute.xlu0 %5763  ;;  %v5762_v10 = vpop.permute.xlu1 %5761  ;;  %v5850_v48 = vld [vmem:[#allocation2 + $0x10] sm:$0xff] }
 0xbcf   :  { %5838 = vst.msk [vmem:[#allocation2 + $0xb0] sm:$0xff] %vm5815_vm11, %v5764_v41  ;;  %5837 = vst.msk [vmem:[#allocation2 + $0xa8] sm:$0xff] %vm5815_vm11, %v5762_v10 }
 0xbd2   :  { %v3258_v49 = vpop.permute.xlu0 %3257  ;;  %v5766_v8 = vpop.permute.xlu1 %5765  ;;  %v5851_v40 = vld [vmem:[#allocation2 + $0x18] sm:$0xff]  ;;  %v5868_v51 = vld [vmem:[#allocation2 + $0xa0] sm:$0xff] }
 0xbd3   :  { %3350 = vst.msk [vmem:[#allocation2 + $0x20] sm:$0xff] %vm3345_vm1, %v3258_v49  ;;  %v5881_v11 = vpack.c.bf16 %v5851_v40, %v5850_v48 }
 0xbd4   :  { %5839 = vst.msk [vmem:[#allocation2 + $0xb8] sm:$0xff] %vm5815_vm11, %v5766_v8 }
 0xbd5   :  { %7095 = vmatmul.mubr.msk.bf16.vlgmr.msra.gmra.mxu0 %vm190_vm0, %v5881_v11 }
 0xbd6   :  { %v3262_v46 = vpop.permute.xlu0 %3261  ;;  %v3260_v50 = vpop.permute.xlu1 %3259  ;;  %v5869_v21 = vld [vmem:[#allocation2 + $0xa8] sm:$0xff]  ;;  %v5870_v17 = vld [vmem:[#allocation2 + $0xb0] sm:$0xff] }
 0xbd7   :  { %3352 = vst.msk [vmem:[#allocation2 + $0x30] sm:$0xff] %vm3345_vm1, %v3262_v46  ;;  %3351 = vst.msk [vmem:[#allocation2 + $0x28] sm:$0xff] %vm3345_vm1, %v3260_v50  ;;  %v5890_v24 = vpack.c.bf16 %v5869_v21, %v5868_v51 }
 0xbd9   :  { %7114 = vmatprep.mubr.msk.bf16.mxu1 %vm190_vm0, %v5890_v24 }
 0xbda   :  { %v3298_v25 = vpop.permute.xlu0 %3297  ;;  %v3264_v37 = vpop.permute.xlu1 %3263 }
 0xbdb   :  { %v5871_v3 = vld [vmem:[#allocation2 + $0xb8] sm:$0xff]  ;;  %3370 = vst.msk [vmem:[#allocation2 + $0xc0] sm:$0xff] %vm3345_vm1, %v3298_v25  ;;  %3353 = vst.msk [vmem:[#allocation2 + $0x38] sm:$0xff] %vm3345_vm1, %v3264_v37 }
 0xbdc   :  { %v5891_v19 = vpack.c.bf16 %v5871_v3, %v5870_v17 }
 0xbde   :  { %7115 = vmatmul.mubr.msk.bf16.gmra.mxu1 %vm190_vm0, %v5891_v19  ;;  %v4493_v2 = vpop.permute.xlu0 %4492  ;;  %v3300_v53 = vpop.permute.xlu1 %3299 }
 0xbdf   :  { %4585 = vst.msk [vmem:[#allocation2 + $0x20] sm:$0xff] %vm4580_vm10, %v4493_v2 }
 0xbe0   :  { %3371 = vst.msk [vmem:[#allocation2 + $0xc8] sm:$0xff] %vm3345_vm1, %v3300_v53 }
 0xbe2   :  { %v3302_v52 = vpop.permute.xlu0 %3301  ;;  %v4495_v47 = vpop.permute.xlu1 %4494 }
 0xbe3   :  { %3372 = vst.msk [vmem:[#allocation2 + $0xd0] sm:$0xff] %vm3345_vm1, %v3302_v52 }
 0xbe4   :  { %4586 = vst.msk [vmem:[#allocation2 + $0x28] sm:$0xff] %vm4580_vm10, %v4495_v47 }
 0xbe6   :  { %v4497_v59 = vpop.permute.xlu0 %4496  ;;  %v3304_v58 = vpop.permute.xlu1 %3303 }
 0xbe7   :  { %4587 = vst.msk [vmem:[#allocation2 + $0x30] sm:$0xff] %vm4580_vm10, %v4497_v59 }
 0xbe8   :  { %3373 = vst.msk [vmem:[#allocation2 + $0xd8] sm:$0xff] %vm3345_vm1, %v3304_v58 }
 0xbea   :  { %v4533_v32 = vpop.permute.xlu0 %4532  ;;  %v4499_v60 = vpop.permute.xlu1 %4498 }
 0xbeb   :  { %4605 = vst.msk [vmem:[#allocation2 + $0xc0] sm:$0xff] %vm4580_vm10, %v4533_v32  ;;  %4588 = vst.msk [vmem:[#allocation2 + $0x38] sm:$0xff] %vm4580_vm10, %v4499_v60 }
 0xbee   :  { %v5728_v13 = vpop.permute.xlu0 %5727  ;;  %v4535_v16 = vpop.permute.xlu1 %4534 }
 0xbef   :  { %5820 = vst.msk [vmem:[#allocation2 + $0x20] sm:$0xff] %vm5815_vm11, %v5728_v13 }
 0xbf0   :  { %4606 = vst.msk [vmem:[#allocation2 + $0xc8] sm:$0xff] %vm4580_vm10, %v4535_v16 }
 0xbf2   :  { %v4537_v9 = vpop.permute.xlu0 %4536  ;;  %v5730_v7 = vpop.permute.xlu1 %5729 }
 0xbf3   :  { %4607 = vst.msk [vmem:[#allocation2 + $0xd0] sm:$0xff] %vm4580_vm10, %v4537_v9 }
 0xbf4   :  { %5821 = vst.msk [vmem:[#allocation2 + $0x28] sm:$0xff] %vm5815_vm11, %v5730_v7 }
 0xbf6   :  { %v5732_v28 = vpop.permute.xlu0 %5731  ;;  %v4539_v31 = vpop.permute.xlu1 %4538  ;;  %v5852_v38 = vld [vmem:[#allocation2 + $0x20] sm:$0xff] }
 0xbf7   :  { %5822 = vst.msk [vmem:[#allocation2 + $0x30] sm:$0xff] %vm5815_vm11, %v5732_v28 }
 0xbf8   :  { %4608 = vst.msk [vmem:[#allocation2 + $0xd8] sm:$0xff] %vm4580_vm10, %v4539_v31 }
 0xbfa   :  { %v5768_v20 = vpop.permute.xlu0 %5767  ;;  %v5734_v34 = vpop.permute.xlu1 %5733 }
 0xbfb   :  { %v5853_v6 = vld [vmem:[#allocation2 + $0x28] sm:$0xff]  ;;  %5840 = vst.msk [vmem:[#allocation2 + $0xc0] sm:$0xff] %vm5815_vm11, %v5768_v20  ;;  %5823 = vst.msk [vmem:[#allocation2 + $0x38] sm:$0xff] %vm5815_vm11, %v5734_v34 }
 0xbfc   :  { %v5882_v30 = vpack.c.bf16 %v5853_v6, %v5852_v38  ;;  %v13130_v6 = vld [vmem:[%s13233_s4] ss:$0 sm:$0xff]  ;;  %s8123_s4 = smov [#allocation9]  }
 0xbfe   :  { %7098 = vmatprep.mubr.msk.bf16.mxu0 %vm190_vm0, %v5882_v30  ;;  %v5772_v63 = vpop.permute.xlu0 %5771  ;;  %v5770_v42 = vpop.permute.xlu1 %5769  ;;  %v5854_v36 = vld [vmem:[#allocation2 + $0x30] sm:$0xff] }
 0xbff   :  { %5842 = vst.msk [vmem:[#allocation2 + $0xd0] sm:$0xff] %vm5815_vm11, %v5772_v63  ;;  %5841 = vst.msk [vmem:[#allocation2 + $0xc8] sm:$0xff] %vm5815_vm11, %v5770_v42 }
 0xc02   :  { %v3266_v12 = vpop.permute.xlu0 %3265  ;;  %v5774_v22 = vpop.permute.xlu1 %5773  ;;  %v5855_v4 = vld [vmem:[#allocation2 + $0x38] sm:$0xff]  ;;  %v5872_v27 = vld [vmem:[#allocation2 + $0xc0] sm:$0xff] }
 0xc03   :  { %3354 = vst.msk [vmem:[#allocation2 + $0x40] sm:$0xff] %vm3345_vm1, %v3266_v12  ;;  %v5883_v26 = vpack.c.bf16 %v5855_v4, %v5854_v36 }
 0xc04   :  { %5843 = vst.msk [vmem:[#allocation2 + $0xd8] sm:$0xff] %vm5815_vm11, %v5774_v22 }
 0xc05   :  { %7099 = vmatmul.mubr.msk.bf16.gmra.mxu0 %vm190_vm0, %v5883_v26 }
 0xc06   :  { %v3270_v44 = vpop.permute.xlu0 %3269  ;;  %v3268_v33 = vpop.permute.xlu1 %3267  ;;  %v5873_v61 = vld [vmem:[#allocation2 + $0xc8] sm:$0xff]  ;;  %v5874_v5 = vld [vmem:[#allocation2 + $0xd0] sm:$0xff] }
 0xc07   :  { %3356 = vst.msk [vmem:[#allocation2 + $0x50] sm:$0xff] %vm3345_vm1, %v3270_v44  ;;  %3355 = vst.msk [vmem:[#allocation2 + $0x48] sm:$0xff] %vm3345_vm1, %v3268_v33  ;;  %v5892_v15 = vpack.c.bf16 %v5873_v61, %v5872_v27 }
 0xc09   :  { %7118 = vmatprep.mubr.msk.bf16.mxu1 %vm190_vm0, %v5892_v15 }
 0xc0a   :  { %v3306_v56 = vpop.permute.xlu0 %3305  ;;  %v3272_v18 = vpop.permute.xlu1 %3271 }
 0xc0b   :  { %v5875_v1 = vld [vmem:[#allocation2 + $0xd8] sm:$0xff]  ;;  %3374 = vst.msk [vmem:[#allocation2 + $0xe0] sm:$0xff] %vm3345_vm1, %v3306_v56  ;;  %3357 = vst.msk [vmem:[#allocation2 + $0x58] sm:$0xff] %vm3345_vm1, %v3272_v18 }
 0xc0c   :  { %v5893_v29 = vpack.c.bf16 %v5875_v1, %v5874_v5 }
 0xc0e   :  { %7119 = vmatmul.mubr.msk.bf16.gmra.mxu1 %vm190_vm0, %v5893_v29  ;;  %v4501_v14 = vpop.permute.xlu0 %4500  ;;  %v3308_v35 = vpop.permute.xlu1 %3307 }
 0xc0f   :  { %4589 = vst.msk [vmem:[#allocation2 + $0x40] sm:$0xff] %vm4580_vm10, %v4501_v14 }
 0xc10   :  { %3375 = vst.msk [vmem:[#allocation2 + $0xe8] sm:$0xff] %vm3345_vm1, %v3308_v35 }
 0xc12   :  { %v3310_v39 = vpop.permute.xlu0 %3309  ;;  %v4503_v43 = vpop.permute.xlu1 %4502 }
 0xc13   :  { %3376 = vst.msk [vmem:[#allocation2 + $0xf0] sm:$0xff] %vm3345_vm1, %v3310_v39 }
 0xc14   :  { %4590 = vst.msk [vmem:[#allocation2 + $0x48] sm:$0xff] %vm4580_vm10, %v4503_v43 }
 0xc16   :  { %v4505_v62 = vpop.permute.xlu0 %4504  ;;  %v3312_v0 = vpop.permute.xlu1 %3311 }
 0xc17   :  { %4591 = vst.msk [vmem:[#allocation2 + $0x50] sm:$0xff] %vm4580_vm10, %v4505_v62 }
 0xc18   :  { %3377 = vst.msk [vmem:[#allocation2 + $0xf8] sm:$0xff] %vm3345_vm1, %v3312_v0 }
 0xc1a   :  { %v4541_v45 = vpop.permute.xlu0 %4540  ;;  %v4507_v23 = vpop.permute.xlu1 %4506 }
 0xc1b   :  { %4609 = vst.msk [vmem:[#allocation2 + $0xe0] sm:$0xff] %vm4580_vm10, %v4541_v45  ;;  %4592 = vst.msk [vmem:[#allocation2 + $0x58] sm:$0xff] %vm4580_vm10, %v4507_v23 }
 0xc1e   :  { %v5736_v57 = vpop.permute.xlu0 %5735  ;;  %v4543_v55 = vpop.permute.xlu1 %4542 }
 0xc1f   :  { %5824 = vst.msk [vmem:[#allocation2 + $0x40] sm:$0xff] %vm5815_vm11, %v5736_v57 }
 0xc20   :  { %4610 = vst.msk [vmem:[#allocation2 + $0xe8] sm:$0xff] %vm4580_vm10, %v4543_v55 }
 0xc22   :  { %v4545_v54 = vpop.permute.xlu0 %4544  ;;  %v5738_v41 = vpop.permute.xlu1 %5737 }
 0xc23   :  { %4611 = vst.msk [vmem:[#allocation2 + $0xf0] sm:$0xff] %vm4580_vm10, %v4545_v54 }
 0xc24   :  { %5825 = vst.msk [vmem:[#allocation2 + $0x48] sm:$0xff] %vm5815_vm11, %v5738_v41 }
 0xc26   :  { %v5740_v10 = vpop.permute.xlu0 %5739  ;;  %v4547_v49 = vpop.permute.xlu1 %4546  ;;  %v5856_v40 = vld [vmem:[#allocation2 + $0x40] sm:$0xff] }
 0xc27   :  { %5826 = vst.msk [vmem:[#allocation2 + $0x50] sm:$0xff] %vm5815_vm11, %v5740_v10 }
 0xc28   :  { %4612 = vst.msk [vmem:[#allocation2 + $0xf8] sm:$0xff] %vm4580_vm10, %v4547_v49 }
 0xc2a   :  { %v5776_v8 = vpop.permute.xlu0 %5775  ;;  %v5742_v48 = vpop.permute.xlu1 %5741 }
 0xc2b   :  { %v5857_v11 = vld [vmem:[#allocation2 + $0x48] sm:$0xff]  ;;  %5844 = vst.msk [vmem:[#allocation2 + $0xe0] sm:$0xff] %vm5815_vm11, %v5776_v8  ;;  %5827 = vst.msk [vmem:[#allocation2 + $0x58] sm:$0xff] %vm5815_vm11, %v5742_v48 }
 0xc2c   :  { %v5884_v46 = vpack.c.bf16 %v5857_v11, %v5856_v40 }
 0xc2e   :  { %7102 = vmatprep.mubr.msk.bf16.mxu0 %vm190_vm0, %v5884_v46  ;;  %v5780_v50 = vpop.permute.xlu0 %5779  ;;  %v5778_v51 = vpop.permute.xlu1 %5777  ;;  %v5858_v24 = vld [vmem:[#allocation2 + $0x50] sm:$0xff] }
 0xc2f   :  { %5846 = vst.msk [vmem:[#allocation2 + $0xf0] sm:$0xff] %vm5815_vm11, %v5780_v50  ;;  %5845 = vst.msk [vmem:[#allocation2 + $0xe8] sm:$0xff] %vm5815_vm11, %v5778_v51 }
 0xc32   :  { %v5782_v21 = vpop.permute.xlu1 %5781  ;;  %v5859_v25 = vld [vmem:[#allocation2 + $0x58] sm:$0xff]  ;;  %v5876_v17 = vld [vmem:[#allocation2 + $0xe0] sm:$0xff] }
 0xc33   :  { %5847 = vst.msk [vmem:[#allocation2 + $0xf8] sm:$0xff] %vm5815_vm11, %v5782_v21  ;;  %v5885_v37 = vpack.c.bf16 %v5859_v25, %v5858_v24 }
 0xc35   :  { %7103 = vmatmul.mubr.msk.bf16.gmra.mxu0 %vm190_vm0, %v5885_v37 }
 0xc36   :  { %v5877_v3 = vld [vmem:[#allocation2 + $0xe8] sm:$0xff]  ;;  %v5878_v2 = vld [vmem:[#allocation2 + $0xf0] sm:$0xff] }
 0xc37   :  { %v5894_v19 = vpack.c.bf16 %v5877_v3, %v5876_v17 }
 0xc39   :  { %7122 = vmatprep.mubr.msk.bf16.mxu1 %vm190_vm0, %v5894_v19 }
 0xc3a   :  { %v5879_v53 = vld [vmem:[#allocation2 + $0xf8] sm:$0xff] }
 0xc3b   :  { %v5895_v52 = vpack.c.bf16 %v5879_v53, %v5878_v2 }
 0xc3d   :  { %7123 = vmatmul.mubr.msk.bf16.gmra.mxu1 %vm190_vm0, %v5895_v52 }
 0xc56   :  { %v13105_v47 = vpop.f32.mrf.mxu1 }
 0xc57   :  { %v6058_v48 = vadd.f32 %v13105_v47, %v13130_v6 }
 0xc58   :  { %v6049_v59 = vpop.f32.mrf.mxu1 }
 0xc59   :  { %v6050_v10 = vadd.f32 %v13130_v6, %v6049_v59 }
 0xc5a   :  { %v13107_v58 = vpop.f32.mrf.mxu1 }
 0xc5b   :  { %v6061_v46 = vadd.f32 %v13107_v58, %v13130_v6 }
 0xc5c   :  { %v13109_v32 = vpop.f32.mrf.mxu1 }
 0xc5d   :  { %v6053_v40 = vadd.f32 %v13130_v6, %v13109_v32 }
 0xc6e   :  { %v13111_v60 = vpop.f32.mrf.mxu1 }
 0xc70   :  { %v13115_v16 = vpop.f32.mrf.mxu1 }
 0xc72   :  { %v13119_v7 = vpop.f32.mrf.mxu1 }
 0xc74   :  { %v13123_v31 = vpop.f32.mrf.mxu1 }
 0xc95   :  { %v13113_v13 = vpop.f32.mrf.mxu0 }
 0xc97   :  { %v13117_v9 = vpop.f32.mrf.mxu0 }
 0xc99   :  { %v13121_v28 = vpop.f32.mrf.mxu0 }
 0xc9b   :  { %v13125_v20 = vpop.f32.mrf.mxu0 }
 0xc9e   :  { %v7116_v34 = vpop.f32.mrf.mxu1 }
 0xc9f   :  { %v6090_v61 = vadd.f32 %v7116_v34, %v13130_v6 }
 0xca0   :  { %v6081_v42 = vpop.f32.mrf.mxu1 }
 0xca1   :  { %v6082_v44 = vadd.f32 %v13130_v6, %v6081_v42  ;;  %v6002_v42 = vadd.f32 %v13130_v6, %v13117_v9 }
 0xca2   :  { %v7117_v26 = vpop.f32.mrf.mxu1 }
 0xca3   :  { %v6093_v56 = vadd.f32 %v7117_v26, %v13130_v6  ;;  %v6010_v26 = vadd.f32 %v13113_v13, %v13130_v6  ;;  %v6013_v13 = vadd.f32 %v13121_v28, %v13130_v6  ;;  %v6069_v28 = vadd.f32 %v13130_v6, %v13123_v31 }
 0xca4   :  { %v6084_v27 = vpop.f32.mrf.mxu1 }
 0xca5   :  { %v6085_v15 = vadd.f32 %v13130_v6, %v6084_v27 }
 0xcc5   :  { %v7100_v38 = vpop.f32.mrf.mxu0 }
 0xcc6   :  { %v6026_v36 = vadd.f32 %v7100_v38, %v13130_v6 }
 0xcc7   :  { %v6017_v30 = vpop.f32.mrf.mxu0 }
 0xcc8   :  { %v6018_v63 = vadd.f32 %v13130_v6, %v6017_v30 }
 0xcc9   :  { %v7101_v12 = vpop.f32.mrf.mxu0 }
 0xcca   :  { %6132 = vrot.lane.b32.xlu0 %v6018_v63, %s8110_s3  ;;  %v6029_v33 = vadd.f32 %v7101_v12, %v13130_v6 }
 0xccb   :  { %v6020_v22 = vpop.f32.mrf.mxu0 }
 0xccc   :  { %v6021_v4 = vadd.f32 %v13130_v6, %v6020_v22 }
 0xcce   :  { %6134 = vrot.lane.b32.xlu1 %v6021_v4, %s8110_s3  ;;  %6136 = vrot.lane.b32.xlu0 %v6026_v36, %s8110_s3  ;;  %v7120_v18 = vpop.f32.mrf.mxu1 }
 0xccf   :  { %v6106_v55 = vadd.f32 %v7120_v18, %v13130_v6 }
 0xcd0   :  { %v6097_v14 = vpop.f32.mrf.mxu1 }
 0xcd1   :  { %v6098_v45 = vadd.f32 %v13130_v6, %v6097_v14 }
 0xcd2   :  { %6138 = vrot.lane.b32.xlu1 %v6029_v33, %s8110_s3  ;;  %6180 = vrot.lane.b32.xlu0 %v6082_v44, %s8110_s3  ;;  %v7121_v0 = vpop.f32.mrf.mxu1  ;;  %v6005_v44 = vadd.f32 %v13130_v6, %v13125_v20 }
 0xcd3   :  { %v6109_v49 = vadd.f32 %v7121_v0, %v13130_v6 }
 0xcd4   :  { %v6100_v57 = vpop.f32.mrf.mxu1 }
 0xcd5   :  { %v6101_v54 = vadd.f32 %v13130_v6, %v6100_v57 }
 0xcd6   :  { %6182 = vrot.lane.b32.xlu1 %v6085_v15, %s8110_s3  ;;  %6184 = vrot.lane.b32.xlu0 %v6090_v61, %s8110_s3 }
 0xcda   :  { %6186 = vrot.lane.b32.xlu1 %v6093_v56, %s8110_s3 }
 0xcf5   :  { %v7104_v5 = vpop.f32.mrf.mxu0 }
 0xcf6   :  { %v6042_v43 = vadd.f32 %v7104_v5, %v13130_v6  ;;  %v6066_v5 = vadd.f32 %v13130_v6, %v13115_v16  ;;  %v6074_v16 = vadd.f32 %v13111_v60, %v13130_v6  ;;  %v6077_v60 = vadd.f32 %v13119_v7, %v13130_v6 }
 0xcf7   :  { %v6033_v1 = vpop.f32.mrf.mxu0 }
 0xcf8   :  { %v6034_v29 = vadd.f32 %v13130_v6, %v6033_v1 }
 0xcf9   :  { %v7105_v35 = vpop.f32.mrf.mxu0 }
 0xcfa   :  { %6148 = vrot.lane.b32.xlu0 %v6034_v29, %s8103_s21  ;;  %v6045_v23 = vadd.f32 %v7105_v35, %v13130_v6 }
 0xcfb   :  { %v6036_v39 = vpop.f32.mrf.mxu0 }
 0xcfc   :  { %v6037_v62 = vadd.f32 %v13130_v6, %v6036_v39 }
 0xcfd   :  { %v7124_v41 = vpop.f32.mrf.mxu1 }
 0xcfe   :  { %6150 = vrot.lane.b32.xlu1 %v6037_v62, %s8103_s21  ;;  %6152 = vrot.lane.b32.xlu0 %v6042_v43, %s8103_s21  ;;  %v6122_v21 = vadd.f32 %v7124_v41, %v13130_v6 }
 0xcff   :  { %v6113_v8 = vpop.f32.mrf.mxu1 }
 0xd00   :  { %v6114_v50 = vadd.f32 %v13130_v6, %v6113_v8 }
 0xd01   :  { %v7125_v11 = vpop.f32.mrf.mxu1 }
 0xd02   :  { %6154 = vrot.lane.b32.xlu1 %v6045_v23, %s8103_s21  ;;  %6196 = vrot.lane.b32.xlu0 %v6098_v45, %s8103_s21  ;;  %v6125_v25 = vadd.f32 %v7125_v11, %v13130_v6 }
 0xd03   :  { %v6116_v51 = vpop.f32.mrf.mxu1 }
 0xd04   :  { %v6117_v24 = vadd.f32 %v13130_v6, %v6116_v51 }
 0xd06   :  { %6198 = vrot.lane.b32.xlu1 %v6101_v54, %s8103_s21  ;;  %6200 = vrot.lane.b32.xlu0 %v6106_v55, %s8103_s21 }
 0xd0a   :  { %6202 = vrot.lane.b32.xlu1 %v6109_v49, %s8103_s21  ;;  %6164 = vrot.lane.b32.xlu0 %v6050_v10, %s8109_s0  ;;  %s6263_s21 = sshll.u32 %s8123_s4, 4  ;;  %s6264_s21 = int_to_ptr.vmem [resolvable:$true] %s6263_s21 }
 0xd0b   :  { %s8076_s26 = scalar_lea.vmem %s6264_s21, 1024  ;;  %p8081_p2 = scmp.lt.s32.totalorder %s6264_s21, %s6264_s21 }
 0xd0c   :  { %p8077_p1 = scmp.ne.s32.totalorder %s6264_s21, %s8076_s26  ;;  %p8082_p3 = scmp.lt.s32.totalorder %s8076_s26, %s8076_s26 }
 0xd0e   :  { %6166 = vrot.lane.b32.xlu1 %v6053_v40, %s8109_s0  ;;  %6168 = vrot.lane.b32.xlu0 %v6058_v48, %s8109_s0  ;;  %p8083_p4 = por %p8082_p3, %p8081_p2 }
 0xd10   :  { %p8084_p5 = pnand %p8083_p4, %p8077_p1 }
 0xd12   :  { %6170 = vrot.lane.b32.xlu1 %v6061_v46, %s8109_s0  ;;  %6212 = vrot.lane.b32.xlu0 %v6114_v50, %s8109_s0 }
 0xd16   :  { %6214 = vrot.lane.b32.xlu1 %v6117_v24, %s8109_s0  ;;  %6216 = vrot.lane.b32.xlu0 %v6122_v21, %s8109_s0 }
 0xd1a   :  { %6218 = vrot.lane.b32.xlu1 %v6125_v25, %s8109_s0 }
 0xd3c   :  { %v6133_v37 = vpop.permute.xlu0 %6132 }
 0xd3d   :  { %v6224_v12 = vsel %vm190_vm0, %v6002_v42, %v6133_v37 }
 0xd40   :  { %v6135_v17 = vpop.permute.xlu1 %6134  ;;  %v6137_v3 = vpop.permute.xlu0 %6136 }
 0xd41   :  { %v6226_v27 = vsel %vm190_vm0, %v6010_v26, %v6137_v3  ;;  %v6225_v9 = vsel %vm190_vm0, %v6005_v44, %v6135_v17 }
 0xd44   :  { %v6139_v19 = vpop.permute.xlu1 %6138  ;;  %v6181_v2 = vpop.permute.xlu0 %6180 }
 0xd45   :  { %v6238_v29 = vsel %vm190_vm0, %v6066_v5, %v6181_v2  ;;  %v6227_v14 = vsel %vm190_vm0, %v6013_v13, %v6139_v19 }
 0xd48   :  { %v6183_v53 = vpop.permute.xlu1 %6182  ;;  %v6185_v52 = vpop.permute.xlu0 %6184 }
 0xd49   :  { %v6240_v23 = vsel %vm190_vm0, %v6074_v16, %v6185_v52  ;;  %v6239_v57 = vsel %vm190_vm0, %v6069_v28, %v6183_v53 }
 0xd4c   :  { %v6187_v47 = vpop.permute.xlu1 %6186 }
 0xd4d   :  { %v6241_v8 = vsel %vm190_vm0, %v6077_v60, %v6187_v47 }
 0xd6c   :  { %v6149_v59 = vpop.permute.xlu0 %6148 }
 0xd6d   :  { %v6229_v22 = vsel %vm6228_vm12, %v6224_v12, %v6149_v59 }
 0xd70   :  { %v6153_v58 = vpop.permute.xlu0 %6152  ;;  %v6151_v32 = vpop.permute.xlu1 %6150 }
 0xd71   :  { %v6231_v61 = vsel %vm6228_vm12, %v6226_v27, %v6153_v58  ;;  %v6230_v15 = vsel %vm6228_vm12, %v6225_v9, %v6151_v32 }
 0xd74   :  { %v6197_v34 = vpop.permute.xlu0 %6196  ;;  %v6155_v38 = vpop.permute.xlu1 %6154 }
 0xd75   :  { %v6242_v35 = vsel %vm6228_vm12, %v6238_v29, %v6197_v34  ;;  %v6232_v39 = vsel %vm6228_vm12, %v6227_v14, %v6155_v38 }
 0xd78   :  { %v6201_v30 = vpop.permute.xlu0 %6200  ;;  %v6199_v63 = vpop.permute.xlu1 %6198 }
 0xd79   :  { %v6244_v55 = vsel %vm6228_vm12, %v6240_v23, %v6201_v30  ;;  %v6243_v54 = vsel %vm6228_vm12, %v6239_v57, %v6199_v63 }
 0xd7c   :  { %v6165_v36 = vpop.permute.xlu0 %6164  ;;  %v6203_v4 = vpop.permute.xlu1 %6202 }
 0xd7d   :  { %v6234_v33 = vsel %vm6233_vm13, %v6229_v22, %v6165_v36  ;;  %v6245_v48 = vsel %vm6228_vm12, %v6241_v8, %v6203_v4 }
 0xd7e   :  { %6250 = vst [vmem:[#allocation9] sm:$0xff] %v6234_v33 }
 0xd80   :  { %v6169_v56 = vpop.permute.xlu0 %6168  ;;  %v6167_v18 = vpop.permute.xlu1 %6166 }
 0xd81   :  { %v6236_v20 = vsel %vm6233_vm13, %v6231_v61, %v6169_v56  ;;  %v6235_v1 = vsel %vm6233_vm13, %v6230_v15, %v6167_v18 }
 0xd82   :  { %6254 = vst [vmem:[#allocation9 + $0x20] sm:$0xff] %v6236_v20  ;;  %6252 = vst [vmem:[#allocation9 + $0x10] sm:$0xff] %v6235_v1 }
 0xd84   :  { %v6213_v43 = vpop.permute.xlu0 %6212  ;;  %v6171_v62 = vpop.permute.xlu1 %6170 }
 0xd85   :  { %v6246_v0 = vsel %vm6233_vm13, %v6242_v35, %v6213_v43  ;;  %v6237_v45 = vsel %vm6233_vm13, %v6232_v39, %v6171_v62 }
 0xd86   :  { %6251 = vst [vmem:[#allocation9 + $0x8] sm:$0xff] %v6246_v0  ;;  %6256 = vst [vmem:[#allocation9 + $0x30] sm:$0xff] %v6237_v45 }
 0xd88   :  { %v6217_v41 = vpop.permute.xlu0 %6216  ;;  %v6215_v10 = vpop.permute.xlu1 %6214 }
 0xd89   :  { %v6248_v31 = vsel %vm6233_vm13, %v6244_v55, %v6217_v41  ;;  %v6247_v49 = vsel %vm6233_vm13, %v6243_v54, %v6215_v10 }
 0xd8a   :  { %6255 = vst [vmem:[#allocation9 + $0x28] sm:$0xff] %v6248_v31  ;;  %6253 = vst [vmem:[#allocation9 + $0x18] sm:$0xff] %v6247_v49 }
 0xd8c   :  { %v6219_v40 = vpop.permute.xlu1 %6218 }
 0xd8d   :  { %v6249_v11 = vsel %vm6233_vm13, %v6245_v48, %v6219_v40 }
 0xd8e   :  { %6257 = vst [vmem:[#allocation9 + $0x38] sm:$0xff] %v6249_v11 }
 0xd8f   :  { %8087 = shalt.err (!%p8084_p5)
}
 0xd90   :  { %6269 = dma.vmem_to_hbm [thread:$0]  %s6264_s21, 1024, %s13234_s5, [#allocation5], %s8106_s28, %s8106_s28, %s8107_s29  }
 0xd91   :  { %8100 = dma.done.wait [#allocation5], 1024  }
 0xd92   :  { %8101 = vsyncadd [#allocation5], 4294966272 }
 0xd93   :  { %6273 = vsyncpa [#allocation4], 1 }
 0xd94   :  { %6274 = vsyncpa [#allocation7], 1 }
 0xd95   :  { %6275 = vsyncpa [#allocation5], 1 }

</bundles_post_ra>
